<compile_context>
chip_gen: v7x
topology: tpu7x:2x2x1
jax: 0.10.0
libtpu: 0.0.40
codegen_flags: <defaults>
</compile_context>

<pallas_src>
import jax
import jax.numpy as jnp
from jax.experimental import pallas as pl
from jax.experimental.pallas import tpu as pltpu

EPS = 1e-5          # PyTorch BatchNorm2d default eps
TM_MAX = 512        # row tile for large-M matmuls


def _pad_to(n, m):
    return ((n + m - 1) // m) * m


# --------------------------- fused matmul kernel -----------------------------

def _make_matmul_kernel(has_prologue, has_residual):
    """matmul + bias, with optional BN+ReLU prologue on A and an optional
    residual-add epilogue.  Elementwise math in f32; dot in bf16."""
    def kernel(*refs):
        idx = 0
        a_ref = refs[idx]; idx += 1
        b_ref = refs[idx]; idx += 1
        bias_ref = refs[idx]; idx += 1
        if has_prologue:
            scale_ref = refs[idx]; idx += 1
            shift_ref = refs[idx]; idx += 1
        if has_residual:
            res_ref = refs[idx]; idx += 1
        o_ref = refs[idx]

        a = a_ref[...]                                      # (TM, K) f32
        if has_prologue:
            a = jnp.maximum(a * scale_ref[...] + shift_ref[...], 0.0)
        acc = jnp.dot(a.astype(jnp.bfloat16), b_ref[...],
                      preferred_element_type=jnp.float32)   # (TM, N) f32
        acc = acc + bias_ref[...]
        if has_residual:
            acc = acc + res_ref[...]
        o_ref[...] = acc.astype(o_ref.dtype)
    return kernel


def fused_matmul(a, w_bf16, bias, *, scale=None, shift=None, residual=None):
    """a: (M, K) f32, w_bf16: (K, N) bf16, bias: (N,) f32 -> (M, N) f32.

    scale/shift: optional (K,) f32 per-column BN prologue (+ReLU) on `a`.
    residual:    optional (M, N) f32 added after the bias.
    """
    M, K = a.shape
    _, N = w_bf16.shape

    TM = TM_MAX if M > TM_MAX else _pad_to(max(M, 1), 8)
    Mp = _pad_to(M, TM)

    a_p = jnp.pad(a, ((0, Mp - M), (0, 0)))
    inputs = [a_p, w_bf16, bias.reshape(1, N).astype(jnp.float32)]
    in_specs = [
        pl.BlockSpec((TM, K), lambda i: (i, 0)),
        pl.BlockSpec((K, N), lambda i: (0, 0)),    # constant block: DMA'd once
        pl.BlockSpec((1, N), lambda i: (0, 0)),
    ]

    has_pro = scale is not None
    if has_pro:
        inputs += [scale.reshape(1, K).astype(jnp.float32),
                   shift.reshape(1, K).astype(jnp.float32)]
        in_specs += [pl.BlockSpec((1, K), lambda i: (0, 0)),
                     pl.BlockSpec((1, K), lambda i: (0, 0))]

    has_res = residual is not None
    if has_res:
        inputs.append(jnp.pad(residual, ((0, Mp - M), (0, 0))))
        in_specs.append(pl.BlockSpec((TM, N), lambda i: (i, 0)))

    out = pl.pallas_call(
        _make_matmul_kernel(has_pro, has_res),
        out_shape=jax.ShapeDtypeStruct((Mp, N), jnp.float32),
        grid_spec=pltpu.PrefetchScalarGridSpec(
            num_scalar_prefetch=0,
            grid=(Mp // TM,),
            in_specs=in_specs,
            out_specs=pl.BlockSpec((TM, N), lambda i: (i, 0)),
        ),
        compiler_params=pltpu.CompilerParams(
            dimension_semantics=("parallel",)),
    )(*inputs)
    return out[:M]


# ------------------ fused res-block front (shortcut + conv1) -----------------

def _res_front_kernel(cin):
    """One im2col A operand, two dots:
         sc = raw-center-tap-of-A @ w_sc + b_sc        (1x1 stride-2 shortcut)
         f  = relu(bn1(A)) @ w_c1 + b_c1               (3x3 stride-2 conv1)
    The center-tap columns of the 3x3/stride-2/pad-1 im2col are exactly the
    1x1/stride-2 input, and are never padded taps, so they hold raw x."""
    def kernel(a_ref, w1_ref, b1_ref, wsc_ref, bsc_ref, scale_ref, shift_ref,
               f_ref, sc_ref):
        # shortcut path: center tap (tap index 4 of 9), lane offset 4*cin is
        # 128-aligned for cin in {32, 64}.
        a_c = a_ref[:, 4 * cin:5 * cin]                     # (TM, Cin) f32
        sc = jnp.dot(a_c.astype(jnp.bfloat16), wsc_ref[...],
                     preferred_element_type=jnp.float32) + bsc_ref[...]
        # conv1( relu( bn1(x) ) )
        a = a_ref[...]                                      # (TM, 9*Cin) f32
        a_bn = jnp.maximum(a * scale_ref[...] + shift_ref[...], 0.0)
        f = jnp.dot(a_bn.astype(jnp.bfloat16), w1_ref[...],
                    preferred_element_type=jnp.float32) + b1_ref[...]
        f_ref[...] = f.astype(f_ref.dtype)
        sc_ref[...] = sc.astype(sc_ref.dtype)
    return kernel


def res_front_matmul(a, w1_bf16, b1, wsc_bf16, bsc, scale, shift, *, cin):
    """a: (M, 9*Cin) im2col of the raw block input (BN pad-value trick applied
    to the spatial padding).  Returns (f, sc), both (M, Cout) f32."""
    M, K = a.shape
    _, N = w1_bf16.shape

    TM = TM_MAX if M > TM_MAX else _pad_to(max(M, 1), 8)
    Mp = _pad_to(M, TM)
    a_p = jnp.pad(a, ((0, Mp - M), (0, 0)))

    inputs = [a_p, w1_bf16, b1.reshape(1, N).astype(jnp.float32),
              wsc_bf16, bsc.reshape(1, N).astype(jnp.float32),
              scale.reshape(1, K).astype(jnp.float32),
              shift.reshape(1, K).astype(jnp.float32)]
    in_specs = [
        pl.BlockSpec((TM, K), lambda i: (i, 0)),
        pl.BlockSpec((K, N), lambda i: (0, 0)),
        pl.BlockSpec((1, N), lambda i: (0, 0)),
        pl.BlockSpec((cin, N), lambda i: (0, 0)),
        pl.BlockSpec((1, N), lambda i: (0, 0)),
        pl.BlockSpec((1, K), lambda i: (0, 0)),
        pl.BlockSpec((1, K), lambda i: (0, 0)),
    ]

    f, sc = pl.pallas_call(
        _res_front_kernel(cin),
        out_shape=(jax.ShapeDtypeStruct((Mp, N), jnp.float32),
                   jax.ShapeDtypeStruct((Mp, N), jnp.float32)),
        grid_spec=pltpu.PrefetchScalarGridSpec(
            num_scalar_prefetch=0,
            grid=(Mp // TM,),
            in_specs=in_specs,
            out_specs=[pl.BlockSpec((TM, N), lambda i: (i, 0)),
                       pl.BlockSpec((TM, N), lambda i: (i, 0))],
        ),
        compiler_params=pltpu.CompilerParams(
            dimension_semantics=("parallel",)),
    )(*inputs)
    return f[:M], sc[:M]


# -------------------------- fused FC head (fc1+fc2) ---------------------------

def _fc_head_kernel(a_ref, w1_ref, b1_ref, w2_ref, b2_ref, o_ref):
    h = jnp.dot(a_ref[...].astype(jnp.bfloat16), w1_ref[...],
                preferred_element_type=jnp.float32) + b1_ref[...]
    # TODO(synk): nn.Dropout(0.5) is identity in eval mode; training-mode RNG
    # dropout intentionally not modeled.
    z = jnp.dot(h.astype(jnp.bfloat16), w2_ref[...],
                preferred_element_type=jnp.float32) + b2_ref[...]
    m = jnp.max(z, axis=-1, keepdims=True)
    e = jnp.exp(z - m)
    o_ref[...] = (e / jnp.sum(e, axis=-1, keepdims=True)).astype(o_ref.dtype)


def fc_head(a, w1_bf16, b1, w2_bf16, b2):
    """a: (M, 1536) -> softmax(fc2(fc1(a))) : (M, 4), all in one kernel so the
    512-wide hidden activation never touches HBM."""
    M, K = a.shape
    H = w1_bf16.shape[1]
    N = w2_bf16.shape[1]
    Mp = _pad_to(max(M, 1), 8)
    a_p = jnp.pad(a, ((0, Mp - M), (0, 0)))

    out = pl.pallas_call(
        _fc_head_kernel,
        out_shape=jax.ShapeDtypeStruct((Mp, N), jnp.float32),
        grid_spec=pltpu.PrefetchScalarGridSpec(
            num_scalar_prefetch=0,
            grid=(1,),
            in_specs=[pl.BlockSpec((Mp, K), lambda i: (0, 0)),
                      pl.BlockSpec((K, H), lambda i: (0, 0)),
                      pl.BlockSpec((1, H), lambda i: (0, 0)),
                      pl.BlockSpec((H, N), lambda i: (0, 0)),
                      pl.BlockSpec((1, N), lambda i: (0, 0))],
            out_specs=pl.BlockSpec((Mp, N), lambda i: (0, 0)),
        ),
    )(a_p, w1_bf16, b1.reshape(1, H).astype(jnp.float32),
      w2_bf16, b2.reshape(1, N).astype(jnp.float32))
    return out[:M]


# ------------------------------- conv helpers ---------------------------------

def _im2col(x_nhwc, kh, kw, stride, padding, pad_value_per_c=None):
    """Build the (N*Ho*Wo, kh*kw*Cin) im2col matrix (tap-major, channel-minor).
    If pad_value_per_c is given, spatial padding uses that per-channel value
    (so a BN prologue maps padded taps to relu(0) == 0)."""
    N, H, W, Cin = x_nhwc.shape
    Ho = (H + 2 * padding - kh) // stride + 1
    Wo = (W + 2 * padding - kw) // stride + 1

    if padding > 0:
        if pad_value_per_c is not None:
            xp = jnp.pad(x_nhwc - pad_value_per_c,
                         ((0, 0), (padding, padding), (padding, padding), (0, 0))
                         ) + pad_value_per_c
        else:
            xp = jnp.pad(x_nhwc,
                         ((0, 0), (padding, padding), (padding, padding), (0, 0)))
    else:
        xp = x_nhwc

    cols = []
    for dy in range(kh):
        for dx in range(kw):
            cols.append(xp[:, dy:dy + stride * (Ho - 1) + 1:stride,
                           dx:dx + stride * (Wo - 1) + 1:stride, :])
    patches = cols[0] if len(cols) == 1 else jnp.concatenate(cols, axis=-1)
    return patches.reshape(N * Ho * Wo, kh * kw * Cin), (N, Ho, Wo)


def _conv_weight_matrix(w):
    """(Cout, Cin, Kh, Kw) torch layout -> (Kh*Kw*Cin, Cout) bf16 matmul RHS,
    rows ordered to match _im2col columns."""
    Cout, Cin, Kh, Kw = w.shape
    return jnp.transpose(w, (2, 3, 1, 0)).reshape(Kh * Kw * Cin, Cout
                                                  ).astype(jnp.bfloat16)


def conv2d_fused(x_nhwc, w, b, stride, padding, bn_scale=None, bn_shift=None,
                 residual_nhwc=None):
    """Conv2d via im2col + fused Pallas matmul.  With bn_scale/bn_shift the
    kernel computes conv( relu( bn(x) ) ); residual_nhwc is added in the
    epilogue."""
    Cout, Cin, Kh, Kw = w.shape

    pv = None
    if bn_scale is not None and padding > 0:
        safe = jnp.where(bn_scale != 0.0, bn_scale, 1.0)
        pv = jnp.where(bn_scale != 0.0, -bn_shift / safe, 0.0)      # (Cin,)

    a, (N, Ho, Wo) = _im2col(x_nhwc, Kh, Kw, stride, padding, pad_value_per_c=pv)
    wm = _conv_weight_matrix(w)

    scale_cols = None if bn_scale is None else jnp.tile(bn_scale, Kh * Kw)
    shift_cols = None if bn_shift is None else jnp.tile(bn_shift, Kh * Kw)
    res2d = None if residual_nhwc is None else residual_nhwc.reshape(
        N * Ho * Wo, Cout)

    out = fused_matmul(a, wm, b, scale=scale_cols, shift=shift_cols,
                       residual=res2d)
    return out.reshape(N, Ho, Wo, Cout)


# ------------------------------ non-matmul glue -------------------------------

def maxpool_3x3_s2(x_nhwc):
    """MaxPool2d(3, stride=2, padding=0) as a running max over 9 shifted views
    (single fused XLA elementwise pass; no 9x-stacked HBM tensor)."""
    N, H, W, C = x_nhwc.shape
    Ho, Wo = (H - 3) // 2 + 1, (W - 3) // 2 + 1
    out = None
    for dy in range(3):
        for dx in range(3):
            v = x_nhwc[:, dy:dy + 2 * (Ho - 1) + 1:2,
                       dx:dx + 2 * (Wo - 1) + 1:2, :]
            out = v if out is None else jnp.maximum(out, v)
    return out


# --------------------------------- network -----------------------------------

def _bn_affine(bn_params):
    gamma, beta, mean, var = bn_params
    scale = gamma / jnp.sqrt(var + EPS)
    shift = beta - mean * scale
    return scale, shift


def res_block(x_nhwc, p):
    Cin = x_nhwc.shape[-1]
    Cout = p["conv1_w"].shape[0]
    scale1, shift1 = _bn_affine(p["bn1"])
    scale2, shift2 = _bn_affine(p["bn2"])

    # One im2col of the raw block input serves BOTH the shortcut (center tap,
    # raw values) and conv1 (BN1+ReLU prologue inside the kernel).
    safe = jnp.where(scale1 != 0.0, scale1, 1.0)
    pv = jnp.where(scale1 != 0.0, -shift1 / safe, 0.0)                # (Cin,)
    a, (N, Ho, Wo) = _im2col(x_nhwc, 3, 3, stride=2, padding=1,
                             pad_value_per_c=pv)

    w1 = _conv_weight_matrix(p["conv1_w"])                            # (9Cin, Cout)
    wsc = _conv_weight_matrix(p["conv_out_w"])                        # (Cin, Cout)
    scale_cols = jnp.tile(scale1, 9)
    shift_cols = jnp.tile(shift1, 9)

    f2d, sc2d = res_front_matmul(a, w1, p["conv1_b"], wsc, p["conv_out_b"],
                                 scale_cols, shift_cols, cin=Cin)
    f = f2d.reshape(N, Ho, Wo, Cout)
    sc = sc2d.reshape(N, Ho, Wo, Cout)

    # conv2( relu( bn2(f) ) ) + shortcut  -- BN2+ReLU prologue, residual epilogue
    out = conv2d_fused(f, p["conv2_w"], p["conv2_b"], stride=1, padding=1,
                       bn_scale=scale2, bn_shift=shift2, residual_nhwc=sc)
    return out


def resnet8_forward(x_nchw, params):
    x = jnp.transpose(x_nchw, (0, 2, 3, 1))                  # NCHW -> NHWC
    x = conv2d_fused(x, params["conv1_w"], params["conv1_b"],
                     stride=2, padding=2)
    x = maxpool_3x3_s2(x)
    x = res_block(x, params["res1"])
    x = res_block(x, params["res2"])
    x = res_block(x, params["res3"])
    # torch.flatten(x, 1) flattens NCHW order -> transpose back first.
    x = jnp.transpose(x, (0, 3, 1, 2)).reshape(x.shape[0], -1)   # (N, 1536)
    # Fused fc1 -> dropout(eval) -> fc2 -> softmax head (single kernel).
    x = fc_head(x,
                params["fc1_w"].T.astype(jnp.bfloat16), params["fc1_b"],
                params["fc2_w"].T.astype(jnp.bfloat16), params["fc2_b"])
    return x


# ------------------------------ parameter init --------------------------------

def init_params(key):
    keys = iter(jax.random.split(key, 128))

    def conv_p(cin, cout, k):
        fan_in = cin * k * k
        w = jax.random.normal(next(keys), (cout, cin, k, k), jnp.float32) / jnp.sqrt(fan_in)
        b = 0.01 * jax.random.normal(next(keys), (cout,), jnp.float32)
        return w, b

    def bn_p(c):
        gamma = 1.0 + 0.1 * jax.random.normal(next(keys), (c,), jnp.float32)
        beta = 0.1 * jax.random.normal(next(keys), (c,), jnp.float32)
        mean = 0.1 * jax.random.normal(next(keys), (c,), jnp.float32)
        var = 1.0 + 0.1 * jnp.abs(jax.random.normal(next(keys), (c,), jnp.float32))
        return (gamma, beta, mean, var)

    def res_p(cin, cout):
        c1w, c1b = conv_p(cin, cout, 3)
        c2w, c2b = conv_p(cout, cout, 3)
        cow, cob = conv_p(cin, cout, 1)
        return dict(bn1=bn_p(cin), bn2=bn_p(cout),
                    conv1_w=c1w, conv1_b=c1b,
                    conv2_w=c2w, conv2_b=c2b,
                    conv_out_w=cow, conv_out_b=cob)

    def fc_p(cin, cout):
        w = jax.random.normal(next(keys), (cout, cin), jnp.float32) / jnp.sqrt(cin)
        b = 0.01 * jax.random.normal(next(keys), (cout,), jnp.float32)
        return w, b

    c1w, c1b = conv_p(3, 32, 5)
    fc1w, fc1b = fc_p(1536, 512)
    fc2w, fc2b = fc_p(512, 4)
    return dict(conv1_w=c1w, conv1_b=c1b,
                res1=res_p(32, 32), res2=res_p(32, 64), res3=res_p(64, 128),
                fc1_w=fc1w, fc1_b=fc1b, fc2_w=fc2w, fc2_b=fc2b)


if __name__ == "__main__":
    key = jax.random.PRNGKey(0)
    kx, kp = jax.random.split(key)
    # (batch=2, C=3, H=120, W=90): the smallest "natural" input for which the
    # res3 feature map is 128 x 4 x 3 = 1536, matching nn.Linear(1536, 512).
    x = jax.random.normal(kx, (2, 3, 120, 90), jnp.float32)
    params = init_params(kp)

    forward = jax.jit(resnet8_forward)
    out = forward(x, params)
    out = jax.block_until_ready(out)

    assert out.shape == (2, 4)
    assert bool(jnp.all(jnp.isfinite(out)))
    # softmax rows sum to 1
    assert bool(jnp.allclose(jnp.sum(out, axis=1), 1.0, atol=1e-5))
    print("KERNEL_OK")
</pallas_src>

<mosaic_0001>
module attributes {stable_mosaic.version = 11 : i64} {
  func.func @kernel(%arg0: i32, %arg1: memref<512x75xf32, #tpu.memory_space<vmem>>, %arg2: memref<75x32xbf16, #tpu.memory_space<vmem>>, %arg3: memref<1x32xf32, #tpu.memory_space<vmem>>, %arg4: memref<512x32xf32, #tpu.memory_space<vmem>>) attributes {dimension_semantics = [#tpu.dimension_semantics<parallel>], iteration_bounds = array<i64: 11>, scalar_prefetch = 0 : i64, scratch_operands = 0 : i64, tpu.core_type = #tpu.core_type<tc>, window_params = [{transform_indices = @transform_0, window_bounds = array<i64: 512, 75>}, {pipeline_mode = #tpu.pipeline_mode<synchronous>, transform_indices = @transform_1, window_bounds = array<i64: 75, 32>}, {pipeline_mode = #tpu.pipeline_mode<synchronous>, transform_indices = @transform_2, window_bounds = array<i64: 1, 32>}, {transform_indices = @transform_3, window_bounds = array<i64: 512, 32>}]} {
    %c0 = arith.constant 0 : index
    %c0_0 = arith.constant 0 : index
    %0 = vector.load %arg1[%c0, %c0_0] : memref<512x75xf32, #tpu.memory_space<vmem>>, vector<512x75xf32>
    %1 = arith.truncf %0 : vector<512x75xf32> to vector<512x75xbf16>
    %c0_1 = arith.constant 0 : index
    %c0_2 = arith.constant 0 : index
    %2 = vector.load %arg2[%c0_1, %c0_2] : memref<75x32xbf16, #tpu.memory_space<vmem>>, vector<75x32xbf16>
    %cst = arith.constant dense<0.000000e+00> : vector<512x32xf32>
    %3 = tpu.matmul %1, %2, %cst {dimension_numbers = #tpu.dot_dimension_numbers<[1], [0], [0], [1], [0, 0, 1, 1], [], []>} : vector<512x75xbf16>, vector<75x32xbf16>, vector<512x32xf32> -> vector<512x32xf32>
    %c0_3 = arith.constant 0 : index
    %c0_4 = arith.constant 0 : index
    %4 = vector.load %arg3[%c0_3, %c0_4] : memref<1x32xf32, #tpu.memory_space<vmem>>, vector<1x32xf32>
    %5 = vector.broadcast %4 : vector<1x32xf32> to vector<512x32xf32>
    %6 = arith.addf %3, %5 : vector<512x32xf32>
    %c0_5 = arith.constant 0 : index
    %c0_6 = arith.constant 0 : index
    %7 = vector.load %arg4[%c0_5, %c0_6] : memref<512x32xf32, #tpu.memory_space<vmem>>, vector<512x32xf32>
    tpu.vector_store %arg4[%c0_5, %c0_6], %6 {strides = array<i32>} : memref<512x32xf32, #tpu.memory_space<vmem>>, vector<512x32xf32>,
    return
  }
  func.func @transform_0(%arg0: i32) -> (i32, i32) {
    %c0_i32 = arith.constant 0 : i32
    %c0_i32_0 = arith.constant 0 : i32
    return %arg0, %c0_i32 : i32, i32
  }
  func.func @transform_1(%arg0: i32) -> (i32, i32) {
    %c0_i32 = arith.constant 0 : i32
    %c0_i32_0 = arith.constant 0 : i32
    %c0_i32_1 = arith.constant 0 : i32
    return %c0_i32, %c0_i32_0 : i32, i32
  }
  func.func @transform_2(%arg0: i32) -> (i32, i32) {
    %c0_i32 = arith.constant 0 : i32
    %c0_i32_0 = arith.constant 0 : i32
    %c0_i32_1 = arith.constant 0 : i32
    return %c0_i32, %c0_i32_0 : i32, i32
  }
  func.func @transform_3(%arg0: i32) -> (i32, i32) {
    %c0_i32 = arith.constant 0 : i32
    %c0_i32_0 = arith.constant 0 : i32
    return %arg0, %c0_i32 : i32, i32
  }
}

module attributes {stable_mosaic.version = 11 : i64} {
  func.func @kernel(%arg0: i32, %arg1: memref<336x288xf32, #tpu.memory_space<vmem>>, %arg2: memref<288x32xbf16, #tpu.memory_space<vmem>>, %arg3: memref<1x32xf32, #tpu.memory_space<vmem>>, %arg4: memref<32x32xbf16, #tpu.memory_space<vmem>>, %arg5: memref<1x32xf32, #tpu.memory_space<vmem>>, %arg6: memref<1x288xf32, #tpu.memory_space<vmem>>, %arg7: memref<1x288xf32, #tpu.memory_space<vmem>>, %arg8: memref<336x32xf32, #tpu.memory_space<vmem>>, %arg9: memref<336x32xf32, #tpu.memory_space<vmem>>) attributes {dimension_semantics = [#tpu.dimension_semantics<parallel>], iteration_bounds = array<i64: 1>, scalar_prefetch = 0 : i64, scratch_operands = 0 : i64, tpu.core_type = #tpu.core_type<tc>, window_params = [{transform_indices = @transform_0, window_bounds = array<i64: 336, 288>}, {pipeline_mode = #tpu.pipeline_mode<synchronous>, transform_indices = @transform_1, window_bounds = array<i64: 288, 32>}, {pipeline_mode = #tpu.pipeline_mode<synchronous>, transform_indices = @transform_2, window_bounds = array<i64: 1, 32>}, {pipeline_mode = #tpu.pipeline_mode<synchronous>, transform_indices = @transform_3, window_bounds = array<i64: 32, 32>}, {pipeline_mode = #tpu.pipeline_mode<synchronous>, transform_indices = @transform_4, window_bounds = array<i64: 1, 32>}, {pipeline_mode = #tpu.pipeline_mode<synchronous>, transform_indices = @transform_5, window_bounds = array<i64: 1, 288>}, {pipeline_mode = #tpu.pipeline_mode<synchronous>, transform_indices = @transform_6, window_bounds = array<i64: 1, 288>}, {transform_indices = @transform_7, window_bounds = array<i64: 336, 32>}, {transform_indices = @transform_8, window_bounds = array<i64: 336, 32>}]} {
    %c0 = arith.constant 0 : index
    %c128 = arith.constant 128 : index
    %0 = vector.load %arg1[%c0, %c128] : memref<336x288xf32, #tpu.memory_space<vmem>>, vector<336x32xf32>
    %1 = arith.truncf %0 : vector<336x32xf32> to vector<336x32xbf16>
    %c0_0 = arith.constant 0 : index
    %c0_1 = arith.constant 0 : index
    %2 = vector.load %arg4[%c0_0, %c0_1] : memref<32x32xbf16, #tpu.memory_space<vmem>>, vector<32x32xbf16>
    %cst = arith.constant dense<0.000000e+00> : vector<336x32xf32>
    %3 = tpu.matmul %1, %2, %cst {dimension_numbers = #tpu.dot_dimension_numbers<[1], [0], [0], [1], [0, 0, 1, 1], [], []>} : vector<336x32xbf16>, vector<32x32xbf16>, vector<336x32xf32> -> vector<336x32xf32>
    %c0_2 = arith.constant 0 : index
    %c0_3 = arith.constant 0 : index
    %4 = vector.load %arg5[%c0_2, %c0_3] : memref<1x32xf32, #tpu.memory_space<vmem>>, vector<1x32xf32>
    %5 = vector.broadcast %4 : vector<1x32xf32> to vector<336x32xf32>
    %6 = arith.addf %3, %5 : vector<336x32xf32>
    %c0_4 = arith.constant 0 : index
    %c0_5 = arith.constant 0 : index
    %7 = vector.load %arg1[%c0_4, %c0_5] : memref<336x288xf32, #tpu.memory_space<vmem>>, vector<336x288xf32>
    %c0_6 = arith.constant 0 : index
    %c0_7 = arith.constant 0 : index
    %8 = vector.load %arg6[%c0_6, %c0_7] : memref<1x288xf32, #tpu.memory_space<vmem>>, vector<1x288xf32>
    %9 = vector.broadcast %8 : vector<1x288xf32> to vector<336x288xf32>
    %10 = arith.mulf %7, %9 : vector<336x288xf32>
    %c0_8 = arith.constant 0 : index
    %c0_9 = arith.constant 0 : index
    %11 = vector.load %arg7[%c0_8, %c0_9] : memref<1x288xf32, #tpu.memory_space<vmem>>, vector<1x288xf32>
    %12 = vector.broadcast %11 : vector<1x288xf32> to vector<336x288xf32>
    %13 = arith.addf %10, %12 : vector<336x288xf32>
    %cst_10 = arith.constant 0.000000e+00 : f32
    %14 = vector.broadcast %cst_10 : f32 to vector<336x288xf32>
    %15 = arith.maximumf %13, %14 : vector<336x288xf32>
    %16 = arith.truncf %15 : vector<336x288xf32> to vector<336x288xbf16>
    %c0_11 = arith.constant 0 : index
    %c0_12 = arith.constant 0 : index
    %17 = vector.load %arg2[%c0_11, %c0_12] : memref<288x32xbf16, #tpu.memory_space<vmem>>, vector<288x32xbf16>
    %cst_13 = arith.constant dense<0.000000e+00> : vector<336x32xf32>
    %18 = tpu.matmul %16, %17, %cst_13 {dimension_numbers = #tpu.dot_dimension_numbers<[1], [0], [0], [1], [0, 0, 1, 1], [], []>} : vector<336x288xbf16>, vector<288x32xbf16>, vector<336x32xf32> -> vector<336x32xf32>
    %c0_14 = arith.constant 0 : index
    %c0_15 = arith.constant 0 : index
    %19 = vector.load %arg3[%c0_14, %c0_15] : memref<1x32xf32, #tpu.memory_space<vmem>>, vector<1x32xf32>
    %20 = vector.broadcast %19 : vector<1x32xf32> to vector<336x32xf32>
    %21 = arith.addf %18, %20 : vector<336x32xf32>
    %c0_16 = arith.constant 0 : index
    %c0_17 = arith.constant 0 : index
    %22 = vector.load %arg8[%c0_16, %c0_17] : memref<336x32xf32, #tpu.memory_space<vmem>>, vector<336x32xf32>
    tpu.vector_store %arg8[%c0_16, %c0_17], %21 {strides = array<i32>} : memref<336x32xf32, #tpu.memory_space<vmem>>, vector<336x32xf32>,
    %c0_18 = arith.constant 0 : index
    %c0_19 = arith.constant 0 : index
    %23 = vector.load %arg9[%c0_18, %c0_19] : memref<336x32xf32, #tpu.memory_space<vmem>>, vector<336x32xf32>
    tpu.vector_store %arg9[%c0_18, %c0_19], %6 {strides = array<i32>} : memref<336x32xf32, #tpu.memory_space<vmem>>, vector<336x32xf32>,
    return
  }
  func.func @transform_0(%arg0: i32) -> (i32, i32) {
    %c0_i32 = arith.constant 0 : i32
    %c0_i32_0 = arith.constant 0 : i32
    return %arg0, %c0_i32 : i32, i32
  }
  func.func @transform_1(%arg0: i32) -> (i32, i32) {
    %c0_i32 = arith.constant 0 : i32
    %c0_i32_0 = arith.constant 0 : i32
    %c0_i32_1 = arith.constant 0 : i32
    return %c0_i32, %c0_i32_0 : i32, i32
  }
  func.func @transform_2(%arg0: i32) -> (i32, i32) {
    %c0_i32 = arith.constant 0 : i32
    %c0_i32_0 = arith.constant 0 : i32
    %c0_i32_1 = arith.constant 0 : i32
    return %c0_i32, %c0_i32_0 : i32, i32
  }
  func.func @transform_3(%arg0: i32) -> (i32, i32) {
    %c0_i32 = arith.constant 0 : i32
    %c0_i32_0 = arith.constant 0 : i32
    %c0_i32_1 = arith.constant 0 : i32
    return %c0_i32, %c0_i32_0 : i32, i32
  }
  func.func @transform_4(%arg0: i32) -> (i32, i32) {
    %c0_i32 = arith.constant 0 : i32
    %c0_i32_0 = arith.constant 0 : i32
    %c0_i32_1 = arith.constant 0 : i32
    return %c0_i32, %c0_i32_0 : i32, i32
  }
  func.func @transform_5(%arg0: i32) -> (i32, i32) {
    %c0_i32 = arith.constant 0 : i32
    %c0_i32_0 = arith.constant 0 : i32
    %c0_i32_1 = arith.constant 0 : i32
    return %c0_i32, %c0_i32_0 : i32, i32
  }
  func.func @transform_6(%arg0: i32) -> (i32, i32) {
    %c0_i32 = arith.constant 0 : i32
    %c0_i32_0 = arith.constant 0 : i32
    %c0_i32_1 = arith.constant 0 : i32
    return %c0_i32, %c0_i32_0 : i32, i32
  }
  func.func @transform_7(%arg0: i32) -> (i32, i32) {
    %c0_i32 = arith.constant 0 : i32
    %c0_i32_0 = arith.constant 0 : i32
    return %arg0, %c0_i32 : i32, i32
  }
  func.func @transform_8(%arg0: i32) -> (i32, i32) {
    %c0_i32 = arith.constant 0 : i32
    %c0_i32_0 = arith.constant 0 : i32
    return %arg0, %c0_i32 : i32, i32
  }
}

module attributes {stable_mosaic.version = 11 : i64} {
  func.func @kernel(%arg0: i32, %arg1: memref<336x288xf32, #tpu.memory_space<vmem>>, %arg2: memref<288x32xbf16, #tpu.memory_space<vmem>>, %arg3: memref<1x32xf32, #tpu.memory_space<vmem>>, %arg4: memref<1x288xf32, #tpu.memory_space<vmem>>, %arg5: memref<1x288xf32, #tpu.memory_space<vmem>>, %arg6: memref<336x32xf32, #tpu.memory_space<vmem>>, %arg7: memref<336x32xf32, #tpu.memory_space<vmem>>) attributes {dimension_semantics = [#tpu.dimension_semantics<parallel>], iteration_bounds = array<i64: 1>, scalar_prefetch = 0 : i64, scratch_operands = 0 : i64, tpu.core_type = #tpu.core_type<tc>, window_params = [{transform_indices = @transform_0, window_bounds = array<i64: 336, 288>}, {pipeline_mode = #tpu.pipeline_mode<synchronous>, transform_indices = @transform_1, window_bounds = array<i64: 288, 32>}, {pipeline_mode = #tpu.pipeline_mode<synchronous>, transform_indices = @transform_2, window_bounds = array<i64: 1, 32>}, {pipeline_mode = #tpu.pipeline_mode<synchronous>, transform_indices = @transform_3, window_bounds = array<i64: 1, 288>}, {pipeline_mode = #tpu.pipeline_mode<synchronous>, transform_indices = @transform_4, window_bounds = array<i64: 1, 288>}, {transform_indices = @transform_5, window_bounds = array<i64: 336, 32>}, {transform_indices = @transform_6, window_bounds = array<i64: 336, 32>}]} {
    %c0 = arith.constant 0 : index
    %c0_0 = arith.constant 0 : index
    %0 = vector.load %arg1[%c0, %c0_0] : memref<336x288xf32, #tpu.memory_space<vmem>>, vector<336x288xf32>
    %c0_1 = arith.constant 0 : index
    %c0_2 = arith.constant 0 : index
    %1 = vector.load %arg4[%c0_1, %c0_2] : memref<1x288xf32, #tpu.memory_space<vmem>>, vector<1x288xf32>
    %2 = vector.broadcast %1 : vector<1x288xf32> to vector<336x288xf32>
    %3 = arith.mulf %0, %2 : vector<336x288xf32>
    %c0_3 = arith.constant 0 : index
    %c0_4 = arith.constant 0 : index
    %4 = vector.load %arg5[%c0_3, %c0_4] : memref<1x288xf32, #tpu.memory_space<vmem>>, vector<1x288xf32>
    %5 = vector.broadcast %4 : vector<1x288xf32> to vector<336x288xf32>
    %6 = arith.addf %3, %5 : vector<336x288xf32>
    %cst = arith.constant 0.000000e+00 : f32
    %7 = vector.broadcast %cst : f32 to vector<336x288xf32>
    %8 = arith.maximumf %6, %7 : vector<336x288xf32>
    %9 = arith.truncf %8 : vector<336x288xf32> to vector<336x288xbf16>
    %c0_5 = arith.constant 0 : index
    %c0_6 = arith.constant 0 : index
    %10 = vector.load %arg2[%c0_5, %c0_6] : memref<288x32xbf16, #tpu.memory_space<vmem>>, vector<288x32xbf16>
    %cst_7 = arith.constant dense<0.000000e+00> : vector<336x32xf32>
    %11 = tpu.matmul %9, %10, %cst_7 {dimension_numbers = #tpu.dot_dimension_numbers<[1], [0], [0], [1], [0, 0, 1, 1], [], []>} : vector<336x288xbf16>, vector<288x32xbf16>, vector<336x32xf32> -> vector<336x32xf32>
    %c0_8 = arith.constant 0 : index
    %c0_9 = arith.constant 0 : index
    %12 = vector.load %arg3[%c0_8, %c0_9] : memref<1x32xf32, #tpu.memory_space<vmem>>, vector<1x32xf32>
    %13 = vector.broadcast %12 : vector<1x32xf32> to vector<336x32xf32>
    %14 = arith.addf %11, %13 : vector<336x32xf32>
    %c0_10 = arith.constant 0 : index
    %c0_11 = arith.constant 0 : index
    %15 = vector.load %arg6[%c0_10, %c0_11] : memref<336x32xf32, #tpu.memory_space<vmem>>, vector<336x32xf32>
    %16 = arith.addf %14, %15 : vector<336x32xf32>
    %c0_12 = arith.constant 0 : index
    %c0_13 = arith.constant 0 : index
    %17 = vector.load %arg7[%c0_12, %c0_13] : memref<336x32xf32, #tpu.memory_space<vmem>>, vector<336x32xf32>
    tpu.vector_store %arg7[%c0_12, %c0_13], %16 {strides = array<i32>} : memref<336x32xf32, #tpu.memory_space<vmem>>, vector<336x32xf32>,
    return
  }
  func.func @transform_0(%arg0: i32) -> (i32, i32) {
    %c0_i32 = arith.constant 0 : i32
    %c0_i32_0 = arith.constant 0 : i32
    return %arg0, %c0_i32 : i32, i32
  }
  func.func @transform_1(%arg0: i32) -> (i32, i32) {
    %c0_i32 = arith.constant 0 : i32
    %c0_i32_0 = arith.constant 0 : i32
    %c0_i32_1 = arith.constant 0 : i32
    return %c0_i32, %c0_i32_0 : i32, i32
  }
  func.func @transform_2(%arg0: i32) -> (i32, i32) {
    %c0_i32 = arith.constant 0 : i32
    %c0_i32_0 = arith.constant 0 : i32
    %c0_i32_1 = arith.constant 0 : i32
    return %c0_i32, %c0_i32_0 : i32, i32
  }
  func.func @transform_3(%arg0: i32) -> (i32, i32) {
    %c0_i32 = arith.constant 0 : i32
    %c0_i32_0 = arith.constant 0 : i32
    %c0_i32_1 = arith.constant 0 : i32
    return %c0_i32, %c0_i32_0 : i32, i32
  }
  func.func @transform_4(%arg0: i32) -> (i32, i32) {
    %c0_i32 = arith.constant 0 : i32
    %c0_i32_0 = arith.constant 0 : i32
    %c0_i32_1 = arith.constant 0 : i32
    return %c0_i32, %c0_i32_0 : i32, i32
  }
  func.func @transform_5(%arg0: i32) -> (i32, i32) {
    %c0_i32 = arith.constant 0 : i32
    %c0_i32_0 = arith.constant 0 : i32
    return %arg0, %c0_i32 : i32, i32
  }
  func.func @transform_6(%arg0: i32) -> (i32, i32) {
    %c0_i32 = arith.constant 0 : i32
    %c0_i32_0 = arith.constant 0 : i32
    return %arg0, %c0_i32 : i32, i32
  }
}

module attributes {stable_mosaic.version = 11 : i64} {
  func.func @kernel(%arg0: i32, %arg1: memref<96x288xf32, #tpu.memory_space<vmem>>, %arg2: memref<288x64xbf16, #tpu.memory_space<vmem>>, %arg3: memref<1x64xf32, #tpu.memory_space<vmem>>, %arg4: memref<32x64xbf16, #tpu.memory_space<vmem>>, %arg5: memref<1x64xf32, #tpu.memory_space<vmem>>, %arg6: memref<1x288xf32, #tpu.memory_space<vmem>>, %arg7: memref<1x288xf32, #tpu.memory_space<vmem>>, %arg8: memref<96x64xf32, #tpu.memory_space<vmem>>, %arg9: memref<96x64xf32, #tpu.memory_space<vmem>>) attributes {dimension_semantics = [#tpu.dimension_semantics<parallel>], iteration_bounds = array<i64: 1>, scalar_prefetch = 0 : i64, scratch_operands = 0 : i64, tpu.core_type = #tpu.core_type<tc>, window_params = [{transform_indices = @transform_0, window_bounds = array<i64: 96, 288>}, {pipeline_mode = #tpu.pipeline_mode<synchronous>, transform_indices = @transform_1, window_bounds = array<i64: 288, 64>}, {pipeline_mode = #tpu.pipeline_mode<synchronous>, transform_indices = @transform_2, window_bounds = array<i64: 1, 64>}, {pipeline_mode = #tpu.pipeline_mode<synchronous>, transform_indices = @transform_3, window_bounds = array<i64: 32, 64>}, {pipeline_mode = #tpu.pipeline_mode<synchronous>, transform_indices = @transform_4, window_bounds = array<i64: 1, 64>}, {pipeline_mode = #tpu.pipeline_mode<synchronous>, transform_indices = @transform_5, window_bounds = array<i64: 1, 288>}, {pipeline_mode = #tpu.pipeline_mode<synchronous>, transform_indices = @transform_6, window_bounds = array<i64: 1, 288>}, {transform_indices = @transform_7, window_bounds = array<i64: 96, 64>}, {transform_indices = @transform_8, window_bounds = array<i64: 96, 64>}]} {
    %c0 = arith.constant 0 : index
    %c128 = arith.constant 128 : index
    %0 = vector.load %arg1[%c0, %c128] : memref<96x288xf32, #tpu.memory_space<vmem>>, vector<96x32xf32>
    %1 = arith.truncf %0 : vector<96x32xf32> to vector<96x32xbf16>
    %c0_0 = arith.constant 0 : index
    %c0_1 = arith.constant 0 : index
    %2 = vector.load %arg4[%c0_0, %c0_1] : memref<32x64xbf16, #tpu.memory_space<vmem>>, vector<32x64xbf16>
    %cst = arith.constant dense<0.000000e+00> : vector<96x64xf32>
    %3 = tpu.matmul %1, %2, %cst {dimension_numbers = #tpu.dot_dimension_numbers<[1], [0], [0], [1], [0, 0, 1, 1], [], []>} : vector<96x32xbf16>, vector<32x64xbf16>, vector<96x64xf32> -> vector<96x64xf32>
    %c0_2 = arith.constant 0 : index
    %c0_3 = arith.constant 0 : index
    %4 = vector.load %arg5[%c0_2, %c0_3] : memref<1x64xf32, #tpu.memory_space<vmem>>, vector<1x64xf32>
    %5 = vector.broadcast %4 : vector<1x64xf32> to vector<96x64xf32>
    %6 = arith.addf %3, %5 : vector<96x64xf32>
    %c0_4 = arith.constant 0 : index
    %c0_5 = arith.constant 0 : index
    %7 = vector.load %arg1[%c0_4, %c0_5] : memref<96x288xf32, #tpu.memory_space<vmem>>, vector<96x288xf32>
    %c0_6 = arith.constant 0 : index
    %c0_7 = arith.constant 0 : index
    %8 = vector.load %arg6[%c0_6, %c0_7] : memref<1x288xf32, #tpu.memory_space<vmem>>, vector<1x288xf32>
    %9 = vector.broadcast %8 : vector<1x288xf32> to vector<96x288xf32>
    %10 = arith.mulf %7, %9 : vector<96x288xf32>
    %c0_8 = arith.constant 0 : index
    %c0_9 = arith.constant 0 : index
    %11 = vector.load %arg7[%c0_8, %c0_9] : memref<1x288xf32, #tpu.memory_space<vmem>>, vector<1x288xf32>
    %12 = vector.broadcast %11 : vector<1x288xf32> to vector<96x288xf32>
    %13 = arith.addf %10, %12 : vector<96x288xf32>
    %cst_10 = arith.constant 0.000000e+00 : f32
    %14 = vector.broadcast %cst_10 : f32 to vector<96x288xf32>
    %15 = arith.maximumf %13, %14 : vector<96x288xf32>
    %16 = arith.truncf %15 : vector<96x288xf32> to vector<96x288xbf16>
    %c0_11 = arith.constant 0 : index
    %c0_12 = arith.constant 0 : index
    %17 = vector.load %arg2[%c0_11, %c0_12] : memref<288x64xbf16, #tpu.memory_space<vmem>>, vector<288x64xbf16>
    %cst_13 = arith.constant dense<0.000000e+00> : vector<96x64xf32>
    %18 = tpu.matmul %16, %17, %cst_13 {dimension_numbers = #tpu.dot_dimension_numbers<[1], [0], [0], [1], [0, 0, 1, 1], [], []>} : vector<96x288xbf16>, vector<288x64xbf16>, vector<96x64xf32> -> vector<96x64xf32>
    %c0_14 = arith.constant 0 : index
    %c0_15 = arith.constant 0 : index
    %19 = vector.load %arg3[%c0_14, %c0_15] : memref<1x64xf32, #tpu.memory_space<vmem>>, vector<1x64xf32>
    %20 = vector.broadcast %19 : vector<1x64xf32> to vector<96x64xf32>
    %21 = arith.addf %18, %20 : vector<96x64xf32>
    %c0_16 = arith.constant 0 : index
    %c0_17 = arith.constant 0 : index
    %22 = vector.load %arg8[%c0_16, %c0_17] : memref<96x64xf32, #tpu.memory_space<vmem>>, vector<96x64xf32>
    tpu.vector_store %arg8[%c0_16, %c0_17], %21 {strides = array<i32>} : memref<96x64xf32, #tpu.memory_space<vmem>>, vector<96x64xf32>,
    %c0_18 = arith.constant 0 : index
    %c0_19 = arith.constant 0 : index
    %23 = vector.load %arg9[%c0_18, %c0_19] : memref<96x64xf32, #tpu.memory_space<vmem>>, vector<96x64xf32>
    tpu.vector_store %arg9[%c0_18, %c0_19], %6 {strides = array<i32>} : memref<96x64xf32, #tpu.memory_space<vmem>>, vector<96x64xf32>,
    return
  }
  func.func @transform_0(%arg0: i32) -> (i32, i32) {
    %c0_i32 = arith.constant 0 : i32
    %c0_i32_0 = arith.constant 0 : i32
    return %arg0, %c0_i32 : i32, i32
  }
  func.func @transform_1(%arg0: i32) -> (i32, i32) {
    %c0_i32 = arith.constant 0 : i32
    %c0_i32_0 = arith.constant 0 : i32
    %c0_i32_1 = arith.constant 0 : i32
    return %c0_i32, %c0_i32_0 : i32, i32
  }
  func.func @transform_2(%arg0: i32) -> (i32, i32) {
    %c0_i32 = arith.constant 0 : i32
    %c0_i32_0 = arith.constant 0 : i32
    %c0_i32_1 = arith.constant 0 : i32
    return %c0_i32, %c0_i32_0 : i32, i32
  }
  func.func @transform_3(%arg0: i32) -> (i32, i32) {
    %c0_i32 = arith.constant 0 : i32
    %c0_i32_0 = arith.constant 0 : i32
    %c0_i32_1 = arith.constant 0 : i32
    return %c0_i32, %c0_i32_0 : i32, i32
  }
  func.func @transform_4(%arg0: i32) -> (i32, i32) {
    %c0_i32 = arith.constant 0 : i32
    %c0_i32_0 = arith.constant 0 : i32
    %c0_i32_1 = arith.constant 0 : i32
    return %c0_i32, %c0_i32_0 : i32, i32
  }
  func.func @transform_5(%arg0: i32) -> (i32, i32) {
    %c0_i32 = arith.constant 0 : i32
    %c0_i32_0 = arith.constant 0 : i32
    %c0_i32_1 = arith.constant 0 : i32
    return %c0_i32, %c0_i32_0 : i32, i32
  }
  func.func @transform_6(%arg0: i32) -> (i32, i32) {
    %c0_i32 = arith.constant 0 : i32
    %c0_i32_0 = arith.constant 0 : i32
    %c0_i32_1 = arith.constant 0 : i32
    return %c0_i32, %c0_i32_0 : i32, i32
  }
  func.func @transform_7(%arg0: i32) -> (i32, i32) {
    %c0_i32 = arith.constant 0 : i32
    %c0_i32_0 = arith.constant 0 : i32
    return %arg0, %c0_i32 : i32, i32
  }
  func.func @transform_8(%arg0: i32) -> (i32, i32) {
    %c0_i32 = arith.constant 0 : i32
    %c0_i32_0 = arith.constant 0 : i32
    return %arg0, %c0_i32 : i32, i32
  }
}

module attributes {stable_mosaic.version = 11 : i64} {
  func.func @kernel(%arg0: i32, %arg1: memref<96x576xf32, #tpu.memory_space<vmem>>, %arg2: memref<576x64xbf16, #tpu.memory_space<vmem>>, %arg3: memref<1x64xf32, #tpu.memory_space<vmem>>, %arg4: memref<1x576xf32, #tpu.memory_space<vmem>>, %arg5: memref<1x576xf32, #tpu.memory_space<vmem>>, %arg6: memref<96x64xf32, #tpu.memory_space<vmem>>, %arg7: memref<96x64xf32, #tpu.memory_space<vmem>>) attributes {dimension_semantics = [#tpu.dimension_semantics<parallel>], iteration_bounds = array<i64: 1>, scalar_prefetch = 0 : i64, scratch_operands = 0 : i64, tpu.core_type = #tpu.core_type<tc>, window_params = [{transform_indices = @transform_0, window_bounds = array<i64: 96, 576>}, {pipeline_mode = #tpu.pipeline_mode<synchronous>, transform_indices = @transform_1, window_bounds = array<i64: 576, 64>}, {pipeline_mode = #tpu.pipeline_mode<synchronous>, transform_indices = @transform_2, window_bounds = array<i64: 1, 64>}, {pipeline_mode = #tpu.pipeline_mode<synchronous>, transform_indices = @transform_3, window_bounds = array<i64: 1, 576>}, {pipeline_mode = #tpu.pipeline_mode<synchronous>, transform_indices = @transform_4, window_bounds = array<i64: 1, 576>}, {transform_indices = @transform_5, window_bounds = array<i64: 96, 64>}, {transform_indices = @transform_6, window_bounds = array<i64: 96, 64>}]} {
    %c0 = arith.constant 0 : index
    %c0_0 = arith.constant 0 : index
    %0 = vector.load %arg1[%c0, %c0_0] : memref<96x576xf32, #tpu.memory_space<vmem>>, vector<96x576xf32>
    %c0_1 = arith.constant 0 : index
    %c0_2 = arith.constant 0 : index
    %1 = vector.load %arg4[%c0_1, %c0_2] : memref<1x576xf32, #tpu.memory_space<vmem>>, vector<1x576xf32>
    %2 = vector.broadcast %1 : vector<1x576xf32> to vector<96x576xf32>
    %3 = arith.mulf %0, %2 : vector<96x576xf32>
    %c0_3 = arith.constant 0 : index
    %c0_4 = arith.constant 0 : index
    %4 = vector.load %arg5[%c0_3, %c0_4] : memref<1x576xf32, #tpu.memory_space<vmem>>, vector<1x576xf32>
    %5 = vector.broadcast %4 : vector<1x576xf32> to vector<96x576xf32>
    %6 = arith.addf %3, %5 : vector<96x576xf32>
    %cst = arith.constant 0.000000e+00 : f32
    %7 = vector.broadcast %cst : f32 to vector<96x576xf32>
    %8 = arith.maximumf %6, %7 : vector<96x576xf32>
    %9 = arith.truncf %8 : vector<96x576xf32> to vector<96x576xbf16>
    %c0_5 = arith.constant 0 : index
    %c0_6 = arith.constant 0 : index
    %10 = vector.load %arg2[%c0_5, %c0_6] : memref<576x64xbf16, #tpu.memory_space<vmem>>, vector<576x64xbf16>
    %cst_7 = arith.constant dense<0.000000e+00> : vector<96x64xf32>
    %11 = tpu.matmul %9, %10, %cst_7 {dimension_numbers = #tpu.dot_dimension_numbers<[1], [0], [0], [1], [0, 0, 1, 1], [], []>} : vector<96x576xbf16>, vector<576x64xbf16>, vector<96x64xf32> -> vector<96x64xf32>
    %c0_8 = arith.constant 0 : index
    %c0_9 = arith.constant 0 : index
    %12 = vector.load %arg3[%c0_8, %c0_9] : memref<1x64xf32, #tpu.memory_space<vmem>>, vector<1x64xf32>
    %13 = vector.broadcast %12 : vector<1x64xf32> to vector<96x64xf32>
    %14 = arith.addf %11, %13 : vector<96x64xf32>
    %c0_10 = arith.constant 0 : index
    %c0_11 = arith.constant 0 : index
    %15 = vector.load %arg6[%c0_10, %c0_11] : memref<96x64xf32, #tpu.memory_space<vmem>>, vector<96x64xf32>
    %16 = arith.addf %14, %15 : vector<96x64xf32>
    %c0_12 = arith.constant 0 : index
    %c0_13 = arith.constant 0 : index
    %17 = vector.load %arg7[%c0_12, %c0_13] : memref<96x64xf32, #tpu.memory_space<vmem>>, vector<96x64xf32>
    tpu.vector_store %arg7[%c0_12, %c0_13], %16 {strides = array<i32>} : memref<96x64xf32, #tpu.memory_space<vmem>>, vector<96x64xf32>,
    return
  }
  func.func @transform_0(%arg0: i32) -> (i32, i32) {
    %c0_i32 = arith.constant 0 : i32
    %c0_i32_0 = arith.constant 0 : i32
    return %arg0, %c0_i32 : i32, i32
  }
  func.func @transform_1(%arg0: i32) -> (i32, i32) {
    %c0_i32 = arith.constant 0 : i32
    %c0_i32_0 = arith.constant 0 : i32
    %c0_i32_1 = arith.constant 0 : i32
    return %c0_i32, %c0_i32_0 : i32, i32
  }
  func.func @transform_2(%arg0: i32) -> (i32, i32) {
    %c0_i32 = arith.constant 0 : i32
    %c0_i32_0 = arith.constant 0 : i32
    %c0_i32_1 = arith.constant 0 : i32
    return %c0_i32, %c0_i32_0 : i32, i32
  }
  func.func @transform_3(%arg0: i32) -> (i32, i32) {
    %c0_i32 = arith.constant 0 : i32
    %c0_i32_0 = arith.constant 0 : i32
    %c0_i32_1 = arith.constant 0 : i32
    return %c0_i32, %c0_i32_0 : i32, i32
  }
  func.func @transform_4(%arg0: i32) -> (i32, i32) {
    %c0_i32 = arith.constant 0 : i32
    %c0_i32_0 = arith.constant 0 : i32
    %c0_i32_1 = arith.constant 0 : i32
    return %c0_i32, %c0_i32_0 : i32, i32
  }
  func.func @transform_5(%arg0: i32) -> (i32, i32) {
    %c0_i32 = arith.constant 0 : i32
    %c0_i32_0 = arith.constant 0 : i32
    return %arg0, %c0_i32 : i32, i32
  }
  func.func @transform_6(%arg0: i32) -> (i32, i32) {
    %c0_i32 = arith.constant 0 : i32
    %c0_i32_0 = arith.constant 0 : i32
    return %arg0, %c0_i32 : i32, i32
  }
}

module attributes {stable_mosaic.version = 11 : i64} {
  func.func @kernel(%arg0: i32, %arg1: memref<24x576xf32, #tpu.memory_space<vmem>>, %arg2: memref<576x128xbf16, #tpu.memory_space<vmem>>, %arg3: memref<1x128xf32, #tpu.memory_space<vmem>>, %arg4: memref<64x128xbf16, #tpu.memory_space<vmem>>, %arg5: memref<1x128xf32, #tpu.memory_space<vmem>>, %arg6: memref<1x576xf32, #tpu.memory_space<vmem>>, %arg7: memref<1x576xf32, #tpu.memory_space<vmem>>, %arg8: memref<24x128xf32, #tpu.memory_space<vmem>>, %arg9: memref<24x128xf32, #tpu.memory_space<vmem>>) attributes {dimension_semantics = [#tpu.dimension_semantics<parallel>], iteration_bounds = array<i64: 1>, scalar_prefetch = 0 : i64, scratch_operands = 0 : i64, tpu.core_type = #tpu.core_type<tc>, window_params = [{transform_indices = @transform_0, window_bounds = array<i64: 24, 576>}, {pipeline_mode = #tpu.pipeline_mode<synchronous>, transform_indices = @transform_1, window_bounds = array<i64: 576, 128>}, {pipeline_mode = #tpu.pipeline_mode<synchronous>, transform_indices = @transform_2, window_bounds = array<i64: 1, 128>}, {pipeline_mode = #tpu.pipeline_mode<synchronous>, transform_indices = @transform_3, window_bounds = array<i64: 64, 128>}, {pipeline_mode = #tpu.pipeline_mode<synchronous>, transform_indices = @transform_4, window_bounds = array<i64: 1, 128>}, {pipeline_mode = #tpu.pipeline_mode<synchronous>, transform_indices = @transform_5, window_bounds = array<i64: 1, 576>}, {pipeline_mode = #tpu.pipeline_mode<synchronous>, transform_indices = @transform_6, window_bounds = array<i64: 1, 576>}, {transform_indices = @transform_7, window_bounds = array<i64: 24, 128>}, {transform_indices = @transform_8, window_bounds = array<i64: 24, 128>}]} {
    %c0 = arith.constant 0 : index
    %c256 = arith.constant 256 : index
    %0 = vector.load %arg1[%c0, %c256] : memref<24x576xf32, #tpu.memory_space<vmem>>, vector<24x64xf32>
    %1 = arith.truncf %0 : vector<24x64xf32> to vector<24x64xbf16>
    %c0_0 = arith.constant 0 : index
    %c0_1 = arith.constant 0 : index
    %2 = vector.load %arg4[%c0_0, %c0_1] : memref<64x128xbf16, #tpu.memory_space<vmem>>, vector<64x128xbf16>
    %cst = arith.constant dense<0.000000e+00> : vector<24x128xf32>
    %3 = tpu.matmul %1, %2, %cst {dimension_numbers = #tpu.dot_dimension_numbers<[1], [0], [0], [1], [0, 0, 1, 1], [], []>} : vector<24x64xbf16>, vector<64x128xbf16>, vector<24x128xf32> -> vector<24x128xf32>
    %c0_2 = arith.constant 0 : index
    %c0_3 = arith.constant 0 : index
    %4 = vector.load %arg5[%c0_2, %c0_3] : memref<1x128xf32, #tpu.memory_space<vmem>>, vector<1x128xf32>
    %5 = vector.broadcast %4 : vector<1x128xf32> to vector<24x128xf32>
    %6 = arith.addf %3, %5 : vector<24x128xf32>
    %c0_4 = arith.constant 0 : index
    %c0_5 = arith.constant 0 : index
    %7 = vector.load %arg1[%c0_4, %c0_5] : memref<24x576xf32, #tpu.memory_space<vmem>>, vector<24x576xf32>
    %c0_6 = arith.constant 0 : index
    %c0_7 = arith.constant 0 : index
    %8 = vector.load %arg6[%c0_6, %c0_7] : memref<1x576xf32, #tpu.memory_space<vmem>>, vector<1x576xf32>
    %9 = vector.broadcast %8 : vector<1x576xf32> to vector<24x576xf32>
    %10 = arith.mulf %7, %9 : vector<24x576xf32>
    %c0_8 = arith.constant 0 : index
    %c0_9 = arith.constant 0 : index
    %11 = vector.load %arg7[%c0_8, %c0_9] : memref<1x576xf32, #tpu.memory_space<vmem>>, vector<1x576xf32>
    %12 = vector.broadcast %11 : vector<1x576xf32> to vector<24x576xf32>
    %13 = arith.addf %10, %12 : vector<24x576xf32>
    %cst_10 = arith.constant 0.000000e+00 : f32
    %14 = vector.broadcast %cst_10 : f32 to vector<24x576xf32>
    %15 = arith.maximumf %13, %14 : vector<24x576xf32>
    %16 = arith.truncf %15 : vector<24x576xf32> to vector<24x576xbf16>
    %c0_11 = arith.constant 0 : index
    %c0_12 = arith.constant 0 : index
    %17 = vector.load %arg2[%c0_11, %c0_12] : memref<576x128xbf16, #tpu.memory_space<vmem>>, vector<576x128xbf16>
    %cst_13 = arith.constant dense<0.000000e+00> : vector<24x128xf32>
    %18 = tpu.matmul %16, %17, %cst_13 {dimension_numbers = #tpu.dot_dimension_numbers<[1], [0], [0], [1], [0, 0, 1, 1], [], []>} : vector<24x576xbf16>, vector<576x128xbf16>, vector<24x128xf32> -> vector<24x128xf32>
    %c0_14 = arith.constant 0 : index
    %c0_15 = arith.constant 0 : index
    %19 = vector.load %arg3[%c0_14, %c0_15] : memref<1x128xf32, #tpu.memory_space<vmem>>, vector<1x128xf32>
    %20 = vector.broadcast %19 : vector<1x128xf32> to vector<24x128xf32>
    %21 = arith.addf %18, %20 : vector<24x128xf32>
    %c0_16 = arith.constant 0 : index
    %c0_17 = arith.constant 0 : index
    %22 = vector.load %arg8[%c0_16, %c0_17] : memref<24x128xf32, #tpu.memory_space<vmem>>, vector<24x128xf32>
    tpu.vector_store %arg8[%c0_16, %c0_17], %21 {strides = array<i32>} : memref<24x128xf32, #tpu.memory_space<vmem>>, vector<24x128xf32>,
    %c0_18 = arith.constant 0 : index
    %c0_19 = arith.constant 0 : index
    %23 = vector.load %arg9[%c0_18, %c0_19] : memref<24x128xf32, #tpu.memory_space<vmem>>, vector<24x128xf32>
    tpu.vector_store %arg9[%c0_18, %c0_19], %6 {strides = array<i32>} : memref<24x128xf32, #tpu.memory_space<vmem>>, vector<24x128xf32>,
    return
  }
  func.func @transform_0(%arg0: i32) -> (i32, i32) {
    %c0_i32 = arith.constant 0 : i32
    %c0_i32_0 = arith.constant 0 : i32
    return %arg0, %c0_i32 : i32, i32
  }
  func.func @transform_1(%arg0: i32) -> (i32, i32) {
    %c0_i32 = arith.constant 0 : i32
    %c0_i32_0 = arith.constant 0 : i32
    %c0_i32_1 = arith.constant 0 : i32
    return %c0_i32, %c0_i32_0 : i32, i32
  }
  func.func @transform_2(%arg0: i32) -> (i32, i32) {
    %c0_i32 = arith.constant 0 : i32
    %c0_i32_0 = arith.constant 0 : i32
    %c0_i32_1 = arith.constant 0 : i32
    return %c0_i32, %c0_i32_0 : i32, i32
  }
  func.func @transform_3(%arg0: i32) -> (i32, i32) {
    %c0_i32 = arith.constant 0 : i32
    %c0_i32_0 = arith.constant 0 : i32
    %c0_i32_1 = arith.constant 0 : i32
    return %c0_i32, %c0_i32_0 : i32, i32
  }
  func.func @transform_4(%arg0: i32) -> (i32, i32) {
    %c0_i32 = arith.constant 0 : i32
    %c0_i32_0 = arith.constant 0 : i32
    %c0_i32_1 = arith.constant 0 : i32
    return %c0_i32, %c0_i32_0 : i32, i32
  }
  func.func @transform_5(%arg0: i32) -> (i32, i32) {
    %c0_i32 = arith.constant 0 : i32
    %c0_i32_0 = arith.constant 0 : i32
    %c0_i32_1 = arith.constant 0 : i32
    return %c0_i32, %c0_i32_0 : i32, i32
  }
  func.func @transform_6(%arg0: i32) -> (i32, i32) {
    %c0_i32 = arith.constant 0 : i32
    %c0_i32_0 = arith.constant 0 : i32
    %c0_i32_1 = arith.constant 0 : i32
    return %c0_i32, %c0_i32_0 : i32, i32
  }
  func.func @transform_7(%arg0: i32) -> (i32, i32) {
    %c0_i32 = arith.constant 0 : i32
    %c0_i32_0 = arith.constant 0 : i32
    return %arg0, %c0_i32 : i32, i32
  }
  func.func @transform_8(%arg0: i32) -> (i32, i32) {
    %c0_i32 = arith.constant 0 : i32
    %c0_i32_0 = arith.constant 0 : i32
    return %arg0, %c0_i32 : i32, i32
  }
}

module attributes {stable_mosaic.version = 11 : i64} {
  func.func @kernel(%arg0: i32, %arg1: memref<24x1152xf32, #tpu.memory_space<vmem>>, %arg2: memref<1152x128xbf16, #tpu.memory_space<vmem>>, %arg3: memref<1x128xf32, #tpu.memory_space<vmem>>, %arg4: memref<1x1152xf32, #tpu.memory_space<vmem>>, %arg5: memref<1x1152xf32, #tpu.memory_space<vmem>>, %arg6: memref<24x128xf32, #tpu.memory_space<vmem>>, %arg7: memref<24x128xf32, #tpu.memory_space<vmem>>) attributes {dimension_semantics = [#tpu.dimension_semantics<parallel>], iteration_bounds = array<i64: 1>, scalar_prefetch = 0 : i64, scratch_operands = 0 : i64, tpu.core_type = #tpu.core_type<tc>, window_params = [{transform_indices = @transform_0, window_bounds = array<i64: 24, 1152>}, {pipeline_mode = #tpu.pipeline_mode<synchronous>, transform_indices = @transform_1, window_bounds = array<i64: 1152, 128>}, {pipeline_mode = #tpu.pipeline_mode<synchronous>, transform_indices = @transform_2, window_bounds = array<i64: 1, 128>}, {pipeline_mode = #tpu.pipeline_mode<synchronous>, transform_indices = @transform_3, window_bounds = array<i64: 1, 1152>}, {pipeline_mode = #tpu.pipeline_mode<synchronous>, transform_indices = @transform_4, window_bounds = array<i64: 1, 1152>}, {transform_indices = @transform_5, window_bounds = array<i64: 24, 128>}, {transform_indices = @transform_6, window_bounds = array<i64: 24, 128>}]} {
    %c0 = arith.constant 0 : index
    %c0_0 = arith.constant 0 : index
    %0 = vector.load %arg1[%c0, %c0_0] : memref<24x1152xf32, #tpu.memory_space<vmem>>, vector<24x1152xf32>
    %c0_1 = arith.constant 0 : index
    %c0_2 = arith.constant 0 : index
    %1 = vector.load %arg4[%c0_1, %c0_2] : memref<1x1152xf32, #tpu.memory_space<vmem>>, vector<1x1152xf32>
    %2 = vector.broadcast %1 : vector<1x1152xf32> to vector<24x1152xf32>
    %3 = arith.mulf %0, %2 : vector<24x1152xf32>
    %c0_3 = arith.constant 0 : index
    %c0_4 = arith.constant 0 : index
    %4 = vector.load %arg5[%c0_3, %c0_4] : memref<1x1152xf32, #tpu.memory_space<vmem>>, vector<1x1152xf32>
    %5 = vector.broadcast %4 : vector<1x1152xf32> to vector<24x1152xf32>
    %6 = arith.addf %3, %5 : vector<24x1152xf32>
    %cst = arith.constant 0.000000e+00 : f32
    %7 = vector.broadcast %cst : f32 to vector<24x1152xf32>
    %8 = arith.maximumf %6, %7 : vector<24x1152xf32>
    %9 = arith.truncf %8 : vector<24x1152xf32> to vector<24x1152xbf16>
    %c0_5 = arith.constant 0 : index
    %c0_6 = arith.constant 0 : index
    %10 = vector.load %arg2[%c0_5, %c0_6] : memref<1152x128xbf16, #tpu.memory_space<vmem>>, vector<1152x128xbf16>
    %cst_7 = arith.constant dense<0.000000e+00> : vector<24x128xf32>
    %11 = tpu.matmul %9, %10, %cst_7 {dimension_numbers = #tpu.dot_dimension_numbers<[1], [0], [0], [1], [0, 0, 1, 1], [], []>} : vector<24x1152xbf16>, vector<1152x128xbf16>, vector<24x128xf32> -> vector<24x128xf32>
    %c0_8 = arith.constant 0 : index
    %c0_9 = arith.constant 0 : index
    %12 = vector.load %arg3[%c0_8, %c0_9] : memref<1x128xf32, #tpu.memory_space<vmem>>, vector<1x128xf32>
    %13 = vector.broadcast %12 : vector<1x128xf32> to vector<24x128xf32>
    %14 = arith.addf %11, %13 : vector<24x128xf32>
    %c0_10 = arith.constant 0 : index
    %c0_11 = arith.constant 0 : index
    %15 = vector.load %arg6[%c0_10, %c0_11] : memref<24x128xf32, #tpu.memory_space<vmem>>, vector<24x128xf32>
    %16 = arith.addf %14, %15 : vector<24x128xf32>
    %c0_12 = arith.constant 0 : index
    %c0_13 = arith.constant 0 : index
    %17 = vector.load %arg7[%c0_12, %c0_13] : memref<24x128xf32, #tpu.memory_space<vmem>>, vector<24x128xf32>
    tpu.vector_store %arg7[%c0_12, %c0_13], %16 {strides = array<i32>} : memref<24x128xf32, #tpu.memory_space<vmem>>, vector<24x128xf32>,
    return
  }
  func.func @transform_0(%arg0: i32) -> (i32, i32) {
    %c0_i32 = arith.constant 0 : i32
    %c0_i32_0 = arith.constant 0 : i32
    return %arg0, %c0_i32 : i32, i32
  }
  func.func @transform_1(%arg0: i32) -> (i32, i32) {
    %c0_i32 = arith.constant 0 : i32
    %c0_i32_0 = arith.constant 0 : i32
    %c0_i32_1 = arith.constant 0 : i32
    return %c0_i32, %c0_i32_0 : i32, i32
  }
  func.func @transform_2(%arg0: i32) -> (i32, i32) {
    %c0_i32 = arith.constant 0 : i32
    %c0_i32_0 = arith.constant 0 : i32
    %c0_i32_1 = arith.constant 0 : i32
    return %c0_i32, %c0_i32_0 : i32, i32
  }
  func.func @transform_3(%arg0: i32) -> (i32, i32) {
    %c0_i32 = arith.constant 0 : i32
    %c0_i32_0 = arith.constant 0 : i32
    %c0_i32_1 = arith.constant 0 : i32
    return %c0_i32, %c0_i32_0 : i32, i32
  }
  func.func @transform_4(%arg0: i32) -> (i32, i32) {
    %c0_i32 = arith.constant 0 : i32
    %c0_i32_0 = arith.constant 0 : i32
    %c0_i32_1 = arith.constant 0 : i32
    return %c0_i32, %c0_i32_0 : i32, i32
  }
  func.func @transform_5(%arg0: i32) -> (i32, i32) {
    %c0_i32 = arith.constant 0 : i32
    %c0_i32_0 = arith.constant 0 : i32
    return %arg0, %c0_i32 : i32, i32
  }
  func.func @transform_6(%arg0: i32) -> (i32, i32) {
    %c0_i32 = arith.constant 0 : i32
    %c0_i32_0 = arith.constant 0 : i32
    return %arg0, %c0_i32 : i32, i32
  }
}

module attributes {stable_mosaic.version = 11 : i64} {
  func.func @_fc_head_kernel(%arg0: i32, %arg1: memref<8x1536xf32, #tpu.memory_space<vmem>>, %arg2: memref<1536x512xbf16, #tpu.memory_space<vmem>>, %arg3: memref<1x512xf32, #tpu.memory_space<vmem>>, %arg4: memref<512x4xbf16, #tpu.memory_space<vmem>>, %arg5: memref<1x4xf32, #tpu.memory_space<vmem>>, %arg6: memref<8x4xf32, #tpu.memory_space<vmem>>) attributes {dimension_semantics = [#tpu.dimension_semantics<arbitrary>], iteration_bounds = array<i64: 1>, scalar_prefetch = 0 : i64, scratch_operands = 0 : i64, tpu.core_type = #tpu.core_type<tc>, window_params = [{pipeline_mode = #tpu.pipeline_mode<synchronous>, transform_indices = @transform_0, window_bounds = array<i64: 8, 1536>}, {pipeline_mode = #tpu.pipeline_mode<synchronous>, transform_indices = @transform_1, window_bounds = array<i64: 1536, 512>}, {pipeline_mode = #tpu.pipeline_mode<synchronous>, transform_indices = @transform_2, window_bounds = array<i64: 1, 512>}, {pipeline_mode = #tpu.pipeline_mode<synchronous>, transform_indices = @transform_3, window_bounds = array<i64: 512, 4>}, {pipeline_mode = #tpu.pipeline_mode<synchronous>, transform_indices = @transform_4, window_bounds = array<i64: 1, 4>}, {pipeline_mode = #tpu.pipeline_mode<synchronous>, transform_indices = @transform_5, window_bounds = array<i64: 8, 4>}]} {
    %c0 = arith.constant 0 : index
    %c0_0 = arith.constant 0 : index
    %0 = vector.load %arg1[%c0, %c0_0] : memref<8x1536xf32, #tpu.memory_space<vmem>>, vector<8x1536xf32>
    %1 = arith.truncf %0 : vector<8x1536xf32> to vector<8x1536xbf16>
    %c0_1 = arith.constant 0 : index
    %c0_2 = arith.constant 0 : index
    %2 = vector.load %arg2[%c0_1, %c0_2] : memref<1536x512xbf16, #tpu.memory_space<vmem>>, vector<1536x512xbf16>
    %cst = arith.constant dense<0.000000e+00> : vector<8x512xf32>
    %3 = tpu.matmul %1, %2, %cst {dimension_numbers = #tpu.dot_dimension_numbers<[1], [0], [0], [1], [0, 0, 1, 1], [], []>} : vector<8x1536xbf16>, vector<1536x512xbf16>, vector<8x512xf32> -> vector<8x512xf32>
    %c0_3 = arith.constant 0 : index
    %c0_4 = arith.constant 0 : index
    %4 = vector.load %arg3[%c0_3, %c0_4] : memref<1x512xf32, #tpu.memory_space<vmem>>, vector<1x512xf32>
    %5 = vector.broadcast %4 : vector<1x512xf32> to vector<8x512xf32>
    %6 = arith.addf %3, %5 : vector<8x512xf32>
    %7 = arith.truncf %6 : vector<8x512xf32> to vector<8x512xbf16>
    %c0_5 = arith.constant 0 : index
    %c0_6 = arith.constant 0 : index
    %8 = vector.load %arg4[%c0_5, %c0_6] : memref<512x4xbf16, #tpu.memory_space<vmem>>, vector<512x4xbf16>
    %cst_7 = arith.constant dense<0.000000e+00> : vector<8x4xf32>
    %9 = tpu.matmul %7, %8, %cst_7 {dimension_numbers = #tpu.dot_dimension_numbers<[1], [0], [0], [1], [0, 0, 1, 1], [], []>} : vector<8x512xbf16>, vector<512x4xbf16>, vector<8x4xf32> -> vector<8x4xf32>
    %c0_8 = arith.constant 0 : index
    %c0_9 = arith.constant 0 : index
    %10 = vector.load %arg5[%c0_8, %c0_9] : memref<1x4xf32, #tpu.memory_space<vmem>>, vector<1x4xf32>
    %11 = vector.broadcast %10 : vector<1x4xf32> to vector<8x4xf32>
    %12 = arith.addf %9, %11 : vector<8x4xf32>
    %cst_10 = arith.constant dense<0xFF800000> : vector<8xf32>
    %13 = vector.multi_reduction <maximumf>, %12, %cst_10 [1] : vector<8x4xf32> to vector<8xf32>
    %14 = vector.shape_cast %13 : vector<8xf32> to vector<8x1xf32>
    %15 = vector.broadcast %14 : vector<8x1xf32> to vector<8x4xf32>
    %16 = arith.subf %12, %15 : vector<8x4xf32>
    %17 = math.exp %16 : vector<8x4xf32>
    %cst_11 = arith.constant dense<0.000000e+00> : vector<8xf32>
    %18 = vector.multi_reduction <add>, %17, %cst_11 [1] : vector<8x4xf32> to vector<8xf32>
    %19 = vector.shape_cast %18 : vector<8xf32> to vector<8x1xf32>
    %20 = vector.broadcast %19 : vector<8x1xf32> to vector<8x4xf32>
    %21 = arith.divf %17, %20 : vector<8x4xf32>
    %c0_12 = arith.constant 0 : index
    %c0_13 = arith.constant 0 : index
    %22 = vector.load %arg6[%c0_12, %c0_13] : memref<8x4xf32, #tpu.memory_space<vmem>>, vector<8x4xf32>
    tpu.vector_store %arg6[%c0_12, %c0_13], %21 {strides = array<i32>} : memref<8x4xf32, #tpu.memory_space<vmem>>, vector<8x4xf32>,
    return
  }
  func.func @transform_0(%arg0: i32) -> (i32, i32) {
    %c0_i32 = arith.constant 0 : i32
    %c0_i32_0 = arith.constant 0 : i32
    %c0_i32_1 = arith.constant 0 : i32
    return %c0_i32, %c0_i32_0 : i32, i32
  }
  func.func @transform_1(%arg0: i32) -> (i32, i32) {
    %c0_i32 = arith.constant 0 : i32
    %c0_i32_0 = arith.constant 0 : i32
    %c0_i32_1 = arith.constant 0 : i32
    return %c0_i32, %c0_i32_0 : i32, i32
  }
  func.func @transform_2(%arg0: i32) -> (i32, i32) {
    %c0_i32 = arith.constant 0 : i32
    %c0_i32_0 = arith.constant 0 : i32
    %c0_i32_1 = arith.constant 0 : i32
    return %c0_i32, %c0_i32_0 : i32, i32
  }
  func.func @transform_3(%arg0: i32) -> (i32, i32) {
    %c0_i32 = arith.constant 0 : i32
    %c0_i32_0 = arith.constant 0 : i32
    %c0_i32_1 = arith.constant 0 : i32
    return %c0_i32, %c0_i32_0 : i32, i32
  }
  func.func @transform_4(%arg0: i32) -> (i32, i32) {
    %c0_i32 = arith.constant 0 : i32
    %c0_i32_0 = arith.constant 0 : i32
    %c0_i32_1 = arith.constant 0 : i32
    return %c0_i32, %c0_i32_0 : i32, i32
  }
  func.func @transform_5(%arg0: i32) -> (i32, i32) {
    %c0_i32 = arith.constant 0 : i32
    %c0_i32_0 = arith.constant 0 : i32
    %c0_i32_1 = arith.constant 0 : i32
    return %c0_i32, %c0_i32_0 : i32, i32
  }
}

</mosaic_0001>

<bundles_post_ra>
// kernel: resnet8_forward.8
= control target key start
LH: loop header
LB: loop body
LE: loop exit
PB: predicated region body
PF: predicated region fallthrough
CT: control target
= control target key end

     0   :  { %s1044_s12 = smov 0   ;;  %s1380_s0 = inlined_call_operand.vmem [shape: f32[5632,75], index: 0, kind: input, shape index: {}]   ;;  %s1381_s1 = inlined_call_operand.vmem [shape: bf16[75,32], index: 1, kind: input, shape index: {}]   ;;  %s1382_s2 = inlined_call_operand.vmem [shape: f32[1,32], index: 2, kind: input, shape index: {}]   ;;  %s1383_s3 = inlined_call_operand.vmem [shape: f32[5632,32], index: 3, kind: output, shape index: {}]  }
   0x1 LB: > { %s831_s13 = sadd.s32 4294967295, %s1021_s12   ;;  %p835_p0 = scmp.ge.s32.totalorder %s1021_s12, 1  ;;  %s1021_s12 = sphi %s1044_s12, %s13_s12  }
   0x2   : > { %p138_p1 = scmp.lt.s32.totalorder %s1021_s12, 12 }
   0x4   : > { %p139_p2 = pnand %p835_p0, %p138_p1 }
   0x5   : > { %v1010_v0 = vld [vmem:[%s1381_s1] sm:$0xff] (!%p139_p2)   ;;  %v1011_v1 = vld [vmem:[%s1381_s1 + $0x8] sm:$0xff] (!%p139_p2)   ;;  %vm414_vm0 = vcmask (!%p139_p2), 1044480   ;;  %v1012_v2 = vld [vmem:[%s1381_s1 + $0x10] sm:$0xff] (!%p139_p2)   ;;  %s836_s20 = sshll.u32 (!%p139_p2), %s831_s13, 6  ;;  %vm415_vm1 = vcmask (!%p139_p2), 1045504  }
   0x6   : > { %142 = sbr.rel (%p139_p2) target bundleno = 300 (0x12c), region = 32  ;;  %917 = vmatprep.subr.bf16.mxu0 (!%p139_p2), %v1010_v0  ;;  %991 = vmatprep.subr.bf16.mxu1 (!%p139_p2), %v1010_v0  ;;  %v1023_v3 = vmov (!%p139_p2), 65535   ;;  %p163_p3 = scmp.lt.s32.totalorder (!%p139_p2), %s836_s20, 703  ;;  %v1013_v5 = vld [vmem:[%s1381_s1 + $0x18] sm:$0xff] (!%p139_p2)   ;;  %v1014_v6 = vld [vmem:[%s1381_s1 + $0x20] sm:$0x3f] (!%p139_p2)  }
   0x7   : > { %918 = vmatpush3.bf16.msra.mxu0 (!%p139_p2), %v1010_v0  ;;  %996 = vmatpush3.bf16.msra.mxu1 (!%p139_p2), %v1010_v0  ;;  %v416_v4 = vsel (!%p139_p2), %vm414_vm0, 4294967295, %v1023_v3  ;;  %vm317_vm2 = vcmask (!%p139_p2), 613376   ;;  %vm710_vm3 = vcmask (!%p139_p2), 261120  }
   0x8   : > { %919 = vmatprep.subr.bf16.mxu0 (!%p139_p2), %v1011_v1  ;;  %992 = vmatprep.subr.bf16.mxu1 (!%p139_p2), %v1011_v1  ;;  %v417_v7 = vsel (!%p139_p2), %vm415_vm1, %v416_v4, 0 }
   0x9   : > { %v419_v8 = vand.u32 (!%p139_p2), %v1014_v6, %v417_v7 }
   0xb   : > { %920 = vmatpush3.bf16.msra.mxu0 (!%p139_p2), %v1011_v1  ;;  %997 = vmatpush3.bf16.msra.mxu1 (!%p139_p2), %v1011_v1 }
   0xc   : > { %921 = vmatprep.subr.bf16.mxu0 (!%p139_p2), %v1012_v2  ;;  %993 = vmatprep.subr.bf16.mxu1 (!%p139_p2), %v1012_v2 }
   0xd   : > { %s1385_s20 = smov (!%p163_p3, %s836_s20), 703 }
   0xe   : > { %s837_s25 = sshll.u32 %s1385_s20, 3 }
   0xf   : > { %922 = vmatpush3.bf16.msra.mxu0 %v1012_v2  ;;  %998 = vmatpush3.bf16.msra.mxu1 %v1012_v2  ;;  %s1075_s28 = scalar_lea.vmem %s1380_s0, %s837_s25  ;;  %s1183_s6 = scalar_lea.vmem %s1383_s3, %s837_s25 }
  0x10   : > { %923 = vmatprep.subr.bf16.mxu0 %v1013_v5  ;;  %994 = vmatprep.subr.bf16.mxu1 %v1013_v5  ;;  %v175_v9 = vld [vmem:[%s1075_s28] sm:$0xff]  ;;  %v176_v10 = vld [vmem:[%s1075_s28 + $0x8] sm:$0xff]  ;;  %v177_v15 = vld [vmem:[%s1075_s28 + $0x10] sm:$0xff] }
  0x11   : > { %v207_v11 = vld [vmem:[%s1075_s28 + $0x100] sm:$0xff]  ;;  %v239_v12 = vpack.c.bf16 %v176_v10, %v175_v9  ;;  %v208_v13 = vld [vmem:[%s1075_s28 + $0x108] sm:$0xff]  ;;  %v178_v16 = vld [vmem:[%s1075_s28 + $0x18] sm:$0xff] }
  0x12   : > { %v255_v14 = vpack.c.bf16 %v208_v13, %v207_v11  ;;  %v209_v17 = vld [vmem:[%s1075_s28 + $0x110] sm:$0xff]  ;;  %v210_v18 = vld [vmem:[%s1075_s28 + $0x118] sm:$0xff]  ;;  %v179_v19 = vld [vmem:[%s1075_s28 + $0x20] sm:$0xff]  ;;  %v240_v23 = vpack.c.bf16 %v178_v16, %v177_v15 }
  0x13   : > { %924 = vmatpush3.bf16.msra.mxu0 %v1013_v5  ;;  %999 = vmatpush3.bf16.msra.mxu1 %v1013_v5  ;;  %v180_v20 = vld [vmem:[%s1075_s28 + $0x28] sm:$0xff]  ;;  %v211_v21 = vld [vmem:[%s1075_s28 + $0x120] sm:$0xff]  ;;  %v256_v24 = vpack.c.bf16 %v210_v18, %v209_v17  ;;  %v181_v27 = vld [vmem:[%s1075_s28 + $0x30] sm:$0xff] }
  0x14   : > { %925 = vmatprep.subr.bf16.mxu0 %v419_v8  ;;  %995 = vmatprep.subr.bf16.mxu1 %v419_v8  ;;  %v212_v22 = vld [vmem:[%s1075_s28 + $0x128] sm:$0xff]  ;;  %v241_v25 = vpack.c.bf16 %v180_v20, %v179_v19  ;;  %v182_v28 = vld [vmem:[%s1075_s28 + $0x38] sm:$0xff]  ;;  %v213_v29 = vld [vmem:[%s1075_s28 + $0x130] sm:$0xff] }
  0x15   : > { %927 = vmatprep.mubr.msk.bf16.mxu0 %vm317_vm2, %v239_v12  ;;  %959 = vmatprep.mubr.msk.bf16.mxu1 %vm317_vm2, %v255_v14  ;;  %v257_v26 = vpack.c.bf16 %v212_v22, %v211_v21  ;;  %v214_v30 = vld [vmem:[%s1075_s28 + $0x138] sm:$0xff]  ;;  %v183_v31 = vld [vmem:[%s1075_s28 + $0x40] sm:$0xff]  ;;  %v184_v32 = vld [vmem:[%s1075_s28 + $0x48] sm:$0xff]  ;;  %v242_v35 = vpack.c.bf16 %v182_v28, %v181_v27 }
  0x16   : > { %v215_v33 = vld [vmem:[%s1075_s28 + $0x140] sm:$0xff]  ;;  %v216_v34 = vld [vmem:[%s1075_s28 + $0x148] sm:$0xff]  ;;  %v258_v36 = vpack.c.bf16 %v214_v30, %v213_v29  ;;  %v243_v37 = vpack.c.bf16 %v184_v32, %v183_v31  ;;  %v185_v39 = vld [vmem:[%s1075_s28 + $0x50] sm:$0xff] }
  0x17   : > { %926 = vmatpush3.bf16.msra.mxu0 %v419_v8  ;;  %1000 = vmatpush3.bf16.msra.mxu1 %v419_v8  ;;  %v259_v38 = vpack.c.bf16 %v216_v34, %v215_v33  ;;  %v186_v40 = vld [vmem:[%s1075_s28 + $0x58] sm:$0xff]  ;;  %v217_v41 = vld [vmem:[%s1075_s28 + $0x150] sm:$0xff]  ;;  %v187_v43 = vld [vmem:[%s1075_s28 + $0x60] sm:$0xff] }
  0x18   : > { %v218_v42 = vld [vmem:[%s1075_s28 + $0x158] sm:$0xff]  ;;  %v188_v44 = vld [vmem:[%s1075_s28 + $0x68] sm:$0xff]  ;;  %v219_v45 = vld [vmem:[%s1075_s28 + $0x160] sm:$0xff]  ;;  %v244_v47 = vpack.c.bf16 %v186_v40, %v185_v39 }
  0x19   : > { %v220_v46 = vld [vmem:[%s1075_s28 + $0x168] sm:$0xff]  ;;  %v260_v48 = vpack.c.bf16 %v218_v42, %v217_v41  ;;  %v245_v49 = vpack.c.bf16 %v188_v44, %v187_v43  ;;  %v189_v51 = vld [vmem:[%s1075_s28 + $0x70] sm:$0xff]  ;;  %v190_v52 = vld [vmem:[%s1075_s28 + $0x78] sm:$0xff] }
  0x1a   : > { %928 = vmatmul.mubr.msk.bf16.vlgmr.msra.gmra.mrb[0].mxu0 %vm317_vm2, %v240_v23  ;;  %960 = vmatmul.mubr.msk.bf16.vlgmr.msra.gmra.mrb[0].mxu1 %vm317_vm2, %v256_v24  ;;  %v261_v50 = vpack.c.bf16 %v220_v46, %v219_v45  ;;  %v221_v53 = vld [vmem:[%s1075_s28 + $0x170] sm:$0xff]  ;;  %v222_v54 = vld [vmem:[%s1075_s28 + $0x178] sm:$0xff]  ;;  %v191_v55 = vld [vmem:[%s1075_s28 + $0x80] sm:$0xff]  ;;  %v246_v59 = vpack.c.bf16 %v190_v52, %v189_v51 }
  0x1b   : > { %931 = vmatprep.mubr.msk.bf16.mxu0 %vm317_vm2, %v241_v25  ;;  %963 = vmatprep.mubr.msk.bf16.mxu1 %vm317_vm2, %v257_v26  ;;  %v192_v56 = vld [vmem:[%s1075_s28 + $0x88] sm:$0xff]  ;;  %v223_v57 = vld [vmem:[%s1075_s28 + $0x180] sm:$0xff]  ;;  %v262_v60 = vpack.c.bf16 %v222_v54, %v221_v53  ;;  %v193_v63 = vld [vmem:[%s1075_s28 + $0x90] sm:$0xff] }
  0x1c   : > { %v224_v58 = vld [vmem:[%s1075_s28 + $0x188] sm:$0xff]  ;;  %v247_v61 = vpack.c.bf16 %v192_v56, %v191_v55  ;;  %v194_v0 = vld [vmem:[%s1075_s28 + $0x98] sm:$0xff]  ;;  %v225_v1 = vld [vmem:[%s1075_s28 + $0x190] sm:$0xff] }
  0x1d   : > { %v263_v62 = vpack.c.bf16 %v224_v58, %v223_v57  ;;  %v226_v2 = vld [vmem:[%s1075_s28 + $0x198] sm:$0xff]  ;;  %v195_v3 = vld [vmem:[%s1075_s28 + $0xa0] sm:$0xff]  ;;  %v196_v4 = vld [vmem:[%s1075_s28 + $0xa8] sm:$0xff]  ;;  %v248_v7 = vpack.c.bf16 %v194_v0, %v193_v63 }
  0x1e   : > { %v227_v5 = vld [vmem:[%s1075_s28 + $0x1a0] sm:$0xff]  ;;  %v228_v6 = vld [vmem:[%s1075_s28 + $0x1a8] sm:$0xff]  ;;  %v264_v8 = vpack.c.bf16 %v226_v2, %v225_v1  ;;  %v249_v9 = vpack.c.bf16 %v196_v4, %v195_v3  ;;  %v197_v11 = vld [vmem:[%s1075_s28 + $0xb0] sm:$0xff] }
  0x1f   : > { %v265_v10 = vpack.c.bf16 %v228_v6, %v227_v5  ;;  %v198_v12 = vld [vmem:[%s1075_s28 + $0xb8] sm:$0xff]  ;;  %v229_v13 = vld [vmem:[%s1075_s28 + $0x1b0] sm:$0xff]  ;;  %v199_v15 = vld [vmem:[%s1075_s28 + $0xc0] sm:$0xff] }
  0x20   : > { %v230_v14 = vld [vmem:[%s1075_s28 + $0x1b8] sm:$0xff]  ;;  %v200_v16 = vld [vmem:[%s1075_s28 + $0xc8] sm:$0xff]  ;;  %v231_v17 = vld [vmem:[%s1075_s28 + $0x1c0] sm:$0xff]  ;;  %v250_v19 = vpack.c.bf16 %v198_v12, %v197_v11 }
  0x21   : > { %v232_v18 = vld [vmem:[%s1075_s28 + $0x1c8] sm:$0xff]  ;;  %v266_v20 = vpack.c.bf16 %v230_v14, %v229_v13  ;;  %v251_v21 = vpack.c.bf16 %v200_v16, %v199_v15  ;;  %v201_v23 = vld [vmem:[%s1075_s28 + $0xd0] sm:$0xff]  ;;  %v202_v24 = vld [vmem:[%s1075_s28 + $0xd8] sm:$0xff] }
  0x22   : > { %932 = vmatmul.mubr.msk.bf16.gmra.mrb[4].mxu0 %vm317_vm2, %v242_v35  ;;  %964 = vmatmul.mubr.msk.bf16.gmra.mrb[4].mxu1 %vm317_vm2, %v258_v36  ;;  %v267_v22 = vpack.c.bf16 %v232_v18, %v231_v17  ;;  %v233_v25 = vld [vmem:[%s1075_s28 + $0x1d0] sm:$0xff]  ;;  %v234_v26 = vld [vmem:[%s1075_s28 + $0x1d8] sm:$0xff]  ;;  %v203_v27 = vld [vmem:[%s1075_s28 + $0xe0] sm:$0xff]  ;;  %v252_v31 = vpack.c.bf16 %v202_v24, %v201_v23 }
  0x23   : > { %935 = vmatprep.mubr.msk.bf16.mxu0 %vm317_vm2, %v243_v37  ;;  %967 = vmatprep.mubr.msk.bf16.mxu1 %vm317_vm2, %v259_v38  ;;  %v204_v28 = vld [vmem:[%s1075_s28 + $0xe8] sm:$0xff]  ;;  %v235_v29 = vld [vmem:[%s1075_s28 + $0x1e0] sm:$0xff]  ;;  %v268_v32 = vpack.c.bf16 %v234_v26, %v233_v25  ;;  %v205_v35 = vld [vmem:[%s1075_s28 + $0xf0] sm:$0xff] }
  0x24   : > { %v236_v30 = vld [vmem:[%s1075_s28 + $0x1e8] sm:$0xff]  ;;  %v253_v33 = vpack.c.bf16 %v204_v28, %v203_v27  ;;  %v206_v36 = vld [vmem:[%s1075_s28 + $0xf8] sm:$0xff]  ;;  %v237_v37 = vld [vmem:[%s1075_s28 + $0x1f0] sm:$0xff] }
  0x25   : > { %v269_v34 = vpack.c.bf16 %v236_v30, %v235_v29  ;;  %v238_v38 = vld [vmem:[%s1075_s28 + $0x1f8] sm:$0xff]  ;;  %v254_v39 = vpack.c.bf16 %v206_v36, %v205_v35  ;;  %v1176_v41 = vld [vmem:[%s1382_s2] ss:$0 sm:$0xff] }
  0x26   : > { %v270_v40 = vpack.c.bf16 %v238_v38, %v237_v37 }
  0x2a   : > { %936 = vmatmul.mubr.msk.bf16.gmra.mrb[8].mxu0 %vm317_vm2, %v244_v47  ;;  %968 = vmatmul.mubr.msk.bf16.gmra.mrb[8].mxu1 %vm317_vm2, %v260_v48 }
  0x2b   : > { %939 = vmatprep.mubr.msk.bf16.mxu0 %vm317_vm2, %v245_v49  ;;  %971 = vmatprep.mubr.msk.bf16.mxu1 %vm317_vm2, %v261_v50 }
  0x32   : > { %940 = vmatmul.mubr.msk.bf16.gmra.mrb[12].mxu0 %vm317_vm2, %v246_v59  ;;  %972 = vmatmul.mubr.msk.bf16.gmra.mrb[12].mxu1 %vm317_vm2, %v262_v60 }
  0x33   : > { %943 = vmatprep.mubr.msk.bf16.mxu0 %vm317_vm2, %v247_v61  ;;  %975 = vmatprep.mubr.msk.bf16.mxu1 %vm317_vm2, %v263_v62 }
  0x3a   : > { %944 = vmatmul.mubr.msk.bf16.gmra.mrb[16].mxu0 %vm317_vm2, %v248_v7  ;;  %976 = vmatmul.mubr.msk.bf16.gmra.mrb[16].mxu1 %vm317_vm2, %v264_v8 }
  0x3b   : > { %947 = vmatprep.mubr.msk.bf16.mxu0 %vm317_vm2, %v249_v9  ;;  %979 = vmatprep.mubr.msk.bf16.mxu1 %vm317_vm2, %v265_v10 }
  0x42   : > { %948 = vmatmul.mubr.msk.bf16.gmra.mrb[20].mxu0 %vm317_vm2, %v250_v19  ;;  %980 = vmatmul.mubr.msk.bf16.gmra.mrb[20].mxu1 %vm317_vm2, %v266_v20 }
  0x43   : > { %951 = vmatprep.mubr.msk.bf16.mxu0 %vm317_vm2, %v251_v21  ;;  %983 = vmatprep.mubr.msk.bf16.mxu1 %vm317_vm2, %v267_v22 }
  0x4a   : > { %952 = vmatmul.mubr.msk.bf16.gmra.mrb[24].mxu0 %vm317_vm2, %v252_v31  ;;  %984 = vmatmul.mubr.msk.bf16.gmra.mrb[24].mxu1 %vm317_vm2, %v268_v32 }
  0x4b   : > { %955 = vmatprep.mubr.msk.bf16.mxu0 %vm317_vm2, %v253_v33  ;;  %987 = vmatprep.mubr.msk.bf16.mxu1 %vm317_vm2, %v269_v34 }
  0x52   : > { %956 = vmatmul.mubr.msk.bf16.gmra.mrb[28].mxu0 %vm317_vm2, %v254_v39  ;;  %988 = vmatmul.mubr.msk.bf16.gmra.mrb[28].mxu1 %vm317_vm2, %v270_v40 }
  0xed   : > { %v929_v42 = vpop.f32.mrb[0].mxu0  ;;  %v961_v43 = vpop.f32.mrb[0].mxu1 }
  0xee   : > { %v464_v44 = vadd.f32 %v929_v42, %v1176_v41  ;;  %v592_v45 = vadd.f32 %v961_v43, %v1176_v41  ;;  %v455_v46 = vpop.f32.mrb[1].mxu0  ;;  %v583_v47 = vpop.f32.mrb[1].mxu1 }
  0xef   : > { %v456_v48 = vadd.f32 %v1176_v41, %v455_v46  ;;  %v584_v49 = vadd.f32 %v1176_v41, %v583_v47  ;;  %v930_v50 = vpop.f32.mrb[2].mxu0  ;;  %v962_v51 = vpop.f32.mrb[2].mxu1 }
  0xf0   : > { %713 = vst.msk [vmem:[%s1183_s6 + $0x10] sm:$0xff] %vm710_vm3, %v464_v44  ;;  %745 = vst.msk [vmem:[%s1183_s6 + $0x110] sm:$0xff] %vm710_vm3, %v592_v45  ;;  %v467_v52 = vadd.f32 %v930_v50, %v1176_v41  ;;  %v595_v53 = vadd.f32 %v962_v51, %v1176_v41  ;;  %v458_v54 = vpop.f32.mrb[3].mxu0  ;;  %v586_v55 = vpop.f32.mrb[3].mxu1 }
  0xf1   : > { %711 = vst.msk [vmem:[%s1183_s6] sm:$0xff] %vm710_vm3, %v456_v48  ;;  %743 = vst.msk [vmem:[%s1183_s6 + $0x100] sm:$0xff] %vm710_vm3, %v584_v49  ;;  %v459_v56 = vadd.f32 %v1176_v41, %v458_v54  ;;  %v587_v57 = vadd.f32 %v1176_v41, %v586_v55 }
  0xf2   : > { %714 = vst.msk [vmem:[%s1183_s6 + $0x18] sm:$0xff] %vm710_vm3, %v467_v52  ;;  %746 = vst.msk [vmem:[%s1183_s6 + $0x118] sm:$0xff] %vm710_vm3, %v595_v53 }
  0xf3   : > { %712 = vst.msk [vmem:[%s1183_s6 + $0x8] sm:$0xff] %vm710_vm3, %v459_v56  ;;  %744 = vst.msk [vmem:[%s1183_s6 + $0x108] sm:$0xff] %vm710_vm3, %v587_v57 }
  0xf5   : > { %v933_v58 = vpop.f32.mrb[4].mxu0  ;;  %v965_v59 = vpop.f32.mrb[4].mxu1 }
  0xf6   : > { %v480_v60 = vadd.f32 %v933_v58, %v1176_v41  ;;  %v608_v61 = vadd.f32 %v965_v59, %v1176_v41  ;;  %v471_v62 = vpop.f32.mrb[5].mxu0  ;;  %v599_v63 = vpop.f32.mrb[5].mxu1 }
  0xf7   : > { %v472_v0 = vadd.f32 %v1176_v41, %v471_v62  ;;  %v600_v1 = vadd.f32 %v1176_v41, %v599_v63  ;;  %v934_v2 = vpop.f32.mrb[6].mxu0  ;;  %v966_v3 = vpop.f32.mrb[6].mxu1 }
  0xf8   : > { %717 = vst.msk [vmem:[%s1183_s6 + $0x30] sm:$0xff] %vm710_vm3, %v480_v60  ;;  %749 = vst.msk [vmem:[%s1183_s6 + $0x130] sm:$0xff] %vm710_vm3, %v608_v61  ;;  %v483_v4 = vadd.f32 %v934_v2, %v1176_v41  ;;  %v611_v5 = vadd.f32 %v966_v3, %v1176_v41  ;;  %v474_v6 = vpop.f32.mrb[7].mxu0  ;;  %v602_v7 = vpop.f32.mrb[7].mxu1 }
  0xf9   : > { %715 = vst.msk [vmem:[%s1183_s6 + $0x20] sm:$0xff] %vm710_vm3, %v472_v0  ;;  %747 = vst.msk [vmem:[%s1183_s6 + $0x120] sm:$0xff] %vm710_vm3, %v600_v1  ;;  %v475_v8 = vadd.f32 %v1176_v41, %v474_v6  ;;  %v603_v9 = vadd.f32 %v1176_v41, %v602_v7 }
  0xfa   : > { %718 = vst.msk [vmem:[%s1183_s6 + $0x38] sm:$0xff] %vm710_vm3, %v483_v4  ;;  %750 = vst.msk [vmem:[%s1183_s6 + $0x138] sm:$0xff] %vm710_vm3, %v611_v5 }
  0xfb   : > { %716 = vst.msk [vmem:[%s1183_s6 + $0x28] sm:$0xff] %vm710_vm3, %v475_v8  ;;  %748 = vst.msk [vmem:[%s1183_s6 + $0x128] sm:$0xff] %vm710_vm3, %v603_v9 }
  0xfd   : > { %v937_v10 = vpop.f32.mrb[8].mxu0  ;;  %v969_v11 = vpop.f32.mrb[8].mxu1 }
  0xfe   : > { %v496_v12 = vadd.f32 %v937_v10, %v1176_v41  ;;  %v624_v13 = vadd.f32 %v969_v11, %v1176_v41  ;;  %v487_v14 = vpop.f32.mrb[9].mxu0  ;;  %v615_v15 = vpop.f32.mrb[9].mxu1 }
  0xff   : > { %v488_v16 = vadd.f32 %v1176_v41, %v487_v14  ;;  %v616_v17 = vadd.f32 %v1176_v41, %v615_v15  ;;  %v938_v18 = vpop.f32.mrb[10].mxu0  ;;  %v970_v19 = vpop.f32.mrb[10].mxu1 }
 0x100   : > { %721 = vst.msk [vmem:[%s1183_s6 + $0x50] sm:$0xff] %vm710_vm3, %v496_v12  ;;  %753 = vst.msk [vmem:[%s1183_s6 + $0x150] sm:$0xff] %vm710_vm3, %v624_v13  ;;  %v499_v20 = vadd.f32 %v938_v18, %v1176_v41  ;;  %v627_v21 = vadd.f32 %v970_v19, %v1176_v41  ;;  %v490_v22 = vpop.f32.mrb[11].mxu0  ;;  %v618_v23 = vpop.f32.mrb[11].mxu1 }
 0x101   : > { %719 = vst.msk [vmem:[%s1183_s6 + $0x40] sm:$0xff] %vm710_vm3, %v488_v16  ;;  %751 = vst.msk [vmem:[%s1183_s6 + $0x140] sm:$0xff] %vm710_vm3, %v616_v17  ;;  %v491_v24 = vadd.f32 %v1176_v41, %v490_v22  ;;  %v619_v25 = vadd.f32 %v1176_v41, %v618_v23 }
 0x102   : > { %722 = vst.msk [vmem:[%s1183_s6 + $0x58] sm:$0xff] %vm710_vm3, %v499_v20  ;;  %754 = vst.msk [vmem:[%s1183_s6 + $0x158] sm:$0xff] %vm710_vm3, %v627_v21 }
 0x103   : > { %720 = vst.msk [vmem:[%s1183_s6 + $0x48] sm:$0xff] %vm710_vm3, %v491_v24  ;;  %752 = vst.msk [vmem:[%s1183_s6 + $0x148] sm:$0xff] %vm710_vm3, %v619_v25 }
 0x105   : > { %v941_v26 = vpop.f32.mrb[12].mxu0  ;;  %v973_v27 = vpop.f32.mrb[12].mxu1 }
 0x106   : > { %v512_v28 = vadd.f32 %v941_v26, %v1176_v41  ;;  %v640_v29 = vadd.f32 %v973_v27, %v1176_v41  ;;  %v503_v30 = vpop.f32.mrb[13].mxu0  ;;  %v631_v31 = vpop.f32.mrb[13].mxu1 }
 0x107   : > { %v504_v32 = vadd.f32 %v1176_v41, %v503_v30  ;;  %v632_v33 = vadd.f32 %v1176_v41, %v631_v31  ;;  %v942_v34 = vpop.f32.mrb[14].mxu0  ;;  %v974_v35 = vpop.f32.mrb[14].mxu1 }
 0x108   : > { %725 = vst.msk [vmem:[%s1183_s6 + $0x70] sm:$0xff] %vm710_vm3, %v512_v28  ;;  %757 = vst.msk [vmem:[%s1183_s6 + $0x170] sm:$0xff] %vm710_vm3, %v640_v29  ;;  %v515_v36 = vadd.f32 %v942_v34, %v1176_v41  ;;  %v643_v37 = vadd.f32 %v974_v35, %v1176_v41  ;;  %v506_v38 = vpop.f32.mrb[15].mxu0  ;;  %v634_v39 = vpop.f32.mrb[15].mxu1 }
 0x109   : > { %723 = vst.msk [vmem:[%s1183_s6 + $0x60] sm:$0xff] %vm710_vm3, %v504_v32  ;;  %755 = vst.msk [vmem:[%s1183_s6 + $0x160] sm:$0xff] %vm710_vm3, %v632_v33  ;;  %v507_v40 = vadd.f32 %v1176_v41, %v506_v38  ;;  %v635_v42 = vadd.f32 %v1176_v41, %v634_v39 }
 0x10a   : > { %726 = vst.msk [vmem:[%s1183_s6 + $0x78] sm:$0xff] %vm710_vm3, %v515_v36  ;;  %758 = vst.msk [vmem:[%s1183_s6 + $0x178] sm:$0xff] %vm710_vm3, %v643_v37 }
 0x10b   : > { %724 = vst.msk [vmem:[%s1183_s6 + $0x68] sm:$0xff] %vm710_vm3, %v507_v40  ;;  %756 = vst.msk [vmem:[%s1183_s6 + $0x168] sm:$0xff] %vm710_vm3, %v635_v42 }
 0x10d   : > { %v945_v43 = vpop.f32.mrb[16].mxu0  ;;  %v977_v44 = vpop.f32.mrb[16].mxu1 }
 0x10e   : > { %v528_v45 = vadd.f32 %v945_v43, %v1176_v41  ;;  %v656_v46 = vadd.f32 %v977_v44, %v1176_v41  ;;  %v519_v47 = vpop.f32.mrb[17].mxu0  ;;  %v647_v48 = vpop.f32.mrb[17].mxu1 }
 0x10f   : > { %v520_v49 = vadd.f32 %v1176_v41, %v519_v47  ;;  %v648_v50 = vadd.f32 %v1176_v41, %v647_v48  ;;  %v946_v51 = vpop.f32.mrb[18].mxu0  ;;  %v978_v52 = vpop.f32.mrb[18].mxu1 }
 0x110   : > { %729 = vst.msk [vmem:[%s1183_s6 + $0x90] sm:$0xff] %vm710_vm3, %v528_v45  ;;  %761 = vst.msk [vmem:[%s1183_s6 + $0x190] sm:$0xff] %vm710_vm3, %v656_v46  ;;  %v531_v53 = vadd.f32 %v946_v51, %v1176_v41  ;;  %v659_v54 = vadd.f32 %v978_v52, %v1176_v41  ;;  %v522_v55 = vpop.f32.mrb[19].mxu0  ;;  %v650_v56 = vpop.f32.mrb[19].mxu1 }
 0x111   : > { %727 = vst.msk [vmem:[%s1183_s6 + $0x80] sm:$0xff] %vm710_vm3, %v520_v49  ;;  %759 = vst.msk [vmem:[%s1183_s6 + $0x180] sm:$0xff] %vm710_vm3, %v648_v50  ;;  %v523_v57 = vadd.f32 %v1176_v41, %v522_v55  ;;  %v651_v58 = vadd.f32 %v1176_v41, %v650_v56 }
 0x112   : > { %730 = vst.msk [vmem:[%s1183_s6 + $0x98] sm:$0xff] %vm710_vm3, %v531_v53  ;;  %762 = vst.msk [vmem:[%s1183_s6 + $0x198] sm:$0xff] %vm710_vm3, %v659_v54 }
 0x113   : > { %728 = vst.msk [vmem:[%s1183_s6 + $0x88] sm:$0xff] %vm710_vm3, %v523_v57  ;;  %760 = vst.msk [vmem:[%s1183_s6 + $0x188] sm:$0xff] %vm710_vm3, %v651_v58 }
 0x115   : > { %v949_v59 = vpop.f32.mrb[20].mxu0  ;;  %v981_v60 = vpop.f32.mrb[20].mxu1 }
 0x116   : > { %v544_v61 = vadd.f32 %v949_v59, %v1176_v41  ;;  %v672_v62 = vadd.f32 %v981_v60, %v1176_v41  ;;  %v535_v63 = vpop.f32.mrb[21].mxu0  ;;  %v663_v0 = vpop.f32.mrb[21].mxu1 }
 0x117   : > { %v536_v1 = vadd.f32 %v1176_v41, %v535_v63  ;;  %v664_v2 = vadd.f32 %v1176_v41, %v663_v0  ;;  %v950_v3 = vpop.f32.mrb[22].mxu0  ;;  %v982_v4 = vpop.f32.mrb[22].mxu1 }
 0x118   : > { %733 = vst.msk [vmem:[%s1183_s6 + $0xb0] sm:$0xff] %vm710_vm3, %v544_v61  ;;  %765 = vst.msk [vmem:[%s1183_s6 + $0x1b0] sm:$0xff] %vm710_vm3, %v672_v62  ;;  %v547_v5 = vadd.f32 %v950_v3, %v1176_v41  ;;  %v675_v6 = vadd.f32 %v982_v4, %v1176_v41  ;;  %v538_v7 = vpop.f32.mrb[23].mxu0  ;;  %v666_v8 = vpop.f32.mrb[23].mxu1 }
 0x119   : > { %731 = vst.msk [vmem:[%s1183_s6 + $0xa0] sm:$0xff] %vm710_vm3, %v536_v1  ;;  %763 = vst.msk [vmem:[%s1183_s6 + $0x1a0] sm:$0xff] %vm710_vm3, %v664_v2  ;;  %v539_v9 = vadd.f32 %v1176_v41, %v538_v7  ;;  %v667_v10 = vadd.f32 %v1176_v41, %v666_v8 }
 0x11a   : > { %734 = vst.msk [vmem:[%s1183_s6 + $0xb8] sm:$0xff] %vm710_vm3, %v547_v5  ;;  %766 = vst.msk [vmem:[%s1183_s6 + $0x1b8] sm:$0xff] %vm710_vm3, %v675_v6 }
 0x11b   : > { %732 = vst.msk [vmem:[%s1183_s6 + $0xa8] sm:$0xff] %vm710_vm3, %v539_v9  ;;  %764 = vst.msk [vmem:[%s1183_s6 + $0x1a8] sm:$0xff] %vm710_vm3, %v667_v10 }
 0x11d   : > { %v953_v11 = vpop.f32.mrb[24].mxu0  ;;  %v985_v12 = vpop.f32.mrb[24].mxu1 }
 0x11e   : > { %v560_v13 = vadd.f32 %v953_v11, %v1176_v41  ;;  %v688_v14 = vadd.f32 %v985_v12, %v1176_v41  ;;  %v551_v15 = vpop.f32.mrb[25].mxu0  ;;  %v679_v16 = vpop.f32.mrb[25].mxu1 }
 0x11f   : > { %v552_v17 = vadd.f32 %v1176_v41, %v551_v15  ;;  %v680_v18 = vadd.f32 %v1176_v41, %v679_v16  ;;  %v954_v19 = vpop.f32.mrb[26].mxu0  ;;  %v986_v20 = vpop.f32.mrb[26].mxu1 }
 0x120   : > { %737 = vst.msk [vmem:[%s1183_s6 + $0xd0] sm:$0xff] %vm710_vm3, %v560_v13  ;;  %769 = vst.msk [vmem:[%s1183_s6 + $0x1d0] sm:$0xff] %vm710_vm3, %v688_v14  ;;  %v563_v21 = vadd.f32 %v954_v19, %v1176_v41  ;;  %v691_v22 = vadd.f32 %v986_v20, %v1176_v41  ;;  %v554_v23 = vpop.f32.mrb[27].mxu0  ;;  %v682_v24 = vpop.f32.mrb[27].mxu1 }
 0x121   : > { %735 = vst.msk [vmem:[%s1183_s6 + $0xc0] sm:$0xff] %vm710_vm3, %v552_v17  ;;  %767 = vst.msk [vmem:[%s1183_s6 + $0x1c0] sm:$0xff] %vm710_vm3, %v680_v18  ;;  %v555_v25 = vadd.f32 %v1176_v41, %v554_v23  ;;  %v683_v26 = vadd.f32 %v1176_v41, %v682_v24 }
 0x122   : > { %738 = vst.msk [vmem:[%s1183_s6 + $0xd8] sm:$0xff] %vm710_vm3, %v563_v21  ;;  %770 = vst.msk [vmem:[%s1183_s6 + $0x1d8] sm:$0xff] %vm710_vm3, %v691_v22 }
 0x123   : > { %736 = vst.msk [vmem:[%s1183_s6 + $0xc8] sm:$0xff] %vm710_vm3, %v555_v25  ;;  %768 = vst.msk [vmem:[%s1183_s6 + $0x1c8] sm:$0xff] %vm710_vm3, %v683_v26 }
 0x125   : > { %v957_v27 = vpop.f32.mrb[28].mxu0  ;;  %v989_v28 = vpop.f32.mrb[28].mxu1 }
 0x126   : > { %v576_v29 = vadd.f32 %v957_v27, %v1176_v41  ;;  %v704_v30 = vadd.f32 %v989_v28, %v1176_v41  ;;  %v567_v31 = vpop.f32.mrb[29].mxu0  ;;  %v695_v32 = vpop.f32.mrb[29].mxu1 }
 0x127   : > { %v568_v33 = vadd.f32 %v1176_v41, %v567_v31  ;;  %v696_v34 = vadd.f32 %v1176_v41, %v695_v32  ;;  %v958_v35 = vpop.f32.mrb[30].mxu0  ;;  %v990_v36 = vpop.f32.mrb[30].mxu1 }
 0x128   : > { %741 = vst.msk [vmem:[%s1183_s6 + $0xf0] sm:$0xff] %vm710_vm3, %v576_v29  ;;  %773 = vst.msk [vmem:[%s1183_s6 + $0x1f0] sm:$0xff] %vm710_vm3, %v704_v30  ;;  %v579_v37 = vadd.f32 %v958_v35, %v1176_v41  ;;  %v707_v38 = vadd.f32 %v990_v36, %v1176_v41  ;;  %v570_v39 = vpop.f32.mrb[31].mxu0  ;;  %v698_v40 = vpop.f32.mrb[31].mxu1 }
 0x129   : > { %739 = vst.msk [vmem:[%s1183_s6 + $0xe0] sm:$0xff] %vm710_vm3, %v568_v33  ;;  %771 = vst.msk [vmem:[%s1183_s6 + $0x1e0] sm:$0xff] %vm710_vm3, %v696_v34  ;;  %v571_v42 = vadd.f32 %v1176_v41, %v570_v39  ;;  %v699_v43 = vadd.f32 %v1176_v41, %v698_v40 }
 0x12a   : > { %742 = vst.msk [vmem:[%s1183_s6 + $0xf8] sm:$0xff] %vm710_vm3, %v579_v37  ;;  %774 = vst.msk [vmem:[%s1183_s6 + $0x1f8] sm:$0xff] %vm710_vm3, %v707_v38 }
 0x12b   : > { %740 = vst.msk [vmem:[%s1183_s6 + $0xe8] sm:$0xff] %vm710_vm3, %v571_v42  ;;  %772 = vst.msk [vmem:[%s1183_s6 + $0x1e8] sm:$0xff] %vm710_vm3, %v699_v43 }
 0x12c PF: > { %s13_s12 = sadd.s32 1, %s1021_s12  }
 0x12d   : > { %p10_p4 = scmp.ge.s32.totalorder %s13_s12, 13  }
 0x12f   :  { %12 = sbr.rel (!%p10_p4) target bundleno = 1 (0x1), region = 62 }

// kernel: tile.63
= control target key start
LH: loop header
LB: loop body
LE: loop exit
PB: predicated region body
PF: predicated region fallthrough
CT: control target
= control target key end

     0   :  { %s28_s0 = inlined_call_operand.vmem [shape: f32[32], index: 0, kind: input, shape index: {}]   ;;  %s29_s1 = inlined_call_operand.vmem [shape: f32[9,32], index: 1, kind: output, shape index: {}]  }
   0x1   :  { %v4_v0 = vld [vmem:[%s28_s0] ss:$0 sm:$0xff] }
   0x2   :  { %5 = vst [vmem:[%s29_s1] sm:$0xff] %v4_v0  ;;  %8 = vst [vmem:[%s29_s1 + $0x8] sm:$0xff] %v4_v0 }

// kernel: tile.68
= control target key start
LH: loop header
LB: loop body
LE: loop exit
PB: predicated region body
PF: predicated region fallthrough
CT: control target
= control target key end

     0   :  { %s6_s6 = smov 3  ;;  %s13_s11 = smov 3  ;;  %vm3_vm0 = vcmask 261120   ;;  %vm10_vm1 = vcmask 1048320   ;;  %vm17_vm2 = vcmask 785920   ;;  %vm24_vm3 = vcmask 523520   ;;  %s86_s0 = inlined_call_operand.vmem [shape: f32[9,32], index: 0, kind: input, shape index: {}]   ;;  %s87_s1 = inlined_call_operand.vmem [shape: f32[1,288], index: 1, kind: output, shape index: {}]  }
   0x1   :  { %v2_v0 = vld [vmem:[%s86_s0] ss:$4 sm:$0x7]   ;;  %v44_v1 = vld [vmem:[%s86_s0 + $0x3] ss:$4 sm:%s6_s6]   ;;  %s52_s12 = smov 96  }
   0x2   :  { %8 = vrot.lane.b32.xlu0 %v44_v1, %s52_s12  ;;  %s20_s13 = smov 3  ;;  %4 = vst.msk [vmem:[#allocation0] ss:$8 sm:$0x7] %vm3_vm0, %v2_v0   ;;  %v45_v2 = vld [vmem:[%s86_s0 + $0x2] ss:$4 sm:%s13_s11]  }
   0x3   :  { %v46_v3 = vld [vmem:[%s86_s0 + $0x1] ss:$4 sm:%s20_s13]   ;;  %s53_s0 = smov 32   ;;  %s54_s18 = smov 64  }
   0x4   :  { %22 = vrot.lane.b32.xlu1 %v46_v3, %s53_s0 }
   0x6   :  { %15 = vrot.lane.b32.xlu0 %v45_v2, %s54_s18 }
   0x9   :  { %v38_v4 = vld [vmem:[#allocation0 + $0x10] sm:$0x1] }
   0xa   :  { %48 = vst [vmem:[%s87_s1 + $0x2] sm:$0x1] %v38_v4 }
  0x74   :  { %v9_v5 = vpop.permute.xlu0 %8  }
  0x75   :  { %11 = vst.msk [vmem:[#allocation0] ss:$8 sm:$0x3] %vm10_vm1, %v9_v5  }
  0x76   :  { %v23_v6 = vpop.permute.xlu1 %22  }
  0x78   :  { %v16_v7 = vpop.permute.xlu0 %15  }
  0x79   :  { %18 = vst.msk [vmem:[#allocation0] ss:$8 sm:$0x3] %vm17_vm2, %v16_v7  }
  0x7a   :  { %25 = vst.msk [vmem:[#allocation0] ss:$8 sm:$0x3] %vm24_vm3, %v23_v6  }
  0x81   :  { %v29_v8 = vld [vmem:[#allocation0] sm:$0x1]  ;;  %v33_v9 = vld [vmem:[#allocation0 + $0x8] sm:$0x1] }
  0x82   :  { %31 = vst [vmem:[%s87_s1] sm:$0x1] %v29_v8  ;;  %47 = vst [vmem:[%s87_s1 + $0x1] sm:$0x1] %v33_v9 }

// kernel: resnet8_forward.9
= control target key start
LH: loop header
LB: loop body
LE: loop exit
PB: predicated region body
PF: predicated region fallthrough
CT: control target
= control target key end

     0   :  { %v2128_v0 = vmov 0.0   ;;  %v2129_v1 = vmov 0   ;;  %vm2130_vm0 = vmmov 0   ;;  %vm115_vm1 = vcmask 261120   ;;  %s3755_s3 = inlined_call_operand.vmem [shape: bf16[32,32], index: 3, kind: input, shape index: {}]   ;;  %s3756_s1 = inlined_call_operand.vmem [shape: bf16[288,32], index: 1, kind: input, shape index: {}]   ;;  %s3757_s0 = inlined_call_operand.vmem [shape: f32[336,288], index: 0, kind: input, shape index: {}]   ;;  %s3758_s5 = inlined_call_operand.vmem [shape: f32[1,288], index: 5, kind: input, shape index: {}]   ;;  %s3759_s6 = inlined_call_operand.vmem [shape: f32[1,288], index: 6, kind: input, shape index: {}]   ;;  %s3760_s4 = inlined_call_operand.vmem [shape: f32[1,32], index: 4, kind: input, shape index: {}]   ;;  %s3761_s8 = inlined_call_operand.vmem [shape: f32[336,32], index: 8, kind: output, shape index: {1}]   ;;  %s3762_s2 = inlined_call_operand.vmem [shape: f32[1,32], index: 2, kind: input, shape index: {}]   ;;  %s3763_s7 = inlined_call_operand.vmem [shape: f32[336,32], index: 7, kind: output, shape index: {0}]  }
   0x1   :  { %1799 = vmatprep.subr.bf16.mxu0 %v2128_v0  ;;  %1975 = vmatprep.subr.bf16.mxu1 %v2129_v1  ;;  %v2108_v2 = vld [vmem:[%s3755_s3] sm:$0xff]   ;;  %v2110_v4 = vld [vmem:[%s3755_s3 + $0x8] sm:$0xff]   ;;  %v2112_v9 = vld [vmem:[%s3756_s1 + $0x10] sm:$0xff]   ;;  %v508_v13 = vlaneseq }
   0x2   :  { %v2109_v3 = vld [vmem:[%s3756_s1] sm:$0xff]   ;;  %1803 = vmatprep.mubr.msk.bf16.mxu0 %vm2130_vm0, %v2128_v0  ;;  %1800 = vmatpush3.bf16.msra.mxu0 %v2108_v2  ;;  %v2111_v5 = vld [vmem:[%s3756_s1 + $0x8] sm:$0xff]   ;;  %v2215_v10 = vld [vmem:[%s3757_s0 + $0x38] sm:$0xff] }
   0x3   :  { %1991 = vmatpush1.bf16.msra.mxu1 %v2109_v3  ;;  %1801 = vmatprep.subr.bf16.mxu0 %v2128_v0  ;;  %v2197_v6 = vld [vmem:[%s3757_s0 + $0x8] sm:$0xff]  ;;  %v2202_v7 = vld [vmem:[%s3757_s0 + $0x20] sm:$0xff]  ;;  %v2222_v11 = vld [vmem:[%s3757_s0 + $0x50] sm:$0xff]  ;;  %v2236_v16 = vshrl.u32 %v508_v13, 7 }
   0x4   :  { %1976 = vmatprep.subr.bf16.mxu1 %v2129_v1  ;;  %v71_v8 = vpack.c.bf16 %v2202_v7, %v2197_v6  ;;  %v2113_v12 = vld [vmem:[%s3756_s1 + $0x18] sm:$0xff]   ;;  %v72_v14 = vpack.c.bf16 %v2222_v11, %v2215_v10  ;;  %v2114_v15 = vld [vmem:[%s3756_s1 + $0x20] sm:$0xff]   ;;  %v2242_v17 = vld [vmem:[%s3757_s0 + $0x68] sm:$0xff] }
   0x5   :  { %v2249_v18 = vld [vmem:[%s3757_s0 + $0x80] sm:$0xff]  ;;  %v2115_v19 = vld [vmem:[%s3756_s1 + $0x28] sm:$0xff]   ;;  %v514_v20 = vsub.s32 1, %v2236_v16  ;;  %v518_v21 = vsub.s32 2, %v2236_v16  ;;  %v2116_v23 = vld [vmem:[%s3756_s1 + $0x30] sm:$0xff]   ;;  %v510_v50 = vsub.s32 0, %v2236_v16 }
   0x6   :  { %1802 = vmatpush3.bf16.msra.mxu0 %v2110_v4  ;;  %v73_v22 = vpack.c.bf16 %v2249_v18, %v2242_v17  ;;  %v2266_v24 = vld [vmem:[%s3757_s0 + $0x2a8] sm:$0xff]  ;;  %v2272_v25 = vld [vmem:[%s3757_s0 + $0x2c0] sm:$0xff]  ;;  %v2301_v33 = vld [vmem:[%s3757_s0 + $0x98] sm:$0xff] }
   0x7   :  { %1992 = vmatpush1.bf16.msra.mxu1 %v2111_v5  ;;  %1195 = vmatprep.subr.bf16.mxu0 %v2129_v1  ;;  %v506_v26 = vld [vmem:[%s3758_s5] sm:$0x7]  ;;  %v85_v32 = vpack.c.bf16 %v2272_v25, %v2266_v24  ;;  %v2306_v34 = vld [vmem:[%s3757_s0 + $0xb0] sm:$0xff]  ;;  %v2117_v37 = vld [vmem:[%s3756_s1 + $0x38] sm:$0xff]  }
   0x8   :  { %1977 = vmatprep.subr.bf16.mxu1 %v2129_v1  ;;  %v2280_v27 = vld [vmem:[%s3759_s6] sm:$0x7]  ;;  %v2283_v28 = vrot.slane %v506_v26, %v514_v20  ;;  %v2285_v29 = vrot.slane %v506_v26, %v518_v21  ;;  %v74_v40 = vpack.c.bf16 %v2306_v34, %v2301_v33  ;;  %v2332_v45 = vld [vmem:[%s3757_s0 + $0xc8] sm:$0xff]  ;;  %v2120_v49 = vld [vmem:[%s3756_s1 + $0x50] sm:$0xff]   ;;  %v2366_v55 = vrot.slane %v506_v26, %v510_v50 }
   0x9   :  { %1804 = vmatmul.mubr.msk.bf16.vlgmr.msra.gmra.mrb[0].mxu0 %vm115_vm1, %v71_v8  ;;  %v2288_v30 = vrot.slane %v2280_v27, %v514_v20  ;;  %v2291_v31 = vrot.slane %v2280_v27, %v518_v21  ;;  %v2118_v43 = vld [vmem:[%s3756_s1 + $0x40] sm:$0xff]   ;;  %v2119_v47 = vld [vmem:[%s3756_s1 + $0x48] sm:$0xff]   ;;  %v39_v51 = vld [vmem:[%s3757_s0 + $0xf8] sm:$0xff]  ;;  %v2392_v62 = vrot.slane %v2280_v27, %v510_v50 }
   0xa   :  { %1196 = vmatpush1.bf16.msra.mxu0 %v2109_v3  ;;  %1807 = vmatprep.mubr.msk.bf16.mxu0 %vm2130_vm0, %v2128_v0  ;;  %v608_v35 = vmul.f32 %v2283_v28, %v2266_v24  ;;  %v611_v36 = vmul.f32 %v2283_v28, %v2272_v25  ;;  %v2337_v46 = vld [vmem:[%s3757_s0 + $0xe0] sm:$0xff]  ;;  %v40_v52 = vld [vmem:[%s3757_s0 + $0x110] sm:$0xff]  ;;  %v2121_v53 = vld [vmem:[%s3756_s1 + $0x58] sm:$0xff]  }
   0xb   :  { %1993 = vmatpush1.bf16.msra.mxu1 %v2112_v9  ;;  %1197 = vmatprep.subr.bf16.mxu0 %v2129_v1  ;;  %v75_v48 = vpack.c.bf16 %v2337_v46, %v2332_v45  ;;  %v76_v54 = vpack.c.bf16 %v40_v52, %v39_v51  ;;  %v2122_v56 = vld [vmem:[%s3756_s1 + $0x60] sm:$0xff]   ;;  %v467_v58 = vld [vmem:[%s3757_s0 + $0x2b8] sm:$0xff]  ;;  %v2385_v60 = vld [vmem:[%s3757_s0 + $0x2f0] sm:$0xff] }
   0xc   :  { %1978 = vmatprep.subr.bf16.mxu1 %v2129_v1  ;;  %v751_v38 = vadd.f32 %v2288_v30, %v608_v35  ;;  %v754_v39 = vadd.f32 %v2288_v30, %v611_v36  ;;  %v464_v57 = vld [vmem:[%s3757_s0 + $0x2a0] sm:$0xff]  ;;  %v2380_v59 = vld [vmem:[%s3757_s0 + $0x2d8] sm:$0xff]  ;;  %v41_v63 = vld [vmem:[%s3757_s0 + $0x128] sm:$0xff]  ;;  %v610_v3 = vmul.f32 %v2366_v55, %v467_v58 }
   0xd   :  { %v607_v61 = vmul.f32 %v2366_v55, %v464_v57  ;;  %v42_v2 = vld [vmem:[%s3757_s0 + $0x140] sm:$0xff]  ;;  %v614_v4 = vmul.f32 %v2283_v28, %v2380_v59  ;;  %v2123_v8 = vld [vmem:[%s3756_s1 + $0x68] sm:$0xff]   ;;  %v470_v21 = vld [vmem:[%s3757_s0 + $0x2d0] sm:$0xff] }
   0xe   :  { %1198 = vmatpush1.bf16.msra.mxu0 %v2111_v5  ;;  %v877_v41 = vmax.f32 %v751_v38, 0.0  ;;  %v880_v42 = vmax.f32 %v754_v39, 0.0  ;;  %v617_v5 = vmul.f32 %v2283_v28, %v2385_v60  ;;  %v753_v16 = vadd.f32 %v2392_v62, %v610_v3  ;;  %v2439_v26 = vld [vmem:[%s3756_s1 + $0x70] sm:$0xff]   ;;  %v2445_v27 = vld [vmem:[%s3757_s0 + $0x338] sm:$0xff]  ;;  %v476_v3 = vld [vmem:[%s3757_s0 + $0x300] sm:$0xff] }
   0xf   :  { %1994 = vmatpush1.bf16.msra.mxu1 %v2113_v12  ;;  %1199 = vmatprep.subr.bf16.mxu0 %v2129_v1  ;;  %v750_v13 = vadd.f32 %v2392_v62, %v607_v61  ;;  %v2450_v35 = vld [vmem:[%s3757_s0 + $0x350] sm:$0xff]  ;;  %v43_v36 = vld [vmem:[%s3757_s0 + $0x158] sm:$0xff]  ;;  %v613_v38 = vmul.f32 %v2366_v55, %v470_v21  ;;  %v400_v25 = vld [vmem:[%s3757_s0 + $0xa0] sm:$0xff] }
  0x10   :  { %1979 = vmatprep.subr.bf16.mxu1 %v2129_v1  ;;  %v961_v44 = vpack.c.bf16 %v880_v42, %v877_v41  ;;  %v760_v20 = vadd.f32 %v2288_v30, %v617_v5  ;;  %v879_v42 = vmax.f32 %v753_v16, 0.0  ;;  %v2515_v5 = vld [vmem:[%s3757_s0 + $0x3e0] sm:$0xff] }
  0x11   :  { %1808 = vmatmul.mubr.msk.bf16.gmra.mrb[4].mxu0 %vm115_vm1, %v72_v14  ;;  %v2418_v14 = vld [vmem:[%s3757_s0 + $0x308] sm:$0xff]  ;;  %v876_v41 = vmax.f32 %v750_v13, 0.0 }
  0x12   :  { %1811 = vmatprep.mubr.msk.bf16.mxu0 %vm2130_vm0, %v2128_v0  ;;  %1200 = vmatpush1.bf16.msra.mxu0 %v2112_v9  ;;  %v86_v9 = vpack.c.bf16 %v2385_v60, %v2380_v59  ;;  %v620_v50 = vmul.f32 %v2283_v28, %v2418_v14  ;;  %v406_v60 = vld [vmem:[%s3757_s0 + $0xd0] sm:$0xff] }
  0x13   :  { %1995 = vmatpush1.bf16.msra.mxu1 %v2114_v15  ;;  %1201 = vmatprep.subr.bf16.mxu0 %v2129_v1 }
  0x14   :  { %1980 = vmatprep.subr.bf16.mxu1 %v2129_v1  ;;  %1339 = vmatprep.mubr.bf16.mxu1 %v961_v44  ;;  %v886_v44 = vmax.f32 %v760_v20, 0.0  ;;  %v763_v13 = vadd.f32 %v2288_v30, %v620_v50  ;;  %v2127_v50 = vld [vmem:[%s3756_s1 + $0x88] sm:$0xff]  }
  0x16   :  { %1202 = vmatpush1.bf16.msra.mxu0 %v2113_v12  ;;  %v77_v12 = vpack.c.bf16 %v42_v2, %v41_v63  ;;  %v960_v63 = vpack.c.bf16 %v879_v42, %v876_v41  ;;  %v626_v41 = vmul.f32 %v2283_v28, %v2445_v27  ;;  %v889_v42 = vmax.f32 %v763_v13, 0.0 }
  0x17   :  { %1996 = vmatpush1.bf16.msra.mxu1 %v2115_v19  ;;  %1203 = vmatprep.subr.bf16.mxu0 %v2129_v1 }
  0x18   :  { %1981 = vmatprep.subr.bf16.mxu1 %v2129_v1 }
  0x19   :  { %1812 = vmatmul.mubr.msk.bf16.gmra.mrb[8].mxu0 %vm115_vm1, %v73_v22  ;;  %v473_v22 = vld [vmem:[%s3757_s0 + $0x2e8] sm:$0xff] }
  0x1a   :  { %1815 = vmatprep.mubr.msk.bf16.mxu0 %vm2130_vm0, %v2128_v0  ;;  %1204 = vmatpush1.bf16.msra.mxu0 %v2114_v15  ;;  %v2423_v15 = vld [vmem:[%s3757_s0 + $0x320] sm:$0xff]  ;;  %v616_v39 = vmul.f32 %v2366_v55, %v473_v22 }
  0x1b   :  { %1997 = vmatpush1.bf16.msra.mxu1 %v2116_v23  ;;  %1205 = vmatprep.subr.bf16.mxu0 %v2129_v1  ;;  %v623_v51 = vmul.f32 %v2283_v28, %v2423_v15 }
  0x1c   :  { %1982 = vmatprep.subr.bf16.mxu1 %v2129_v1  ;;  %v759_v58 = vadd.f32 %v2392_v62, %v616_v39 }
  0x1d   :  { %v766_v16 = vadd.f32 %v2288_v30, %v623_v51 }
  0x1e   :  { %1206 = vmatpush1.bf16.msra.mxu0 %v2115_v19  ;;  %v757_v19 = vadd.f32 %v2288_v30, %v614_v4  ;;  %v2510_v4 = vld [vmem:[%s3757_s0 + $0x3c8] sm:$0xff]  ;;  %v885_v22 = vmax.f32 %v759_v58, 0.0 }
  0x1f   :  { %1998 = vmatpush1.bf16.msra.mxu1 %v2117_v37  ;;  %1207 = vmatprep.subr.bf16.mxu0 %v2129_v1  ;;  %v91_v20 = vpack.c.bf16 %v2515_v5, %v2510_v4 }
  0x20   :  { %1983 = vmatprep.subr.bf16.mxu1 %v2129_v1 }
  0x21   :  { %1816 = vmatmul.mubr.msk.bf16.gmra.mrb[12].mxu0 %vm115_vm1, %v74_v40  ;;  %v88_v40 = vpack.c.bf16 %v2450_v35, %v2445_v27 }
  0x22   :  { %1819 = vmatprep.mubr.msk.bf16.mxu0 %vm2130_vm0, %v2128_v0  ;;  %1208 = vmatpush1.bf16.msra.mxu0 %v2116_v23  ;;  %v87_v23 = vpack.c.bf16 %v2423_v15, %v2418_v14  ;;  %v412_v15 = vld [vmem:[%s3757_s0 + $0x100] sm:$0xff] }
  0x23   :  { %1999 = vmatpush1.bf16.msra.mxu1 %v2118_v43  ;;  %1209 = vmatprep.subr.bf16.mxu0 %v2129_v1 }
  0x24   :  { %1984 = vmatprep.subr.bf16.mxu1 %v2129_v1 }
  0x26   :  { %1210 = vmatpush1.bf16.msra.mxu0 %v2117_v37  ;;  %v44_v37 = vld [vmem:[%s3757_s0 + $0x170] sm:$0xff] }
  0x27   :  { %2000 = vmatpush1.bf16.msra.mxu1 %v2119_v47  ;;  %1211 = vmatprep.subr.bf16.mxu0 %v2129_v1  ;;  %v78_v57 = vpack.c.bf16 %v44_v37, %v43_v36  ;;  %v619_v36 = vmul.f32 %v2366_v55, %v476_v3  ;;  %v524_v37 = vmul.f32 %v2283_v28, %v2197_v6 }
  0x28   :  { %1985 = vmatprep.subr.bf16.mxu1 %v2129_v1  ;;  %v527_v6 = vmul.f32 %v2283_v28, %v2202_v7  ;;  %v769_v3 = vadd.f32 %v2288_v30, %v626_v41 }
  0x29   :  { %1820 = vmatmul.mubr.msk.bf16.gmra.mrb[16].mxu0 %vm115_vm1, %v75_v48  ;;  %v2474_v48 = vld [vmem:[%s3757_s0 + $0x380] sm:$0xff]  ;;  %v667_v51 = vadd.f32 %v2288_v30, %v524_v37  ;;  %v762_v58 = vadd.f32 %v2392_v62, %v619_v36 }
  0x2a   :  { %1823 = vmatprep.mubr.msk.bf16.mxu0 %vm2130_vm0, %v2128_v0  ;;  %1212 = vmatpush1.bf16.msra.mxu0 %v2118_v43  ;;  %v883_v43 = vmax.f32 %v757_v19, 0.0  ;;  %v479_v19 = vld [vmem:[%s3757_s0 + $0x318] sm:$0xff] }
  0x2b   :  { %2001 = vmatpush1.bf16.msra.mxu1 %v2120_v49  ;;  %1213 = vmatprep.subr.bf16.mxu0 %v2129_v1  ;;  %v622_v39 = vmul.f32 %v2366_v55, %v479_v19 }
  0x2c   :  { %1986 = vmatprep.subr.bf16.mxu1 %v2129_v1  ;;  %v964_v2 = vpack.c.bf16 %v886_v44, %v883_v43  ;;  %v892_v43 = vmax.f32 %v766_v16, 0.0  ;;  %v629_v44 = vmul.f32 %v2283_v28, %v2450_v35  ;;  %v418_v35 = vld [vmem:[%s3757_s0 + $0x130] sm:$0xff] }
  0x2e   :  { %1214 = vmatpush1.bf16.msra.mxu0 %v2119_v47  ;;  %v2469_v47 = vld [vmem:[%s3757_s0 + $0x368] sm:$0xff]  ;;  %v967_v16 = vpack.c.bf16 %v892_v43, %v889_v42  ;;  %v772_v19 = vadd.f32 %v2288_v30, %v629_v44  ;;  %v635_v44 = vmul.f32 %v2283_v28, %v2474_v48 }
  0x2f   :  { %2002 = vmatpush1.bf16.msra.mxu1 %v2121_v53  ;;  %1215 = vmatprep.subr.bf16.mxu0 %v2129_v1  ;;  %v89_v52 = vpack.c.bf16 %v2474_v48, %v2469_v47  ;;  %v632_v43 = vmul.f32 %v2283_v28, %v2469_v47  ;;  %v380_v48 = vld [vmem:[%s3757_s0] sm:$0xff] }
  0x30   :  { %1987 = vmatprep.subr.bf16.mxu1 %v2129_v1  ;;  %v898_v42 = vmax.f32 %v772_v19, 0.0 }
  0x31   :  { %1824 = vmatmul.mubr.msk.bf16.gmra.mrb[20].mxu0 %vm115_vm1, %v76_v54  ;;  %v2497_v54 = vld [vmem:[%s3757_s0 + $0x3b0] sm:$0xff] }
  0x32   :  { %1827 = vmatprep.mubr.msk.bf16.mxu0 %vm2130_vm0, %v2128_v0  ;;  %1216 = vmatpush1.bf16.msra.mxu0 %v2120_v49  ;;  %v2480_v49 = vld [vmem:[%s3756_s1 + $0x78] sm:$0xff]  }
  0x33   :  { %2003 = vmatpush1.bf16.msra.mxu1 %v2122_v56  ;;  %1217 = vmatprep.subr.bf16.mxu0 %v2129_v1 }
  0x34   :  { %1988 = vmatprep.subr.bf16.mxu1 %v2129_v1 }
  0x36   :  { %1218 = vmatpush1.bf16.msra.mxu0 %v2121_v53  ;;  %v2492_v53 = vld [vmem:[%s3757_s0 + $0x398] sm:$0xff] }
  0x37   :  { %2004 = vmatpush1.bf16.msra.mxu1 %v2123_v8  ;;  %1219 = vmatprep.subr.bf16.mxu0 %v2129_v1  ;;  %v90_v61 = vpack.c.bf16 %v2497_v54, %v2492_v53 }
  0x38   :  { %1989 = vmatprep.subr.bf16.mxu1 %v2129_v1 }
  0x39   :  { %1828 = vmatmul.mubr.msk.bf16.gmra.mrb[24].mxu0 %vm115_vm1, %v77_v12  ;;  %v2126_v12 = vld [vmem:[%s3756_s1 + $0x80] sm:$0xff]  }
  0x3a   :  { %1831 = vmatprep.mubr.msk.bf16.mxu0 %vm2130_vm0, %v2128_v0  ;;  %1220 = vmatpush1.bf16.msra.mxu0 %v2122_v56  ;;  %v756_v56 = vadd.f32 %v2392_v62, %v613_v38  ;;  %v46_v38 = vld [vmem:[%s3757_s0 + $0x1a0] sm:$0xff] }
  0x3b   :  { %2005 = vmatpush1.bf16.msra.mxu1 %v2439_v26  ;;  %1221 = vmatprep.subr.bf16.mxu0 %v2129_v1 }
  0x3c   :  { %1990 = vmatprep.subr.bf16.mxu1 %v2129_v1  ;;  %v882_v21 = vmax.f32 %v756_v56, 0.0 }
  0x3e   :  { %1222 = vmatpush1.bf16.msra.mxu0 %v2123_v8  ;;  %v45_v8 = vld [vmem:[%s3757_s0 + $0x188] sm:$0xff]  ;;  %v963_v56 = vpack.c.bf16 %v885_v22, %v882_v21  ;;  %v533_v21 = vmul.f32 %v2283_v28, %v2222_v11  ;;  %v47_v11 = vld [vmem:[%s3757_s0 + $0x1b8] sm:$0xff] }
  0x3f   :  { %2006 = vmatpush1.bf16.msra.mxu1 %v2480_v49  ;;  %1223 = vmatprep.subr.bf16.mxu0 %v2129_v1  ;;  %v79_v7 = vpack.c.bf16 %v46_v38, %v45_v8 }
  0x40   :  { %1887 = vmatprep.subr.bf16.mxu1 %v2128_v0  ;;  %v676_v8 = vadd.f32 %v2288_v30, %v533_v21 }
  0x41   :  { %1832 = vmatmul.mubr.msk.bf16.gmra.mrb[28].mxu0 %vm115_vm1, %v78_v57  ;;  %v670_v57 = vadd.f32 %v2288_v30, %v527_v6 }
  0x42   :  { %1340 = vmatmul.mubr.bf16.vlgmr.msra.gmra.mrb[0].mxu1 %v960_v63  ;;  %1835 = vmatprep.mubr.msk.bf16.mxu0 %vm2130_vm0, %v2128_v0  ;;  %v793_v63 = vmax.f32 %v667_v51, 0.0 }
  0x43   :  { %1888 = vmatpush3.bf16.msra.mxu1 %v2126_v12  ;;  %1347 = vmatprep.mubr.bf16.mxu1 %v964_v2  ;;  %v765_v2 = vadd.f32 %v2392_v62, %v622_v39  ;;  %v482_v12 = vld [vmem:[%s3757_s0 + $0x330] sm:$0xff]  ;;  %v796_v13 = vmax.f32 %v670_v57, 0.0  ;;  %v895_v39 = vmax.f32 %v769_v3, 0.0  ;;  %v778_v3 = vadd.f32 %v2288_v30, %v635_v44 }
  0x44   :  { %1889 = vmatprep.subr.bf16.mxu1 %v2128_v0  ;;  %1224 = vmatpush1.bf16.msra.mxu0 %v2439_v26  ;;  %v530_v26 = vmul.f32 %v2283_v28, %v2215_v10  ;;  %v888_v10 = vmax.f32 %v762_v58, 0.0  ;;  %v625_v37 = vmul.f32 %v2366_v55, %v482_v12  ;;  %v488_v12 = vld [vmem:[%s3757_s0 + $0x360] sm:$0xff]  ;;  %v494_v44 = vld [vmem:[%s3757_s0 + $0x390] sm:$0xff] }
  0x45   :  { %1225 = vmatprep.subr.bf16.mxu0 %v2129_v1  ;;  %v485_v1 = vld [vmem:[%s3757_s0 + $0x348] sm:$0xff]  ;;  %v2572_v22 = vpack.c.bf16 %v796_v13, %v793_v63  ;;  %v891_v38 = vmax.f32 %v765_v2, 0.0  ;;  %v970_v63 = vpack.c.bf16 %v898_v42, %v895_v39  ;;  %v775_v2 = vadd.f32 %v2288_v30, %v632_v43  ;;  %v491_v13 = vld [vmem:[%s3757_s0 + $0x378] sm:$0xff] }
  0x46   :  { %v673_v36 = vadd.f32 %v2288_v30, %v530_v26  ;;  %v628_v41 = vmul.f32 %v2366_v55, %v485_v1  ;;  %v49_v26 = vld [vmem:[%s3757_s0 + $0x1e8] sm:$0xff]  ;;  %v631_v21 = vmul.f32 %v2366_v55, %v488_v12 }
  0x47   :  { %1890 = vmatpush3.bf16.msra.mxu1 %v2127_v50  ;;  %v802_v50 = vmax.f32 %v676_v8, 0.0  ;;  %v638_v8 = vmul.f32 %v2283_v28, %v2492_v53 }
  0x48   :  { %1226 = vmatpush1.bf16.msra.mxu0 %v2480_v49  ;;  %v48_v49 = vld [vmem:[%s3757_s0 + $0x1d0] sm:$0xff]  ;;  %v799_v6 = vmax.f32 %v673_v36, 0.0  ;;  %v771_v58 = vadd.f32 %v2392_v62, %v628_v41  ;;  %v634_v36 = vmul.f32 %v2366_v55, %v491_v13  ;;  %v774_v39 = vadd.f32 %v2392_v62, %v631_v21 }
  0x49   :  { %1836 = vmatmul.mubr.msk.bf16.gmra.mrb[32].mxu0 %vm115_vm1, %v79_v7  ;;  %v80_v51 = vpack.c.bf16 %v48_v49, %v47_v11  ;;  %v966_v7 = vpack.c.bf16 %v891_v38, %v888_v10  ;;  %v901_v10 = vmax.f32 %v775_v2, 0.0  ;;  %v641_v11 = vmul.f32 %v2283_v28, %v2497_v54 }
  0x4a   :  { %1348 = vmatmul.mubr.bf16.gmra.mrb[4].mxu1 %v963_v56  ;;  %1839 = vmatprep.mubr.msk.bf16.mxu0 %vm2130_vm0, %v2128_v0  ;;  %v2591_v57 = vpack.c.bf16 %v802_v50, %v799_v6  ;;  %v768_v56 = vadd.f32 %v2392_v62, %v625_v37  ;;  %v897_v1 = vmax.f32 %v771_v58, 0.0  ;;  %v904_v37 = vmax.f32 %v778_v3, 0.0  ;;  %v497_v50 = vld [vmem:[%s3757_s0 + $0x3a8] sm:$0xff] }
  0x4b   :  { %1355 = vmatprep.mubr.bf16.mxu1 %v967_v16  ;;  %v50_v16 = vld [vmem:[%s3757_s0 + $0x200] sm:$0xff]  ;;  %v777_v41 = vadd.f32 %v2392_v62, %v634_v36  ;;  %v781_v42 = vadd.f32 %v2288_v30, %v638_v8  ;;  %v784_v43 = vadd.f32 %v2288_v30, %v641_v11  ;;  %v640_v2 = vmul.f32 %v2366_v55, %v497_v50  ;;  %v503_v11 = vld [vmem:[%s3757_s0 + $0x3d8] sm:$0xff] }
  0x4c   :  { %v894_v19 = vmax.f32 %v768_v56, 0.0  ;;  %v81_v49 = vpack.c.bf16 %v50_v16, %v49_v26  ;;  %v973_v6 = vpack.c.bf16 %v904_v37, %v901_v10  ;;  %v900_v56 = vmax.f32 %v774_v39, 0.0  ;;  %v500_v8 = vld [vmem:[%s3757_s0 + $0x3c0] sm:$0xff] }
  0x4d   :  { %v903_v58 = vmax.f32 %v777_v41, 0.0  ;;  %v907_v3 = vmax.f32 %v781_v42, 0.0  ;;  %v910_v12 = vmax.f32 %v784_v43, 0.0  ;;  %v644_v13 = vmul.f32 %v2283_v28, %v2510_v4 }
  0x4e   :  { %v969_v38 = vpack.c.bf16 %v897_v1, %v894_v19  ;;  %v647_v26 = vmul.f32 %v2283_v28, %v2515_v5  ;;  %v783_v21 = vadd.f32 %v2392_v62, %v640_v2  ;;  %v646_v42 = vmul.f32 %v2366_v55, %v503_v11  ;;  %v385_v2 = vld [vmem:[%s3757_s0 + $0x28] sm:$0xff] }
  0x4f   :  { %v972_v19 = vpack.c.bf16 %v903_v58, %v900_v56  ;;  %v976_v36 = vpack.c.bf16 %v910_v12, %v907_v3  ;;  %v787_v10 = vadd.f32 %v2288_v30, %v644_v13  ;;  %v55_v3 = vld [vmem:[%s3757_s0 + $0x278] sm:$0xff]  ;;  %v56_v12 = vld [vmem:[%s3757_s0 + $0x290] sm:$0xff]  ;;  %v539_v4 = vmul.f32 %v2283_v28, %v2249_v18 }
  0x50   :  { %v790_v37 = vadd.f32 %v2288_v30, %v647_v26  ;;  %v909_v41 = vmax.f32 %v783_v21, 0.0  ;;  %v789_v56 = vadd.f32 %v2392_v62, %v646_v42 }
  0x51   :  { %1840 = vmatmul.mubr.msk.bf16.gmra.mrb[36].mxu0 %vm115_vm1, %v80_v51  ;;  %v51_v51 = vld [vmem:[%s3757_s0 + $0x218] sm:$0xff]  ;;  %v913_v43 = vmax.f32 %v787_v10, 0.0 }
  0x52   :  { %1356 = vmatmul.mubr.bf16.gmra.mrb[8].mxu1 %v966_v7  ;;  %1843 = vmatprep.mubr.msk.bf16.mxu0 %vm2130_vm0, %v2128_v0  ;;  %v52_v7 = vld [vmem:[%s3757_s0 + $0x230] sm:$0xff]  ;;  %v915_v26 = vmax.f32 %v789_v56, 0.0 }
  0x53   :  { %1363 = vmatprep.mubr.bf16.mxu1 %v970_v63  ;;  %v637_v63 = vmul.f32 %v2366_v55, %v494_v44  ;;  %v82_v16 = vpack.c.bf16 %v52_v7, %v51_v51  ;;  %v916_v44 = vmax.f32 %v790_v37, 0.0  ;;  %v388_v37 = vld [vmem:[%s3757_s0 + $0x40] sm:$0xff] }
  0x55   :  { %v780_v1 = vadd.f32 %v2392_v62, %v637_v63  ;;  %v979_v58 = vpack.c.bf16 %v916_v44, %v913_v43  ;;  %v382_v63 = vld [vmem:[%s3757_s0 + $0x10] sm:$0xff]  ;;  %v397_v44 = vld [vmem:[%s3757_s0 + $0x88] sm:$0xff] }
  0x56   :  { %v394_v43 = vld [vmem:[%s3757_s0 + $0x70] sm:$0xff]  ;;  %v540_v56 = vmul.f32 %v2285_v29, %v397_v44 }
  0x57   :  { %v906_v39 = vmax.f32 %v780_v1, 0.0  ;;  %v84_v1 = vpack.c.bf16 %v56_v12, %v55_v3  ;;  %v543_v12 = vmul.f32 %v2285_v29, %v400_v25 }
  0x58   :  { %v683_v24 = vadd.f32 %v2291_v31, %v540_v56  ;;  %v427_v56 = vld [vmem:[%s3757_s0 + $0x178] sm:$0xff] }
  0x59   :  { %1844 = vmatmul.mubr.msk.bf16.gmra.mrb[40].mxu0 %vm115_vm1, %v81_v49  ;;  %v53_v49 = vld [vmem:[%s3757_s0 + $0x248] sm:$0xff]  ;;  %v975_v51 = vpack.c.bf16 %v909_v41, %v906_v39 }
  0x5a   :  { %1364 = vmatmul.mubr.bf16.gmra.mrb[12].mxu1 %v969_v38  ;;  %1847 = vmatprep.mubr.msk.bf16.mxu0 %vm2130_vm0, %v2128_v0  ;;  %v54_v38 = vld [vmem:[%s3757_s0 + $0x260] sm:$0xff]  ;;  %v809_v3 = vmax.f32 %v683_v24, 0.0 }
  0x5b   :  { %1371 = vmatprep.mubr.bf16.mxu1 %v973_v6  ;;  %v643_v6 = vmul.f32 %v2366_v55, %v500_v8  ;;  %v83_v50 = vpack.c.bf16 %v54_v38, %v53_v49  ;;  %v391_v8 = vld [vmem:[%s3757_s0 + $0x58] sm:$0xff]  ;;  %v531_v38 = vmul.f32 %v2285_v29, %v388_v37 }
  0x5c   :  { %v534_v39 = vmul.f32 %v2285_v29, %v391_v8 }
  0x5d   :  { %v786_v7 = vadd.f32 %v2392_v62, %v643_v6  ;;  %v674_v6 = vadd.f32 %v2291_v31, %v531_v38 }
  0x5e   :  { %v677_v42 = vadd.f32 %v2291_v31, %v534_v39 }
  0x5f   :  { %v912_v13 = vmax.f32 %v786_v7, 0.0  ;;  %v537_v7 = vmul.f32 %v2285_v29, %v394_v43  ;;  %v561_v43 = vmul.f32 %v2285_v29, %v418_v35 }
  0x61   :  { %1848 = vmatmul.mubr.msk.bf16.gmra.mrb[44].mxu0 %vm115_vm1, %v82_v16  ;;  %v525_v16 = vmul.f32 %v2285_v29, %v382_v63  ;;  %v978_v21 = vpack.c.bf16 %v915_v26, %v912_v13  ;;  %v680_v63 = vadd.f32 %v2291_v31, %v537_v7  ;;  %v424_v7 = vld [vmem:[%s3757_s0 + $0x160] sm:$0xff] }
  0x62   :  { %1372 = vmatmul.mubr.bf16.gmra.mrb[16].mxu1 %v972_v19  ;;  %1851 = vmatprep.mubr.msk.bf16.mxu0 %vm2130_vm0, %v2128_v0  ;;  %v528_v19 = vmul.f32 %v2285_v29, %v385_v2 }
  0x63   :  { %1379 = vmatprep.mubr.bf16.mxu1 %v976_v36  ;;  %v668_v36 = vadd.f32 %v2291_v31, %v525_v16  ;;  %v806_v2 = vmax.f32 %v680_v63, 0.0  ;;  %v686_v16 = vadd.f32 %v2291_v31, %v543_v12 }
  0x64   :  { %v671_v10 = vadd.f32 %v2291_v31, %v528_v19 }
  0x65   :  { %v794_v11 = vmax.f32 %v668_v36, 0.0  ;;  %v926_v26 = vpack.c.bf16 %v809_v3, %v806_v2  ;;  %v812_v19 = vmax.f32 %v686_v16, 0.0  ;;  %v570_v2 = vmul.f32 %v2285_v29, %v427_v56  ;;  %v389_v3 = vld [vmem:[%s3757_s0 + $0x48] sm:$0xff]  ;;  %v430_v16 = vld [vmem:[%s3757_s0 + $0x190] sm:$0xff] }
  0x66   :  { %v797_v49 = vmax.f32 %v671_v10, 0.0 }
  0x68   :  { %v920_v41 = vpack.c.bf16 %v797_v49, %v794_v11  ;;  %v555_v49 = vmul.f32 %v2285_v29, %v412_v15 }
  0x69   :  { %1852 = vmatmul.mubr.msk.bf16.gmra.mrb[48].mxu0 %vm115_vm1, %v83_v50  ;;  %v800_v50 = vmax.f32 %v674_v6, 0.0 }
  0x6a   :  { %1380 = vmatmul.mubr.bf16.gmra.mrb[20].mxu1 %v975_v51  ;;  %1855 = vmatprep.mubr.msk.bf16.mxu0 %vm2130_vm0, %v2128_v0  ;;  %v803_v51 = vmax.f32 %v677_v42, 0.0 }
  0x6b   :  { %1387 = vmatprep.mubr.bf16.mxu1 %v979_v58 }
  0x6c   :  { %v923_v58 = vpack.c.bf16 %v803_v51, %v800_v50  ;;  %v704_v51 = vadd.f32 %v2291_v31, %v561_v43 }
  0x6e   :  { %v830_v24 = vmax.f32 %v704_v51, 0.0 }
  0x71   :  { %1856 = vmatmul.mubr.msk.bf16.gmra.mrb[52].mxu0 %vm115_vm1, %v84_v1 }
  0x72   :  { %1388 = vmatmul.mubr.bf16.gmra.mrb[24].mxu1 %v978_v21  ;;  %1859 = vmatprep.mubr.msk.bf16.mxu0 %vm2130_vm0, %v2128_v0  ;;  %v549_v21 = vmul.f32 %v2285_v29, %v406_v60 }
  0x73   :  { %1891 = vmatprep.mubr.msk.bf16.mxu1 %vm2130_vm0, %v2128_v0 }
  0x74   :  { %v692_v37 = vadd.f32 %v2291_v31, %v549_v21  ;;  %v573_v21 = vmul.f32 %v2285_v29, %v430_v16 }
  0x76   :  { %v818_v8 = vmax.f32 %v692_v37, 0.0 }
  0x79   :  { %1860 = vmatmul.mubr.msk.bf16.gmra.mrb[56].mxu0 %vm115_vm1, %v85_v32  ;;  %v403_v32 = vld [vmem:[%s3757_s0 + $0xb8] sm:$0xff] }
  0x7a   :  { %1892 = vmatmul.mubr.msk.bf16.vlgmr.msra.gmra.mrb[28].mxu1 %vm115_vm1, %v920_v41  ;;  %1863 = vmatprep.mubr.msk.bf16.mxu0 %vm2130_vm0, %v2128_v0  ;;  %v546_v13 = vmul.f32 %v2285_v29, %v403_v32  ;;  %v698_v41 = vadd.f32 %v2291_v31, %v555_v49  ;;  %v567_v32 = vmul.f32 %v2285_v29, %v424_v7 }
  0x7b   :  { %1895 = vmatprep.mubr.msk.bf16.mxu1 %vm2130_vm0, %v2128_v0  ;;  %v682_v49 = vadd.f32 %v2288_v30, %v539_v4  ;;  %v404_v4 = vld [vmem:[%s3757_s0 + $0xc0] sm:$0xff] }
  0x7c   :  { %v689_v59 = vadd.f32 %v2291_v31, %v546_v13  ;;  %v824_v6 = vmax.f32 %v698_v41, 0.0  ;;  %v710_v13 = vadd.f32 %v2291_v31, %v567_v32 }
  0x7d   :  { %v808_v51 = vmax.f32 %v682_v49, 0.0  ;;  %v547_v49 = vmul.f32 %v2366_v55, %v404_v4 }
  0x7e   :  { %v815_v1 = vmax.f32 %v689_v59, 0.0  ;;  %v433_v59 = vld [vmem:[%s3757_s0 + $0x1a8] sm:$0xff] }
  0x80   :  { %v929_v10 = vpack.c.bf16 %v815_v1, %v812_v19 }
  0x81   :  { %1864 = vmatmul.mubr.msk.bf16.gmra.mrb[60].mxu0 %vm115_vm1, %v86_v9  ;;  %v409_v9 = vld [vmem:[%s3757_s0 + $0xe8] sm:$0xff] }
  0x82   :  { %1896 = vmatmul.mubr.msk.bf16.gmra.mrb[32].mxu1 %vm115_vm1, %v923_v58  ;;  %1867 = vmatprep.mubr.msk.bf16.mxu0 %vm2130_vm0, %v2128_v0  ;;  %v552_v36 = vmul.f32 %v2285_v29, %v409_v9  ;;  %v523_v58 = vmul.f32 %v2366_v55, %v380_v48  ;;  %v532_v9 = vmul.f32 %v2366_v55, %v389_v3 }
  0x83   :  { %1899 = vmatprep.mubr.msk.bf16.mxu1 %vm2130_vm0, %v2128_v0  ;;  %v545_v48 = vmul.f32 %v2283_v28, %v2306_v34 }
  0x84   :  { %v695_v14 = vadd.f32 %v2291_v31, %v552_v36  ;;  %v666_v53 = vadd.f32 %v2392_v62, %v523_v58  ;;  %v576_v36 = vmul.f32 %v2285_v29, %v433_v59 }
  0x85   :  { %v688_v32 = vadd.f32 %v2288_v30, %v545_v48 }
  0x86   :  { %v821_v11 = vmax.f32 %v695_v14, 0.0  ;;  %v792_v19 = vmax.f32 %v666_v53, 0.0  ;;  %v536_v14 = vmul.f32 %v2283_v28, %v2242_v17  ;;  %v395_v17 = vld [vmem:[%s3757_s0 + $0x78] sm:$0xff]  ;;  %v445_v53 = vld [vmem:[%s3757_s0 + $0x208] sm:$0xff] }
  0x87   :  { %v588_v59 = vmul.f32 %v2285_v29, %v445_v53 }
  0x88   :  { %v932_v39 = vpack.c.bf16 %v821_v11, %v818_v8  ;;  %v392_v8 = vld [vmem:[%s3757_s0 + $0x60] sm:$0xff]  ;;  %v679_v11 = vadd.f32 %v2288_v30, %v536_v14 }
  0x89   :  { %1868 = vmatmul.mubr.msk.bf16.gmra.mrb[64].mxu0 %vm115_vm1, %v87_v23  ;;  %v415_v23 = vld [vmem:[%s3757_s0 + $0x118] sm:$0xff]  ;;  %v535_v35 = vmul.f32 %v2366_v55, %v392_v8  ;;  %v731_v14 = vadd.f32 %v2291_v31, %v588_v59 }
  0x8a   :  { %1900 = vmatmul.mubr.msk.bf16.gmra.mrb[36].mxu1 %vm115_vm1, %v926_v26  ;;  %1871 = vmatprep.mubr.msk.bf16.mxu0 %vm2130_vm0, %v2128_v0  ;;  %v558_v38 = vmul.f32 %v2285_v29, %v415_v23  ;;  %v713_v26 = vadd.f32 %v2291_v31, %v570_v2  ;;  %v716_v23 = vadd.f32 %v2291_v31, %v573_v21  ;;  %v442_v2 = vld [vmem:[%s3757_s0 + $0x1f0] sm:$0xff]  ;;  %v411_v8 = vld [vmem:[%s3757_s0 + $0xf8] sm:$0xff] }
  0x8b   :  { %1903 = vmatprep.mubr.msk.bf16.mxu1 %vm2130_vm0, %v2128_v0  ;;  %v585_v16 = vmul.f32 %v2285_v29, %v442_v2 }
  0x8c   :  { %v701_v27 = vadd.f32 %v2291_v31, %v558_v38  ;;  %v839_v37 = vmax.f32 %v713_v26, 0.0  ;;  %v436_v38 = vld [vmem:[%s3757_s0 + $0x1c0] sm:$0xff] }
  0x8d   :  { %v579_v43 = vmul.f32 %v2285_v29, %v436_v38 }
  0x8e   :  { %v827_v42 = vmax.f32 %v701_v27, 0.0 }
  0x8f   :  { %v722_v58 = vadd.f32 %v2291_v31, %v579_v43 }
  0x90   :  { %v935_v50 = vpack.c.bf16 %v827_v42, %v824_v6  ;;  %v842_v6 = vmax.f32 %v716_v23, 0.0  ;;  %v448_v23 = vld [vmem:[%s3757_s0 + $0x220] sm:$0xff] }
  0x91   :  { %1872 = vmatmul.mubr.msk.bf16.gmra.mrb[68].mxu0 %vm115_vm1, %v88_v40  ;;  %v421_v40 = vld [vmem:[%s3757_s0 + $0x148] sm:$0xff] }
  0x92   :  { %1904 = vmatmul.mubr.msk.bf16.gmra.mrb[40].mxu1 %vm115_vm1, %v929_v10  ;;  %1875 = vmatprep.mubr.msk.bf16.mxu0 %vm2130_vm0, %v2128_v0  ;;  %v564_v44 = vmul.f32 %v2285_v29, %v421_v40  ;;  %v836_v10 = vmax.f32 %v710_v13, 0.0  ;;  %v538_v40 = vmul.f32 %v2366_v55, %v395_v17  ;;  %v848_v13 = vmax.f32 %v722_v58, 0.0  ;;  %v414_v17 = vld [vmem:[%s3757_s0 + $0x110] sm:$0xff] }
  0x93   :  { %1907 = vmatprep.mubr.msk.bf16.mxu1 %vm2130_vm0, %v2128_v0  ;;  %v557_v43 = vmul.f32 %v2283_v28, %v414_v17 }
  0x94   :  { %v707_v47 = vadd.f32 %v2291_v31, %v564_v44  ;;  %v941_v18 = vpack.c.bf16 %v839_v37, %v836_v10  ;;  %v681_v7 = vadd.f32 %v2392_v62, %v538_v40  ;;  %v728_v37 = vadd.f32 %v2291_v31, %v585_v16 }
  0x96   :  { %v833_v25 = vmax.f32 %v707_v47, 0.0  ;;  %v542_v47 = vmul.f32 %v2283_v28, %v2301_v33  ;;  %v401_v33 = vld [vmem:[%s3757_s0 + $0xa8] sm:$0xff] }
  0x98   :  { %v938_v12 = vpack.c.bf16 %v833_v25, %v830_v24  ;;  %v685_v25 = vadd.f32 %v2288_v30, %v542_v47 }
  0x99   :  { %1876 = vmatmul.mubr.msk.bf16.gmra.mrb[72].mxu0 %vm115_vm1, %v89_v52  ;;  %v383_v52 = vld [vmem:[%s3757_s0 + $0x18] sm:$0xff] }
  0x9a   :  { %1908 = vmatmul.mubr.msk.bf16.gmra.mrb[44].mxu1 %vm115_vm1, %v932_v39  ;;  %1879 = vmatprep.mubr.msk.bf16.mxu0 %vm2130_vm0, %v2128_v0  ;;  %v526_v63 = vmul.f32 %v2366_v55, %v383_v52  ;;  %v439_v39 = vld [vmem:[%s3757_s0 + $0x1d8] sm:$0xff]  ;;  %v678_v52 = vadd.f32 %v2392_v62, %v535_v35 }
  0x9b   :  { %1911 = vmatprep.mubr.msk.bf16.mxu1 %vm2130_vm0, %v2128_v0  ;;  %v582_v44 = vmul.f32 %v2285_v29, %v439_v39  ;;  %v854_v39 = vmax.f32 %v728_v37, 0.0  ;;  %v419_v37 = vld [vmem:[%s3757_s0 + $0x138] sm:$0xff] }
  0x9c   :  { %v669_v54 = vadd.f32 %v2392_v62, %v526_v63  ;;  %v398_v63 = vld [vmem:[%s3757_s0 + $0x90] sm:$0xff] }
  0x9d   :  { %v541_v3 = vmul.f32 %v2366_v55, %v398_v63  ;;  %v700_v63 = vadd.f32 %v2288_v30, %v557_v43 }
  0x9e   :  { %v795_v1 = vmax.f32 %v669_v54, 0.0  ;;  %v804_v54 = vmax.f32 %v678_v52, 0.0  ;;  %v410_v52 = vld [vmem:[%s3757_s0 + $0xf0] sm:$0xff] }
  0x9f   :  { %v684_v21 = vadd.f32 %v2392_v62, %v541_v3  ;;  %v553_v53 = vmul.f32 %v2366_v55, %v410_v52  ;;  %v826_v16 = vmax.f32 %v700_v63, 0.0  ;;  %v429_v63 = vld [vmem:[%s3757_s0 + $0x188] sm:$0xff] }
  0xa0   :  { %v918_v15 = vpack.c.bf16 %v795_v1, %v792_v19  ;;  %v548_v19 = vmul.f32 %v2283_v28, %v2332_v45  ;;  %v551_v1 = vmul.f32 %v2283_v28, %v2337_v46  ;;  %v407_v45 = vld [vmem:[%s3757_s0 + $0xd8] sm:$0xff] }
  0xa1   :  { %1880 = vmatmul.mubr.msk.bf16.gmra.mrb[76].mxu0 %vm115_vm1, %v90_v61  ;;  %v386_v61 = vld [vmem:[%s3757_s0 + $0x30] sm:$0xff]  ;;  %v550_v38 = vmul.f32 %v2366_v55, %v407_v45 }
  0xa2   :  { %1912 = vmatmul.mubr.msk.bf16.gmra.mrb[48].mxu1 %vm115_vm1, %v935_v50  ;;  %1883 = vmatprep.mubr.msk.bf16.mxu0 %vm2130_vm0, %v2128_v0  ;;  %v529_v60 = vmul.f32 %v2366_v55, %v386_v61  ;;  %v805_v50 = vmax.f32 %v679_v11, 0.0  ;;  %v807_v61 = vmax.f32 %v681_v7, 0.0  ;;  %v413_v7 = vld [vmem:[%s3757_s0 + $0x108] sm:$0xff] }
  0xa3   :  { %1915 = vmatprep.mubr.msk.bf16.mxu1 %vm2130_vm0, %v2128_v0 }
  0xa4   :  { %v672_v5 = vadd.f32 %v2392_v62, %v529_v60  ;;  %v925_v24 = vpack.c.bf16 %v808_v51, %v805_v50  ;;  %v811_v60 = vmax.f32 %v685_v25, 0.0  ;;  %v924_v10 = vpack.c.bf16 %v807_v61, %v804_v54  ;;  %v420_v25 = vld [vmem:[%s3757_s0 + $0x140] sm:$0xff] }
  0xa5   :  { %v693_v50 = vadd.f32 %v2392_v62, %v550_v38  ;;  %v556_v54 = vmul.f32 %v2366_v55, %v413_v7 }
  0xa6   :  { %v798_v41 = vmax.f32 %v672_v5, 0.0 }
  0xa7   :  { %v819_v2 = vmax.f32 %v693_v50, 0.0 }
  0xa9   :  { %1884 = vmatmul.mubr.msk.bf16.gmra.mrb[80].mxu0 %vm115_vm1, %v91_v20  ;;  %v675_v20 = vadd.f32 %v2392_v62, %v532_v9  ;;  %v814_v9 = vmax.f32 %v688_v32, 0.0 }
  0xaa   :  { %1916 = vmatmul.mubr.msk.bf16.gmra.mrb[52].mxu1 %vm115_vm1, %v938_v12  ;;  %1227 = vmatprep.mubr.bf16.mxu0 %v2572_v22  ;;  %v719_v22 = vadd.f32 %v2291_v31, %v576_v36  ;;  %v544_v12 = vmul.f32 %v2366_v55, %v401_v33  ;;  %v454_v33 = vld [vmem:[%s3757_s0 + $0x250] sm:$0xff] }
  0xab   :  { %1919 = vmatprep.mubr.msk.bf16.mxu1 %vm2130_vm0, %v2128_v0  ;;  %v801_v27 = vmax.f32 %v675_v20, 0.0  ;;  %v928_v5 = vpack.c.bf16 %v814_v9, %v811_v60  ;;  %v691_v20 = vadd.f32 %v2288_v30, %v548_v19  ;;  %v563_v60 = vmul.f32 %v2283_v28, %v420_v25 }
  0xac   :  { %v845_v42 = vmax.f32 %v719_v22, 0.0  ;;  %v687_v36 = vadd.f32 %v2392_v62, %v544_v12  ;;  %v451_v22 = vld [vmem:[%s3757_s0 + $0x238] sm:$0xff]  ;;  %v597_v12 = vmul.f32 %v2285_v29, %v454_v33  ;;  %v696_v9 = vadd.f32 %v2392_v62, %v553_v53  ;;  %v432_v33 = vld [vmem:[%s3757_s0 + $0x1a0] sm:$0xff] }
  0xad   :  { %v921_v56 = vpack.c.bf16 %v801_v27, %v798_v41  ;;  %v857_v41 = vmax.f32 %v731_v14, 0.0  ;;  %v591_v27 = vmul.f32 %v2285_v29, %v448_v23  ;;  %v594_v35 = vmul.f32 %v2285_v29, %v451_v22  ;;  %v426_v23 = vld [vmem:[%s3757_s0 + $0x170] sm:$0xff] }
  0xae   :  { %v944_v34 = vpack.c.bf16 %v845_v42, %v842_v6  ;;  %v813_v11 = vmax.f32 %v687_v36, 0.0  ;;  %v817_v40 = vmax.f32 %v691_v20, 0.0  ;;  %v554_v42 = vmul.f32 %v2283_v28, %v411_v8  ;;  %v463_v20 = vld [vmem:[%s3757_s0 + $0x298] sm:$0xff] }
  0xaf   :  { %v734_v47 = vadd.f32 %v2291_v31, %v591_v27  ;;  %v737_v48 = vadd.f32 %v2291_v31, %v594_v35  ;;  %v699_v19 = vadd.f32 %v2392_v62, %v556_v54  ;;  %v822_v22 = vmax.f32 %v696_v9, 0.0 }
  0xb1   :  { %1228 = vmatmul.mubr.bf16.vlgmr.msra.gmra.mrb[84].mxu0 %v918_v15  ;;  %v694_v15 = vadd.f32 %v2288_v30, %v551_v1  ;;  %v860_v61 = vmax.f32 %v734_v47, 0.0  ;;  %v863_v3 = vmax.f32 %v737_v48, 0.0  ;;  %v825_v8 = vmax.f32 %v699_v19, 0.0  ;;  %v425_v47 = vld [vmem:[%s3757_s0 + $0x168] sm:$0xff] }
  0xb2   :  { %1920 = vmatmul.mubr.msk.bf16.gmra.mrb[56].mxu1 %vm115_vm1, %v941_v18  ;;  %1235 = vmatprep.mubr.bf16.mxu0 %v2591_v57  ;;  %v725_v57 = vadd.f32 %v2291_v31, %v582_v44  ;;  %v810_v18 = vmax.f32 %v684_v21, 0.0  ;;  %v690_v44 = vadd.f32 %v2392_v62, %v547_v49  ;;  %v740_v21 = vadd.f32 %v2291_v31, %v597_v12 }
  0xb3   :  { %1923 = vmatprep.mubr.msk.bf16.mxu1 %vm2130_vm0, %v2128_v0  ;;  %v820_v6 = vmax.f32 %v694_v15, 0.0  ;;  %v953_v14 = vpack.c.bf16 %v863_v3, %v860_v61  ;;  %v423_v15 = vld [vmem:[%s3757_s0 + $0x158] sm:$0xff]  ;;  %v933_v43 = vpack.c.bf16 %v825_v8, %v822_v22  ;;  %v3042_v3 = vld [vmem:[%s3760_s4] ss:$0 sm:$0xff] }
  0xb4   :  { %v851_v26 = vmax.f32 %v725_v57, 0.0  ;;  %v927_v51 = vpack.c.bf16 %v813_v11, %v810_v18  ;;  %v697_v57 = vadd.f32 %v2288_v30, %v554_v42  ;;  %v816_v32 = vmax.f32 %v690_v44, 0.0 }
  0xb5   :  { %v931_v58 = vpack.c.bf16 %v820_v6, %v817_v40  ;;  %v562_v18 = vmul.f32 %v2366_v55, %v419_v37  ;;  %v866_v11 = vmax.f32 %v740_v21, 0.0  ;;  %v566_v35 = vmul.f32 %v2283_v28, %v423_v15  ;;  %v428_v37 = vld [vmem:[%s3757_s0 + $0x180] sm:$0xff] }
  0xb6   :  { %v947_v46 = vpack.c.bf16 %v851_v26, %v848_v13  ;;  %v823_v26 = vmax.f32 %v697_v57, 0.0  ;;  %v930_v1 = vpack.c.bf16 %v819_v2, %v816_v32  ;;  %v569_v40 = vmul.f32 %v2283_v28, %v426_v23  ;;  %v469_v57 = vld [vmem:[%s3757_s0 + $0x2c8] sm:$0xff]  ;;  %v472_v15 = vld [vmem:[%s3757_s0 + $0x2e0] sm:$0xff]  ;;  %v475_v23 = vld [vmem:[%s3757_s0 + $0x2f8] sm:$0xff] }
  0xb7   :  { %v705_v42 = vadd.f32 %v2392_v62, %v562_v18  ;;  %v709_v7 = vadd.f32 %v2288_v30, %v566_v35  ;;  %v568_v32 = vmul.f32 %v2366_v55, %v425_v47  ;;  %v612_v61 = vmul.f32 %v2285_v29, %v469_v57  ;;  %v438_v18 = vld [vmem:[%s3757_s0 + $0x1d0] sm:$0xff] }
  0xb8   :  { %v934_v4 = vpack.c.bf16 %v826_v16, %v823_v26  ;;  %v572_v26 = vmul.f32 %v2283_v28, %v429_v63  ;;  %v575_v16 = vmul.f32 %v2283_v28, %v432_v33  ;;  %v615_v35 = vmul.f32 %v2285_v29, %v472_v15  ;;  %v434_v57 = vld [vmem:[%s3757_s0 + $0x1b0] sm:$0xff]  ;;  %v437_v63 = vld [vmem:[%s3757_s0 + $0x1c8] sm:$0xff] }
  0xb9   :  { %1236 = vmatmul.mubr.bf16.gmra.mrb[88].mxu0 %v921_v56  ;;  %v950_v56 = vpack.c.bf16 %v857_v41, %v854_v39  ;;  %v606_v39 = vmul.f32 %v2285_v29, %v463_v20  ;;  %v835_v12 = vmax.f32 %v709_v7, 0.0  ;;  %v711_v9 = vadd.f32 %v2392_v62, %v568_v32 }
  0xba   :  { %1924 = vmatmul.mubr.msk.bf16.gmra.mrb[60].mxu1 %vm115_vm1, %v944_v34  ;;  %1243 = vmatprep.mubr.bf16.mxu0 %v925_v24  ;;  %v457_v34 = vld [vmem:[%s3757_s0 + $0x268] sm:$0xff]  ;;  %v718_v20 = vadd.f32 %v2288_v30, %v575_v16 }
  0xbb   :  { %1927 = vmatprep.mubr.msk.bf16.mxu1 %vm2130_vm0, %v2128_v0  ;;  %v417_v24 = vld [vmem:[%s3757_s0 + $0x128] sm:$0xff]  ;;  %v600_v13 = vmul.f32 %v2285_v29, %v457_v34  ;;  %v749_v50 = vadd.f32 %v2291_v31, %v606_v39 }
  0xbc   :  { %v560_v59 = vmul.f32 %v2283_v28, %v417_v24  ;;  %v831_v24 = vmax.f32 %v705_v42, 0.0  ;;  %v844_v42 = vmax.f32 %v718_v20, 0.0 }
  0xbd   :  { %v743_v36 = vadd.f32 %v2291_v31, %v600_v13  ;;  %v875_v53 = vmax.f32 %v749_v50, 0.0 }
  0xbe   :  { %v703_v45 = vadd.f32 %v2288_v30, %v560_v59 }
  0xbf   :  { %v869_v49 = vmax.f32 %v743_v36, 0.0 }
  0xc0   :  { %v829_v41 = vmax.f32 %v703_v45, 0.0 }
  0xc1   :  { %1244 = vmatmul.mubr.bf16.gmra.mrb[92].mxu0 %v924_v10  ;;  %v416_v10 = vld [vmem:[%s3757_s0 + $0x120] sm:$0xff]  ;;  %v956_v48 = vpack.c.bf16 %v869_v49, %v866_v11  ;;  %v837_v49 = vmax.f32 %v711_v9, 0.0 }
  0xc2   :  { %1928 = vmatmul.mubr.msk.bf16.gmra.mrb[64].mxu1 %vm115_vm1, %v947_v46  ;;  %1251 = vmatprep.mubr.bf16.mxu0 %v928_v5  ;;  %v706_v46 = vadd.f32 %v2288_v30, %v563_v60  ;;  %v460_v5 = vld [vmem:[%s3757_s0 + $0x280] sm:$0xff]  ;;  %v559_v17 = vmul.f32 %v2366_v55, %v416_v10  ;;  %v755_v10 = vadd.f32 %v2291_v31, %v612_v61 }
  0xc3   :  { %1931 = vmatprep.mubr.msk.bf16.mxu1 %vm2130_vm0, %v2128_v0  ;;  %v603_v38 = vmul.f32 %v2285_v29, %v460_v5  ;;  %v715_v5 = vadd.f32 %v2288_v30, %v572_v26 }
  0xc4   :  { %v832_v27 = vmax.f32 %v706_v46, 0.0  ;;  %v702_v6 = vadd.f32 %v2392_v62, %v559_v17  ;;  %v435_v17 = vld [vmem:[%s3757_s0 + $0x1b8] sm:$0xff] }
  0xc5   :  { %v746_v44 = vadd.f32 %v2291_v31, %v603_v38  ;;  %v571_v38 = vmul.f32 %v2366_v55, %v428_v37 }
  0xc6   :  { %v937_v52 = vpack.c.bf16 %v832_v27, %v829_v41  ;;  %v828_v34 = vmax.f32 %v702_v6, 0.0  ;;  %v881_v27 = vmax.f32 %v755_v10, 0.0  ;;  %v841_v6 = vmax.f32 %v715_v5, 0.0 }
  0xc7   :  { %v872_v2 = vmax.f32 %v746_v44, 0.0  ;;  %v581_v44 = vmul.f32 %v2283_v28, %v438_v18 }
  0xc8   :  { %v936_v21 = vpack.c.bf16 %v831_v24, %v828_v34  ;;  %v943_v24 = vpack.c.bf16 %v844_v42, %v841_v6  ;;  %v447_v6 = vld [vmem:[%s3757_s0 + $0x218] sm:$0xff]  ;;  %v450_v42 = vld [vmem:[%s3757_s0 + $0x230] sm:$0xff] }
  0xc9   :  { %1252 = vmatmul.mubr.bf16.gmra.mrb[96].mxu0 %v927_v51  ;;  %v422_v51 = vld [vmem:[%s3757_s0 + $0x150] sm:$0xff]  ;;  %v959_v45 = vpack.c.bf16 %v875_v53, %v872_v2  ;;  %v724_v32 = vadd.f32 %v2288_v30, %v581_v44  ;;  %v481_v53 = vld [vmem:[%s3757_s0 + $0x328] sm:$0xff] }
  0xca   :  { %1932 = vmatmul.mubr.msk.bf16.gmra.mrb[68].mxu1 %vm115_vm1, %v950_v56  ;;  %1259 = vmatprep.mubr.bf16.mxu0 %v931_v58  ;;  %v712_v56 = vadd.f32 %v2288_v30, %v569_v40  ;;  %v466_v58 = vld [vmem:[%s3757_s0 + $0x2b0] sm:$0xff]  ;;  %v565_v25 = vmul.f32 %v2366_v55, %v422_v51  ;;  %v618_v40 = vmul.f32 %v2285_v29, %v475_v23 }
  0xcb   :  { %1935 = vmatprep.mubr.msk.bf16.mxu1 %vm2130_vm0, %v2128_v0  ;;  %v609_v54 = vmul.f32 %v2285_v29, %v466_v58  ;;  %v714_v51 = vadd.f32 %v2392_v62, %v571_v38  ;;  %v478_v2 = vld [vmem:[%s3757_s0 + $0x310] sm:$0xff]  ;;  %v850_v10 = vmax.f32 %v724_v32, 0.0 }
  0xcc   :  { %v838_v13 = vmax.f32 %v712_v56, 0.0  ;;  %v708_v60 = vadd.f32 %v2392_v62, %v565_v25  ;;  %v758_v56 = vadd.f32 %v2291_v31, %v615_v35  ;;  %v761_v58 = vadd.f32 %v2291_v31, %v618_v40 }
  0xcd   :  { %v752_v36 = vadd.f32 %v2291_v31, %v609_v54  ;;  %v840_v26 = vmax.f32 %v714_v51, 0.0 }
  0xce   :  { %v940_v46 = vpack.c.bf16 %v838_v13, %v835_v12  ;;  %v834_v11 = vmax.f32 %v708_v60, 0.0  ;;  %v441_v12 = vld [vmem:[%s3757_s0 + $0x1e8] sm:$0xff]  ;;  %v444_v13 = vld [vmem:[%s3757_s0 + $0x200] sm:$0xff]  ;;  %v580_v60 = vmul.f32 %v2366_v55, %v437_v63  ;;  %v884_v9 = vmax.f32 %v758_v56, 0.0 }
  0xcf   :  { %v878_v41 = vmax.f32 %v752_v36, 0.0  ;;  %v584_v37 = vmul.f32 %v2283_v28, %v441_v12  ;;  %v593_v63 = vmul.f32 %v2283_v28, %v450_v42  ;;  %v449_v12 = vld [vmem:[%s3757_s0 + $0x228] sm:$0xff] }
  0xd0   :  { %v939_v7 = vpack.c.bf16 %v837_v49, %v834_v11 }
  0xd1   :  { %1260 = vmatmul.mubr.bf16.gmra.mrb[100].mxu0 %v930_v1  ;;  %v962_v34 = vpack.c.bf16 %v881_v27, %v878_v41  ;;  %v727_v38 = vadd.f32 %v2288_v30, %v584_v37  ;;  %v484_v41 = vld [vmem:[%s3757_s0 + $0x340] sm:$0xff]  ;;  %v487_v27 = vld [vmem:[%s3757_s0 + $0x358] sm:$0xff] }
  0xd2   :  { %1936 = vmatmul.mubr.msk.bf16.gmra.mrb[72].mxu1 %vm115_vm1, %v953_v14  ;;  %1267 = vmatprep.mubr.bf16.mxu0 %v934_v4  ;;  %v431_v14 = vld [vmem:[%s3757_s0 + $0x198] sm:$0xff] }
  0xd3   :  { %1939 = vmatprep.mubr.msk.bf16.mxu1 %vm2130_vm0, %v2128_v0  ;;  %v574_v39 = vmul.f32 %v2366_v55, %v431_v14  ;;  %v587_v14 = vmul.f32 %v2283_v28, %v444_v13  ;;  %v853_v56 = vmax.f32 %v727_v38, 0.0 }
  0xd5   :  { %v717_v47 = vadd.f32 %v2392_v62, %v574_v39  ;;  %v730_v39 = vadd.f32 %v2288_v30, %v587_v14 }
  0xd7   :  { %v843_v16 = vmax.f32 %v717_v47, 0.0 }
  0xd9   :  { %1268 = vmatmul.mubr.bf16.gmra.mrb[104].mxu0 %v933_v43  ;;  %v578_v43 = vmul.f32 %v2283_v28, %v435_v17  ;;  %v942_v15 = vpack.c.bf16 %v843_v16, %v840_v26  ;;  %v443_v17 = vld [vmem:[%s3757_s0 + $0x1f8] sm:$0xff] }
  0xda   :  { %1940 = vmatmul.mubr.msk.bf16.gmra.mrb[76].mxu1 %vm115_vm1, %v956_v48  ;;  %1275 = vmatprep.mubr.bf16.mxu0 %v937_v52  ;;  %v586_v51 = vmul.f32 %v2366_v55, %v443_v17 }
  0xdb   :  { %1943 = vmatprep.mubr.msk.bf16.mxu1 %vm2130_vm0, %v2128_v0  ;;  %v721_v25 = vadd.f32 %v2288_v30, %v578_v43 }
  0xdc   :  { %v213_v59 = vpop.f32.mrb[0].mxu0 }
  0xdd   :  { %v214_v19 = vadd.f32 %v3042_v3, %v213_v59  ;;  %v1805_v1 = vpop.f32.mrb[1].mxu0  ;;  %v577_v59 = vmul.f32 %v2366_v55, %v434_v57  ;;  %v847_v36 = vmax.f32 %v721_v25, 0.0  ;;  %v590_v57 = vmul.f32 %v2283_v28, %v447_v6  ;;  %v455_v6 = vld [vmem:[%s3757_s0 + $0x258] sm:$0xff] }
  0xde   :  { %v216_v4 = vpop.f32.mrb[2].mxu0  ;;  %v621_v1 = vmul.f32 %v2285_v29, %v478_v2 }
  0xdf   :  { %1639 = vst.msk [vmem:[%s3761_s8] sm:$0xff] %vm115_vm1, %v214_v19  ;;  %v217_v22 = vadd.f32 %v3042_v3, %v216_v4  ;;  %v1806_v8 = vpop.f32.mrb[3].mxu0  ;;  %v887_v19 = vmax.f32 %v761_v58, 0.0  ;;  %v946_v49 = vpack.c.bf16 %v850_v10, %v847_v36  ;;  %v856_v58 = vmax.f32 %v730_v39, 0.0  ;;  %v453_v36 = vld [vmem:[%s3757_s0 + $0x248] sm:$0xff]  ;;  %v456_v10 = vld [vmem:[%s3757_s0 + $0x260] sm:$0xff] }
  0xe0   :  { %v764_v23 = vadd.f32 %v2291_v31, %v621_v1  ;;  %v440_v8 = vld [vmem:[%s3757_s0 + $0x1e0] sm:$0xff]  ;;  %v599_v17 = vmul.f32 %v2283_v28, %v456_v10 }
  0xe1   :  { %1640 = vst.msk [vmem:[%s3761_s8 + $0x8] sm:$0xff] %vm115_vm1, %v217_v22  ;;  %1276 = vmatmul.mubr.bf16.gmra.mrb[108].mxu0 %v936_v21  ;;  %v624_v21 = vmul.f32 %v2285_v29, %v481_v53  ;;  %v965_v11 = vpack.c.bf16 %v887_v19, %v884_v9  ;;  %v949_v16 = vpack.c.bf16 %v856_v58, %v853_v56  ;;  %v490_v9 = vld [vmem:[%s3757_s0 + $0x370] sm:$0xff]  ;;  %v493_v19 = vld [vmem:[%s3757_s0 + $0x388] sm:$0xff]  ;;  %v459_v56 = vld [vmem:[%s3757_s0 + $0x278] sm:$0xff] }
  0xe2   :  { %1944 = vmatmul.mubr.msk.bf16.gmra.mrb[80].mxu1 %vm115_vm1, %v959_v45  ;;  %1283 = vmatprep.mubr.bf16.mxu0 %v940_v46  ;;  %v720_v45 = vadd.f32 %v2392_v62, %v577_v59  ;;  %v723_v46 = vadd.f32 %v2392_v62, %v580_v60  ;;  %v890_v47 = vmax.f32 %v764_v23, 0.0  ;;  %v733_v59 = vadd.f32 %v2288_v30, %v590_v57  ;;  %v462_v58 = vld [vmem:[%s3757_s0 + $0x290] sm:$0xff] }
  0xe3   :  { %1947 = vmatprep.mubr.msk.bf16.mxu1 %vm2130_vm0, %v2128_v0  ;;  %v767_v22 = vadd.f32 %v2291_v31, %v624_v21  ;;  %v736_v60 = vadd.f32 %v2288_v30, %v593_v63 }
  0xe4   :  { %v221_v50 = vpop.f32.mrb[4].mxu0  ;;  %v846_v43 = vmax.f32 %v720_v45, 0.0  ;;  %v849_v44 = vmax.f32 %v723_v46, 0.0  ;;  %v592_v45 = vmul.f32 %v2366_v55, %v449_v12  ;;  %v859_v23 = vmax.f32 %v733_v59, 0.0 }
  0xe5   :  { %v222_v48 = vadd.f32 %v3042_v3, %v221_v50  ;;  %v1809_v52 = vpop.f32.mrb[5].mxu0  ;;  %v583_v50 = vmul.f32 %v2366_v55, %v440_v8  ;;  %v596_v8 = vmul.f32 %v2283_v28, %v453_v36  ;;  %v605_v12 = vmul.f32 %v2283_v28, %v462_v58 }
  0xe6   :  { %v224_v33 = vpop.f32.mrb[6].mxu0  ;;  %v627_v52 = vmul.f32 %v2285_v29, %v484_v41  ;;  %v945_v2 = vpack.c.bf16 %v849_v44, %v846_v43 }
  0xe7   :  { %1641 = vst.msk [vmem:[%s3761_s8 + $0x10] sm:$0xff] %vm115_vm1, %v222_v48  ;;  %v225_v54 = vadd.f32 %v3042_v3, %v224_v33  ;;  %v1810_v61 = vpop.f32.mrb[7].mxu0  ;;  %v893_v48 = vmax.f32 %v767_v22, 0.0  ;;  %v862_v22 = vmax.f32 %v736_v60, 0.0 }
  0xe8   :  { %v770_v53 = vadd.f32 %v2291_v31, %v627_v52  ;;  %v446_v61 = vld [vmem:[%s3757_s0 + $0x210] sm:$0xff] }
  0xe9   :  { %1642 = vst.msk [vmem:[%s3761_s8 + $0x18] sm:$0xff] %vm115_vm1, %v225_v54  ;;  %1284 = vmatmul.mubr.bf16.gmra.mrb[112].mxu0 %v939_v7  ;;  %v630_v7 = vmul.f32 %v2285_v29, %v487_v27  ;;  %v968_v26 = vpack.c.bf16 %v893_v48, %v890_v47  ;;  %v952_v44 = vpack.c.bf16 %v862_v22, %v859_v23  ;;  %v496_v47 = vld [vmem:[%s3757_s0 + $0x3a0] sm:$0xff]  ;;  %v499_v48 = vld [vmem:[%s3757_s0 + $0x3b8] sm:$0xff] }
  0xea   :  { %1948 = vmatmul.mubr.msk.bf16.gmra.mrb[0].mxu1 %vm115_vm1, %v962_v34  ;;  %1291 = vmatprep.mubr.bf16.mxu0 %v943_v24  ;;  %v726_v34 = vadd.f32 %v2392_v62, %v583_v50  ;;  %v729_v24 = vadd.f32 %v2392_v62, %v586_v51  ;;  %v896_v46 = vmax.f32 %v770_v53, 0.0  ;;  %v739_v50 = vadd.f32 %v2288_v30, %v596_v8 }
  0xeb   :  { %1951 = vmatprep.mubr.msk.bf16.mxu1 %vm2130_vm0, %v2128_v0  ;;  %v773_v54 = vadd.f32 %v2291_v31, %v630_v7  ;;  %v742_v51 = vadd.f32 %v2288_v30, %v599_v17 }
  0xec   :  { %v229_v4 = vpop.f32.mrb[8].mxu0  ;;  %v852_v37 = vmax.f32 %v726_v34, 0.0  ;;  %v855_v14 = vmax.f32 %v729_v24, 0.0  ;;  %v598_v34 = vmul.f32 %v2366_v55, %v455_v6  ;;  %v865_v53 = vmax.f32 %v739_v50, 0.0 }
  0xed   :  { %v230_v5 = vadd.f32 %v3042_v3, %v229_v4  ;;  %v1813_v20 = vpop.f32.mrb[9].mxu0  ;;  %v589_v4 = vmul.f32 %v2366_v55, %v446_v61  ;;  %v602_v61 = vmul.f32 %v2283_v28, %v459_v56 }
  0xee   :  { %v232_v18 = vpop.f32.mrb[10].mxu0  ;;  %v633_v20 = vmul.f32 %v2285_v29, %v490_v9  ;;  %v948_v41 = vpack.c.bf16 %v855_v14, %v852_v37  ;;  %v748_v37 = vadd.f32 %v2288_v30, %v605_v12  ;;  %v458_v14 = vld [vmem:[%s3757_s0 + $0x270] sm:$0xff] }
  0xef   :  { %1643 = vst.msk [vmem:[%s3761_s8 + $0x20] sm:$0xff] %vm115_vm1, %v230_v5  ;;  %v233_v35 = vadd.f32 %v3042_v3, %v232_v18  ;;  %v1814_v40 = vpop.f32.mrb[11].mxu0  ;;  %v899_v5 = vmax.f32 %v773_v54, 0.0  ;;  %v868_v54 = vmax.f32 %v742_v51, 0.0  ;;  %v745_v28 = vadd.f32 %v2288_v30, %v602_v61  ;;  %v502_v30 = vld [vmem:[%s3757_s0 + $0x3d0] sm:$0xff] }
  0xf0   :  { %v776_v27 = vadd.f32 %v2291_v31, %v633_v20  ;;  %v452_v40 = vld [vmem:[%s3757_s0 + $0x240] sm:$0xff]  ;;  %v601_v8 = vmul.f32 %v2366_v55, %v458_v14 }
  0xf1   :  { %1644 = vst.msk [vmem:[%s3761_s8 + $0x28] sm:$0xff] %vm115_vm1, %v233_v35  ;;  %1292 = vmatmul.mubr.bf16.gmra.mrb[116].mxu0 %v942_v15  ;;  %v636_v15 = vmul.f32 %v2285_v29, %v493_v19  ;;  %v971_v43 = vpack.c.bf16 %v899_v5, %v896_v46  ;;  %v955_v10 = vpack.c.bf16 %v868_v54, %v865_v53  ;;  %v505_v5 = vld [vmem:[%s3757_s0 + $0x3e8] sm:$0xff] }
  0xf2   :  { %1952 = vmatmul.mubr.msk.bf16.gmra.mrb[4].mxu1 %vm115_vm1, %v965_v11  ;;  %1299 = vmatprep.mubr.bf16.mxu0 %v946_v49  ;;  %v732_v11 = vadd.f32 %v2392_v62, %v589_v4  ;;  %v735_v49 = vadd.f32 %v2392_v62, %v592_v45  ;;  %v902_v24 = vmax.f32 %v776_v27, 0.0  ;;  %v461_v4 = vld [vmem:[%s3757_s0 + $0x288] sm:$0xff] }
  0xf3   :  { %1955 = vmatprep.mubr.msk.bf16.mxu1 %vm2130_vm0, %v2128_v0  ;;  %v779_v35 = vadd.f32 %v2291_v31, %v636_v15  ;;  %v604_v17 = vmul.f32 %v2366_v55, %v461_v4 }
  0xf4   :  { %v237_v33 = vpop.f32.mrb[12].mxu0  ;;  %v858_v57 = vmax.f32 %v732_v11, 0.0  ;;  %v861_v63 = vmax.f32 %v735_v49, 0.0  ;;  %v874_v11 = vmax.f32 %v748_v37, 0.0  ;;  %v645_v49 = vmul.f32 %v2285_v29, %v502_v30 }
  0xf5   :  { %v238_v25 = vadd.f32 %v3042_v3, %v237_v33  ;;  %v1817_v32 = vpop.f32.mrb[13].mxu0  ;;  %v595_v33 = vmul.f32 %v2366_v55, %v452_v40  ;;  %v744_v40 = vadd.f32 %v2392_v62, %v601_v8  ;;  %v747_v55 = vadd.f32 %v2392_v62, %v604_v17 }
  0xf6   :  { %v240_v13 = vpop.f32.mrb[14].mxu0  ;;  %v639_v32 = vmul.f32 %v2285_v29, %v496_v47  ;;  %v951_v9 = vpack.c.bf16 %v861_v63, %v858_v57 }
  0xf7   :  { %1645 = vst.msk [vmem:[%s3761_s8 + $0x30] sm:$0xff] %vm115_vm1, %v238_v25  ;;  %v241_v1 = vadd.f32 %v3042_v3, %v240_v13  ;;  %v1818_v21 = vpop.f32.mrb[15].mxu0  ;;  %v905_v25 = vmax.f32 %v779_v35, 0.0  ;;  %v873_v47 = vmax.f32 %v747_v55, 0.0 }
  0xf8   :  { %v782_v19 = vadd.f32 %v2291_v31, %v639_v32 }
  0xf9   :  { %1646 = vst.msk [vmem:[%s3761_s8 + $0x38] sm:$0xff] %vm115_vm1, %v241_v1  ;;  %1300 = vmatmul.mubr.bf16.gmra.mrb[120].mxu0 %v945_v2  ;;  %v642_v2 = vmul.f32 %v2285_v29, %v499_v48  ;;  %v974_v36 = vpack.c.bf16 %v905_v25, %v902_v24 }
  0xfa   :  { %1956 = vmatmul.mubr.msk.bf16.gmra.mrb[8].mxu1 %vm115_vm1, %v968_v26  ;;  %1307 = vmatprep.mubr.bf16.mxu0 %v949_v16  ;;  %v738_v26 = vadd.f32 %v2392_v62, %v595_v33  ;;  %v741_v16 = vadd.f32 %v2392_v62, %v598_v34  ;;  %v908_v23 = vmax.f32 %v782_v19, 0.0  ;;  %v870_v62 = vmax.f32 %v744_v40, 0.0 }
  0xfb   :  { %1959 = vmatprep.mubr.msk.bf16.mxu1 %vm2130_vm0, %v2128_v0  ;;  %v785_v1 = vadd.f32 %v2291_v31, %v642_v2 }
  0xfc   :  { %v245_v18 = vpop.f32.mrb[16].mxu0  ;;  %v864_v20 = vmax.f32 %v738_v26, 0.0  ;;  %v867_v15 = vmax.f32 %v741_v16, 0.0  ;;  %v957_v58 = vpack.c.bf16 %v873_v47, %v870_v62 }
  0xfd   :  { %v246_v38 = vadd.f32 %v3042_v3, %v245_v18  ;;  %v1821_v39 = vpop.f32.mrb[17].mxu0  ;;  %v911_v22 = vmax.f32 %v785_v1, 0.0  ;;  %v871_v18 = vmax.f32 %v745_v28, 0.0 }
  0xfe   :  { %v248_v42 = vpop.f32.mrb[18].mxu0  ;;  %v954_v35 = vpack.c.bf16 %v867_v15, %v864_v20 }
  0xff   :  { %1647 = vst.msk [vmem:[%s3761_s8 + $0x40] sm:$0xff] %vm115_vm1, %v246_v38  ;;  %v249_v52 = vadd.f32 %v3042_v3, %v248_v42  ;;  %v1822_v7 = vpop.f32.mrb[19].mxu0  ;;  %v648_v38 = vmul.f32 %v2285_v29, %v505_v5  ;;  %v977_v42 = vpack.c.bf16 %v911_v22, %v908_v23 }
 0x101   :  { %1648 = vst.msk [vmem:[%s3761_s8 + $0x48] sm:$0xff] %vm115_vm1, %v249_v52  ;;  %1308 = vmatmul.mubr.bf16.gmra.mrb[124].mxu0 %v948_v41  ;;  %v791_v50 = vadd.f32 %v2291_v31, %v648_v38 }
 0x102   :  { %1960 = vmatmul.mubr.msk.bf16.gmra.mrb[12].mxu1 %vm115_vm1, %v971_v43  ;;  %1315 = vmatprep.mubr.bf16.mxu0 %v952_v44  ;;  %v958_v43 = vpack.c.bf16 %v874_v11, %v871_v18  ;;  %v788_v44 = vadd.f32 %v2291_v31, %v645_v49 }
 0x103   :  { %1963 = vmatprep.mubr.msk.bf16.mxu1 %vm2130_vm0, %v2128_v0  ;;  %v917_v48 = vmax.f32 %v791_v50, 0.0 }
 0x104   :  { %v253_v13 = vpop.f32.mrb[20].mxu0  ;;  %v914_v31 = vmax.f32 %v788_v44, 0.0 }
 0x105   :  { %v254_v59 = vadd.f32 %v3042_v3, %v253_v13  ;;  %v1825_v60 = vpop.f32.mrb[21].mxu0 }
 0x106   :  { %v256_v21 = vpop.f32.mrb[22].mxu0  ;;  %v980_v63 = vpack.c.bf16 %v917_v48, %v914_v31 }
 0x107   :  { %1649 = vst.msk [vmem:[%s3761_s8 + $0x50] sm:$0xff] %vm115_vm1, %v254_v59  ;;  %v257_v45 = vadd.f32 %v3042_v3, %v256_v21  ;;  %v1826_v46 = vpop.f32.mrb[23].mxu0 }
 0x109   :  { %1650 = vst.msk [vmem:[%s3761_s8 + $0x58] sm:$0xff] %vm115_vm1, %v257_v45  ;;  %1316 = vmatmul.mubr.bf16.gmra.mrb[128].mxu0 %v951_v9 }
 0x10a   :  { %1964 = vmatmul.mubr.msk.bf16.gmra.mrb[16].mxu1 %vm115_vm1, %v974_v36  ;;  %1323 = vmatprep.mubr.bf16.mxu0 %v955_v10 }
 0x10b   :  { %1967 = vmatprep.mubr.msk.bf16.mxu1 %vm2130_vm0, %v2128_v0 }
 0x10c   :  { %v261_v39 = vpop.f32.mrb[24].mxu0 }
 0x10d   :  { %v262_v41 = vadd.f32 %v3042_v3, %v261_v39  ;;  %v1829_v27 = vpop.f32.mrb[25].mxu0 }
 0x10e   :  { %v264_v6 = vpop.f32.mrb[26].mxu0 }
 0x10f   :  { %1651 = vst.msk [vmem:[%s3761_s8 + $0x60] sm:$0xff] %vm115_vm1, %v262_v41  ;;  %v265_v29 = vadd.f32 %v3042_v3, %v264_v6  ;;  %v1830_v51 = vpop.f32.mrb[27].mxu0 }
 0x111   :  { %1652 = vst.msk [vmem:[%s3761_s8 + $0x68] sm:$0xff] %vm115_vm1, %v265_v29  ;;  %1324 = vmatmul.mubr.bf16.gmra.mrb[132].mxu0 %v954_v35 }
 0x112   :  { %1968 = vmatmul.mubr.msk.bf16.gmra.mrb[20].mxu1 %vm115_vm1, %v977_v42  ;;  %1331 = vmatprep.mubr.bf16.mxu0 %v958_v43 }
 0x113   :  { %1971 = vmatprep.mubr.msk.bf16.mxu1 %vm2130_vm0, %v2128_v0 }
 0x114   :  { %v269_v52 = vpop.f32.mrb[28].mxu0 }
 0x115   :  { %v270_v7 = vadd.f32 %v3042_v3, %v269_v52  ;;  %v1833_v56 = vpop.f32.mrb[29].mxu0 }
 0x116   :  { %v272_v57 = vpop.f32.mrb[30].mxu0 }
 0x117   :  { %1653 = vst.msk [vmem:[%s3761_s8 + $0x70] sm:$0xff] %vm115_vm1, %v270_v7  ;;  %v273_v33 = vadd.f32 %v3042_v3, %v272_v57  ;;  %v1834_v34 = vpop.f32.mrb[31].mxu0 }
 0x119   :  { %1654 = vst.msk [vmem:[%s3761_s8 + $0x78] sm:$0xff] %vm115_vm1, %v273_v33  ;;  %1332 = vmatmul.mubr.bf16.gmra.mrb[136].mxu0 %v957_v58 }
 0x11a   :  { %1972 = vmatmul.mubr.msk.bf16.gmra.mrb[24].mxu1 %vm115_vm1, %v980_v63 }
 0x11c   :  { %v277_v0 = vpop.f32.mrb[32].mxu0 }
 0x11d   :  { %v278_v24 = vadd.f32 %v3042_v3, %v277_v0  ;;  %v1837_v25 = vpop.f32.mrb[33].mxu0 }
 0x11e   :  { %v280_v32 = vpop.f32.mrb[34].mxu0 }
 0x11f   :  { %1655 = vst.msk [vmem:[%s3761_s8 + $0x80] sm:$0xff] %vm115_vm1, %v278_v24  ;;  %v281_v2 = vadd.f32 %v3042_v3, %v280_v32  ;;  %v1838_v53 = vpop.f32.mrb[35].mxu0 }
 0x121   :  { %1656 = vst.msk [vmem:[%s3761_s8 + $0x88] sm:$0xff] %vm115_vm1, %v281_v2 }
 0x124   :  { %v285_v54 = vpop.f32.mrb[36].mxu0 }
 0x125   :  { %v286_v61 = vadd.f32 %v3042_v3, %v285_v54  ;;  %v1841_v12 = vpop.f32.mrb[37].mxu0 }
 0x126   :  { %v288_v13 = vpop.f32.mrb[38].mxu0 }
 0x127   :  { %1657 = vst.msk [vmem:[%s3761_s8 + $0x90] sm:$0xff] %vm115_vm1, %v286_v61  ;;  %v289_v26 = vadd.f32 %v3042_v3, %v288_v13  ;;  %v1842_v16 = vpop.f32.mrb[39].mxu0 }
 0x129   :  { %1658 = vst.msk [vmem:[%s3761_s8 + $0x98] sm:$0xff] %vm115_vm1, %v289_v26 }
 0x12c   :  { %v293_v59 = vpop.f32.mrb[40].mxu0 }
 0x12d   :  { %v294_v60 = vadd.f32 %v3042_v3, %v293_v59  ;;  %v1845_v9 = vpop.f32.mrb[41].mxu0 }
 0x12e   :  { %v296_v19 = vpop.f32.mrb[42].mxu0 }
 0x12f   :  { %1659 = vst.msk [vmem:[%s3761_s8 + $0xa0] sm:$0xff] %vm115_vm1, %v294_v60  ;;  %v297_v1 = vadd.f32 %v3042_v3, %v296_v19  ;;  %v1846_v21 = vpop.f32.mrb[43].mxu0 }
 0x131   :  { %1660 = vst.msk [vmem:[%s3761_s8 + $0xa8] sm:$0xff] %vm115_vm1, %v297_v1 }
 0x134   :  { %v301_v36 = vpop.f32.mrb[44].mxu0 }
 0x135   :  { %v302_v10 = vadd.f32 %v3042_v3, %v301_v36  ;;  %v1849_v28 = vpop.f32.mrb[45].mxu0 }
 0x136   :  { %v304_v37 = vpop.f32.mrb[46].mxu0 }
 0x137   :  { %1661 = vst.msk [vmem:[%s3761_s8 + $0xb0] sm:$0xff] %vm115_vm1, %v302_v10  ;;  %v305_v14 = vadd.f32 %v3042_v3, %v304_v37  ;;  %v1850_v4 = vpop.f32.mrb[47].mxu0 }
 0x139   :  { %1662 = vst.msk [vmem:[%s3761_s8 + $0xb8] sm:$0xff] %vm115_vm1, %v305_v14 }
 0x13c   :  { %v309_v45 = vpop.f32.mrb[48].mxu0 }
 0x13d   :  { %v310_v46 = vadd.f32 %v3042_v3, %v309_v45  ;;  %v1853_v30 = vpop.f32.mrb[49].mxu0 }
 0x13e   :  { %v312_v5 = vpop.f32.mrb[50].mxu0 }
 0x13f   :  { %1663 = vst.msk [vmem:[%s3761_s8 + $0xc0] sm:$0xff] %vm115_vm1, %v310_v46  ;;  %v313_v20 = vadd.f32 %v3042_v3, %v312_v5  ;;  %v1854_v15 = vpop.f32.mrb[51].mxu0 }
 0x141   :  { %1664 = vst.msk [vmem:[%s3761_s8 + $0xc8] sm:$0xff] %vm115_vm1, %v313_v20 }
 0x144   :  { %v317_v23 = vpop.f32.mrb[52].mxu0 }
 0x145   :  { %v318_v22 = vadd.f32 %v3042_v3, %v317_v23  ;;  %v1857_v8 = vpop.f32.mrb[53].mxu0 }
 0x146   :  { %v320_v17 = vpop.f32.mrb[54].mxu0 }
 0x147   :  { %1665 = vst.msk [vmem:[%s3761_s8 + $0xd0] sm:$0xff] %vm115_vm1, %v318_v22  ;;  %v321_v18 = vadd.f32 %v3042_v3, %v320_v17  ;;  %v1858_v11 = vpop.f32.mrb[55].mxu0 }
 0x149   :  { %1666 = vst.msk [vmem:[%s3761_s8 + $0xd8] sm:$0xff] %vm115_vm1, %v321_v18 }
 0x14c   :  { %v325_v49 = vpop.f32.mrb[56].mxu0 }
 0x14d   :  { %v326_v38 = vadd.f32 %v3042_v3, %v325_v49  ;;  %v3387_v39 = vpop.f32.mrb[28].mxu1  ;;  %v1861_v41 = vpop.f32.mrb[57].mxu0 }
 0x14e   :  { %v1893_v27 = vpop.f32.mrb[29].mxu1  ;;  %v328_v35 = vpop.f32.mrb[58].mxu0 }
 0x14f   :  { %1667 = vst.msk [vmem:[%s3761_s8 + $0xe0] sm:$0xff] %vm115_vm1, %v326_v38  ;;  %v329_v40 = vadd.f32 %v3042_v3, %v328_v35  ;;  %v3394_v55 = vpop.f32.mrb[30].mxu1  ;;  %v1862_v6 = vpop.f32.mrb[59].mxu0 }
 0x150   :  { %v1894_v42 = vpop.f32.mrb[31].mxu1 }
 0x151   :  { %1668 = vst.msk [vmem:[%s3761_s8 + $0xe8] sm:$0xff] %vm115_vm1, %v329_v40  ;;  %v3487_v42 = vld [vmem:[%s3762_s2] ss:$0 sm:$0xff] }
 0x154   :  { %v333_v43 = vpop.f32.mrb[60].mxu0 }
 0x155   :  { %v334_v44 = vadd.f32 %v3042_v3, %v333_v43  ;;  %v3401_v50 = vpop.f32.mrb[32].mxu1  ;;  %v1865_v29 = vpop.f32.mrb[61].mxu0 }
 0x156   :  { %v1897_v51 = vpop.f32.mrb[33].mxu1  ;;  %v336_v62 = vpop.f32.mrb[62].mxu0 }
 0x157   :  { %1669 = vst.msk [vmem:[%s3761_s8 + $0xf0] sm:$0xff] %vm115_vm1, %v334_v44  ;;  %v337_v47 = vadd.f32 %v3042_v3, %v336_v62  ;;  %v3408_v31 = vpop.f32.mrb[34].mxu1  ;;  %v1866_v48 = vpop.f32.mrb[63].mxu0 }
 0x158   :  { %v1898_v52 = vpop.f32.mrb[35].mxu1 }
 0x159   :  { %1670 = vst.msk [vmem:[%s3761_s8 + $0xf8] sm:$0xff] %vm115_vm1, %v337_v47 }
 0x15c   :  { %v341_v7 = vpop.f32.mrb[64].mxu0 }
 0x15d   :  { %v342_v56 = vadd.f32 %v3042_v3, %v341_v7  ;;  %v3415_v58 = vpop.f32.mrb[36].mxu1  ;;  %v1869_v57 = vpop.f32.mrb[65].mxu0 }
 0x15e   :  { %v1901_v63 = vpop.f32.mrb[37].mxu1  ;;  %v344_v33 = vpop.f32.mrb[66].mxu0 }
 0x15f   :  { %1671 = vst.msk [vmem:[%s3761_s8 + $0x100] sm:$0xff] %vm115_vm1, %v342_v56  ;;  %v345_v34 = vadd.f32 %v3042_v3, %v344_v33  ;;  %v3422_v0 = vpop.f32.mrb[38].mxu1  ;;  %v1870_v24 = vpop.f32.mrb[67].mxu0 }
 0x160   :  { %v1902_v25 = vpop.f32.mrb[39].mxu1 }
 0x161   :  { %1672 = vst.msk [vmem:[%s3761_s8 + $0x108] sm:$0xff] %vm115_vm1, %v345_v34 }
 0x164   :  { %v349_v32 = vpop.f32.mrb[68].mxu0 }
 0x165   :  { %v350_v2 = vadd.f32 %v3042_v3, %v349_v32  ;;  %v3429_v53 = vpop.f32.mrb[40].mxu1  ;;  %v1873_v54 = vpop.f32.mrb[69].mxu0 }
 0x166   :  { %v1905_v61 = vpop.f32.mrb[41].mxu1  ;;  %v352_v12 = vpop.f32.mrb[70].mxu0 }
 0x167   :  { %1673 = vst.msk [vmem:[%s3761_s8 + $0x110] sm:$0xff] %vm115_vm1, %v350_v2  ;;  %v353_v13 = vadd.f32 %v3042_v3, %v352_v12  ;;  %v3436_v26 = vpop.f32.mrb[42].mxu1  ;;  %v1874_v16 = vpop.f32.mrb[71].mxu0 }
 0x168   :  { %v1906_v59 = vpop.f32.mrb[43].mxu1 }
 0x169   :  { %1674 = vst.msk [vmem:[%s3761_s8 + $0x118] sm:$0xff] %vm115_vm1, %v353_v13 }
 0x16c   :  { %v357_v60 = vpop.f32.mrb[72].mxu0 }
 0x16d   :  { %v358_v9 = vadd.f32 %v3042_v3, %v357_v60  ;;  %v3443_v19 = vpop.f32.mrb[44].mxu1  ;;  %v1877_v1 = vpop.f32.mrb[73].mxu0 }
 0x16e   :  { %v1909_v21 = vpop.f32.mrb[45].mxu1  ;;  %v360_v36 = vpop.f32.mrb[74].mxu0 }
 0x16f   :  { %1675 = vst.msk [vmem:[%s3761_s8 + $0x120] sm:$0xff] %vm115_vm1, %v358_v9  ;;  %v361_v10 = vadd.f32 %v3042_v3, %v360_v36  ;;  %v3450_v28 = vpop.f32.mrb[46].mxu1  ;;  %v1878_v37 = vpop.f32.mrb[75].mxu0 }
 0x170   :  { %v1910_v14 = vpop.f32.mrb[47].mxu1 }
 0x171   :  { %1676 = vst.msk [vmem:[%s3761_s8 + $0x128] sm:$0xff] %vm115_vm1, %v361_v10 }
 0x174   :  { %v365_v4 = vpop.f32.mrb[76].mxu0 }
 0x175   :  { %v366_v45 = vadd.f32 %v3042_v3, %v365_v4  ;;  %v3457_v46 = vpop.f32.mrb[48].mxu1  ;;  %v1881_v30 = vpop.f32.mrb[77].mxu0 }
 0x176   :  { %v1913_v5 = vpop.f32.mrb[49].mxu1  ;;  %v368_v20 = vpop.f32.mrb[78].mxu0 }
 0x177   :  { %1677 = vst.msk [vmem:[%s3761_s8 + $0x130] sm:$0xff] %vm115_vm1, %v366_v45  ;;  %v369_v15 = vadd.f32 %v3042_v3, %v368_v20  ;;  %v3464_v23 = vpop.f32.mrb[50].mxu1  ;;  %v1882_v22 = vpop.f32.mrb[79].mxu0 }
 0x178   :  { %v1914_v8 = vpop.f32.mrb[51].mxu1 }
 0x179   :  { %1678 = vst.msk [vmem:[%s3761_s8 + $0x138] sm:$0xff] %vm115_vm1, %v369_v15 }
 0x17c   :  { %v373_v17 = vpop.f32.mrb[80].mxu0 }
 0x17d   :  { %v374_v18 = vadd.f32 %v3042_v3, %v373_v17  ;;  %v3471_v11 = vpop.f32.mrb[52].mxu1  ;;  %v1885_v49 = vpop.f32.mrb[81].mxu0 }
 0x17e   :  { %v1917_v38 = vpop.f32.mrb[53].mxu1  ;;  %v376_v41 = vpop.f32.mrb[82].mxu0 }
 0x17f   :  { %1679 = vst.msk [vmem:[%s3761_s8 + $0x140] sm:$0xff] %vm115_vm1, %v374_v18  ;;  %v377_v27 = vadd.f32 %v3042_v3, %v376_v41  ;;  %v3478_v35 = vpop.f32.mrb[54].mxu1  ;;  %v1886_v40 = vpop.f32.mrb[83].mxu0 }
 0x180   :  { %v1918_v6 = vpop.f32.mrb[55].mxu1 }
 0x181   :  { %1680 = vst.msk [vmem:[%s3761_s8 + $0x148] sm:$0xff] %vm115_vm1, %v377_v27 }
 0x184   :  { %v1229_v43 = vpop.f32.mrb[84].mxu0 }
 0x185   :  { %v1230_v44 = vadd.f32 %v3487_v42, %v1229_v43  ;;  %v3490_v29 = vpop.f32.mrb[56].mxu1  ;;  %v1231_v3 = vpop.f32.mrb[85].mxu0 }
 0x186   :  { %v1921_v51 = vpop.f32.mrb[57].mxu1  ;;  %v1232_v62 = vpop.f32.mrb[86].mxu0 }
 0x187   :  { %v1431_v47 = vadd.f32 %v3387_v39, %v1230_v44  ;;  %v1233_v48 = vadd.f32 %v3487_v42, %v1232_v62  ;;  %v3494_v52 = vpop.f32.mrb[58].mxu1  ;;  %v1234_v7 = vpop.f32.mrb[87].mxu0 }
 0x188   :  { %v1922_v56 = vpop.f32.mrb[59].mxu1 }
 0x189   :  { %1597 = vst.msk [vmem:[%s3763_s7] sm:$0xff] %vm115_vm1, %v1431_v47  ;;  %v1434_v57 = vadd.f32 %v3394_v55, %v1233_v48 }
 0x18b   :  { %1598 = vst.msk [vmem:[%s3763_s7 + $0x8] sm:$0xff] %vm115_vm1, %v1434_v57 }
 0x18c   :  { %v1237_v63 = vpop.f32.mrb[88].mxu0 }
 0x18d   :  { %v1238_v39 = vadd.f32 %v3487_v42, %v1237_v63  ;;  %v3506_v33 = vpop.f32.mrb[60].mxu1  ;;  %v1239_v34 = vpop.f32.mrb[89].mxu0 }
 0x18e   :  { %v1925_v24 = vpop.f32.mrb[61].mxu1  ;;  %v1240_v25 = vpop.f32.mrb[90].mxu0 }
 0x18f   :  { %v1439_v32 = vadd.f32 %v3401_v50, %v1238_v39  ;;  %v1241_v2 = vadd.f32 %v3487_v42, %v1240_v25  ;;  %v3510_v54 = vpop.f32.mrb[62].mxu1  ;;  %v1242_v55 = vpop.f32.mrb[91].mxu0 }
 0x190   :  { %v1926_v61 = vpop.f32.mrb[63].mxu1 }
 0x191   :  { %1599 = vst.msk [vmem:[%s3763_s7 + $0x10] sm:$0xff] %vm115_vm1, %v1439_v32  ;;  %v1442_v12 = vadd.f32 %v3408_v31, %v1241_v2 }
 0x193   :  { %1600 = vst.msk [vmem:[%s3763_s7 + $0x18] sm:$0xff] %vm115_vm1, %v1442_v12 }
 0x194   :  { %v1245_v13 = vpop.f32.mrb[92].mxu0 }
 0x195   :  { %v1246_v50 = vadd.f32 %v3487_v42, %v1245_v13  ;;  %v3522_v16 = vpop.f32.mrb[64].mxu1  ;;  %v1247_v59 = vpop.f32.mrb[93].mxu0 }
 0x196   :  { %v1929_v60 = vpop.f32.mrb[65].mxu1  ;;  %v1248_v9 = vpop.f32.mrb[94].mxu0 }
 0x197   :  { %v1447_v1 = vadd.f32 %v3415_v58, %v1246_v50  ;;  %v1249_v21 = vadd.f32 %v3487_v42, %v1248_v9  ;;  %v3526_v36 = vpop.f32.mrb[66].mxu1  ;;  %v1250_v31 = vpop.f32.mrb[95].mxu0 }
 0x198   :  { %v1930_v10 = vpop.f32.mrb[67].mxu1 }
 0x199   :  { %1601 = vst.msk [vmem:[%s3763_s7 + $0x20] sm:$0xff] %vm115_vm1, %v1447_v1  ;;  %v1450_v37 = vadd.f32 %v3422_v0, %v1249_v21 }
 0x19b   :  { %1602 = vst.msk [vmem:[%s3763_s7 + $0x28] sm:$0xff] %vm115_vm1, %v1450_v37 }
 0x19c   :  { %v1253_v14 = vpop.f32.mrb[96].mxu0 }
 0x19d   :  { %v1254_v58 = vadd.f32 %v3487_v42, %v1253_v14  ;;  %v3538_v4 = vpop.f32.mrb[68].mxu1  ;;  %v1255_v45 = vpop.f32.mrb[97].mxu0 }
 0x19e   :  { %v1933_v30 = vpop.f32.mrb[69].mxu1  ;;  %v1256_v5 = vpop.f32.mrb[98].mxu0 }
 0x19f   :  { %v1455_v20 = vadd.f32 %v3429_v53, %v1254_v58  ;;  %v1257_v15 = vadd.f32 %v3487_v42, %v1256_v5  ;;  %v3542_v22 = vpop.f32.mrb[70].mxu1  ;;  %v1258_v0 = vpop.f32.mrb[99].mxu0 }
 0x1a0   :  { %v1934_v8 = vpop.f32.mrb[71].mxu1 }
 0x1a1   :  { %1603 = vst.msk [vmem:[%s3763_s7 + $0x30] sm:$0xff] %vm115_vm1, %v1455_v20  ;;  %v1458_v17 = vadd.f32 %v3436_v26, %v1257_v15 }
 0x1a3   :  { %1604 = vst.msk [vmem:[%s3763_s7 + $0x38] sm:$0xff] %vm115_vm1, %v1458_v17 }
 0x1a4   :  { %v1261_v18 = vpop.f32.mrb[100].mxu0 }
 0x1a5   :  { %v1262_v53 = vadd.f32 %v3487_v42, %v1261_v18  ;;  %v3554_v49 = vpop.f32.mrb[72].mxu1  ;;  %v1263_v38 = vpop.f32.mrb[101].mxu0 }
 0x1a6   :  { %v1937_v41 = vpop.f32.mrb[73].mxu1  ;;  %v1264_v27 = vpop.f32.mrb[102].mxu0 }
 0x1a7   :  { %v1463_v40 = vadd.f32 %v3443_v19, %v1262_v53  ;;  %v1265_v6 = vadd.f32 %v3487_v42, %v1264_v27  ;;  %v3558_v43 = vpop.f32.mrb[74].mxu1  ;;  %v1266_v26 = vpop.f32.mrb[103].mxu0 }
 0x1a8   :  { %v1938_v44 = vpop.f32.mrb[75].mxu1 }
 0x1a9   :  { %1605 = vst.msk [vmem:[%s3763_s7 + $0x40] sm:$0xff] %vm115_vm1, %v1463_v40  ;;  %v1466_v3 = vadd.f32 %v3450_v28, %v1265_v6 }
 0x1ab   :  { %1606 = vst.msk [vmem:[%s3763_s7 + $0x48] sm:$0xff] %vm115_vm1, %v1466_v3 }
 0x1ac   :  { %v1269_v51 = vpop.f32.mrb[104].mxu0 }
 0x1ad   :  { %v1270_v19 = vadd.f32 %v3487_v42, %v1269_v51  ;;  %v3570_v62 = vpop.f32.mrb[76].mxu1  ;;  %v1271_v47 = vpop.f32.mrb[105].mxu0 }
 0x1ae   :  { %v1941_v48 = vpop.f32.mrb[77].mxu1  ;;  %v1272_v7 = vpop.f32.mrb[106].mxu0 }
 0x1af   :  { %v1471_v56 = vadd.f32 %v3457_v46, %v1270_v19  ;;  %v1273_v57 = vadd.f32 %v3487_v42, %v1272_v7  ;;  %v3574_v63 = vpop.f32.mrb[78].mxu1  ;;  %v1274_v28 = vpop.f32.mrb[107].mxu0 }
 0x1b0   :  { %v1942_v39 = vpop.f32.mrb[79].mxu1 }
 0x1b1   :  { %1607 = vst.msk [vmem:[%s3763_s7 + $0x50] sm:$0xff] %vm115_vm1, %v1471_v56  ;;  %v1474_v34 = vadd.f32 %v3464_v23, %v1273_v57 }
 0x1b3   :  { %1608 = vst.msk [vmem:[%s3763_s7 + $0x58] sm:$0xff] %vm115_vm1, %v1474_v34 }
 0x1b4   :  { %v1277_v24 = vpop.f32.mrb[108].mxu0 }
 0x1b5   :  { %v1278_v46 = vadd.f32 %v3487_v42, %v1277_v24  ;;  %v3586_v25 = vpop.f32.mrb[80].mxu1  ;;  %v1279_v32 = vpop.f32.mrb[109].mxu0 }
 0x1b6   :  { %v1945_v2 = vpop.f32.mrb[81].mxu1  ;;  %v1280_v55 = vpop.f32.mrb[110].mxu0 }
 0x1b7   :  { %v1479_v61 = vadd.f32 %v3471_v11, %v1278_v46  ;;  %v1281_v12 = vadd.f32 %v3487_v42, %v1280_v55  ;;  %v3590_v13 = vpop.f32.mrb[82].mxu1  ;;  %v1282_v23 = vpop.f32.mrb[111].mxu0 }
 0x1b8   :  { %v1946_v50 = vpop.f32.mrb[83].mxu1 }
 0x1b9   :  { %1609 = vst.msk [vmem:[%s3763_s7 + $0x60] sm:$0xff] %vm115_vm1, %v1479_v61  ;;  %v1482_v59 = vadd.f32 %v3478_v35, %v1281_v12 }
 0x1bb   :  { %1610 = vst.msk [vmem:[%s3763_s7 + $0x68] sm:$0xff] %vm115_vm1, %v1482_v59 }
 0x1bc   :  { %v1285_v60 = vpop.f32.mrb[112].mxu0 }
 0x1bd   :  { %v1286_v11 = vadd.f32 %v3487_v42, %v1285_v60  ;;  %v1542_v9 = vpop.f32.mrb[0].mxu1  ;;  %v1287_v1 = vpop.f32.mrb[113].mxu0 }
 0x1be   :  { %v2063_v21 = vadd.f32 %v3487_v42, %v1542_v9  ;;  %v1949_v31 = vpop.f32.mrb[1].mxu1  ;;  %v1288_v10 = vpop.f32.mrb[114].mxu0 }
 0x1bf   :  { %v1487_v37 = vadd.f32 %v3490_v29, %v1286_v11  ;;  %v1289_v14 = vadd.f32 %v3487_v42, %v1288_v10  ;;  %v1545_v58 = vpop.f32.mrb[2].mxu1  ;;  %v1290_v35 = vpop.f32.mrb[115].mxu0 }
 0x1c0   :  { %1625 = vst.msk [vmem:[%s3763_s7 + $0xe0] sm:$0xff] %vm115_vm1, %v2063_v21  ;;  %v2064_v45 = vadd.f32 %v3487_v42, %v1545_v58  ;;  %v1950_v30 = vpop.f32.mrb[3].mxu1 }
 0x1c1   :  { %1611 = vst.msk [vmem:[%s3763_s7 + $0x70] sm:$0xff] %vm115_vm1, %v1487_v37  ;;  %v1490_v5 = vadd.f32 %v3494_v52, %v1289_v14 }
 0x1c2   :  { %1626 = vst.msk [vmem:[%s3763_s7 + $0xe8] sm:$0xff] %vm115_vm1, %v2064_v45 }
 0x1c3   :  { %1612 = vst.msk [vmem:[%s3763_s7 + $0x78] sm:$0xff] %vm115_vm1, %v1490_v5 }
 0x1c4   :  { %v1293_v29 = vpop.f32.mrb[116].mxu0 }
 0x1c5   :  { %v1294_v20 = vadd.f32 %v3487_v42, %v1293_v29  ;;  %v1550_v15 = vpop.f32.mrb[4].mxu1  ;;  %v1295_v0 = vpop.f32.mrb[117].mxu0 }
 0x1c6   :  { %v2065_v8 = vadd.f32 %v3487_v42, %v1550_v15  ;;  %v1953_v17 = vpop.f32.mrb[5].mxu1  ;;  %v1296_v18 = vpop.f32.mrb[118].mxu0 }
 0x1c7   :  { %v1495_v52 = vadd.f32 %v3506_v33, %v1294_v20  ;;  %v1297_v53 = vadd.f32 %v3487_v42, %v1296_v18  ;;  %v1553_v38 = vpop.f32.mrb[6].mxu1  ;;  %v1298_v41 = vpop.f32.mrb[119].mxu0 }
 0x1c8   :  { %1627 = vst.msk [vmem:[%s3763_s7 + $0xf0] sm:$0xff] %vm115_vm1, %v2065_v8  ;;  %v2066_v27 = vadd.f32 %v3487_v42, %v1553_v38  ;;  %v1954_v40 = vpop.f32.mrb[7].mxu1 }
 0x1c9   :  { %1613 = vst.msk [vmem:[%s3763_s7 + $0x80] sm:$0xff] %vm115_vm1, %v1495_v52  ;;  %v1498_v6 = vadd.f32 %v3510_v54, %v1297_v53 }
 0x1ca   :  { %1628 = vst.msk [vmem:[%s3763_s7 + $0xf8] sm:$0xff] %vm115_vm1, %v2066_v27 }
 0x1cb   :  { %1614 = vst.msk [vmem:[%s3763_s7 + $0x88] sm:$0xff] %vm115_vm1, %v1498_v6 }
 0x1cc   :  { %v1301_v33 = vpop.f32.mrb[120].mxu0 }
 0x1cd   :  { %v1302_v26 = vadd.f32 %v3487_v42, %v1301_v33  ;;  %v1558_v44 = vpop.f32.mrb[8].mxu1  ;;  %v1303_v3 = vpop.f32.mrb[121].mxu0 }
 0x1ce   :  { %v2067_v51 = vadd.f32 %v3487_v42, %v1558_v44  ;;  %v1957_v19 = vpop.f32.mrb[9].mxu1  ;;  %v1304_v47 = vpop.f32.mrb[122].mxu0 }
 0x1cf   :  { %v1503_v54 = vadd.f32 %v3522_v16, %v1302_v26  ;;  %v1305_v48 = vadd.f32 %v3487_v42, %v1304_v47  ;;  %v1561_v7 = vpop.f32.mrb[10].mxu1  ;;  %v1306_v56 = vpop.f32.mrb[123].mxu0 }
 0x1d0   :  { %1629 = vst.msk [vmem:[%s3763_s7 + $0x100] sm:$0xff] %vm115_vm1, %v2067_v51  ;;  %v2068_v57 = vadd.f32 %v3487_v42, %v1561_v7  ;;  %v1958_v28 = vpop.f32.mrb[11].mxu1 }
 0x1d1   :  { %1615 = vst.msk [vmem:[%s3763_s7 + $0x90] sm:$0xff] %vm115_vm1, %v1503_v54  ;;  %v1506_v39 = vadd.f32 %v3526_v36, %v1305_v48 }
 0x1d2   :  { %1630 = vst.msk [vmem:[%s3763_s7 + $0x108] sm:$0xff] %vm115_vm1, %v2068_v57 }
 0x1d3   :  { %1616 = vst.msk [vmem:[%s3763_s7 + $0x98] sm:$0xff] %vm115_vm1, %v1506_v39 }
 0x1d4   :  { %v1309_v16 = vpop.f32.mrb[124].mxu0 }
 0x1d5   :  { %v1310_v34 = vadd.f32 %v3487_v42, %v1309_v16  ;;  %v1566_v24 = vpop.f32.mrb[12].mxu1  ;;  %v1311_v46 = vpop.f32.mrb[125].mxu0 }
 0x1d6   :  { %v2069_v32 = vadd.f32 %v3487_v42, %v1566_v24  ;;  %v1961_v2 = vpop.f32.mrb[13].mxu1  ;;  %v1312_v55 = vpop.f32.mrb[126].mxu0 }
 0x1d7   :  { %v1511_v36 = vadd.f32 %v3538_v4, %v1310_v34  ;;  %v1313_v61 = vadd.f32 %v3487_v42, %v1312_v55  ;;  %v1569_v12 = vpop.f32.mrb[14].mxu1  ;;  %v1314_v23 = vpop.f32.mrb[127].mxu0 }
 0x1d8   :  { %1631 = vst.msk [vmem:[%s3763_s7 + $0x110] sm:$0xff] %vm115_vm1, %v2069_v32  ;;  %v2070_v50 = vadd.f32 %v3487_v42, %v1569_v12  ;;  %v1962_v59 = vpop.f32.mrb[15].mxu1 }
 0x1d9   :  { %1617 = vst.msk [vmem:[%s3763_s7 + $0xa0] sm:$0xff] %vm115_vm1, %v1511_v36  ;;  %v1514_v60 = vadd.f32 %v3542_v22, %v1313_v61 }
 0x1da   :  { %1632 = vst.msk [vmem:[%s3763_s7 + $0x118] sm:$0xff] %vm115_vm1, %v2070_v50 }
 0x1db   :  { %1618 = vst.msk [vmem:[%s3763_s7 + $0xa8] sm:$0xff] %vm115_vm1, %v1514_v60 }
 0x1dc   :  { %v1317_v4 = vpop.f32.mrb[128].mxu0 }
 0x1dd   :  { %v1318_v11 = vadd.f32 %v3487_v42, %v1317_v4  ;;  %v1574_v9 = vpop.f32.mrb[16].mxu1  ;;  %v1319_v1 = vpop.f32.mrb[129].mxu0 }
 0x1de   :  { %v2071_v21 = vadd.f32 %v3487_v42, %v1574_v9  ;;  %v1965_v31 = vpop.f32.mrb[17].mxu1  ;;  %v1320_v10 = vpop.f32.mrb[130].mxu0 }
 0x1df   :  { %v1519_v22 = vadd.f32 %v3554_v49, %v1318_v11  ;;  %v1321_v37 = vadd.f32 %v3487_v42, %v1320_v10  ;;  %v1577_v14 = vpop.f32.mrb[18].mxu1  ;;  %v1322_v58 = vpop.f32.mrb[131].mxu0 }
 0x1e0   :  { %1633 = vst.msk [vmem:[%s3763_s7 + $0x120] sm:$0xff] %vm115_vm1, %v2071_v21  ;;  %v2072_v35 = vadd.f32 %v3487_v42, %v1577_v14  ;;  %v1966_v45 = vpop.f32.mrb[19].mxu1 }
 0x1e1   :  { %1619 = vst.msk [vmem:[%s3763_s7 + $0xb0] sm:$0xff] %vm115_vm1, %v1519_v22  ;;  %v1522_v30 = vadd.f32 %v3558_v43, %v1321_v37 }
 0x1e2   :  { %1634 = vst.msk [vmem:[%s3763_s7 + $0x128] sm:$0xff] %vm115_vm1, %v2072_v35 }
 0x1e3   :  { %1620 = vst.msk [vmem:[%s3763_s7 + $0xb8] sm:$0xff] %vm115_vm1, %v1522_v30 }
 0x1e4   :  { %v1325_v49 = vpop.f32.mrb[132].mxu0 }
 0x1e5   :  { %v1326_v5 = vadd.f32 %v3487_v42, %v1325_v49  ;;  %v1582_v29 = vpop.f32.mrb[20].mxu1  ;;  %v1327_v20 = vpop.f32.mrb[133].mxu0 }
 0x1e6   :  { %v2073_v15 = vadd.f32 %v3487_v42, %v1582_v29  ;;  %v1969_v0 = vpop.f32.mrb[21].mxu1  ;;  %v1328_v8 = vpop.f32.mrb[134].mxu0 }
 0x1e7   :  { %v1527_v43 = vadd.f32 %v3570_v62, %v1326_v5  ;;  %v1329_v17 = vadd.f32 %v3487_v42, %v1328_v8  ;;  %v1585_v18 = vpop.f32.mrb[22].mxu1  ;;  %v1330_v52 = vpop.f32.mrb[135].mxu0 }
 0x1e8   :  { %1635 = vst.msk [vmem:[%s3763_s7 + $0x130] sm:$0xff] %vm115_vm1, %v2073_v15  ;;  %v2074_v53 = vadd.f32 %v3487_v42, %v1585_v18  ;;  %v1970_v38 = vpop.f32.mrb[23].mxu1 }
 0x1e9   :  { %1621 = vst.msk [vmem:[%s3763_s7 + $0xc0] sm:$0xff] %vm115_vm1, %v1527_v43  ;;  %v1530_v41 = vadd.f32 %v3574_v63, %v1329_v17 }
 0x1ea   :  { %1636 = vst.msk [vmem:[%s3763_s7 + $0x138] sm:$0xff] %vm115_vm1, %v2074_v53 }
 0x1eb   :  { %1622 = vst.msk [vmem:[%s3763_s7 + $0xc8] sm:$0xff] %vm115_vm1, %v1530_v41 }
 0x1ec   :  { %v1333_v62 = vpop.f32.mrb[136].mxu0 }
 0x1ed   :  { %v1334_v27 = vadd.f32 %v3487_v42, %v1333_v62  ;;  %v1590_v40 = vpop.f32.mrb[24].mxu1  ;;  %v1335_v6 = vpop.f32.mrb[137].mxu0 }
 0x1ee   :  { %v2075_v33 = vadd.f32 %v3487_v42, %v1590_v40  ;;  %v1973_v26 = vpop.f32.mrb[25].mxu1  ;;  %v1336_v44 = vpop.f32.mrb[138].mxu0 }
 0x1ef   :  { %v1535_v63 = vadd.f32 %v3586_v25, %v1334_v27  ;;  %v1337_v3 = vadd.f32 %v3487_v42, %v1336_v44  ;;  %v1593_v51 = vpop.f32.mrb[26].mxu1  ;;  %v1338_v19 = vpop.f32.mrb[139].mxu0 }
 0x1f0   :  { %1637 = vst.msk [vmem:[%s3763_s7 + $0x140] sm:$0xff] %vm115_vm1, %v2075_v33  ;;  %v2076_v47 = vadd.f32 %v3487_v42, %v1593_v51  ;;  %v1974_v54 = vpop.f32.mrb[27].mxu1 }
 0x1f1   :  { %1623 = vst.msk [vmem:[%s3763_s7 + $0xd0] sm:$0xff] %vm115_vm1, %v1535_v63  ;;  %v1538_v48 = vadd.f32 %v3590_v13, %v1337_v3 }
 0x1f2   :  { %1638 = vst.msk [vmem:[%s3763_s7 + $0x148] sm:$0xff] %vm115_vm1, %v2076_v47 }
 0x1f3   :  { %1624 = vst.msk [vmem:[%s3763_s7 + $0xd8] sm:$0xff] %vm115_vm1, %v1538_v48 }

// kernel: resnet8_forward.10
= control target key start
LH: loop header
LB: loop body
LE: loop exit
PB: predicated region body
PF: predicated region fallthrough
CT: control target
= control target key end

     0   :  { %v1544_v0 = vmov 0   ;;  %v1545_v2 = vmov 0.0   ;;  %vm1546_vm0 = vmmov 0   ;;  %v152_v5 = vlaneseq  ;;  %s2829_s1 = inlined_call_operand.vmem [shape: bf16[288,32], index: 1, kind: input, shape index: {}]   ;;  %s2830_s0 = inlined_call_operand.vmem [shape: f32[336,288], index: 0, kind: input, shape index: {}]   ;;  %s2831_s3 = inlined_call_operand.vmem [shape: f32[1,288], index: 3, kind: input, shape index: {}]   ;;  %s2832_s4 = inlined_call_operand.vmem [shape: f32[1,288], index: 4, kind: input, shape index: {}]   ;;  %s2833_s2 = inlined_call_operand.vmem [shape: f32[1,32], index: 2, kind: input, shape index: {}]   ;;  %s2834_s5 = inlined_call_operand.vmem [shape: f32[336,32], index: 5, kind: input, shape index: {}]   ;;  %s2835_s6 = inlined_call_operand.vmem [shape: f32[336,32], index: 6, kind: output, shape index: {}]  }
   0x1   :  { %840 = vmatprep.subr.bf16.mxu0 %v1544_v0  ;;  %v1526_v1 = vld [vmem:[%s2829_s1] sm:$0xff]   ;;  %1435 = vmatprep.subr.bf16.mxu1 %v1545_v2  ;;  %v1527_v3 = vld [vmem:[%s2829_s1 + $0x8] sm:$0xff]   ;;  %v1528_v4 = vld [vmem:[%s2829_s1 + $0x10] sm:$0xff]   ;;  %vm776_vm1 = vcmask 261120  }
   0x2   :  { %1439 = vmatprep.mubr.msk.bf16.mxu1 %vm1546_vm0, %v1545_v2  ;;  %841 = vmatpush1.bf16.msra.mxu0 %v1526_v1  ;;  %v1529_v6 = vld [vmem:[%s2829_s1 + $0x18] sm:$0xff]   ;;  %v1601_v7 = vshrl.u32 %v152_v5, 7  ;;  %v1530_v8 = vld [vmem:[%s2829_s1 + $0x20] sm:$0xff]   ;;  %v1542_v12 = vld [vmem:[%s2829_s1 + $0x88] sm:$0xff]  }
   0x3   :  { %842 = vmatprep.subr.bf16.mxu0 %v1544_v0  ;;  %v1540_v9 = vld [vmem:[%s2829_s1 + $0x80] sm:$0xff]   ;;  %v1531_v13 = vld [vmem:[%s2829_s1 + $0x28] sm:$0xff]   ;;  %v26_v20 = vld [vmem:[%s2830_s0 + $0x10] sm:$0xff] }
   0x4   :  { %v158_v10 = vsub.s32 1, %v1601_v7  ;;  %v162_v11 = vsub.s32 2, %v1601_v7  ;;  %1436 = vmatpush3.bf16.msra.mxu1 %v1540_v9  ;;  %v25_v14 = vld [vmem:[%s2830_s0 + $0x8] sm:$0xff]  ;;  %v28_v15 = vld [vmem:[%s2830_s0 + $0x20] sm:$0xff]  ;;  %v1532_v28 = vld [vmem:[%s2829_s1 + $0x30] sm:$0xff]   ;;  %v154_v1 = vsub.s32 0, %v1601_v7 }
   0x5   :  { %1437 = vmatprep.subr.bf16.mxu1 %v1545_v2  ;;  %v1628_v16 = vld [vmem:[%s2831_s3] sm:$0x7]  ;;  %v29_v21 = vld [vmem:[%s2830_s0 + $0x28] sm:$0xff]  ;;  %v35_v34 = vld [vmem:[%s2830_s0 + $0x58] sm:$0xff] }
   0x6   :  { %843 = vmatpush1.bf16.msra.mxu0 %v1527_v3  ;;  %v1632_v17 = vrot.slane %v1628_v16, %v158_v10  ;;  %v1635_v18 = vrot.slane %v1628_v16, %v162_v11  ;;  %v1640_v19 = vld [vmem:[%s2832_s4] sm:$0x7]  ;;  %v1533_v39 = vld [vmem:[%s2829_s1 + $0x38] sm:$0xff]   ;;  %v38_v44 = vld [vmem:[%s2830_s0 + $0x70] sm:$0xff]  ;;  %v1730_v7 = vrot.slane %v1628_v16, %v154_v1 }
   0x7   :  { %844 = vmatprep.subr.bf16.mxu0 %v1544_v0  ;;  %v1649_v22 = vrot.slane %v1640_v19, %v158_v10  ;;  %v1652_v23 = vrot.slane %v1640_v19, %v162_v11  ;;  %v32_v33 = vld [vmem:[%s2830_s0 + $0x40] sm:$0xff]  ;;  %v41_v47 = vld [vmem:[%s2830_s0 + $0x88] sm:$0xff]  ;;  %v47_v58 = vld [vmem:[%s2830_s0 + $0xb8] sm:$0xff] }
   0x8   :  { %1438 = vmatpush3.bf16.msra.mxu1 %v1542_v12  ;;  %v168_v24 = vmul.f32 %v1632_v17, %v25_v14  ;;  %v171_v25 = vmul.f32 %v1632_v17, %v28_v15  ;;  %v169_v26 = vmul.f32 %v1635_v18, %v26_v20  ;;  %v172_v27 = vmul.f32 %v1635_v18, %v29_v21  ;;  %v1534_v48 = vld [vmem:[%s2829_s1 + $0x40] sm:$0xff]   ;;  %v1535_v55 = vld [vmem:[%s2829_s1 + $0x48] sm:$0xff]   ;;  %v1536_v63 = vld [vmem:[%s2829_s1 + $0x50] sm:$0xff]  }
   0x9   :  { %v175_v42 = vmul.f32 %v1635_v18, %v32_v33  ;;  %v178_v43 = vmul.f32 %v1635_v18, %v35_v34  ;;  %v181_v51 = vmul.f32 %v1635_v18, %v38_v44  ;;  %v184_v52 = vmul.f32 %v1635_v18, %v41_v47  ;;  %v44_v57 = vld [vmem:[%s2830_s0 + $0xa0] sm:$0xff]  ;;  %v53_v9 = vld [vmem:[%s2830_s0 + $0xe8] sm:$0xff]  ;;  %v27_v11 = vld [vmem:[%s2830_s0 + $0x18] sm:$0xff] }
   0xa   :  { %845 = vmatpush1.bf16.msra.mxu0 %v1528_v4  ;;  %v311_v29 = vadd.f32 %v1649_v22, %v168_v24  ;;  %v314_v30 = vadd.f32 %v1649_v22, %v171_v25  ;;  %v312_v31 = vadd.f32 %v1652_v23, %v169_v26  ;;  %v315_v32 = vadd.f32 %v1652_v23, %v172_v27  ;;  %v24_v10 = vld [vmem:[%s2830_s0] sm:$0xff]  ;;  %v31_v20 = vld [vmem:[%s2830_s0 + $0x38] sm:$0xff]  ;;  %v34_v21 = vld [vmem:[%s2830_s0 + $0x50] sm:$0xff] }
   0xb   :  { %846 = vmatprep.subr.bf16.mxu0 %v1544_v0  ;;  %v318_v45 = vadd.f32 %v1652_v23, %v175_v42  ;;  %v321_v46 = vadd.f32 %v1652_v23, %v178_v43  ;;  %v324_v54 = vadd.f32 %v1652_v23, %v181_v51  ;;  %v327_v56 = vadd.f32 %v1652_v23, %v184_v52  ;;  %v1538_v16 = vld [vmem:[%s2829_s1 + $0x60] sm:$0xff]   ;;  %v1541_v42 = vld [vmem:[%s2829_s1 + $0x70] sm:$0xff]  }
   0xc   :  { %v437_v35 = vmax.f32 %v311_v29, 0.0  ;;  %v440_v36 = vmax.f32 %v314_v30, 0.0  ;;  %v438_v37 = vmax.f32 %v312_v31, 0.0  ;;  %v441_v38 = vmax.f32 %v315_v32, 0.0  ;;  %v1539_v30 = vld [vmem:[%s2829_s1 + $0x68] sm:$0xff]   ;;  %v56_v33 = vld [vmem:[%s2830_s0 + $0x100] sm:$0xff] }
   0xd   :  { %v444_v49 = vmax.f32 %v318_v45, 0.0  ;;  %v447_v50 = vmax.f32 %v321_v46, 0.0  ;;  %v450_v59 = vmax.f32 %v324_v54, 0.0  ;;  %v453_v60 = vmax.f32 %v327_v56, 0.0  ;;  %v37_v45 = vld [vmem:[%s2830_s0 + $0x68] sm:$0xff]  ;;  %v40_v46 = vld [vmem:[%s2830_s0 + $0x80] sm:$0xff] }
   0xe   :  { %847 = vmatpush1.bf16.msra.mxu0 %v1529_v6  ;;  %v563_v40 = vpack.c.bf16 %v440_v36, %v437_v35  ;;  %v564_v41 = vpack.c.bf16 %v441_v38, %v438_v37  ;;  %v187_v61 = vmul.f32 %v1635_v18, %v44_v57  ;;  %v190_v62 = vmul.f32 %v1635_v18, %v47_v58  ;;  %v1537_v6 = vld [vmem:[%s2829_s1 + $0x58] sm:$0xff]   ;;  %v30_v36 = vld [vmem:[%s2830_s0 + $0x30] sm:$0xff]  ;;  %v33_v37 = vld [vmem:[%s2830_s0 + $0x48] sm:$0xff] }
   0xf   :  { %848 = vmatprep.subr.bf16.mxu0 %v1544_v0  ;;  %v567_v53 = vpack.c.bf16 %v447_v50, %v444_v49  ;;  %v570_v3 = vpack.c.bf16 %v453_v60, %v450_v59  ;;  %v196_v15 = vmul.f32 %v1635_v18, %v53_v9  ;;  %v167_v24 = vmul.f32 %v1730_v7, %v24_v10  ;;  %v1543_v54 = vld [vmem:[%s2829_s1 + $0x78] sm:$0xff]   ;;  %v62_v59 = vld [vmem:[%s2830_s0 + $0x130] sm:$0xff]  ;;  %v65_v60 = vld [vmem:[%s2830_s0 + $0x148] sm:$0xff] }
  0x10   :  { %872 = vmatprep.mubr.bf16.mxu0 %v563_v40  ;;  %1440 = vmatmul.mubr.msk.bf16.vlgmr.msra.gmra.mrb[0].mxu1 %vm776_vm1, %v564_v41  ;;  %v330_v4 = vadd.f32 %v1652_v23, %v187_v61  ;;  %v333_v5 = vadd.f32 %v1652_v23, %v190_v62  ;;  %v170_v25 = vmul.f32 %v1730_v7, %v27_v11  ;;  %v43_v11 = vld [vmem:[%s2830_s0 + $0x98] sm:$0xff] }
  0x11   :  { %1443 = vmatprep.mubr.msk.bf16.mxu1 %vm1546_vm0, %v1545_v2  ;;  %v1756_v26 = vrot.slane %v1640_v19, %v154_v1  ;;  %v339_v29 = vadd.f32 %v1652_v23, %v196_v15  ;;  %v174_v31 = vmul.f32 %v1632_v17, %v31_v20  ;;  %v177_v32 = vmul.f32 %v1632_v17, %v34_v21  ;;  %v59_v19 = vld [vmem:[%s2830_s0 + $0x118] sm:$0xff]  ;;  %v36_v1 = vld [vmem:[%s2830_s0 + $0x60] sm:$0xff] }
  0x12   :  { %849 = vmatpush1.bf16.msra.mxu0 %v1530_v8  ;;  %v50_v8 = vld [vmem:[%s2830_s0 + $0xd0] sm:$0xff]  ;;  %v456_v12 = vmax.f32 %v330_v4, 0.0  ;;  %v199_v40 = vmul.f32 %v1635_v18, %v56_v33  ;;  %v202_v41 = vmul.f32 %v1635_v18, %v59_v19  ;;  %v173_v49 = vmul.f32 %v1730_v7, %v30_v36 }
  0x13   :  { %850 = vmatprep.subr.bf16.mxu0 %v1544_v0  ;;  %v193_v14 = vmul.f32 %v1635_v18, %v50_v8  ;;  %v310_v34 = vadd.f32 %v1756_v26, %v167_v24  ;;  %v313_v35 = vadd.f32 %v1756_v26, %v170_v25  ;;  %v317_v43 = vadd.f32 %v1649_v22, %v174_v31  ;;  %v71_v31 = vld [vmem:[%s2830_s0 + $0x178] sm:$0xff] }
  0x14   :  { %v320_v44 = vadd.f32 %v1649_v22, %v177_v32  ;;  %v176_v50 = vmul.f32 %v1730_v7, %v33_v37  ;;  %v342_v52 = vadd.f32 %v1652_v23, %v199_v40  ;;  %v180_v57 = vmul.f32 %v1632_v17, %v37_v45 }
  0x15   :  { %v436_v47 = vmax.f32 %v310_v34, 0.0  ;;  %v183_v58 = vmul.f32 %v1632_v17, %v40_v46  ;;  %v316_v62 = vadd.f32 %v1756_v26, %v173_v49  ;;  %v179_v15 = vmul.f32 %v1730_v7, %v36_v1  ;;  %v42_v34 = vld [vmem:[%s2830_s0 + $0x90] sm:$0xff] }
  0x16   :  { %851 = vmatpush1.bf16.msra.mxu0 %v1531_v13  ;;  %v459_v13 = vmax.f32 %v333_v5, 0.0  ;;  %v446_v56 = vmax.f32 %v320_v44, 0.0  ;;  %v468_v4 = vmax.f32 %v342_v52, 0.0  ;;  %v323_v9 = vadd.f32 %v1649_v22, %v180_v57  ;;  %v52_v44 = vld [vmem:[%s2830_s0 + $0xe0] sm:$0xff]  ;;  %v77_v57 = vld [vmem:[%s2830_s0 + $0x1a8] sm:$0xff] }
  0x17   :  { %852 = vmatprep.subr.bf16.mxu0 %v1544_v0  ;;  %v326_v10 = vadd.f32 %v1649_v22, %v183_v58  ;;  %v322_v33 = vadd.f32 %v1756_v26, %v179_v15 }
  0x18   :  { %1444 = vmatmul.mubr.msk.bf16.gmra.mrb[4].mxu1 %vm776_vm1, %v567_v53  ;;  %v573_v27 = vpack.c.bf16 %v459_v13, %v456_v12  ;;  %v345_v53 = vadd.f32 %v1652_v23, %v202_v41  ;;  %v46_v12 = vld [vmem:[%s2830_s0 + $0xb0] sm:$0xff]  ;;  %v442_v13 = vmax.f32 %v316_v62, 0.0  ;;  %v449_v25 = vmax.f32 %v323_v9, 0.0  ;;  %v51_v62 = vld [vmem:[%s2830_s0 + $0xd8] sm:$0xff] }
  0x19   :  { %1447 = vmatprep.mubr.msk.bf16.mxu1 %vm1546_vm0, %v1545_v2  ;;  %v448_v45 = vmax.f32 %v322_v33, 0.0  ;;  %v58_v9 = vld [vmem:[%s2830_s0 + $0x110] sm:$0xff]  ;;  %v57_v33 = vld [vmem:[%s2830_s0 + $0x108] sm:$0xff] }
  0x1a   :  { %853 = vmatpush1.bf16.msra.mxu0 %v1532_v28  ;;  %v336_v28 = vadd.f32 %v1652_v23, %v193_v14  ;;  %v471_v5 = vmax.f32 %v345_v53, 0.0 }
  0x1b   :  { %854 = vmatprep.subr.bf16.mxu0 %v1544_v0 }
  0x1c   :  { %v462_v38 = vmax.f32 %v336_v28, 0.0  ;;  %v579_v20 = vpack.c.bf16 %v471_v5, %v468_v4  ;;  %v186_v28 = vmul.f32 %v1632_v17, %v43_v11  ;;  %v220_v4 = vmul.f32 %v1635_v18, %v77_v57 }
  0x1e   :  { %855 = vmatpush1.bf16.msra.mxu0 %v1533_v39  ;;  %v465_v39 = vmax.f32 %v339_v29, 0.0  ;;  %v189_v29 = vmul.f32 %v1632_v17, %v46_v12  ;;  %v329_v41 = vadd.f32 %v1649_v22, %v186_v28  ;;  %v83_v28 = vld [vmem:[%s2830_s0 + $0x1d8] sm:$0xff] }
  0x1f   :  { %856 = vmatprep.subr.bf16.mxu0 %v1544_v0 }
  0x20   :  { %1448 = vmatmul.mubr.msk.bf16.gmra.mrb[8].mxu1 %vm776_vm1, %v570_v3  ;;  %v576_v51 = vpack.c.bf16 %v465_v39, %v462_v38  ;;  %v39_v3 = vld [vmem:[%s2830_s0 + $0x78] sm:$0xff]  ;;  %v214_v39 = vmul.f32 %v1635_v18, %v71_v31  ;;  %v455_v52 = vmax.f32 %v329_v41, 0.0  ;;  %v64_v41 = vld [vmem:[%s2830_s0 + $0x140] sm:$0xff] }
  0x21   :  { %1451 = vmatprep.mubr.msk.bf16.mxu1 %vm1546_vm0, %v1545_v2 }
  0x22   :  { %857 = vmatpush1.bf16.msra.mxu0 %v1534_v48  ;;  %v439_v48 = vmax.f32 %v313_v35, 0.0  ;;  %v45_v35 = vld [vmem:[%s2830_s0 + $0xa8] sm:$0xff] }
  0x23   :  { %858 = vmatprep.subr.bf16.mxu0 %v1544_v0 }
  0x24   :  { %v562_v61 = vpack.c.bf16 %v439_v48, %v436_v47  ;;  %v185_v47 = vmul.f32 %v1730_v7, %v42_v34  ;;  %v188_v48 = vmul.f32 %v1730_v7, %v45_v35 }
  0x26   :  { %859 = vmatpush1.bf16.msra.mxu0 %v1535_v55  ;;  %v443_v55 = vmax.f32 %v317_v43, 0.0  ;;  %v49_v43 = vld [vmem:[%s2830_s0 + $0xc8] sm:$0xff] }
  0x27   :  { %860 = vmatprep.subr.bf16.mxu0 %v1544_v0 }
  0x28   :  { %1452 = vmatmul.mubr.msk.bf16.gmra.mrb[12].mxu1 %vm776_vm1, %v573_v27  ;;  %v566_v8 = vpack.c.bf16 %v446_v56, %v443_v55  ;;  %v452_v27 = vmax.f32 %v326_v10, 0.0  ;;  %v195_v55 = vmul.f32 %v1632_v17, %v52_v44  ;;  %v74_v56 = vld [vmem:[%s2830_s0 + $0x190] sm:$0xff] }
  0x29   :  { %1455 = vmatprep.mubr.msk.bf16.mxu1 %vm1546_vm0, %v1545_v2 }
  0x2a   :  { %861 = vmatpush1.bf16.msra.mxu0 %v1536_v63  ;;  %v319_v63 = vadd.f32 %v1756_v26, %v176_v50  ;;  %v569_v40 = vpack.c.bf16 %v452_v27, %v449_v25  ;;  %v201_v25 = vmul.f32 %v1632_v17, %v58_v9  ;;  %v80_v27 = vld [vmem:[%s2830_s0 + $0x1c0] sm:$0xff] }
  0x2b   :  { %862 = vmatprep.subr.bf16.mxu0 %v1544_v0  ;;  %v223_v35 = vmul.f32 %v1635_v18, %v80_v27 }
  0x2c   :  { %v445_v14 = vmax.f32 %v319_v63, 0.0 }
  0x2e   :  { %863 = vmatpush1.bf16.msra.mxu0 %v1537_v6  ;;  %v205_v6 = vmul.f32 %v1635_v18, %v62_v59  ;;  %v565_v32 = vpack.c.bf16 %v445_v14, %v442_v13  ;;  %v328_v59 = vadd.f32 %v1756_v26, %v185_v47  ;;  %v194_v13 = vmul.f32 %v1730_v7, %v51_v62 }
  0x2f   :  { %864 = vmatprep.subr.bf16.mxu0 %v1544_v0  ;;  %v366_v47 = vadd.f32 %v1652_v23, %v223_v35 }
  0x30   :  { %1456 = vmatmul.mubr.msk.bf16.gmra.mrb[16].mxu1 %vm776_vm1, %v576_v51  ;;  %v348_v21 = vadd.f32 %v1652_v23, %v205_v6  ;;  %v357_v51 = vadd.f32 %v1652_v23, %v214_v39  ;;  %v454_v10 = vmax.f32 %v328_v59, 0.0  ;;  %v337_v31 = vadd.f32 %v1756_v26, %v194_v13  ;;  %v63_v59 = vld [vmem:[%s2830_s0 + $0x138] sm:$0xff] }
  0x31   :  { %1459 = vmatprep.mubr.msk.bf16.mxu1 %vm1546_vm0, %v1545_v2  ;;  %v344_v39 = vadd.f32 %v1649_v22, %v201_v25 }
  0x32   :  { %865 = vmatpush1.bf16.msra.mxu0 %v1538_v16  ;;  %v182_v16 = vmul.f32 %v1730_v7, %v39_v3  ;;  %v474_v36 = vmax.f32 %v348_v21, 0.0  ;;  %v483_v1 = vmax.f32 %v357_v51, 0.0  ;;  %v217_v3 = vmul.f32 %v1635_v18, %v74_v56 }
  0x33   :  { %866 = vmatprep.subr.bf16.mxu0 %v1544_v0 }
  0x34   :  { %v325_v19 = vadd.f32 %v1756_v26, %v182_v16  ;;  %v360_v15 = vadd.f32 %v1652_v23, %v217_v3  ;;  %v363_v16 = vadd.f32 %v1652_v23, %v220_v4 }
  0x36   :  { %867 = vmatpush1.bf16.msra.mxu0 %v1539_v30  ;;  %v68_v30 = vld [vmem:[%s2830_s0 + $0x160] sm:$0xff]  ;;  %v451_v46 = vmax.f32 %v325_v19, 0.0  ;;  %v486_v19 = vmax.f32 %v360_v15, 0.0  ;;  %v489_v34 = vmax.f32 %v363_v16, 0.0 }
  0x37   :  { %868 = vmatprep.subr.bf16.mxu0 %v1544_v0  ;;  %v211_v38 = vmul.f32 %v1635_v18, %v68_v30 }
  0x38   :  { %1460 = vmatmul.mubr.msk.bf16.gmra.mrb[20].mxu1 %vm776_vm1, %v579_v20  ;;  %v568_v58 = vpack.c.bf16 %v451_v46, %v448_v45  ;;  %v200_v45 = vmul.f32 %v1730_v7, %v57_v33  ;;  %v588_v46 = vpack.c.bf16 %v489_v34, %v486_v19 }
  0x39   :  { %1463 = vmatprep.mubr.msk.bf16.mxu1 %vm1546_vm0, %v1545_v2  ;;  %v354_v50 = vadd.f32 %v1652_v23, %v211_v38 }
  0x3a   :  { %869 = vmatpush1.bf16.msra.mxu0 %v1541_v42  ;;  %v332_v42 = vadd.f32 %v1649_v22, %v189_v29  ;;  %v343_v57 = vadd.f32 %v1756_v26, %v200_v45 }
  0x3b   :  { %870 = vmatprep.subr.bf16.mxu0 %v1544_v0  ;;  %v208_v0 = vmul.f32 %v1635_v18, %v65_v60  ;;  %v331_v60 = vadd.f32 %v1756_v26, %v188_v48  ;;  %v480_v63 = vmax.f32 %v354_v50, 0.0  ;;  %v470_v50 = vmax.f32 %v344_v39, 0.0 }
  0x3c   :  { %v458_v53 = vmax.f32 %v332_v42, 0.0 }
  0x3d   :  { %v351_v24 = vadd.f32 %v1652_v23, %v208_v0  ;;  %v338_v0 = vadd.f32 %v1649_v22, %v195_v55  ;;  %v457_v11 = vmax.f32 %v331_v60, 0.0  ;;  %v585_v14 = vpack.c.bf16 %v483_v1, %v480_v63 }
  0x3e   :  { %871 = vmatpush1.bf16.msra.mxu0 %v1543_v54  ;;  %v192_v54 = vmul.f32 %v1632_v17, %v49_v43  ;;  %v572_v5 = vpack.c.bf16 %v458_v53, %v455_v52  ;;  %v463_v43 = vmax.f32 %v337_v31, 0.0  ;;  %v207_v52 = vmul.f32 %v1632_v17, %v64_v41  ;;  %v86_v53 = vld [vmem:[%s2830_s0 + $0x1f0] sm:$0xff] }
  0x3f   :  { %v477_v37 = vmax.f32 %v351_v24, 0.0  ;;  %v464_v21 = vmax.f32 %v338_v0, 0.0  ;;  %v571_v29 = vpack.c.bf16 %v457_v11, %v454_v10  ;;  %v492_v60 = vmax.f32 %v366_v47, 0.0 }
  0x40   :  { %v335_v6 = vadd.f32 %v1649_v22, %v192_v54  ;;  %v89_v54 = vld [vmem:[%s2830_s0 + $0x208] sm:$0xff]  ;;  %v229_v62 = vmul.f32 %v1635_v18, %v86_v53  ;;  %v350_v4 = vadd.f32 %v1649_v22, %v207_v52  ;;  %v206_v10 = vmul.f32 %v1730_v7, %v63_v59 }
  0x41   :  { %873 = vmatmul.mubr.bf16.vlgmr.msra.gmra.mrb[0].mxu0 %v562_v61  ;;  %v582_v49 = vpack.c.bf16 %v477_v37, %v474_v36  ;;  %v48_v61 = vld [vmem:[%s2830_s0 + $0xc0] sm:$0xff]  ;;  %v226_v36 = vmul.f32 %v1635_v18, %v83_v28  ;;  %v232_v63 = vmul.f32 %v1635_v18, %v89_v54 }
  0x42   :  { %880 = vmatprep.mubr.bf16.mxu0 %v566_v8  ;;  %v55_v8 = vld [vmem:[%s2830_s0 + $0xf8] sm:$0xff]  ;;  %v191_v12 = vmul.f32 %v1730_v7, %v48_v61  ;;  %v461_v20 = vmax.f32 %v335_v6, 0.0  ;;  %v70_v6 = vld [vmem:[%s2830_s0 + $0x170] sm:$0xff]  ;;  %v476_v15 = vmax.f32 %v350_v4, 0.0  ;;  %v349_v28 = vadd.f32 %v1756_v26, %v206_v10 }
  0x43   :  { %1464 = vmatmul.mubr.msk.bf16.gmra.mrb[24].mxu1 %vm776_vm1, %v582_v49  ;;  %v198_v24 = vmul.f32 %v1632_v17, %v55_v8  ;;  %v369_v48 = vadd.f32 %v1652_v23, %v226_v36  ;;  %v469_v8 = vmax.f32 %v343_v57, 0.0  ;;  %v375_v13 = vadd.f32 %v1652_v23, %v232_v63 }
  0x44   :  { %1467 = vmatprep.mubr.msk.bf16.mxu1 %vm1546_vm0, %v1545_v2  ;;  %v334_v30 = vadd.f32 %v1756_v26, %v191_v12  ;;  %v575_v37 = vpack.c.bf16 %v464_v21, %v461_v20  ;;  %v372_v12 = vadd.f32 %v1652_v23, %v229_v62  ;;  %v213_v20 = vmul.f32 %v1632_v17, %v70_v6  ;;  %v92_v21 = vld [vmem:[%s2830_s0 + $0x220] sm:$0xff] }
  0x45   :  { %v341_v38 = vadd.f32 %v1649_v22, %v198_v24  ;;  %v495_v61 = vmax.f32 %v369_v48, 0.0  ;;  %v95_v24 = vld [vmem:[%s2830_s0 + $0x238] sm:$0xff]  ;;  %v235_v33 = vmul.f32 %v1635_v18, %v92_v21 }
  0x46   :  { %v460_v42 = vmax.f32 %v334_v30, 0.0  ;;  %v69_v30 = vld [vmem:[%s2830_s0 + $0x168] sm:$0xff]  ;;  %v498_v31 = vmax.f32 %v372_v12, 0.0  ;;  %v238_v19 = vmul.f32 %v1635_v18, %v95_v24  ;;  %v356_v36 = vadd.f32 %v1649_v22, %v213_v20 }
  0x47   :  { %v467_v49 = vmax.f32 %v341_v38, 0.0  ;;  %v591_v11 = vpack.c.bf16 %v495_v61, %v492_v60  ;;  %v76_v38 = vld [vmem:[%s2830_s0 + $0x1a0] sm:$0xff] }
  0x48   :  { %v574_v55 = vpack.c.bf16 %v463_v43, %v460_v42  ;;  %v212_v42 = vmul.f32 %v1730_v7, %v69_v30  ;;  %v381_v45 = vadd.f32 %v1652_v23, %v238_v19  ;;  %v482_v47 = vmax.f32 %v356_v36, 0.0 }
  0x49   :  { %881 = vmatmul.mubr.bf16.gmra.mrb[4].mxu0 %v565_v32  ;;  %v54_v32 = vld [vmem:[%s2830_s0 + $0xf0] sm:$0xff]  ;;  %v578_v1 = vpack.c.bf16 %v470_v50, %v467_v49  ;;  %v219_v49 = vmul.f32 %v1632_v17, %v76_v38 }
  0x4a   :  { %888 = vmatprep.mubr.bf16.mxu0 %v569_v40  ;;  %v61_v40 = vld [vmem:[%s2830_s0 + $0x128] sm:$0xff]  ;;  %v197_v44 = vmul.f32 %v1730_v7, %v54_v32  ;;  %v501_v32 = vmax.f32 %v375_v13, 0.0  ;;  %v98_v50 = vld [vmem:[%s2830_s0 + $0x250] sm:$0xff]  ;;  %v355_v54 = vadd.f32 %v1756_v26, %v212_v42 }
  0x4b   :  { %1468 = vmatmul.mubr.msk.bf16.gmra.mrb[28].mxu1 %vm776_vm1, %v585_v14  ;;  %v204_v51 = vmul.f32 %v1632_v17, %v61_v40  ;;  %v475_v40 = vmax.f32 %v349_v28, 0.0  ;;  %v241_v59 = vmul.f32 %v1635_v18, %v98_v50  ;;  %v362_v63 = vadd.f32 %v1649_v22, %v219_v49 }
  0x4c   :  { %1471 = vmatprep.mubr.msk.bf16.mxu1 %vm1546_vm0, %v1545_v2  ;;  %v340_v56 = vadd.f32 %v1756_v26, %v197_v44  ;;  %v594_v43 = vpack.c.bf16 %v501_v32, %v498_v31  ;;  %v378_v44 = vadd.f32 %v1652_v23, %v235_v33 }
  0x4d   :  { %v347_v3 = vadd.f32 %v1649_v22, %v204_v51  ;;  %v101_v51 = vld [vmem:[%s2830_s0 + $0x268] sm:$0xff]  ;;  %v488_v12 = vmax.f32 %v362_v63, 0.0 }
  0x4e   :  { %v466_v0 = vmax.f32 %v340_v56, 0.0  ;;  %v75_v56 = vld [vmem:[%s2830_s0 + $0x198] sm:$0xff]  ;;  %v504_v57 = vmax.f32 %v378_v44, 0.0  ;;  %v244_v60 = vmul.f32 %v1635_v18, %v101_v51 }
  0x4f   :  { %v473_v14 = vmax.f32 %v347_v3, 0.0  ;;  %v82_v3 = vld [vmem:[%s2830_s0 + $0x1d0] sm:$0xff] }
  0x50   :  { %v577_v25 = vpack.c.bf16 %v469_v8, %v466_v0  ;;  %v218_v0 = vmul.f32 %v1730_v7, %v75_v56  ;;  %v387_v10 = vadd.f32 %v1652_v23, %v244_v60 }
  0x51   :  { %889 = vmatmul.mubr.bf16.gmra.mrb[8].mxu0 %v568_v58  ;;  %v60_v58 = vld [vmem:[%s2830_s0 + $0x120] sm:$0xff]  ;;  %v581_v34 = vpack.c.bf16 %v476_v15, %v473_v14  ;;  %v225_v14 = vmul.f32 %v1632_v17, %v82_v3 }
  0x52   :  { %896 = vmatprep.mubr.bf16.mxu0 %v572_v5  ;;  %v67_v5 = vld [vmem:[%s2830_s0 + $0x158] sm:$0xff]  ;;  %v203_v9 = vmul.f32 %v1730_v7, %v60_v58  ;;  %v507_v58 = vmax.f32 %v381_v45, 0.0  ;;  %v104_v15 = vld [vmem:[%s2830_s0 + $0x280] sm:$0xff]  ;;  %v361_v24 = vadd.f32 %v1756_v26, %v218_v0 }
  0x53   :  { %1472 = vmatmul.mubr.msk.bf16.gmra.mrb[32].mxu1 %vm776_vm1, %v588_v46  ;;  %v210_v16 = vmul.f32 %v1632_v17, %v67_v5  ;;  %v481_v5 = vmax.f32 %v355_v54, 0.0  ;;  %v247_v30 = vmul.f32 %v1635_v18, %v104_v15  ;;  %v368_v19 = vadd.f32 %v1649_v22, %v225_v14 }
  0x54   :  { %1475 = vmatprep.mubr.msk.bf16.mxu1 %vm1546_vm0, %v1545_v2  ;;  %v346_v27 = vadd.f32 %v1756_v26, %v203_v9  ;;  %v597_v8 = vpack.c.bf16 %v507_v58, %v504_v57  ;;  %v384_v9 = vadd.f32 %v1652_v23, %v241_v59 }
  0x55   :  { %v353_v35 = vadd.f32 %v1649_v22, %v210_v16  ;;  %v107_v16 = vld [vmem:[%s2830_s0 + $0x298] sm:$0xff]  ;;  %v494_v44 = vmax.f32 %v368_v19, 0.0 }
  0x56   :  { %v472_v39 = vmax.f32 %v346_v27, 0.0  ;;  %v81_v27 = vld [vmem:[%s2830_s0 + $0x1c8] sm:$0xff]  ;;  %v510_v28 = vmax.f32 %v384_v9, 0.0  ;;  %v250_v31 = vmul.f32 %v1635_v18, %v107_v16 }
  0x57   :  { %v479_v46 = vmax.f32 %v353_v35, 0.0  ;;  %v88_v35 = vld [vmem:[%s2830_s0 + $0x200] sm:$0xff] }
  0x58   :  { %v580_v52 = vpack.c.bf16 %v475_v40, %v472_v39  ;;  %v224_v39 = vmul.f32 %v1730_v7, %v81_v27  ;;  %v393_v42 = vadd.f32 %v1652_v23, %v250_v31 }
  0x59   :  { %897 = vmatmul.mubr.bf16.gmra.mrb[12].mxu0 %v571_v29  ;;  %v66_v29 = vld [vmem:[%s2830_s0 + $0x150] sm:$0xff]  ;;  %v584_v61 = vpack.c.bf16 %v482_v47, %v479_v46  ;;  %v231_v46 = vmul.f32 %v1632_v17, %v88_v35 }
  0x5a   :  { %904 = vmatprep.mubr.bf16.mxu0 %v575_v37  ;;  %v73_v37 = vld [vmem:[%s2830_s0 + $0x188] sm:$0xff]  ;;  %v209_v41 = vmul.f32 %v1730_v7, %v66_v29  ;;  %v513_v29 = vmax.f32 %v387_v10, 0.0  ;;  %v110_v47 = vld [vmem:[%s2830_s0 + $0x2b0] sm:$0xff]  ;;  %v367_v51 = vadd.f32 %v1756_v26, %v224_v39 }
  0x5b   :  { %1476 = vmatmul.mubr.msk.bf16.gmra.mrb[36].mxu1 %vm776_vm1, %v591_v11  ;;  %v216_v48 = vmul.f32 %v1632_v17, %v73_v37  ;;  %v487_v37 = vmax.f32 %v361_v24, 0.0  ;;  %v253_v56 = vmul.f32 %v1635_v18, %v110_v47  ;;  %v374_v60 = vadd.f32 %v1649_v22, %v231_v46 }
  0x5c   :  { %1479 = vmatprep.mubr.msk.bf16.mxu1 %vm1546_vm0, %v1545_v2  ;;  %v352_v53 = vadd.f32 %v1756_v26, %v209_v41  ;;  %v600_v40 = vpack.c.bf16 %v513_v29, %v510_v28  ;;  %v390_v41 = vadd.f32 %v1652_v23, %v247_v30 }
  0x5d   :  { %v359_v62 = vadd.f32 %v1649_v22, %v216_v48  ;;  %v113_v48 = vld [vmem:[%s2830_s0 + $0x2c8] sm:$0xff]  ;;  %v500_v9 = vmax.f32 %v374_v60, 0.0 }
  0x5e   :  { %v478_v4 = vmax.f32 %v352_v53, 0.0  ;;  %v87_v53 = vld [vmem:[%s2830_s0 + $0x1f8] sm:$0xff]  ;;  %v516_v54 = vmax.f32 %v390_v41, 0.0  ;;  %v256_v57 = vmul.f32 %v1635_v18, %v113_v48 }
  0x5f   :  { %v485_v11 = vmax.f32 %v359_v62, 0.0  ;;  %v94_v62 = vld [vmem:[%s2830_s0 + $0x230] sm:$0xff] }
  0x60   :  { %v583_v20 = vpack.c.bf16 %v481_v5, %v478_v4  ;;  %v230_v4 = vmul.f32 %v1730_v7, %v87_v53  ;;  %v399_v0 = vadd.f32 %v1652_v23, %v256_v57 }
  0x61   :  { %905 = vmatmul.mubr.bf16.gmra.mrb[16].mxu0 %v574_v55  ;;  %v72_v55 = vld [vmem:[%s2830_s0 + $0x180] sm:$0xff]  ;;  %v587_v32 = vpack.c.bf16 %v488_v12, %v485_v11  ;;  %v237_v11 = vmul.f32 %v1632_v17, %v94_v62 }
  0x62   :  { %912 = vmatprep.mubr.bf16.mxu0 %v578_v1  ;;  %v79_v1 = vld [vmem:[%s2830_s0 + $0x1b8] sm:$0xff]  ;;  %v215_v6 = vmul.f32 %v1730_v7, %v72_v55  ;;  %v519_v55 = vmax.f32 %v393_v42, 0.0  ;;  %v116_v12 = vld [vmem:[%s2830_s0 + $0x2e0] sm:$0xff]  ;;  %v373_v16 = vadd.f32 %v1756_v26, %v230_v4 }
  0x63   :  { %1480 = vmatmul.mubr.msk.bf16.gmra.mrb[40].mxu1 %vm776_vm1, %v594_v43  ;;  %v222_v13 = vmul.f32 %v1632_v17, %v79_v1  ;;  %v493_v1 = vmax.f32 %v367_v51, 0.0  ;;  %v259_v27 = vmul.f32 %v1635_v18, %v116_v12  ;;  %v380_v31 = vadd.f32 %v1649_v22, %v237_v11 }
  0x64   :  { %1483 = vmatprep.mubr.msk.bf16.mxu1 %vm1546_vm0, %v1545_v2  ;;  %v358_v21 = vadd.f32 %v1756_v26, %v215_v6  ;;  %v603_v5 = vpack.c.bf16 %v519_v55, %v516_v54  ;;  %v396_v6 = vadd.f32 %v1652_v23, %v253_v56 }
  0x65   :  { %v365_v33 = vadd.f32 %v1649_v22, %v222_v13  ;;  %v119_v13 = vld [vmem:[%s2830_s0 + $0x2f8] sm:$0xff]  ;;  %v506_v41 = vmax.f32 %v380_v31, 0.0 }
  0x66   :  { %v484_v36 = vmax.f32 %v358_v21, 0.0  ;;  %v93_v21 = vld [vmem:[%s2830_s0 + $0x228] sm:$0xff]  ;;  %v522_v24 = vmax.f32 %v396_v6, 0.0  ;;  %v262_v28 = vmul.f32 %v1635_v18, %v119_v13 }
  0x67   :  { %v491_v43 = vmax.f32 %v365_v33, 0.0  ;;  %v100_v33 = vld [vmem:[%s2830_s0 + $0x260] sm:$0xff] }
  0x68   :  { %v586_v49 = vpack.c.bf16 %v487_v37, %v484_v36  ;;  %v236_v36 = vmul.f32 %v1730_v7, %v93_v21  ;;  %v405_v39 = vadd.f32 %v1652_v23, %v262_v28 }
  0x69   :  { %913 = vmatmul.mubr.bf16.gmra.mrb[20].mxu0 %v577_v25  ;;  %v78_v25 = vld [vmem:[%s2830_s0 + $0x1b0] sm:$0xff]  ;;  %v590_v58 = vpack.c.bf16 %v494_v44, %v491_v43  ;;  %v243_v43 = vmul.f32 %v1632_v17, %v100_v33 }
  0x6a   :  { %920 = vmatprep.mubr.bf16.mxu0 %v581_v34  ;;  %v85_v34 = vld [vmem:[%s2830_s0 + $0x1e8] sm:$0xff]  ;;  %v221_v38 = vmul.f32 %v1730_v7, %v78_v25  ;;  %v525_v25 = vmax.f32 %v399_v0, 0.0  ;;  %v122_v44 = vld [vmem:[%s2830_s0 + $0x310] sm:$0xff]  ;;  %v379_v48 = vadd.f32 %v1756_v26, %v236_v36 }
  0x6b   :  { %1484 = vmatmul.mubr.msk.bf16.gmra.mrb[44].mxu1 %vm776_vm1, %v597_v8  ;;  %v228_v45 = vmul.f32 %v1632_v17, %v85_v34  ;;  %v499_v34 = vmax.f32 %v373_v16, 0.0  ;;  %v265_v53 = vmul.f32 %v1635_v18, %v122_v44  ;;  %v386_v57 = vadd.f32 %v1649_v22, %v243_v43 }
  0x6c   :  { %1487 = vmatprep.mubr.msk.bf16.mxu1 %vm1546_vm0, %v1545_v2  ;;  %v364_v50 = vadd.f32 %v1756_v26, %v221_v38  ;;  %v606_v37 = vpack.c.bf16 %v525_v25, %v522_v24  ;;  %v402_v38 = vadd.f32 %v1652_v23, %v259_v27 }
  0x6d   :  { %v371_v59 = vadd.f32 %v1649_v22, %v228_v45  ;;  %v125_v45 = vld [vmem:[%s2830_s0 + $0x328] sm:$0xff]  ;;  %v512_v6 = vmax.f32 %v386_v57, 0.0 }
  0x6e   :  { %v490_v63 = vmax.f32 %v364_v50, 0.0  ;;  %v99_v50 = vld [vmem:[%s2830_s0 + $0x258] sm:$0xff]  ;;  %v528_v51 = vmax.f32 %v402_v38, 0.0  ;;  %v268_v54 = vmul.f32 %v1635_v18, %v125_v45 }
  0x6f   :  { %v497_v8 = vmax.f32 %v371_v59, 0.0  ;;  %v106_v59 = vld [vmem:[%s2830_s0 + $0x290] sm:$0xff] }
  0x70   :  { %v589_v14 = vpack.c.bf16 %v493_v1, %v490_v63  ;;  %v242_v63 = vmul.f32 %v1730_v7, %v99_v50  ;;  %v411_v4 = vadd.f32 %v1652_v23, %v268_v54 }
  0x71   :  { %921 = vmatmul.mubr.bf16.gmra.mrb[24].mxu0 %v580_v52  ;;  %v84_v52 = vld [vmem:[%s2830_s0 + $0x1e0] sm:$0xff]  ;;  %v593_v29 = vpack.c.bf16 %v500_v9, %v497_v8  ;;  %v249_v8 = vmul.f32 %v1632_v17, %v106_v59 }
  0x72   :  { %928 = vmatprep.mubr.bf16.mxu0 %v584_v61  ;;  %v91_v61 = vld [vmem:[%s2830_s0 + $0x218] sm:$0xff]  ;;  %v227_v3 = vmul.f32 %v1730_v7, %v84_v52  ;;  %v531_v52 = vmax.f32 %v405_v39, 0.0  ;;  %v128_v9 = vld [vmem:[%s2830_s0 + $0x340] sm:$0xff]  ;;  %v385_v13 = vadd.f32 %v1756_v26, %v242_v63 }
  0x73   :  { %1488 = vmatmul.mubr.msk.bf16.gmra.mrb[48].mxu1 %vm776_vm1, %v600_v40  ;;  %v234_v10 = vmul.f32 %v1632_v17, %v91_v61  ;;  %v505_v61 = vmax.f32 %v379_v48, 0.0  ;;  %v271_v21 = vmul.f32 %v1635_v18, %v128_v9  ;;  %v392_v28 = vadd.f32 %v1649_v22, %v249_v8 }
  0x74   :  { %1491 = vmatprep.mubr.msk.bf16.mxu1 %vm1546_vm0, %v1545_v2  ;;  %v370_v15 = vadd.f32 %v1756_v26, %v227_v3  ;;  %v609_v1 = vpack.c.bf16 %v531_v52, %v528_v51  ;;  %v408_v3 = vadd.f32 %v1652_v23, %v265_v53 }
  0x75   :  { %v377_v30 = vadd.f32 %v1649_v22, %v234_v10  ;;  %v131_v10 = vld [vmem:[%s2830_s0 + $0x358] sm:$0xff]  ;;  %v518_v38 = vmax.f32 %v392_v28, 0.0 }
  0x76   :  { %v496_v19 = vmax.f32 %v370_v15, 0.0  ;;  %v105_v15 = vld [vmem:[%s2830_s0 + $0x288] sm:$0xff]  ;;  %v534_v16 = vmax.f32 %v408_v3, 0.0  ;;  %v274_v24 = vmul.f32 %v1635_v18, %v131_v10 }
  0x77   :  { %v503_v40 = vmax.f32 %v377_v30, 0.0  ;;  %v112_v30 = vld [vmem:[%s2830_s0 + $0x2c0] sm:$0xff] }
  0x78   :  { %v592_v46 = vpack.c.bf16 %v499_v34, %v496_v19  ;;  %v248_v19 = vmul.f32 %v1730_v7, %v105_v15  ;;  %v417_v36 = vadd.f32 %v1652_v23, %v274_v24 }
  0x79   :  { %929 = vmatmul.mubr.bf16.gmra.mrb[28].mxu0 %v583_v20  ;;  %v90_v20 = vld [vmem:[%s2830_s0 + $0x210] sm:$0xff]  ;;  %v596_v55 = vpack.c.bf16 %v506_v41, %v503_v40  ;;  %v255_v40 = vmul.f32 %v1632_v17, %v112_v30 }
  0x7a   :  { %936 = vmatprep.mubr.bf16.mxu0 %v587_v32  ;;  %v97_v32 = vld [vmem:[%s2830_s0 + $0x248] sm:$0xff]  ;;  %v233_v35 = vmul.f32 %v1730_v7, %v90_v20  ;;  %v537_v20 = vmax.f32 %v411_v4, 0.0  ;;  %v134_v41 = vld [vmem:[%s2830_s0 + $0x370] sm:$0xff]  ;;  %v391_v45 = vadd.f32 %v1756_v26, %v248_v19 }
  0x7b   :  { %1492 = vmatmul.mubr.msk.bf16.gmra.mrb[52].mxu1 %vm776_vm1, %v603_v5  ;;  %v240_v42 = vmul.f32 %v1632_v17, %v97_v32  ;;  %v511_v32 = vmax.f32 %v385_v13, 0.0  ;;  %v277_v50 = vmul.f32 %v1635_v18, %v134_v41  ;;  %v398_v54 = vadd.f32 %v1649_v22, %v255_v40 }
  0x7c   :  { %1495 = vmatprep.mubr.msk.bf16.mxu1 %vm1546_vm0, %v1545_v2  ;;  %v376_v47 = vadd.f32 %v1756_v26, %v233_v35  ;;  %v612_v34 = vpack.c.bf16 %v537_v20, %v534_v16  ;;  %v414_v35 = vadd.f32 %v1652_v23, %v271_v21 }
  0x7d   :  { %v383_v56 = vadd.f32 %v1649_v22, %v240_v42  ;;  %v137_v42 = vld [vmem:[%s2830_s0 + $0x388] sm:$0xff]  ;;  %v524_v3 = vmax.f32 %v398_v54, 0.0 }
  0x7e   :  { %v502_v60 = vmax.f32 %v376_v47, 0.0  ;;  %v111_v47 = vld [vmem:[%s2830_s0 + $0x2b8] sm:$0xff]  ;;  %v540_v48 = vmax.f32 %v414_v35, 0.0  ;;  %v280_v51 = vmul.f32 %v1635_v18, %v137_v42 }
  0x7f   :  { %v509_v5 = vmax.f32 %v383_v56, 0.0  ;;  %v118_v56 = vld [vmem:[%s2830_s0 + $0x2f0] sm:$0xff] }
  0x80   :  { %v595_v11 = vpack.c.bf16 %v505_v61, %v502_v60  ;;  %v254_v60 = vmul.f32 %v1730_v7, %v111_v47  ;;  %v423_v63 = vadd.f32 %v1652_v23, %v280_v51  ;;  %v123_v51 = vld [vmem:[%s2830_s0 + $0x318] sm:$0xff] }
  0x81   :  { %937 = vmatmul.mubr.bf16.gmra.mrb[32].mxu0 %v586_v49  ;;  %v96_v49 = vld [vmem:[%s2830_s0 + $0x240] sm:$0xff]  ;;  %v599_v25 = vpack.c.bf16 %v512_v6, %v509_v5  ;;  %v261_v5 = vmul.f32 %v1632_v17, %v118_v56  ;;  %v266_v56 = vmul.f32 %v1730_v7, %v123_v51  ;;  %v141_v51 = vld [vmem:[%s2830_s0 + $0x3a8] sm:$0xff] }
  0x82   :  { %944 = vmatprep.mubr.bf16.mxu0 %v590_v58  ;;  %v103_v58 = vld [vmem:[%s2830_s0 + $0x278] sm:$0xff]  ;;  %v239_v62 = vmul.f32 %v1730_v7, %v96_v49  ;;  %v543_v49 = vmax.f32 %v417_v36, 0.0  ;;  %v140_v6 = vld [vmem:[%s2830_s0 + $0x3a0] sm:$0xff]  ;;  %v397_v10 = vadd.f32 %v1756_v26, %v254_v60 }
  0x83   :  { %1496 = vmatmul.mubr.msk.bf16.gmra.mrb[56].mxu1 %vm776_vm1, %v606_v37  ;;  %v246_v0 = vmul.f32 %v1632_v17, %v103_v58  ;;  %v517_v58 = vmax.f32 %v391_v45, 0.0  ;;  %v283_v15 = vmul.f32 %v1635_v18, %v140_v6  ;;  %v404_v24 = vadd.f32 %v1649_v22, %v261_v5 }
  0x84   :  { %1499 = vmatprep.mubr.msk.bf16.mxu1 %vm1546_vm0, %v1545_v2  ;;  %v382_v12 = vadd.f32 %v1756_v26, %v239_v62  ;;  %v615_v61 = vpack.c.bf16 %v543_v49, %v540_v48  ;;  %v420_v62 = vadd.f32 %v1652_v23, %v277_v50 }
  0x85   :  { %v389_v27 = vadd.f32 %v1649_v22, %v246_v0  ;;  %v143_v0 = vld [vmem:[%s2830_s0 + $0x3b8] sm:$0xff]  ;;  %v530_v35 = vmax.f32 %v404_v24, 0.0 }
  0x86   :  { %v508_v31 = vmax.f32 %v382_v12, 0.0  ;;  %v117_v12 = vld [vmem:[%s2830_s0 + $0x2e8] sm:$0xff]  ;;  %v546_v13 = vmax.f32 %v420_v62, 0.0  ;;  %v286_v16 = vmul.f32 %v1635_v18, %v143_v0 }
  0x87   :  { %v515_v37 = vmax.f32 %v389_v27, 0.0  ;;  %v124_v27 = vld [vmem:[%s2830_s0 + $0x320] sm:$0xff] }
  0x88   :  { %v598_v43 = vpack.c.bf16 %v511_v32, %v508_v31  ;;  %v260_v31 = vmul.f32 %v1730_v7, %v117_v12  ;;  %v429_v19 = vadd.f32 %v1652_v23, %v286_v16  ;;  %v136_v12 = vld [vmem:[%s2830_s0 + $0x380] sm:$0xff] }
  0x89   :  { %945 = vmatmul.mubr.bf16.gmra.mrb[36].mxu0 %v589_v14  ;;  %v102_v14 = vld [vmem:[%s2830_s0 + $0x270] sm:$0xff]  ;;  %v602_v52 = vpack.c.bf16 %v518_v38, %v515_v37  ;;  %v267_v37 = vmul.f32 %v1632_v17, %v124_v27 }
  0x8a   :  { %952 = vmatprep.mubr.bf16.mxu0 %v593_v29  ;;  %v109_v29 = vld [vmem:[%s2830_s0 + $0x2a8] sm:$0xff]  ;;  %v245_v33 = vmul.f32 %v1730_v7, %v102_v14  ;;  %v549_v14 = vmax.f32 %v423_v63, 0.0  ;;  %v146_v38 = vld [vmem:[%s2830_s0 + $0x3d0] sm:$0xff]  ;;  %v403_v42 = vadd.f32 %v1756_v26, %v260_v31  ;;  %v555_v45 = vmax.f32 %v429_v19, 0.0  ;;  %v135_v19 = vld [vmem:[%s2830_s0 + $0x378] sm:$0xff] }
  0x8b   :  { %1500 = vmatmul.mubr.msk.bf16.gmra.mrb[60].mxu1 %vm776_vm1, %v609_v1  ;;  %v252_v39 = vmul.f32 %v1632_v17, %v109_v29  ;;  %v523_v29 = vmax.f32 %v397_v10, 0.0  ;;  %v410_v50 = vadd.f32 %v1649_v22, %v267_v37  ;;  %v129_v10 = vld [vmem:[%s2830_s0 + $0x348] sm:$0xff] }
  0x8c   :  { %1503 = vmatprep.mubr.msk.bf16.mxu1 %vm1546_vm0, %v1545_v2  ;;  %v388_v44 = vadd.f32 %v1756_v26, %v245_v33  ;;  %v618_v32 = vpack.c.bf16 %v549_v14, %v546_v13  ;;  %v426_v33 = vadd.f32 %v1652_v23, %v283_v15  ;;  %v529_v54 = vmax.f32 %v403_v42, 0.0 }
  0x8d   :  { %v395_v53 = vadd.f32 %v1649_v22, %v252_v39  ;;  %v149_v39 = vld [vmem:[%s2830_s0 + $0x3e8] sm:$0xff]  ;;  %v272_v16 = vmul.f32 %v1730_v7, %v129_v10 }
  0x8e   :  { %v514_v57 = vmax.f32 %v388_v44, 0.0  ;;  %v552_v44 = vmax.f32 %v426_v33, 0.0  ;;  %v292_v47 = vmul.f32 %v1635_v18, %v149_v39  ;;  %v132_v33 = vld [vmem:[%s2830_s0 + $0x360] sm:$0xff]  ;;  %v278_v39 = vmul.f32 %v1730_v7, %v135_v19 }
  0x8f   :  { %v521_v1 = vmax.f32 %v395_v53, 0.0 }
  0x90   :  { %v601_v8 = vpack.c.bf16 %v517_v58, %v514_v57  ;;  %v621_v57 = vpack.c.bf16 %v555_v45, %v552_v44 }
  0x91   :  { %953 = vmatmul.mubr.bf16.gmra.mrb[40].mxu0 %v592_v46  ;;  %v108_v46 = vld [vmem:[%s2830_s0 + $0x2a0] sm:$0xff]  ;;  %v605_v20 = vpack.c.bf16 %v524_v3, %v521_v1 }
  0x92   :  { %960 = vmatprep.mubr.bf16.mxu0 %v596_v55  ;;  %v115_v55 = vld [vmem:[%s2830_s0 + $0x2d8] sm:$0xff]  ;;  %v251_v59 = vmul.f32 %v1730_v7, %v108_v46  ;;  %v289_v46 = vmul.f32 %v1635_v18, %v146_v38  ;;  %v130_v18 = vld [vmem:[%s2830_s0 + $0x350] sm:$0xff]  ;;  %v275_v38 = vmul.f32 %v1730_v7, %v132_v33 }
  0x93   :  { %1504 = vmatmul.mubr.msk.bf16.gmra.mrb[64].mxu1 %vm776_vm1, %v612_v34  ;;  %v258_v4 = vmul.f32 %v1632_v17, %v115_v55  ;;  %v273_v63 = vmul.f32 %v1632_v17, %v130_v18  ;;  %v148_v18 = vld [vmem:[%s2830_s0 + $0x3e0] sm:$0xff] }
  0x94   :  { %1507 = vmatprep.mubr.msk.bf16.mxu1 %vm1546_vm0, %v1545_v2  ;;  %v394_v9 = vadd.f32 %v1756_v26, %v251_v59  ;;  %v432_v58 = vadd.f32 %v1652_v23, %v289_v46  ;;  %v435_v59 = vadd.f32 %v1652_v23, %v292_v47  ;;  %v418_v45 = vadd.f32 %v1756_v26, %v275_v38 }
  0x95   :  { %v401_v21 = vadd.f32 %v1649_v22, %v258_v4  ;;  %v409_v4 = vadd.f32 %v1756_v26, %v266_v56  ;;  %v416_v23 = vadd.f32 %v1649_v22, %v273_v63  ;;  %v421_v46 = vadd.f32 %v1756_v26, %v278_v39 }
  0x96   :  { %v520_v28 = vmax.f32 %v394_v9, 0.0  ;;  %v558_v5 = vmax.f32 %v432_v58, 0.0  ;;  %v561_v6 = vmax.f32 %v435_v59, 0.0  ;;  %v126_v9 = vld [vmem:[%s2830_s0 + $0x330] sm:$0xff]  ;;  %v284_v56 = vmul.f32 %v1730_v7, %v141_v51 }
  0x97   :  { %v527_v34 = vmax.f32 %v401_v21, 0.0  ;;  %v535_v14 = vmax.f32 %v409_v4, 0.0  ;;  %v269_v15 = vmul.f32 %v1730_v7, %v126_v9  ;;  %v542_v24 = vmax.f32 %v416_v23, 0.0 }
  0x98   :  { %v604_v40 = vpack.c.bf16 %v523_v29, %v520_v28  ;;  %v415_v29 = vadd.f32 %v1756_v26, %v272_v16  ;;  %v427_v63 = vadd.f32 %v1756_v26, %v284_v56 }
  0x99   :  { %961 = vmatmul.mubr.bf16.gmra.mrb[44].mxu0 %v595_v11  ;;  %v114_v11 = vld [vmem:[%s2830_s0 + $0x2d0] sm:$0xff]  ;;  %v608_v48 = vpack.c.bf16 %v530_v35, %v527_v34  ;;  %v412_v28 = vadd.f32 %v1756_v26, %v269_v15  ;;  %v139_v34 = vld [vmem:[%s2830_s0 + $0x398] sm:$0xff] }
  0x9a   :  { %968 = vmatprep.mubr.bf16.mxu0 %v599_v25  ;;  %v121_v25 = vld [vmem:[%s2830_s0 + $0x308] sm:$0xff]  ;;  %v257_v30 = vmul.f32 %v1730_v7, %v114_v11  ;;  %v142_v35 = vld [vmem:[%s2830_s0 + $0x3b0] sm:$0xff]  ;;  %v541_v37 = vmax.f32 %v415_v29, 0.0  ;;  %v282_v42 = vmul.f32 %v1632_v17, %v139_v34 }
  0x9b   :  { %1508 = vmatmul.mubr.msk.bf16.gmra.mrb[68].mxu1 %vm776_vm1, %v615_v61  ;;  %v264_v36 = vmul.f32 %v1632_v17, %v121_v25  ;;  %v536_v61 = vmax.f32 %v410_v50, 0.0  ;;  %v133_v11 = vld [vmem:[%s2830_s0 + $0x368] sm:$0xff]  ;;  %v279_v25 = vmul.f32 %v1632_v17, %v136_v12  ;;  %v138_v50 = vld [vmem:[%s2830_s0 + $0x390] sm:$0xff] }
  0x9c   :  { %1511 = vmatprep.mubr.msk.bf16.mxu1 %vm1546_vm0, %v1545_v2  ;;  %v400_v41 = vadd.f32 %v1756_v26, %v257_v30 }
  0x9d   :  { %v407_v49 = vadd.f32 %v1649_v22, %v264_v36  ;;  %v538_v36 = vmax.f32 %v412_v28, 0.0 }
  0x9e   :  { %v526_v53 = vmax.f32 %v400_v41, 0.0 }
  0x9f   :  { %v533_v60 = vmax.f32 %v407_v49, 0.0  ;;  %v613_v44 = vpack.c.bf16 %v541_v37, %v538_v36  ;;  %v2389_v37 = vld [vmem:[%s2833_s2] ss:$0 sm:$0xff] }
  0xa0   :  { %v607_v3 = vpack.c.bf16 %v529_v54, %v526_v53  ;;  %v544_v53 = vmax.f32 %v418_v45, 0.0  ;;  %v547_v54 = vmax.f32 %v421_v46, 0.0 }
  0xa1   :  { %969 = vmatmul.mubr.bf16.gmra.mrb[48].mxu0 %v598_v43  ;;  %v120_v43 = vld [vmem:[%s2830_s0 + $0x300] sm:$0xff]  ;;  %v611_v0 = vpack.c.bf16 %v536_v61, %v533_v60  ;;  %v291_v60 = vmul.f32 %v1632_v17, %v148_v18 }
  0xa2   :  { %976 = vmatprep.mubr.bf16.mxu0 %v602_v52  ;;  %v127_v52 = vld [vmem:[%s2830_s0 + $0x338] sm:$0xff]  ;;  %v263_v55 = vmul.f32 %v1730_v7, %v120_v43  ;;  %v285_v43 = vmul.f32 %v1632_v17, %v142_v35  ;;  %v616_v61 = vpack.c.bf16 %v547_v54, %v544_v53 }
  0xa3   :  { %1512 = vmatmul.mubr.msk.bf16.gmra.mrb[72].mxu1 %vm776_vm1, %v618_v32  ;;  %v270_v62 = vmul.f32 %v1632_v17, %v127_v52  ;;  %v422_v32 = vadd.f32 %v1649_v22, %v279_v25  ;;  %v145_v52 = vld [vmem:[%s2830_s0 + $0x3c8] sm:$0xff]  ;;  %v434_v4 = vadd.f32 %v1649_v22, %v291_v60 }
  0xa4   :  { %1515 = vmatprep.mubr.msk.bf16.mxu1 %vm1546_vm0, %v1545_v2  ;;  %v406_v1 = vadd.f32 %v1756_v26, %v263_v55  ;;  %v428_v49 = vadd.f32 %v1649_v22, %v285_v43  ;;  %v281_v55 = vmul.f32 %v1730_v7, %v138_v50  ;;  %v288_v59 = vmul.f32 %v1632_v17, %v145_v52  ;;  %v1242_v43 = vld [vmem:[%s2834_s5] sm:$0xff] }
  0xa5   :  { %v548_v41 = vmax.f32 %v422_v32, 0.0  ;;  %v560_v10 = vmax.f32 %v434_v4, 0.0 }
  0xa6   :  { %v532_v13 = vmax.f32 %v406_v1, 0.0  ;;  %v554_v58 = vmax.f32 %v428_v49, 0.0 }
  0xa8   :  { %v610_v27 = vpack.c.bf16 %v535_v14, %v532_v13 }
  0xa9   :  { %977 = vmatmul.mubr.bf16.gmra.mrb[52].mxu0 %v601_v8  ;;  %v413_v8 = vadd.f32 %v1649_v22, %v270_v62  ;;  %v424_v62 = vadd.f32 %v1756_v26, %v281_v55 }
  0xaa   :  { %984 = vmatprep.mubr.bf16.mxu0 %v605_v20  ;;  %v624_v20 = vpack.c.bf16 %v561_v6, %v558_v5  ;;  %v144_v5 = vld [vmem:[%s2830_s0 + $0x3c0] sm:$0xff]  ;;  %v147_v6 = vld [vmem:[%s2830_s0 + $0x3d8] sm:$0xff] }
  0xab   :  { %1516 = vmatmul.mubr.msk.bf16.gmra.mrb[76].mxu1 %vm776_vm1, %v621_v57  ;;  %v539_v21 = vmax.f32 %v413_v8, 0.0  ;;  %v287_v8 = vmul.f32 %v1730_v7, %v144_v5  ;;  %v290_v23 = vmul.f32 %v1730_v7, %v147_v6 }
  0xac   :  { %1519 = vmatprep.mubr.msk.bf16.mxu1 %vm1546_vm0, %v1545_v2  ;;  %v276_v2 = vmul.f32 %v1632_v17, %v133_v11  ;;  %v550_v17 = vmax.f32 %v424_v62, 0.0 }
  0xad   :  { %v614_v30 = vpack.c.bf16 %v542_v24, %v539_v21  ;;  %v433_v12 = vadd.f32 %v1756_v26, %v290_v23 }
  0xae   :  { %v419_v31 = vadd.f32 %v1649_v22, %v276_v2 }
  0xaf   :  { %v559_v15 = vmax.f32 %v433_v12, 0.0 }
  0xb1   :  { %985 = vmatmul.mubr.bf16.gmra.mrb[56].mxu0 %v604_v40  ;;  %v545_v40 = vmax.f32 %v419_v31, 0.0 }
  0xb2   :  { %992 = vmatprep.mubr.bf16.mxu0 %v608_v48  ;;  %v425_v48 = vadd.f32 %v1649_v22, %v282_v42 }
  0xb3   :  { %1520 = vmatmul.mubr.msk.bf16.gmra.mrb[80].mxu1 %vm776_vm1, %v624_v20  ;;  %v617_v47 = vpack.c.bf16 %v548_v41, %v545_v40 }
  0xb4   :  { %v551_v57 = vmax.f32 %v425_v48, 0.0  ;;  %v1243_v48 = vld [vmem:[%s2834_s5 + $0x8] sm:$0xff] }
  0xb6   :  { %v620_v1 = vpack.c.bf16 %v554_v58, %v551_v57  ;;  %v1244_v58 = vld [vmem:[%s2834_s5 + $0x10] sm:$0xff] }
  0xb9   :  { %993 = vmatmul.mubr.bf16.gmra.mrb[60].mxu0 %v607_v3  ;;  %v431_v3 = vadd.f32 %v1649_v22, %v288_v59  ;;  %v430_v22 = vadd.f32 %v1756_v26, %v287_v8 }
  0xba   :  { %1000 = vmatprep.mubr.bf16.mxu0 %v611_v0  ;;  %v553_v0 = vmax.f32 %v427_v63, 0.0  ;;  %v1245_v63 = vld [vmem:[%s2834_s5 + $0x18] sm:$0xff] }
  0xbb   :  { %v557_v9 = vmax.f32 %v431_v3, 0.0  ;;  %v556_v14 = vmax.f32 %v430_v22, 0.0 }
  0xbc   :  { %v619_v11 = vpack.c.bf16 %v553_v0, %v550_v17 }
  0xbd   :  { %v623_v13 = vpack.c.bf16 %v560_v10, %v557_v9  ;;  %v622_v16 = vpack.c.bf16 %v559_v15, %v556_v14  ;;  %v1246_v10 = vld [vmem:[%s2834_s5 + $0x20] sm:$0xff]  ;;  %v1247_v14 = vld [vmem:[%s2834_s5 + $0x28] sm:$0xff] }
  0xc1   :  { %1001 = vmatmul.mubr.bf16.gmra.mrb[64].mxu0 %v610_v27 }
  0xc2   :  { %1008 = vmatprep.mubr.bf16.mxu0 %v614_v30 }
  0xc9   :  { %1009 = vmatmul.mubr.bf16.gmra.mrb[68].mxu0 %v613_v44 }
  0xca   :  { %1016 = vmatprep.mubr.bf16.mxu0 %v617_v47 }
  0xd1   :  { %1017 = vmatmul.mubr.bf16.gmra.mrb[72].mxu0 %v616_v61 }
  0xd2   :  { %1024 = vmatprep.mubr.bf16.mxu0 %v620_v1 }
  0xd9   :  { %1025 = vmatmul.mubr.bf16.gmra.mrb[76].mxu0 %v619_v11 }
  0xda   :  { %1032 = vmatprep.mubr.bf16.mxu0 %v623_v13 }
  0xe1   :  { %1033 = vmatmul.mubr.bf16.gmra.mrb[80].mxu0 %v622_v16 }
  0xe3   :  { %v1075_v20 = vpop.f32.mrb[0].mxu1 }
  0xe4   :  { %v1441_v21 = vpop.f32.mrb[1].mxu1 }
  0xe5   :  { %v1078_v24 = vpop.f32.mrb[2].mxu1 }
  0xe6   :  { %v1442_v2 = vpop.f32.mrb[3].mxu1 }
  0xeb   :  { %v1083_v7 = vpop.f32.mrb[4].mxu1 }
  0xec   :  { %v1445_v25 = vpop.f32.mrb[5].mxu1 }
  0xed   :  { %v1086_v27 = vpop.f32.mrb[6].mxu1 }
  0xee   :  { %v1446_v28 = vpop.f32.mrb[7].mxu1 }
  0xf3   :  { %v1091_v29 = vpop.f32.mrb[8].mxu1 }
  0xf4   :  { %v1449_v30 = vpop.f32.mrb[9].mxu1 }
  0xf5   :  { %v1094_v31 = vpop.f32.mrb[10].mxu1 }
  0xf6   :  { %v1450_v32 = vpop.f32.mrb[11].mxu1 }
  0xfb   :  { %v2380_v26 = vpop.f32.mrb[12].mxu1 }
  0xfc   :  { %v1453_v33 = vpop.f32.mrb[13].mxu1 }
  0xfd   :  { %v2382_v19 = vpop.f32.mrb[14].mxu1 }
  0xfe   :  { %v1454_v34 = vpop.f32.mrb[15].mxu1 }
  0xff   :  { %v1249_v34 = vld [vmem:[%s2834_s5 + $0x38] sm:$0xff] }
 0x103   :  { %v2384_v35 = vpop.f32.mrb[16].mxu1 }
 0x104   :  { %v1457_v36 = vpop.f32.mrb[17].mxu1 }
 0x105   :  { %v2391_v38 = vpop.f32.mrb[18].mxu1 }
 0x106   :  { %v1458_v39 = vpop.f32.mrb[19].mxu1 }
 0x10b   :  { %v2401_v49 = vpop.f32.mrb[20].mxu1 }
 0x10c   :  { %v1461_v52 = vpop.f32.mrb[21].mxu1 }
 0x10d   :  { %v2403_v18 = vpop.f32.mrb[22].mxu1  ;;  %v1251_v52 = vld [vmem:[%s2834_s5 + $0x48] sm:$0xff] }
 0x10e   :  { %v1462_v54 = vpop.f32.mrb[23].mxu1 }
 0x114   :  { %v874_v40 = vpop.f32.mrb[0].mxu0 }
 0x115   :  { %v875_v41 = vadd.f32 %v2389_v37, %v874_v40  ;;  %v876_v42 = vpop.f32.mrb[1].mxu0 }
 0x116   :  { %v877_v44 = vpop.f32.mrb[2].mxu0  ;;  %v2421_v1 = vpop.f32.mrb[24].mxu1 }
 0x117   :  { %v1076_v45 = vadd.f32 %v1075_v20, %v875_v41  ;;  %v878_v46 = vadd.f32 %v2389_v37, %v877_v44  ;;  %v879_v47 = vpop.f32.mrb[3].mxu0  ;;  %v1465_v5 = vpop.f32.mrb[25].mxu1 }
 0x118   :  { %v2423_v6 = vpop.f32.mrb[26].mxu1  ;;  %v1253_v5 = vld [vmem:[%s2834_s5 + $0x58] sm:$0xff] }
 0x119   :  { %v1284_v50 = vadd.f32 %v1242_v43, %v1076_v45  ;;  %v1079_v51 = vadd.f32 %v1078_v24, %v878_v46  ;;  %v1466_v0 = vpop.f32.mrb[27].mxu1 }
 0x11b   :  { %1326 = vst.msk [vmem:[%s2835_s6] sm:$0xff] %vm776_vm1, %v1284_v50  ;;  %v1285_v53 = vadd.f32 %v1243_v48, %v1079_v51 }
 0x11c   :  { %v882_v55 = vpop.f32.mrb[4].mxu0 }
 0x11d   :  { %1327 = vst.msk [vmem:[%s2835_s6 + $0x8] sm:$0xff] %vm776_vm1, %v1285_v53  ;;  %v883_v56 = vadd.f32 %v2389_v37, %v882_v55  ;;  %v884_v57 = vpop.f32.mrb[5].mxu0 }
 0x11e   :  { %v885_v59 = vpop.f32.mrb[6].mxu0  ;;  %v2441_v15 = vpop.f32.mrb[28].mxu1 }
 0x11f   :  { %v1084_v60 = vadd.f32 %v1083_v7, %v883_v56  ;;  %v886_v61 = vadd.f32 %v2389_v37, %v885_v59  ;;  %v887_v62 = vpop.f32.mrb[7].mxu0  ;;  %v1469_v21 = vpop.f32.mrb[29].mxu1 }
 0x120   :  { %v2443_v24 = vpop.f32.mrb[30].mxu1  ;;  %v1255_v21 = vld [vmem:[%s2834_s5 + $0x68] sm:$0xff] }
 0x121   :  { %v1286_v3 = vadd.f32 %v1244_v58, %v1084_v60  ;;  %v1087_v4 = vadd.f32 %v1086_v27, %v886_v61  ;;  %v1470_v7 = vpop.f32.mrb[31].mxu1 }
 0x123   :  { %1328 = vst.msk [vmem:[%s2835_s6 + $0x10] sm:$0xff] %vm776_vm1, %v1286_v3  ;;  %v1287_v17 = vadd.f32 %v1245_v63, %v1087_v4 }
 0x124   :  { %v890_v8 = vpop.f32.mrb[8].mxu0 }
 0x125   :  { %1329 = vst.msk [vmem:[%s2835_s6 + $0x18] sm:$0xff] %vm776_vm1, %v1287_v17  ;;  %v891_v23 = vadd.f32 %v2389_v37, %v890_v8  ;;  %v892_v9 = vpop.f32.mrb[9].mxu0 }
 0x126   :  { %v893_v11 = vpop.f32.mrb[10].mxu0  ;;  %v2462_v36 = vpop.f32.mrb[32].mxu1 }
 0x127   :  { %v1092_v22 = vadd.f32 %v1091_v29, %v891_v23  ;;  %v894_v12 = vadd.f32 %v2389_v37, %v893_v11  ;;  %v895_v13 = vpop.f32.mrb[11].mxu0  ;;  %v1248_v29 = vld [vmem:[%s2834_s5 + $0x30] sm:$0xff]  ;;  %v1473_v41 = vpop.f32.mrb[33].mxu1 }
 0x128   :  { %v2465_v42 = vpop.f32.mrb[34].mxu1  ;;  %v1257_v41 = vld [vmem:[%s2834_s5 + $0x78] sm:$0xff] }
 0x129   :  { %v1288_v16 = vadd.f32 %v1246_v10, %v1092_v22  ;;  %v1095_v20 = vadd.f32 %v1094_v31, %v894_v12  ;;  %v1474_v43 = vpop.f32.mrb[35].mxu1 }
 0x12b   :  { %1330 = vst.msk [vmem:[%s2835_s6 + $0x20] sm:$0xff] %vm776_vm1, %v1288_v16  ;;  %v1289_v2 = vadd.f32 %v1247_v14, %v1095_v20 }
 0x12c   :  { %v898_v25 = vpop.f32.mrb[12].mxu0 }
 0x12d   :  { %1331 = vst.msk [vmem:[%s2835_s6 + $0x28] sm:$0xff] %vm776_vm1, %v1289_v2  ;;  %v899_v27 = vadd.f32 %v2389_v37, %v898_v25  ;;  %v900_v28 = vpop.f32.mrb[13].mxu0 }
 0x12e   :  { %v901_v30 = vpop.f32.mrb[14].mxu0  ;;  %v2484_v53 = vpop.f32.mrb[36].mxu1 }
 0x12f   :  { %v1100_v31 = vadd.f32 %v2380_v26, %v899_v27  ;;  %v902_v32 = vadd.f32 %v2389_v37, %v901_v30  ;;  %v903_v33 = vpop.f32.mrb[15].mxu0  ;;  %v1477_v56 = vpop.f32.mrb[37].mxu1 }
 0x130   :  { %v2487_v57 = vpop.f32.mrb[38].mxu1  ;;  %v1259_v56 = vld [vmem:[%s2834_s5 + $0x88] sm:$0xff] }
 0x131   :  { %v1290_v39 = vadd.f32 %v1248_v29, %v1100_v31  ;;  %v1103_v40 = vadd.f32 %v2382_v19, %v902_v32  ;;  %v1250_v19 = vld [vmem:[%s2834_s5 + $0x40] sm:$0xff]  ;;  %v1478_v58 = vpop.f32.mrb[39].mxu1 }
 0x133   :  { %1332 = vst.msk [vmem:[%s2835_s6 + $0x30] sm:$0xff] %vm776_vm1, %v1290_v39  ;;  %v1291_v26 = vadd.f32 %v1249_v34, %v1103_v40 }
 0x134   :  { %v906_v44 = vpop.f32.mrb[16].mxu0 }
 0x135   :  { %1333 = vst.msk [vmem:[%s2835_s6 + $0x38] sm:$0xff] %vm776_vm1, %v1291_v26  ;;  %v907_v45 = vadd.f32 %v2389_v37, %v906_v44  ;;  %v908_v46 = vpop.f32.mrb[17].mxu0 }
 0x136   :  { %v909_v47 = vpop.f32.mrb[18].mxu0  ;;  %v2506_v17 = vpop.f32.mrb[40].mxu1 }
 0x137   :  { %v1108_v48 = vadd.f32 %v2384_v35, %v907_v45  ;;  %v910_v50 = vadd.f32 %v2389_v37, %v909_v47  ;;  %v911_v51 = vpop.f32.mrb[19].mxu0  ;;  %v1481_v23 = vpop.f32.mrb[41].mxu1 }
 0x138   :  { %v2509_v9 = vpop.f32.mrb[42].mxu1  ;;  %v1261_v23 = vld [vmem:[%s2834_s5 + $0x98] sm:$0xff] }
 0x139   :  { %v1292_v54 = vadd.f32 %v1250_v19, %v1108_v48  ;;  %v1111_v55 = vadd.f32 %v2391_v38, %v910_v50  ;;  %v1252_v38 = vld [vmem:[%s2834_s5 + $0x50] sm:$0xff]  ;;  %v1482_v10 = vpop.f32.mrb[43].mxu1 }
 0x13b   :  { %1334 = vst.msk [vmem:[%s2835_s6 + $0x40] sm:$0xff] %vm776_vm1, %v1292_v54  ;;  %v1293_v35 = vadd.f32 %v1251_v52, %v1111_v55 }
 0x13c   :  { %v914_v59 = vpop.f32.mrb[20].mxu0 }
 0x13d   :  { %1335 = vst.msk [vmem:[%s2835_s6 + $0x48] sm:$0xff] %vm776_vm1, %v1293_v35  ;;  %v915_v60 = vadd.f32 %v2389_v37, %v914_v59  ;;  %v916_v61 = vpop.f32.mrb[21].mxu0 }
 0x13e   :  { %v917_v62 = vpop.f32.mrb[22].mxu0  ;;  %v2528_v2 = vpop.f32.mrb[44].mxu1 }
 0x13f   :  { %v1116_v63 = vadd.f32 %v2401_v49, %v915_v60  ;;  %v918_v3 = vadd.f32 %v2389_v37, %v917_v62  ;;  %v919_v4 = vpop.f32.mrb[23].mxu0  ;;  %v1485_v27 = vpop.f32.mrb[45].mxu1 }
 0x140   :  { %v2531_v28 = vpop.f32.mrb[46].mxu1  ;;  %v1263_v27 = vld [vmem:[%s2834_s5 + $0xa8] sm:$0xff] }
 0x141   :  { %v1294_v0 = vadd.f32 %v1252_v38, %v1116_v63  ;;  %v1119_v8 = vadd.f32 %v2403_v18, %v918_v3  ;;  %v1254_v18 = vld [vmem:[%s2834_s5 + $0x60] sm:$0xff]  ;;  %v1486_v29 = vpop.f32.mrb[47].mxu1 }
 0x143   :  { %1336 = vst.msk [vmem:[%s2835_s6 + $0x50] sm:$0xff] %vm776_vm1, %v1294_v0  ;;  %v1295_v49 = vadd.f32 %v1253_v5, %v1119_v8 }
 0x144   :  { %v922_v11 = vpop.f32.mrb[24].mxu0 }
 0x145   :  { %1337 = vst.msk [vmem:[%s2835_s6 + $0x58] sm:$0xff] %vm776_vm1, %v1295_v49  ;;  %v923_v22 = vadd.f32 %v2389_v37, %v922_v11  ;;  %v924_v12 = vpop.f32.mrb[25].mxu0 }
 0x146   :  { %v925_v13 = vpop.f32.mrb[26].mxu0  ;;  %v2550_v26 = vpop.f32.mrb[48].mxu1 }
 0x147   :  { %v1124_v14 = vadd.f32 %v2421_v1, %v923_v22  ;;  %v926_v16 = vadd.f32 %v2389_v37, %v925_v13  ;;  %v927_v20 = vpop.f32.mrb[27].mxu0  ;;  %v1489_v45 = vpop.f32.mrb[49].mxu1 }
 0x148   :  { %v2553_v46 = vpop.f32.mrb[50].mxu1  ;;  %v1265_v45 = vld [vmem:[%s2834_s5 + $0xb8] sm:$0xff] }
 0x149   :  { %v1296_v7 = vadd.f32 %v1254_v18, %v1124_v14  ;;  %v1127_v25 = vadd.f32 %v2423_v6, %v926_v16  ;;  %v1256_v6 = vld [vmem:[%s2834_s5 + $0x70] sm:$0xff]  ;;  %v1490_v19 = vpop.f32.mrb[51].mxu1 }
 0x14b   :  { %1338 = vst.msk [vmem:[%s2835_s6 + $0x60] sm:$0xff] %vm776_vm1, %v1296_v7  ;;  %v1297_v1 = vadd.f32 %v1255_v21, %v1127_v25 }
 0x14c   :  { %v930_v30 = vpop.f32.mrb[28].mxu0 }
 0x14d   :  { %1339 = vst.msk [vmem:[%s2835_s6 + $0x68] sm:$0xff] %vm776_vm1, %v1297_v1  ;;  %v931_v31 = vadd.f32 %v2389_v37, %v930_v30  ;;  %v932_v32 = vpop.f32.mrb[29].mxu0 }
 0x14e   :  { %v933_v33 = vpop.f32.mrb[30].mxu0  ;;  %v2572_v35 = vpop.f32.mrb[52].mxu1 }
 0x14f   :  { %v1132_v34 = vadd.f32 %v2441_v15, %v931_v31  ;;  %v934_v39 = vadd.f32 %v2389_v37, %v933_v33  ;;  %v935_v40 = vpop.f32.mrb[31].mxu0  ;;  %v1493_v60 = vpop.f32.mrb[53].mxu1 }
 0x150   :  { %v2575_v61 = vpop.f32.mrb[54].mxu1  ;;  %v1267_v60 = vld [vmem:[%s2834_s5 + $0xc8] sm:$0xff] }
 0x151   :  { %v1298_v43 = vadd.f32 %v1256_v6, %v1132_v34  ;;  %v1135_v44 = vadd.f32 %v2443_v24, %v934_v39  ;;  %v1258_v24 = vld [vmem:[%s2834_s5 + $0x80] sm:$0xff]  ;;  %v1494_v38 = vpop.f32.mrb[55].mxu1 }
 0x153   :  { %1340 = vst.msk [vmem:[%s2835_s6 + $0x70] sm:$0xff] %vm776_vm1, %v1298_v43  ;;  %v1299_v15 = vadd.f32 %v1257_v41, %v1135_v44 }
 0x154   :  { %v938_v47 = vpop.f32.mrb[32].mxu0 }
 0x155   :  { %1341 = vst.msk [vmem:[%s2835_s6 + $0x78] sm:$0xff] %vm776_vm1, %v1299_v15  ;;  %v939_v48 = vadd.f32 %v2389_v37, %v938_v47  ;;  %v940_v50 = vpop.f32.mrb[33].mxu0 }
 0x156   :  { %v941_v51 = vpop.f32.mrb[34].mxu0  ;;  %v2594_v49 = vpop.f32.mrb[56].mxu1 }
 0x157   :  { %v1140_v52 = vadd.f32 %v2462_v36, %v939_v48  ;;  %v942_v54 = vadd.f32 %v2389_v37, %v941_v51  ;;  %v943_v55 = vpop.f32.mrb[35].mxu0  ;;  %v1497_v22 = vpop.f32.mrb[57].mxu1 }
 0x158   :  { %v2597_v12 = vpop.f32.mrb[58].mxu1  ;;  %v1269_v22 = vld [vmem:[%s2834_s5 + $0xd8] sm:$0xff] }
 0x159   :  { %v1300_v58 = vadd.f32 %v1258_v24, %v1140_v52  ;;  %v1143_v59 = vadd.f32 %v2465_v42, %v942_v54  ;;  %v1260_v42 = vld [vmem:[%s2834_s5 + $0x90] sm:$0xff]  ;;  %v1498_v18 = vpop.f32.mrb[59].mxu1 }
 0x15b   :  { %1342 = vst.msk [vmem:[%s2835_s6 + $0x80] sm:$0xff] %vm776_vm1, %v1300_v58  ;;  %v1301_v36 = vadd.f32 %v1259_v56, %v1143_v59 }
 0x15c   :  { %v946_v62 = vpop.f32.mrb[36].mxu0 }
 0x15d   :  { %1343 = vst.msk [vmem:[%s2835_s6 + $0x88] sm:$0xff] %vm776_vm1, %v1301_v36  ;;  %v947_v63 = vadd.f32 %v2389_v37, %v946_v62  ;;  %v948_v3 = vpop.f32.mrb[37].mxu0 }
 0x15e   :  { %v949_v4 = vpop.f32.mrb[38].mxu0  ;;  %v2616_v1 = vpop.f32.mrb[60].mxu1 }
 0x15f   :  { %v1148_v5 = vadd.f32 %v2484_v53, %v947_v63  ;;  %v950_v0 = vadd.f32 %v2389_v37, %v949_v4  ;;  %v951_v8 = vpop.f32.mrb[39].mxu0  ;;  %v1501_v31 = vpop.f32.mrb[61].mxu1 }
 0x160   :  { %v2619_v32 = vpop.f32.mrb[62].mxu1  ;;  %v1271_v31 = vld [vmem:[%s2834_s5 + $0xe8] sm:$0xff] }
 0x161   :  { %v1302_v10 = vadd.f32 %v1260_v42, %v1148_v5  ;;  %v1151_v11 = vadd.f32 %v2487_v57, %v950_v0  ;;  %v1262_v57 = vld [vmem:[%s2834_s5 + $0xa0] sm:$0xff]  ;;  %v1502_v6 = vpop.f32.mrb[63].mxu1 }
 0x163   :  { %1344 = vst.msk [vmem:[%s2835_s6 + $0x90] sm:$0xff] %vm776_vm1, %v1302_v10  ;;  %v1303_v53 = vadd.f32 %v1261_v23, %v1151_v11 }
 0x164   :  { %v954_v13 = vpop.f32.mrb[40].mxu0 }
 0x165   :  { %1345 = vst.msk [vmem:[%s2835_s6 + $0x98] sm:$0xff] %vm776_vm1, %v1303_v53  ;;  %v955_v14 = vadd.f32 %v2389_v37, %v954_v13  ;;  %v956_v16 = vpop.f32.mrb[41].mxu0 }
 0x166   :  { %v957_v20 = vpop.f32.mrb[42].mxu0  ;;  %v2638_v15 = vpop.f32.mrb[64].mxu1 }
 0x167   :  { %v1156_v21 = vadd.f32 %v2506_v17, %v955_v14  ;;  %v958_v7 = vadd.f32 %v2389_v37, %v957_v20  ;;  %v959_v25 = vpop.f32.mrb[43].mxu0  ;;  %v1505_v48 = vpop.f32.mrb[65].mxu1 }
 0x168   :  { %v2641_v50 = vpop.f32.mrb[66].mxu1  ;;  %v1273_v48 = vld [vmem:[%s2834_s5 + $0xf8] sm:$0xff] }
 0x169   :  { %v1304_v29 = vadd.f32 %v1262_v57, %v1156_v21  ;;  %v1159_v30 = vadd.f32 %v2509_v9, %v958_v7  ;;  %v1264_v9 = vld [vmem:[%s2834_s5 + $0xb0] sm:$0xff]  ;;  %v1506_v24 = vpop.f32.mrb[67].mxu1 }
 0x16b   :  { %1346 = vst.msk [vmem:[%s2835_s6 + $0xa0] sm:$0xff] %vm776_vm1, %v1304_v29  ;;  %v1305_v17 = vadd.f32 %v1263_v27, %v1159_v30 }
 0x16c   :  { %v962_v33 = vpop.f32.mrb[44].mxu0 }
 0x16d   :  { %1347 = vst.msk [vmem:[%s2835_s6 + $0xa8] sm:$0xff] %vm776_vm1, %v1305_v17  ;;  %v963_v34 = vadd.f32 %v2389_v37, %v962_v33  ;;  %v964_v39 = vpop.f32.mrb[45].mxu0 }
 0x16e   :  { %v965_v40 = vpop.f32.mrb[46].mxu0  ;;  %v2660_v36 = vpop.f32.mrb[68].mxu1 }
 0x16f   :  { %v1164_v41 = vadd.f32 %v2528_v2, %v963_v34  ;;  %v966_v43 = vadd.f32 %v2389_v37, %v965_v40  ;;  %v967_v44 = vpop.f32.mrb[47].mxu0  ;;  %v1509_v63 = vpop.f32.mrb[69].mxu1 }
 0x170   :  { %v2663_v3 = vpop.f32.mrb[70].mxu1  ;;  %v1275_v63 = vld [vmem:[%s2834_s5 + $0x108] sm:$0xff] }
 0x171   :  { %v1306_v19 = vadd.f32 %v1264_v9, %v1164_v41  ;;  %v1167_v47 = vadd.f32 %v2531_v28, %v966_v43  ;;  %v1266_v28 = vld [vmem:[%s2834_s5 + $0xc0] sm:$0xff]  ;;  %v1510_v42 = vpop.f32.mrb[71].mxu1 }
 0x173   :  { %1348 = vst.msk [vmem:[%s2835_s6 + $0xb0] sm:$0xff] %vm776_vm1, %v1306_v19  ;;  %v1307_v2 = vadd.f32 %v1265_v45, %v1167_v47 }
 0x174   :  { %v970_v51 = vpop.f32.mrb[48].mxu0 }
 0x175   :  { %1349 = vst.msk [vmem:[%s2835_s6 + $0xb8] sm:$0xff] %vm776_vm1, %v1307_v2  ;;  %v971_v52 = vadd.f32 %v2389_v37, %v970_v51  ;;  %v972_v54 = vpop.f32.mrb[49].mxu0 }
 0x176   :  { %v973_v55 = vpop.f32.mrb[50].mxu0  ;;  %v2682_v53 = vpop.f32.mrb[72].mxu1 }
 0x177   :  { %v1172_v56 = vadd.f32 %v2550_v26, %v971_v52  ;;  %v974_v58 = vadd.f32 %v2389_v37, %v973_v55  ;;  %v975_v59 = vpop.f32.mrb[51].mxu0  ;;  %v1513_v14 = vpop.f32.mrb[73].mxu1 }
 0x178   :  { %v2685_v16 = vpop.f32.mrb[74].mxu1 }
 0x179   :  { %v1308_v38 = vadd.f32 %v1266_v28, %v1172_v56  ;;  %v1175_v62 = vadd.f32 %v2553_v46, %v974_v58  ;;  %v1268_v46 = vld [vmem:[%s2834_s5 + $0xd0] sm:$0xff]  ;;  %v1514_v57 = vpop.f32.mrb[75].mxu1 }
 0x17a   :  { %v1278_v57 = vld [vmem:[%s2834_s5 + $0x120] sm:$0xff] }
 0x17b   :  { %1350 = vst.msk [vmem:[%s2835_s6 + $0xc0] sm:$0xff] %vm776_vm1, %v1308_v38  ;;  %v1309_v26 = vadd.f32 %v1267_v60, %v1175_v62 }
 0x17c   :  { %v978_v4 = vpop.f32.mrb[52].mxu0 }
 0x17d   :  { %1351 = vst.msk [vmem:[%s2835_s6 + $0xc8] sm:$0xff] %vm776_vm1, %v1309_v26  ;;  %v979_v5 = vadd.f32 %v2389_v37, %v978_v4  ;;  %v980_v0 = vpop.f32.mrb[53].mxu0 }
 0x17e   :  { %v981_v8 = vpop.f32.mrb[54].mxu0  ;;  %v2704_v17 = vpop.f32.mrb[76].mxu1 }
 0x17f   :  { %v1180_v23 = vadd.f32 %v2572_v35, %v979_v5  ;;  %v982_v10 = vadd.f32 %v2389_v37, %v981_v8  ;;  %v983_v11 = vpop.f32.mrb[55].mxu0  ;;  %v1517_v34 = vpop.f32.mrb[77].mxu1 }
 0x180   :  { %v2707_v39 = vpop.f32.mrb[78].mxu1  ;;  %v1277_v11 = vld [vmem:[%s2834_s5 + $0x118] sm:$0xff] }
 0x181   :  { %v1310_v18 = vadd.f32 %v1268_v46, %v1180_v23  ;;  %v1183_v13 = vadd.f32 %v2575_v61, %v982_v10  ;;  %v1270_v61 = vld [vmem:[%s2834_s5 + $0xe0] sm:$0xff]  ;;  %v1518_v9 = vpop.f32.mrb[79].mxu1  ;;  %v1276_v46 = vld [vmem:[%s2834_s5 + $0x110] sm:$0xff] }
 0x182   :  { %v1281_v9 = vld [vmem:[%s2834_s5 + $0x138] sm:$0xff] }
 0x183   :  { %1352 = vst.msk [vmem:[%s2835_s6 + $0xd0] sm:$0xff] %vm776_vm1, %v1310_v18  ;;  %v1311_v35 = vadd.f32 %v1269_v22, %v1183_v13 }
 0x184   :  { %v986_v20 = vpop.f32.mrb[56].mxu0 }
 0x185   :  { %1353 = vst.msk [vmem:[%s2835_s6 + $0xd8] sm:$0xff] %vm776_vm1, %v1311_v35  ;;  %v987_v21 = vadd.f32 %v2389_v37, %v986_v20  ;;  %v988_v7 = vpop.f32.mrb[57].mxu0 }
 0x186   :  { %v989_v25 = vpop.f32.mrb[58].mxu0  ;;  %v2726_v2 = vpop.f32.mrb[80].mxu1 }
 0x187   :  { %v1188_v27 = vadd.f32 %v2594_v49, %v987_v21  ;;  %v990_v29 = vadd.f32 %v2389_v37, %v989_v25  ;;  %v991_v30 = vpop.f32.mrb[59].mxu0  ;;  %v1521_v52 = vpop.f32.mrb[81].mxu1 }
 0x188   :  { %v2729_v54 = vpop.f32.mrb[82].mxu1 }
 0x189   :  { %v1312_v6 = vadd.f32 %v1270_v61, %v1188_v27  ;;  %v1191_v33 = vadd.f32 %v2597_v12, %v990_v29  ;;  %v1272_v12 = vld [vmem:[%s2834_s5 + $0xf0] sm:$0xff]  ;;  %v1522_v28 = vpop.f32.mrb[83].mxu1  ;;  %v1279_v61 = vld [vmem:[%s2834_s5 + $0x128] sm:$0xff] }
 0x18b   :  { %1354 = vst.msk [vmem:[%s2835_s6 + $0xe0] sm:$0xff] %vm776_vm1, %v1312_v6  ;;  %v1313_v49 = vadd.f32 %v1271_v31, %v1191_v33  ;;  %v1280_v6 = vld [vmem:[%s2834_s5 + $0x130] sm:$0xff] }
 0x18c   :  { %v994_v40 = vpop.f32.mrb[60].mxu0 }
 0x18d   :  { %1355 = vst.msk [vmem:[%s2835_s6 + $0xe8] sm:$0xff] %vm776_vm1, %v1313_v49  ;;  %v995_v41 = vadd.f32 %v2389_v37, %v994_v40  ;;  %v996_v43 = vpop.f32.mrb[61].mxu0 }
 0x18e   :  { %v997_v44 = vpop.f32.mrb[62].mxu0 }
 0x18f   :  { %v1196_v45 = vadd.f32 %v2616_v1, %v995_v41  ;;  %v998_v19 = vadd.f32 %v2389_v37, %v997_v44  ;;  %v999_v47 = vpop.f32.mrb[63].mxu0 }
 0x191   :  { %v1314_v24 = vadd.f32 %v1272_v12, %v1196_v45  ;;  %v1199_v51 = vadd.f32 %v2619_v32, %v998_v19  ;;  %v1274_v32 = vld [vmem:[%s2834_s5 + $0x100] sm:$0xff] }
 0x192   :  { %v1282_v45 = vld [vmem:[%s2834_s5 + $0x140] sm:$0xff] }
 0x193   :  { %1356 = vst.msk [vmem:[%s2835_s6 + $0xf0] sm:$0xff] %vm776_vm1, %v1314_v24  ;;  %v1315_v1 = vadd.f32 %v1273_v48, %v1199_v51  ;;  %v1283_v24 = vld [vmem:[%s2834_s5 + $0x148] sm:$0xff] }
 0x194   :  { %v1002_v55 = vpop.f32.mrb[64].mxu0 }
 0x195   :  { %1357 = vst.msk [vmem:[%s2835_s6 + $0xf8] sm:$0xff] %vm776_vm1, %v1315_v1  ;;  %v1003_v56 = vadd.f32 %v2389_v37, %v1002_v55  ;;  %v1004_v58 = vpop.f32.mrb[65].mxu0 }
 0x196   :  { %v1005_v59 = vpop.f32.mrb[66].mxu0 }
 0x197   :  { %v1204_v60 = vadd.f32 %v2638_v15, %v1003_v56  ;;  %v1006_v38 = vadd.f32 %v2389_v37, %v1005_v59  ;;  %v1007_v62 = vpop.f32.mrb[67].mxu0 }
 0x199   :  { %v1316_v26 = vadd.f32 %v1274_v32, %v1204_v60  ;;  %v1207_v42 = vadd.f32 %v2641_v50, %v1006_v38 }
 0x19b   :  { %1358 = vst.msk [vmem:[%s2835_s6 + $0x100] sm:$0xff] %vm776_vm1, %v1316_v26  ;;  %v1317_v4 = vadd.f32 %v1275_v63, %v1207_v42 }
 0x19c   :  { %v1010_v5 = vpop.f32.mrb[68].mxu0 }
 0x19d   :  { %1359 = vst.msk [vmem:[%s2835_s6 + $0x108] sm:$0xff] %vm776_vm1, %v1317_v4  ;;  %v1011_v15 = vadd.f32 %v2389_v37, %v1010_v5  ;;  %v1012_v0 = vpop.f32.mrb[69].mxu0 }
 0x19e   :  { %v1013_v50 = vpop.f32.mrb[70].mxu0 }
 0x19f   :  { %v1212_v8 = vadd.f32 %v2660_v36, %v1011_v15  ;;  %v1014_v23 = vadd.f32 %v2389_v37, %v1013_v50  ;;  %v1015_v10 = vpop.f32.mrb[71].mxu0 }
 0x1a1   :  { %v1318_v22 = vadd.f32 %v1276_v46, %v1212_v8  ;;  %v1215_v18 = vadd.f32 %v2663_v3, %v1014_v23 }
 0x1a3   :  { %1360 = vst.msk [vmem:[%s2835_s6 + $0x110] sm:$0xff] %vm776_vm1, %v1318_v22  ;;  %v1319_v13 = vadd.f32 %v1277_v11, %v1215_v18 }
 0x1a4   :  { %v1018_v14 = vpop.f32.mrb[72].mxu0 }
 0x1a5   :  { %1361 = vst.msk [vmem:[%s2835_s6 + $0x118] sm:$0xff] %vm776_vm1, %v1319_v13  ;;  %v1019_v36 = vadd.f32 %v2389_v37, %v1018_v14  ;;  %v1020_v35 = vpop.f32.mrb[73].mxu0 }
 0x1a6   :  { %v1021_v3 = vpop.f32.mrb[74].mxu0 }
 0x1a7   :  { %v1220_v20 = vadd.f32 %v2682_v53, %v1019_v36  ;;  %v1022_v21 = vadd.f32 %v2389_v37, %v1021_v3  ;;  %v1023_v7 = vpop.f32.mrb[75].mxu0 }
 0x1a9   :  { %v1320_v25 = vadd.f32 %v1278_v57, %v1220_v20  ;;  %v1223_v27 = vadd.f32 %v2685_v16, %v1022_v21 }
 0x1ab   :  { %1362 = vst.msk [vmem:[%s2835_s6 + $0x120] sm:$0xff] %vm776_vm1, %v1320_v25  ;;  %v1321_v29 = vadd.f32 %v1279_v61, %v1223_v27 }
 0x1ac   :  { %v1026_v30 = vpop.f32.mrb[76].mxu0 }
 0x1ad   :  { %1363 = vst.msk [vmem:[%s2835_s6 + $0x128] sm:$0xff] %vm776_vm1, %v1321_v29  ;;  %v1027_v53 = vadd.f32 %v2389_v37, %v1026_v30  ;;  %v1028_v31 = vpop.f32.mrb[77].mxu0 }
 0x1ae   :  { %v1029_v16 = vpop.f32.mrb[78].mxu0 }
 0x1af   :  { %v1228_v33 = vadd.f32 %v2704_v17, %v1027_v53  ;;  %v1030_v34 = vadd.f32 %v2389_v37, %v1029_v16  ;;  %v1031_v49 = vpop.f32.mrb[79].mxu0 }
 0x1b1   :  { %v1322_v40 = vadd.f32 %v1280_v6, %v1228_v33  ;;  %v1231_v41 = vadd.f32 %v2707_v39, %v1030_v34 }
 0x1b3   :  { %1364 = vst.msk [vmem:[%s2835_s6 + $0x130] sm:$0xff] %vm776_vm1, %v1322_v40  ;;  %v1323_v43 = vadd.f32 %v1281_v9, %v1231_v41 }
 0x1b4   :  { %v1034_v12 = vpop.f32.mrb[80].mxu0 }
 0x1b5   :  { %1365 = vst.msk [vmem:[%s2835_s6 + $0x138] sm:$0xff] %vm776_vm1, %v1323_v43  ;;  %v1035_v17 = vadd.f32 %v2389_v37, %v1034_v12  ;;  %v1036_v44 = vpop.f32.mrb[81].mxu0 }
 0x1b6   :  { %v1037_v39 = vpop.f32.mrb[82].mxu0 }
 0x1b7   :  { %v1236_v19 = vadd.f32 %v2726_v2, %v1035_v17  ;;  %v1038_v47 = vadd.f32 %v2389_v37, %v1037_v39  ;;  %v1039_v48 = vpop.f32.mrb[83].mxu0 }
 0x1b9   :  { %v1324_v51 = vadd.f32 %v1282_v45, %v1236_v19  ;;  %v1239_v52 = vadd.f32 %v2729_v54, %v1038_v47 }
 0x1bb   :  { %1366 = vst.msk [vmem:[%s2835_s6 + $0x140] sm:$0xff] %vm776_vm1, %v1324_v51  ;;  %v1325_v1 = vadd.f32 %v1283_v24, %v1239_v52 }
 0x1bd   :  { %1367 = vst.msk [vmem:[%s2835_s6 + $0x148] sm:$0xff] %vm776_vm1, %v1325_v1 }

// kernel: tile.93
= control target key start
LH: loop header
LB: loop body
LE: loop exit
PB: predicated region body
PF: predicated region fallthrough
CT: control target
= control target key end

     0   :  { %s28_s0 = inlined_call_operand.vmem [shape: f32[64], index: 0, kind: input, shape index: {}]   ;;  %s29_s1 = inlined_call_operand.vmem [shape: f32[9,64], index: 1, kind: output, shape index: {}]  }
   0x1   :  { %v4_v0 = vld [vmem:[%s28_s0] ss:$0 sm:$0xff] }
   0x2   :  { %5 = vst [vmem:[%s29_s1] sm:$0xff] %v4_v0  ;;  %8 = vst [vmem:[%s29_s1 + $0x8] sm:$0xff] %v4_v0 }

// kernel: tile.98
= control target key start
LH: loop header
LB: loop body
LE: loop exit
PB: predicated region body
PF: predicated region fallthrough
CT: control target
= control target key end

     0   :  { %vm3_vm0 = vcmask 523264   ;;  %s51_s8 = smov 64   ;;  %vm11_vm1 = vcmask 1048064   ;;  %s83_s0 = inlined_call_operand.vmem [shape: f32[9,64], index: 0, kind: input, shape index: {}]   ;;  %s84_s1 = inlined_call_operand.vmem [shape: f32[1,576], index: 1, kind: output, shape index: {}]  }
   0x1   :  { %v45_v0 = vld [vmem:[%s83_s0 + $0x1] ss:$2 sm:$0xf]   ;;  %v2_v1 = vld [vmem:[%s83_s0] ss:$2 sm:$0x1f]  }
   0x2   :  { %9 = vrot.lane.b32.xlu0 %v45_v0, %s51_s8  ;;  %4 = vst.msk [vmem:[#allocation0] ss:$8 sm:$0xf] %vm3_vm0, %v2_v1   ;;  %6 = vst.msk [vmem:[#allocation0 + $0x1c] sm:$0x10] %vm3_vm0, %v2_v1  }
   0x9   :  { %v37_v2 = vld [vmem:[#allocation0 + $0x20] sm:$0x1] }
   0xa   :  { %49 = vst [vmem:[%s84_s1 + $0x4] sm:$0x1] %v37_v2 }
  0x74   :  { %v10_v3 = vpop.permute.xlu0 %9  }
  0x75   :  { %12 = vst.msk [vmem:[#allocation0] ss:$8 sm:$0xf] %vm11_vm1, %v10_v3  }
  0x7c   :  { %v16_v4 = vld [vmem:[#allocation0] sm:$0x1]  ;;  %v20_v5 = vld [vmem:[#allocation0 + $0x8] sm:$0x1]  ;;  %v25_v6 = vld [vmem:[#allocation0 + $0x10] sm:$0x1] }
  0x7d   :  { %18 = vst [vmem:[%s84_s1] sm:$0x1] %v16_v4  ;;  %46 = vst [vmem:[%s84_s1 + $0x1] sm:$0x1] %v20_v5  ;;  %v31_v7 = vld [vmem:[#allocation0 + $0x18] sm:$0x1] }
  0x7e   :  { %47 = vst [vmem:[%s84_s1 + $0x2] sm:$0x1] %v25_v6  ;;  %48 = vst [vmem:[%s84_s1 + $0x3] sm:$0x1] %v31_v7 }

// kernel: resnet8_forward.11
= control target key start
LH: loop header
LB: loop body
LE: loop exit
PB: predicated region body
PF: predicated region fallthrough
CT: control target
= control target key end

     0   :  { %vm70_vm0 = vcmask 261120   ;;  %v208_v15 = vlaneseq  ;;  %vm697_vm1 = vcmask 523264   ;;  %s1387_s3 = inlined_call_operand.vmem [shape: bf16[32,64], index: 3, kind: input, shape index: {}]   ;;  %s1388_s1 = inlined_call_operand.vmem [shape: bf16[288,64], index: 1, kind: input, shape index: {}]   ;;  %s1389_s0 = inlined_call_operand.vmem [shape: f32[96,288], index: 0, kind: input, shape index: {}]   ;;  %s1390_s5 = inlined_call_operand.vmem [shape: f32[1,288], index: 5, kind: input, shape index: {}]   ;;  %s1391_s6 = inlined_call_operand.vmem [shape: f32[1,288], index: 6, kind: input, shape index: {}]   ;;  %s1392_s4 = inlined_call_operand.vmem [shape: f32[1,64], index: 4, kind: input, shape index: {}]   ;;  %s1393_s8 = inlined_call_operand.vmem [shape: f32[96,64], index: 8, kind: output, shape index: {1}]   ;;  %s1394_s2 = inlined_call_operand.vmem [shape: f32[1,64], index: 2, kind: input, shape index: {}]   ;;  %s1395_s7 = inlined_call_operand.vmem [shape: f32[96,64], index: 7, kind: output, shape index: {0}]  }
   0x1   :  { %v880_v0 = vld [vmem:[%s1387_s3] sm:$0xff]   ;;  %v883_v3 = vld [vmem:[%s1387_s3 + $0x8] sm:$0xff]   ;;  %v886_v9 = vld [vmem:[%s1388_s1 + $0x50] sm:$0xff]  }
   0x2   :  { %v881_v1 = vld [vmem:[%s1388_s1 + $0x40] sm:$0xff]   ;;  %832 = vmatprep.subr.bf16.mxu0 %v880_v0  ;;  %v884_v4 = vld [vmem:[%s1388_s1 + $0x48] sm:$0xff]   ;;  %v31_v10 = vld [vmem:[%s1389_s0 + $0x38] sm:$0xff]  ;;  %v209_v18 = vshrl.u32 %v208_v15, 7 }
   0x3   :  { %v882_v2 = vld [vmem:[%s1388_s1] sm:$0xff]   ;;  %864 = vmatprep.subr.bf16.mxu1 %v881_v1  ;;  %833 = vmatpush3.bf16.msra.mxu0 %v880_v0  ;;  %v885_v5 = vld [vmem:[%s1388_s1 + $0x8] sm:$0xff]   ;;  %v32_v11 = vld [vmem:[%s1389_s0 + $0x50] sm:$0xff] }
   0x4   :  { %872 = vmatpush3.bf16.msra.mxu1 %v882_v2  ;;  %834 = vmatprep.subr.bf16.mxu0 %v883_v3  ;;  %v966_v6 = vld [vmem:[%s1389_s0 + $0x8] sm:$0xff]  ;;  %v971_v7 = vld [vmem:[%s1389_s0 + $0x20] sm:$0xff]  ;;  %v42_v12 = vpack.c.bf16 %v32_v11, %v31_v10  ;;  %v887_v13 = vld [vmem:[%s1388_s1 + $0x10] sm:$0xff]   ;;  %v214_v27 = vsub.s32 1, %v209_v18  ;;  %v218_v28 = vsub.s32 2, %v209_v18  ;;  %v210_v30 = vsub.s32 0, %v209_v18 }
   0x5   :  { %865 = vmatprep.subr.bf16.mxu1 %v884_v4  ;;  %v41_v8 = vpack.c.bf16 %v971_v7, %v966_v6  ;;  %v888_v14 = vld [vmem:[%s1388_s1 + $0x58] sm:$0xff]   ;;  %v890_v17 = vld [vmem:[%s1388_s1 + $0x60] sm:$0xff]   ;;  %v33_v20 = vld [vmem:[%s1389_s0 + $0x68] sm:$0xff] }
   0x6   :  { %v889_v16 = vld [vmem:[%s1388_s1 + $0x18] sm:$0xff]   ;;  %v1001_v19 = vld [vmem:[%s1388_s1 + $0x20] sm:$0xff]   ;;  %v1017_v24 = vld [vmem:[%s1389_s0 + $0xb0] sm:$0xff] }
   0x7   :  { %835 = vmatpush3.bf16.msra.mxu0 %v883_v3  ;;  %836 = vmatprep.mubr.msk.bf16.mxu0 %vm70_vm0, %v41_v8  ;;  %v34_v21 = vld [vmem:[%s1389_s0 + $0x80] sm:$0xff]  ;;  %v1012_v23 = vld [vmem:[%s1389_s0 + $0x98] sm:$0xff]  ;;  %v892_v25 = vld [vmem:[%s1388_s1 + $0x68] sm:$0xff]  }
   0x8   :  { %873 = vmatpush3.bf16.msra.mxu1 %v885_v5  ;;  %772 = vmatprep.subr.bf16.mxu0 %v881_v1  ;;  %v43_v22 = vpack.c.bf16 %v34_v21, %v33_v20  ;;  %v44_v26 = vpack.c.bf16 %v1017_v24, %v1012_v23  ;;  %v1028_v29 = vld [vmem:[%s1388_s1 + $0x28] sm:$0xff]   ;;  %v1035_v31 = vld [vmem:[%s1388_s1 + $0x70] sm:$0xff]   ;;  %v1045_v33 = vld [vmem:[%s1389_s0 + $0xe0] sm:$0xff] }
   0x9   :  { %866 = vmatprep.subr.bf16.mxu1 %v886_v9  ;;  %v1040_v32 = vld [vmem:[%s1389_s0 + $0xc8] sm:$0xff]  ;;  %v206_v34 = vld [vmem:[%s1390_s5] sm:$0x7]  ;;  %v1064_v40 = vld [vmem:[%s1389_s0 + $0xf8] sm:$0xff] }
   0xa   :  { %837 = vmatmul.mubr.msk.bf16.vlgmr.msra.gmra.mrb[0].mxu0 %vm70_vm0, %v42_v12  ;;  %v259_v35 = vld [vmem:[%s1391_s6] sm:$0x7]  ;;  %v45_v36 = vpack.c.bf16 %v1045_v33, %v1040_v32  ;;  %v1055_v37 = vrot.slane %v206_v34, %v214_v27  ;;  %v1057_v38 = vrot.slane %v206_v34, %v218_v28  ;;  %v1069_v41 = vld [vmem:[%s1389_s0 + $0x110] sm:$0xff]  ;;  %v179_v45 = vld [vmem:[%s1389_s0 + $0x48] sm:$0xff]  ;;  %v1081_v46 = vrot.slane %v206_v34, %v210_v30 }
   0xb   :  { %773 = vmatpush3.bf16.msra.mxu0 %v882_v2  ;;  %840 = vmatprep.mubr.msk.bf16.mxu0 %vm70_vm0, %v43_v22  ;;  %v1059_v39 = vrot.slane %v259_v35, %v214_v27  ;;  %v176_v42 = vld [vmem:[%s1389_s0 + $0x30] sm:$0xff]  ;;  %v1074_v43 = vrot.slane %v259_v35, %v218_v28  ;;  %v46_v44 = vpack.c.bf16 %v1069_v41, %v1064_v40  ;;  %v1099_v52 = vld [vmem:[%s1388_s1 + $0x78] sm:$0xff]   ;;  %v170_v0 = vld [vmem:[%s1389_s0] sm:$0xff] }
   0xc   :  { %874 = vmatpush3.bf16.msra.mxu1 %v887_v13  ;;  %774 = vmatprep.subr.bf16.mxu0 %v884_v4  ;;  %v1083_v47 = vrot.slane %v259_v35, %v210_v30  ;;  %v1089_v48 = vld [vmem:[%s1388_s1 + $0x30] sm:$0xff]   ;;  %v230_v49 = vmul.f32 %v1055_v37, %v31_v10  ;;  %v233_v50 = vmul.f32 %v1055_v37, %v32_v11  ;;  %v173_v1 = vld [vmem:[%s1389_s0 + $0x18] sm:$0xff]  ;;  %v175_v27 = vld [vmem:[%s1389_s0 + $0x28] sm:$0xff] }
   0xd   :  { %867 = vmatprep.subr.bf16.mxu1 %v888_v14  ;;  %v224_v51 = vmul.f32 %v1055_v37, %v966_v6  ;;  %v229_v53 = vmul.f32 %v1081_v46, %v176_v42  ;;  %v232_v54 = vmul.f32 %v1081_v46, %v179_v45  ;;  %v227_v55 = vmul.f32 %v1055_v37, %v971_v7  ;;  %v1126_v2 = vld [vmem:[%s1388_s1 + $0x38] sm:$0xff]   ;;  %v182_v7 = vld [vmem:[%s1389_s0 + $0x60] sm:$0xff]  ;;  %v188_v34 = vld [vmem:[%s1389_s0 + $0x90] sm:$0xff] }
   0xe   :  { %v283_v56 = vadd.f32 %v1059_v39, %v230_v49  ;;  %v286_v57 = vadd.f32 %v1059_v39, %v233_v50  ;;  %v236_v59 = vmul.f32 %v1055_v37, %v33_v20  ;;  %v239_v63 = vmul.f32 %v1055_v37, %v34_v21  ;;  %v185_v12 = vld [vmem:[%s1389_s0 + $0x78] sm:$0xff] }
   0xf   :  { %775 = vmatpush3.bf16.msra.mxu0 %v885_v5  ;;  %v277_v58 = vadd.f32 %v1059_v39, %v224_v51  ;;  %v282_v60 = vadd.f32 %v1083_v47, %v229_v53  ;;  %v285_v61 = vadd.f32 %v1083_v47, %v232_v54  ;;  %v280_v62 = vadd.f32 %v1059_v39, %v227_v55  ;;  %v178_v51 = vld [vmem:[%s1389_s0 + $0x40] sm:$0xff] }
  0x10   :  { %875 = vmatpush3.bf16.msra.mxu1 %v889_v16  ;;  %776 = vmatprep.subr.bf16.mxu0 %v886_v9  ;;  %v319_v3 = vmax.f32 %v283_v56, 0.0  ;;  %v322_v4 = vmax.f32 %v286_v57, 0.0  ;;  %v289_v6 = vadd.f32 %v1059_v39, %v236_v59  ;;  %v292_v11 = vadd.f32 %v1059_v39, %v239_v63  ;;  %v181_v56 = vld [vmem:[%s1389_s0 + $0x58] sm:$0xff]  ;;  %v898_v57 = vld [vmem:[%s1388_s1 + $0x80] sm:$0xff]  }
  0x11   :  { %868 = vmatprep.subr.bf16.mxu1 %v890_v17  ;;  %v313_v5 = vmax.f32 %v277_v58, 0.0  ;;  %v318_v8 = vmax.f32 %v282_v60, 0.0  ;;  %v321_v9 = vmax.f32 %v285_v61, 0.0  ;;  %v316_v10 = vmax.f32 %v280_v62, 0.0 }
  0x12   :  { %841 = vmatmul.mubr.msk.bf16.gmra.mrb[4].mxu0 %vm70_vm0, %v44_v26  ;;  %v223_v15 = vmul.f32 %v1081_v46, %v170_v0  ;;  %v235_v20 = vmul.f32 %v1081_v46, %v182_v7  ;;  %v172_v26 = vld [vmem:[%s1389_s0 + $0x10] sm:$0xff]  ;;  %v242_v30 = vmul.f32 %v1055_v37, %v1012_v23  ;;  %v228_v50 = vmul.f32 %v1057_v38, %v175_v27 }
  0x13   :  { %777 = vmatpush3.bf16.msra.mxu0 %v887_v13  ;;  %844 = vmatprep.mubr.msk.bf16.mxu0 %vm70_vm0, %v45_v36  ;;  %v352_v13 = vpack.c.bf16 %v322_v4, %v319_v3  ;;  %v349_v18 = vpack.c.bf16 %v316_v10, %v313_v5  ;;  %v225_v49 = vmul.f32 %v1057_v38, %v172_v26  ;;  %v184_v5 = vld [vmem:[%s1389_s0 + $0x70] sm:$0xff] }
  0x14   :  { %876 = vmatpush3.bf16.msra.mxu1 %v1001_v19  ;;  %778 = vmatprep.subr.bf16.mxu0 %v888_v14  ;;  %v325_v14 = vmax.f32 %v289_v6, 0.0  ;;  %v276_v21 = vadd.f32 %v1083_v47, %v223_v15  ;;  %v295_v23 = vadd.f32 %v1059_v39, %v242_v30  ;;  %v241_v55 = vmul.f32 %v1081_v46, %v188_v34  ;;  %v187_v6 = vld [vmem:[%s1389_s0 + $0x88] sm:$0xff] }
  0x15   :  { %869 = vmatprep.subr.bf16.mxu1 %v892_v25  ;;  %575 = vmatprep.mubr.bf16.mxu1 %v352_v13  ;;  %v281_v59 = vadd.f32 %v1074_v43, %v228_v50  ;;  %v231_v0 = vmul.f32 %v1057_v38, %v178_v51  ;;  %v234_v4 = vmul.f32 %v1057_v38, %v181_v56 }
  0x16   :  { %v312_v35 = vmax.f32 %v276_v21, 0.0  ;;  %v331_v58 = vmax.f32 %v295_v23, 0.0  ;;  %v294_v63 = vadd.f32 %v1083_v47, %v241_v55  ;;  %v248_v10 = vmul.f32 %v1055_v37, %v1040_v32  ;;  %v197_v32 = vld [vmem:[%s1389_s0 + $0xd8] sm:$0xff]  ;;  %v196_v23 = vld [vmem:[%s1389_s0 + $0xd0] sm:$0xff] }
  0x17   :  { %779 = vmatpush3.bf16.msra.mxu0 %v889_v16  ;;  %v226_v16 = vmul.f32 %v1081_v46, %v173_v1  ;;  %v317_v3 = vmax.f32 %v281_v59, 0.0  ;;  %v251_v15 = vmul.f32 %v1055_v37, %v1045_v33 }
  0x18   :  { %877 = vmatpush3.bf16.msra.mxu1 %v1028_v29  ;;  %780 = vmatprep.subr.bf16.mxu0 %v890_v17  ;;  %v351_v17 = vpack.c.bf16 %v321_v9, %v318_v8  ;;  %v330_v8 = vmax.f32 %v294_v63, 0.0  ;;  %v284_v9 = vadd.f32 %v1074_v43, %v231_v0 }
  0x19   :  { %870 = vmatprep.subr.bf16.mxu1 %v1035_v31  ;;  %v279_v22 = vadd.f32 %v1083_v47, %v226_v16  ;;  %v301_v16 = vadd.f32 %v1059_v39, %v248_v10  ;;  %v304_v33 = vadd.f32 %v1059_v39, %v251_v15 }
  0x1a   :  { %845 = vmatmul.mubr.msk.bf16.gmra.mrb[8].mxu0 %vm70_vm0, %v46_v44  ;;  %v245_v44 = vmul.f32 %v1055_v37, %v1017_v24 }
  0x1b   :  { %781 = vmatpush3.bf16.msra.mxu0 %v1001_v19  ;;  %v328_v19 = vmax.f32 %v292_v11, 0.0  ;;  %567 = vmatprep.mubr.bf16.mxu0 %v349_v18  ;;  %v315_v36 = vmax.f32 %v279_v22, 0.0  ;;  %v194_v11 = vld [vmem:[%s1389_s0 + $0xc0] sm:$0xff]  ;;  %v240_v18 = vmul.f32 %v1057_v38, %v187_v6  ;;  %v337_v26 = vmax.f32 %v301_v16, 0.0 }
  0x1c   :  { %878 = vmatpush3.bf16.msra.mxu1 %v1089_v48  ;;  %782 = vmatprep.subr.bf16.mxu0 %v892_v25  ;;  %v238_v25 = vmul.f32 %v1081_v46, %v185_v12  ;;  %v298_v54 = vadd.f32 %v1059_v39, %v245_v44  ;;  %v899_v12 = vld [vmem:[%s1388_s1 + $0x88] sm:$0xff]   ;;  %v247_v22 = vmul.f32 %v1081_v46, %v194_v11  ;;  %v340_v34 = vmax.f32 %v304_v33, 0.0 }
  0x1d   :  { %871 = vmatprep.subr.bf16.mxu1 %v1099_v52  ;;  %v355_v28 = vpack.c.bf16 %v328_v19, %v325_v14  ;;  %v348_v24 = vpack.c.bf16 %v315_v36, %v312_v35  ;;  %v190_v19 = vld [vmem:[%s1389_s0 + $0xa0] sm:$0xff] }
  0x1e   :  { %v291_v42 = vadd.f32 %v1083_v47, %v238_v25  ;;  %v334_v62 = vmax.f32 %v298_v54, 0.0  ;;  %v193_v25 = vld [vmem:[%s1389_s0 + $0xb8] sm:$0xff]  ;;  %v300_v35 = vadd.f32 %v1083_v47, %v247_v22  ;;  %v243_v36 = vmul.f32 %v1057_v38, %v190_v19  ;;  %v200_v54 = vld [vmem:[%s1389_s0 + $0xf0] sm:$0xff] }
  0x1f   :  { %783 = vmatpush3.bf16.msra.mxu0 %v1028_v29  ;;  %v288_v29 = vadd.f32 %v1083_v47, %v235_v20  ;;  %v320_v20 = vmax.f32 %v284_v9, 0.0  ;;  %v361_v51 = vpack.c.bf16 %v340_v34, %v337_v26 }
  0x20   :  { %879 = vmatpush3.bf16.msra.mxu1 %v1126_v2  ;;  %784 = vmatprep.subr.bf16.mxu0 %v1035_v31  ;;  %v191_v31 = vld [vmem:[%s1389_s0 + $0xa8] sm:$0xff]  ;;  %v327_v53 = vmax.f32 %v291_v42, 0.0  ;;  %v358_v7 = vpack.c.bf16 %v334_v62, %v331_v58  ;;  %v336_v56 = vmax.f32 %v300_v35, 0.0  ;;  %v257_v58 = vmul.f32 %v1055_v37, %v1069_v41  ;;  %v202_v62 = vld [vmem:[%s1389_s0 + $0x100] sm:$0xff]  ;;  %v205_v41 = vld [vmem:[%s1389_s0 + $0x118] sm:$0xff] }
  0x21   :  { %v324_v45 = vmax.f32 %v288_v29, 0.0  ;;  %v244_v60 = vmul.f32 %v1081_v46, %v191_v31  ;;  %v250_v29 = vmul.f32 %v1081_v46, %v197_v32  ;;  %v255_v6 = vmul.f32 %v1057_v38, %v202_v62 }
  0x22   :  { %v258_v9 = vmul.f32 %v1057_v38, %v205_v41 }
  0x23   :  { %576 = vmatmul.mubr.bf16.vlgmr.msra.gmra.mrb[0].mxu1 %v351_v17  ;;  %785 = vmatpush3.bf16.msra.mxu0 %v1089_v48  ;;  %v278_v48 = vadd.f32 %v1074_v43, %v225_v49  ;;  %v354_v61 = vpack.c.bf16 %v327_v53, %v324_v45  ;;  %v237_v17 = vmul.f32 %v1057_v38, %v184_v5  ;;  %v199_v49 = vld [vmem:[%s1389_s0 + $0xe8] sm:$0xff] }
  0x24   :  { %583 = vmatprep.mubr.bf16.mxu1 %v355_v28  ;;  %786 = vmatprep.subr.bf16.mxu0 %v1099_v52  ;;  %v297_v52 = vadd.f32 %v1083_v47, %v244_v60  ;;  %v293_v28 = vadd.f32 %v1074_v43, %v240_v18  ;;  %v303_v31 = vadd.f32 %v1083_v47, %v250_v29 }
  0x25   :  { %v314_v1 = vmax.f32 %v278_v48, 0.0  ;;  %v290_v27 = vadd.f32 %v1074_v43, %v237_v17  ;;  %v246_v45 = vmul.f32 %v1057_v38, %v193_v25  ;;  %v254_v53 = vmul.f32 %v1055_v37, %v1064_v40  ;;  %v203_v48 = vld [vmem:[%s1389_s0 + $0x108] sm:$0xff] }
  0x26   :  { %v333_v14 = vmax.f32 %v297_v52, 0.0  ;;  %v329_v44 = vmax.f32 %v293_v28, 0.0  ;;  %v339_v59 = vmax.f32 %v303_v31, 0.0  ;;  %v249_v40 = vmul.f32 %v1057_v38, %v196_v23 }
  0x27   :  { %787 = vmatpush3.bf16.msra.mxu0 %v1126_v2  ;;  %v350_v13 = vpack.c.bf16 %v317_v3, %v314_v1  ;;  %v287_v2 = vadd.f32 %v1074_v43, %v234_v4  ;;  %v326_v42 = vmax.f32 %v290_v27, 0.0  ;;  %v307_v60 = vadd.f32 %v1059_v39, %v254_v53 }
  0x28   :  { %848 = vmatprep.subr.bf16.mxu0 %v898_v57  ;;  %v357_v30 = vpack.c.bf16 %v333_v14, %v330_v8  ;;  %v310_v1 = vadd.f32 %v1059_v39, %v257_v58  ;;  %v253_v37 = vmul.f32 %v1081_v46, %v200_v54  ;;  %v302_v3 = vadd.f32 %v1074_v43, %v249_v40 }
  0x29   :  { %v323_v21 = vmax.f32 %v287_v2, 0.0  ;;  %v356_v55 = vpack.c.bf16 %v329_v44, %v326_v42  ;;  %v256_v4 = vmul.f32 %v1081_v46, %v203_v48  ;;  %v343_v5 = vmax.f32 %v307_v60, 0.0 }
  0x2a   :  { %568 = vmatmul.mubr.bf16.vlgmr.msra.gmra.mrb[12].mxu0 %v348_v24  ;;  %v296_v24 = vadd.f32 %v1074_v43, %v243_v36  ;;  %v346_v39 = vmax.f32 %v310_v1, 0.0  ;;  %v360_v10 = vpack.c.bf16 %v339_v59, %v336_v56  ;;  %v308_v14 = vadd.f32 %v1074_v43, %v255_v6 }
  0x2b   :  { %584 = vmatmul.mubr.bf16.gmra.mrb[4].mxu1 %v354_v61  ;;  %849 = vmatpush3.bf16.msra.mxu0 %v898_v57  ;;  %v353_v50 = vpack.c.bf16 %v323_v21, %v320_v20  ;;  %v299_v57 = vadd.f32 %v1074_v43, %v246_v45  ;;  %v252_v61 = vmul.f32 %v1057_v38, %v199_v49 }
  0x2c   :  { %591 = vmatprep.mubr.bf16.mxu1 %v358_v7  ;;  %850 = vmatprep.subr.bf16.mxu0 %v899_v12  ;;  %v332_v63 = vmax.f32 %v296_v24, 0.0  ;;  %v338_v7 = vmax.f32 %v302_v3, 0.0  ;;  %v311_v46 = vadd.f32 %v1074_v43, %v258_v9  ;;  %v364_v2 = vpack.c.bf16 %v346_v39, %v343_v5 }
  0x2d   :  { %852 = vmatprep.mubr.msk.bf16.mxu0 %vm70_vm0, %v350_v13  ;;  %v335_v0 = vmax.f32 %v299_v57, 0.0  ;;  %v305_v52 = vadd.f32 %v1074_v43, %v252_v61  ;;  %v309_v13 = vadd.f32 %v1083_v47, %v256_v4  ;;  %v344_v17 = vmax.f32 %v308_v14, 0.0  ;;  %v730_v43 = vld [vmem:[%s1392_s4] ss:$0 sm:$0xff] }
  0x2e   :  { %v347_v18 = vmax.f32 %v311_v46, 0.0  ;;  %v1325_v4 = vld [vmem:[%s1394_s2] ss:$0 sm:$0xff] }
  0x2f   :  { %851 = vmatpush3.bf16.msra.mxu0 %v899_v12  ;;  %v341_v8 = vmax.f32 %v305_v52, 0.0  ;;  %v359_v11 = vpack.c.bf16 %v335_v0, %v332_v63  ;;  %v306_v12 = vadd.f32 %v1083_v47, %v253_v37  ;;  %v345_v16 = vmax.f32 %v309_v13, 0.0 }
  0x30   :  { %v365_v19 = vpack.c.bf16 %v347_v18, %v344_v17 }
  0x31   :  { %v362_v15 = vpack.c.bf16 %v341_v8, %v338_v7  ;;  %v342_v32 = vmax.f32 %v306_v12, 0.0 }
  0x32   :  { %853 = vmatmul.mubr.msk.bf16.vlgmr.msra.gmra.mrb[16].mxu0 %vm70_vm0, %v353_v50 }
  0x33   :  { %592 = vmatmul.mubr.bf16.gmra.mrb[8].mxu1 %v357_v30  ;;  %856 = vmatprep.mubr.msk.bf16.mxu0 %vm70_vm0, %v356_v55  ;;  %v363_v38 = vpack.c.bf16 %v345_v16, %v342_v32 }
  0x34   :  { %599 = vmatprep.mubr.bf16.mxu1 %v361_v51 }
  0x3a   :  { %857 = vmatmul.mubr.msk.bf16.gmra.mrb[20].mxu0 %vm70_vm0, %v359_v11 }
  0x3b   :  { %600 = vmatmul.mubr.bf16.gmra.mrb[12].mxu1 %v360_v10  ;;  %860 = vmatprep.mubr.msk.bf16.mxu0 %vm70_vm0, %v362_v15 }
  0x3c   :  { %607 = vmatprep.mubr.bf16.mxu1 %v364_v2 }
  0x42   :  { %861 = vmatmul.mubr.msk.bf16.gmra.mrb[24].mxu0 %vm70_vm0, %v365_v19 }
  0x43   :  { %608 = vmatmul.mubr.bf16.gmra.mrb[16].mxu1 %v363_v38 }
  0xdd   :  { %v838_v47 = vpop.f32.mrb[0].mxu0 }
  0xde   :  { %v132_v20 = vadd.f32 %v838_v47, %v730_v43  ;;  %v123_v21 = vpop.f32.mrb[1].mxu0 }
  0xdf   :  { %v124_v33 = vadd.f32 %v730_v43, %v123_v21  ;;  %v839_v22 = vpop.f32.mrb[2].mxu0 }
  0xe0   :  { %712 = vst.msk [vmem:[%s1393_s8 + $0x10] sm:$0xff] %vm697_vm1, %v132_v20  ;;  %v135_v25 = vadd.f32 %v839_v22, %v730_v43  ;;  %v126_v26 = vpop.f32.mrb[3].mxu0 }
  0xe1   :  { %710 = vst.msk [vmem:[%s1393_s8] sm:$0xff] %vm697_vm1, %v124_v33  ;;  %v127_v27 = vadd.f32 %v730_v43, %v126_v26 }
  0xe2   :  { %713 = vst.msk [vmem:[%s1393_s8 + $0x18] sm:$0xff] %vm697_vm1, %v135_v25 }
  0xe3   :  { %711 = vst.msk [vmem:[%s1393_s8 + $0x8] sm:$0xff] %vm697_vm1, %v127_v27 }
  0xe5   :  { %v842_v28 = vpop.f32.mrb[4].mxu0 }
  0xe6   :  { %v148_v29 = vadd.f32 %v842_v28, %v730_v43  ;;  %v139_v30 = vpop.f32.mrb[5].mxu0 }
  0xe7   :  { %v140_v34 = vadd.f32 %v730_v43, %v139_v30  ;;  %v843_v35 = vpop.f32.mrb[6].mxu0 }
  0xe8   :  { %716 = vst.msk [vmem:[%s1393_s8 + $0x30] sm:$0xff] %vm697_vm1, %v148_v29  ;;  %v151_v36 = vadd.f32 %v843_v35, %v730_v43  ;;  %v142_v42 = vpop.f32.mrb[7].mxu0 }
  0xe9   :  { %714 = vst.msk [vmem:[%s1393_s8 + $0x20] sm:$0xff] %vm697_vm1, %v140_v34  ;;  %v143_v44 = vadd.f32 %v730_v43, %v142_v42 }
  0xea   :  { %717 = vst.msk [vmem:[%s1393_s8 + $0x38] sm:$0xff] %vm697_vm1, %v151_v36 }
  0xeb   :  { %715 = vst.msk [vmem:[%s1393_s8 + $0x28] sm:$0xff] %vm697_vm1, %v143_v44 }
  0xed   :  { %v846_v31 = vpop.f32.mrb[8].mxu0 }
  0xee   :  { %v164_v45 = vadd.f32 %v846_v31, %v730_v43  ;;  %v155_v23 = vpop.f32.mrb[9].mxu0 }
  0xef   :  { %v156_v49 = vadd.f32 %v730_v43, %v155_v23  ;;  %v847_v50 = vpop.f32.mrb[10].mxu0 }
  0xf0   :  { %720 = vst.msk [vmem:[%s1393_s8 + $0x50] sm:$0xff] %vm697_vm1, %v164_v45  ;;  %v167_v51 = vadd.f32 %v847_v50, %v730_v43  ;;  %v158_v24 = vpop.f32.mrb[11].mxu0 }
  0xf1   :  { %718 = vst.msk [vmem:[%s1393_s8 + $0x40] sm:$0xff] %vm697_vm1, %v156_v49  ;;  %v159_v53 = vadd.f32 %v730_v43, %v158_v24 }
  0xf2   :  { %721 = vst.msk [vmem:[%s1393_s8 + $0x58] sm:$0xff] %vm697_vm1, %v167_v51 }
  0xf3   :  { %719 = vst.msk [vmem:[%s1393_s8 + $0x48] sm:$0xff] %vm697_vm1, %v159_v53 }
  0xf6   :  { %v794_v54 = vpop.f32.mrb[0].mxu1 }
  0xf7   :  { %v795_v55 = vpop.f32.mrb[1].mxu1 }
  0xf8   :  { %v796_v56 = vadd.f32 %v795_v55, %v794_v54  ;;  %v797_v57 = vpop.f32.mrb[2].mxu1 }
  0xf9   :  { %v798_v58 = vpop.f32.mrb[3].mxu1 }
  0xfa   :  { %v799_v48 = vadd.f32 %v798_v58, %v797_v57  ;;  %v578_v39 = vadd.f32 %v796_v56, %v1325_v4 }
  0xfc   :  { %v581_v11 = vadd.f32 %v799_v48, %v1325_v4 }
  0xfd   :  { %v788_v60 = vpop.f32.mrb[12].mxu0 }
  0xfe   :  { %v800_v59 = vpop.f32.mrb[4].mxu1  ;;  %v789_v61 = vpop.f32.mrb[13].mxu0 }
  0xff   :  { %v801_v40 = vpop.f32.mrb[5].mxu1  ;;  %v790_v63 = vadd.f32 %v789_v61, %v788_v60  ;;  %v791_v1 = vpop.f32.mrb[14].mxu0 }
 0x100   :  { %v802_v62 = vadd.f32 %v801_v40, %v800_v59  ;;  %v803_v0 = vpop.f32.mrb[6].mxu1  ;;  %v792_v41 = vpop.f32.mrb[15].mxu0 }
 0x101   :  { %v804_v37 = vpop.f32.mrb[7].mxu1  ;;  %v793_v52 = vadd.f32 %v792_v41, %v791_v1  ;;  %v570_v5 = vadd.f32 %v790_v63, %v1325_v4 }
 0x102   :  { %v805_v3 = vadd.f32 %v804_v37, %v803_v0  ;;  %v586_v47 = vadd.f32 %v802_v62, %v1325_v4 }
 0x103   :  { %v573_v2 = vadd.f32 %v793_v52, %v1325_v4 }
 0x104   :  { %v589_v29 = vadd.f32 %v805_v3, %v1325_v4 }
 0x105   :  { %v854_v7 = vpop.f32.mrb[16].mxu0 }
 0x106   :  { %v806_v6 = vpop.f32.mrb[8].mxu1  ;;  %v659_v8 = vadd.f32 %v854_v7, %v578_v39  ;;  %v650_v10 = vpop.f32.mrb[17].mxu0 }
 0x107   :  { %v807_v9 = vpop.f32.mrb[9].mxu1  ;;  %v651_v13 = vadd.f32 %v650_v10, %v570_v5  ;;  %v855_v46 = vpop.f32.mrb[18].mxu0 }
 0x108   :  { %v808_v12 = vadd.f32 %v807_v9, %v806_v6  ;;  %v809_v14 = vpop.f32.mrb[10].mxu1  ;;  %700 = vst.msk [vmem:[%s1395_s7 + $0x10] sm:$0xff] %vm697_vm1, %v659_v8  ;;  %v662_v15 = vadd.f32 %v855_v46, %v581_v11  ;;  %v653_v16 = vpop.f32.mrb[19].mxu0 }
 0x109   :  { %v810_v32 = vpop.f32.mrb[11].mxu1  ;;  %698 = vst.msk [vmem:[%s1395_s7] sm:$0xff] %vm697_vm1, %v651_v13  ;;  %v654_v18 = vadd.f32 %v653_v16, %v573_v2 }
 0x10a   :  { %v811_v17 = vadd.f32 %v810_v32, %v809_v14  ;;  %701 = vst.msk [vmem:[%s1395_s7 + $0x18] sm:$0xff] %vm697_vm1, %v662_v15  ;;  %v594_v38 = vadd.f32 %v808_v12, %v1325_v4 }
 0x10b   :  { %699 = vst.msk [vmem:[%s1395_s7 + $0x8] sm:$0xff] %vm697_vm1, %v654_v18 }
 0x10c   :  { %v597_v22 = vadd.f32 %v811_v17, %v1325_v4 }
 0x10d   :  { %v858_v43 = vpop.f32.mrb[20].mxu0 }
 0x10e   :  { %v812_v19 = vpop.f32.mrb[12].mxu1  ;;  %v675_v20 = vadd.f32 %v858_v43, %v594_v38  ;;  %v666_v33 = vpop.f32.mrb[21].mxu0 }
 0x10f   :  { %v813_v21 = vpop.f32.mrb[13].mxu1  ;;  %v667_v26 = vadd.f32 %v666_v33, %v586_v47  ;;  %v859_v28 = vpop.f32.mrb[22].mxu0 }
 0x110   :  { %v814_v25 = vadd.f32 %v813_v21, %v812_v19  ;;  %v815_v27 = vpop.f32.mrb[14].mxu1  ;;  %704 = vst.msk [vmem:[%s1395_s7 + $0x30] sm:$0xff] %vm697_vm1, %v675_v20  ;;  %v678_v30 = vadd.f32 %v859_v28, %v597_v22  ;;  %v669_v35 = vpop.f32.mrb[23].mxu0 }
 0x111   :  { %v816_v34 = vpop.f32.mrb[15].mxu1  ;;  %702 = vst.msk [vmem:[%s1395_s7 + $0x20] sm:$0xff] %vm697_vm1, %v667_v26  ;;  %v670_v42 = vadd.f32 %v669_v35, %v589_v29 }
 0x112   :  { %v817_v36 = vadd.f32 %v816_v34, %v815_v27  ;;  %705 = vst.msk [vmem:[%s1395_s7 + $0x38] sm:$0xff] %vm697_vm1, %v678_v30  ;;  %v602_v45 = vadd.f32 %v814_v25, %v1325_v4 }
 0x113   :  { %703 = vst.msk [vmem:[%s1395_s7 + $0x28] sm:$0xff] %vm697_vm1, %v670_v42 }
 0x114   :  { %v605_v54 = vadd.f32 %v817_v36, %v1325_v4 }
 0x115   :  { %v862_v31 = vpop.f32.mrb[24].mxu0 }
 0x116   :  { %v818_v44 = vpop.f32.mrb[16].mxu1  ;;  %v682_v49 = vpop.f32.mrb[25].mxu0 }
 0x117   :  { %v819_v23 = vpop.f32.mrb[17].mxu1  ;;  %v683_v51 = vadd.f32 %v682_v49, %v602_v45  ;;  %v863_v53 = vpop.f32.mrb[26].mxu0 }
 0x118   :  { %v820_v50 = vadd.f32 %v819_v23, %v818_v44  ;;  %v821_v24 = vpop.f32.mrb[18].mxu1  ;;  %v685_v56 = vpop.f32.mrb[27].mxu0 }
 0x119   :  { %v822_v55 = vpop.f32.mrb[19].mxu1  ;;  %706 = vst.msk [vmem:[%s1395_s7 + $0x40] sm:$0xff] %vm697_vm1, %v683_v51  ;;  %v686_v48 = vadd.f32 %v685_v56, %v605_v54 }
 0x11a   :  { %v610_v57 = vadd.f32 %v820_v50, %v1325_v4  ;;  %v823_v58 = vadd.f32 %v822_v55, %v821_v24 }
 0x11b   :  { %707 = vst.msk [vmem:[%s1395_s7 + $0x48] sm:$0xff] %vm697_vm1, %v686_v48 }
 0x11c   :  { %v691_v59 = vadd.f32 %v862_v31, %v610_v57  ;;  %v613_v60 = vadd.f32 %v823_v58, %v1325_v4 }
 0x11e   :  { %708 = vst.msk [vmem:[%s1395_s7 + $0x50] sm:$0xff] %vm697_vm1, %v691_v59  ;;  %v694_v40 = vadd.f32 %v863_v53, %v613_v60 }
 0x120   :  { %709 = vst.msk [vmem:[%s1395_s7 + $0x58] sm:$0xff] %vm697_vm1, %v694_v40 }

// kernel: resnet8_forward.12
= control target key start
LH: loop header
LB: loop body
LE: loop exit
PB: predicated region body
PF: predicated region fallthrough
CT: control target
= control target key end

     0   :  { %v86_v19 = vlaneseq  ;;  %vm643_vm0 = vcmask 523264   ;;  %s1763_s1 = inlined_call_operand.vmem [shape: bf16[576,64], index: 1, kind: input, shape index: {}]   ;;  %s1764_s0 = inlined_call_operand.vmem [shape: f32[96,576], index: 0, kind: input, shape index: {}]   ;;  %s1765_s3 = inlined_call_operand.vmem [shape: f32[1,576], index: 3, kind: input, shape index: {}]   ;;  %s1766_s4 = inlined_call_operand.vmem [shape: f32[1,576], index: 4, kind: input, shape index: {}]   ;;  %s1767_s2 = inlined_call_operand.vmem [shape: f32[1,64], index: 2, kind: input, shape index: {}]   ;;  %s1768_s5 = inlined_call_operand.vmem [shape: f32[96,64], index: 5, kind: input, shape index: {}]   ;;  %s1769_s6 = inlined_call_operand.vmem [shape: f32[96,64], index: 6, kind: output, shape index: {}]  }
   0x1   :  { %v1130_v0 = vld [vmem:[%s1763_s1 + $0x40] sm:$0xff]   ;;  %v1134_v4 = vld [vmem:[%s1763_s1 + $0x48] sm:$0xff]   ;;  %v1138_v8 = vld [vmem:[%s1763_s1 + $0x50] sm:$0xff]  }
   0x2   :  { %v1131_v1 = vld [vmem:[%s1763_s1 + $0xc0] sm:$0xff]   ;;  %988 = vmatprep.subr.bf16.mxu0 %v1130_v0  ;;  %v1135_v5 = vld [vmem:[%s1763_s1 + $0xc8] sm:$0xff]   ;;  %v1139_v9 = vld [vmem:[%s1763_s1 + $0xd0] sm:$0xff]   ;;  %v1270_v24 = vshrl.u32 %v86_v19, 7 }
   0x3   :  { %v1132_v2 = vld [vmem:[%s1763_s1] sm:$0xff]   ;;  %1040 = vmatprep.subr.bf16.mxu1 %v1131_v1  ;;  %v1136_v6 = vld [vmem:[%s1763_s1 + $0x8] sm:$0xff]   ;;  %v1140_v10 = vld [vmem:[%s1763_s1 + $0x10] sm:$0xff]  }
   0x4   :  { %v1133_v3 = vld [vmem:[%s1763_s1 + $0x80] sm:$0xff]   ;;  %989 = vmatpush3.bf16.msra.mxu0 %v1132_v2  ;;  %v1137_v7 = vld [vmem:[%s1763_s1 + $0x88] sm:$0xff]   ;;  %v1141_v11 = vld [vmem:[%s1763_s1 + $0x90] sm:$0xff]   ;;  %v92_v29 = vsub.s32 1, %v1270_v24  ;;  %v100_v31 = vsub.s32 3, %v1270_v24  ;;  %v88_v33 = vsub.s32 0, %v1270_v24 }
   0x5   :  { %1041 = vmatpush3.bf16.msra.mxu1 %v1133_v3  ;;  %990 = vmatprep.subr.bf16.mxu0 %v1134_v4  ;;  %v1142_v12 = vld [vmem:[%s1763_s1 + $0x58] sm:$0xff]   ;;  %v1146_v16 = vld [vmem:[%s1763_s1 + $0x60] sm:$0xff]   ;;  %v1150_v21 = vld [vmem:[%s1763_s1 + $0x68] sm:$0xff]   ;;  %v96_v35 = vsub.s32 2, %v1270_v24 }
   0x6   :  { %1042 = vmatprep.subr.bf16.mxu1 %v1135_v5  ;;  %v1143_v13 = vld [vmem:[%s1763_s1 + $0xd8] sm:$0xff]   ;;  %v1147_v17 = vld [vmem:[%s1763_s1 + $0xe0] sm:$0xff]   ;;  %v1151_v22 = vld [vmem:[%s1763_s1 + $0xe8] sm:$0xff]  }
   0x7   :  { %v1144_v14 = vld [vmem:[%s1763_s1 + $0x18] sm:$0xff]   ;;  %v1148_v18 = vld [vmem:[%s1763_s1 + $0x20] sm:$0xff]   ;;  %v1152_v23 = vld [vmem:[%s1763_s1 + $0x28] sm:$0xff]  }
   0x8   :  { %991 = vmatpush3.bf16.msra.mxu0 %v1136_v6  ;;  %v1145_v15 = vld [vmem:[%s1763_s1 + $0x98] sm:$0xff]   ;;  %v1149_v20 = vld [vmem:[%s1763_s1 + $0xa0] sm:$0xff]   ;;  %v1153_v25 = vld [vmem:[%s1763_s1 + $0xa8] sm:$0xff]  }
   0x9   :  { %1043 = vmatpush3.bf16.msra.mxu1 %v1137_v7  ;;  %992 = vmatprep.subr.bf16.mxu0 %v1138_v8  ;;  %v1154_v26 = vld [vmem:[%s1763_s1 + $0x70] sm:$0xff]   ;;  %v1158_v32 = vld [vmem:[%s1763_s1 + $0x78] sm:$0xff]   ;;  %v25_v38 = vld [vmem:[%s1764_s0 + $0x8] sm:$0xff] }
   0xa   :  { %1044 = vmatprep.subr.bf16.mxu1 %v1139_v9  ;;  %v1155_v27 = vld [vmem:[%s1763_s1 + $0xf0] sm:$0xff]   ;;  %v1159_v34 = vld [vmem:[%s1763_s1 + $0xf8] sm:$0xff]   ;;  %v1312_v40 = vld [vmem:[%s1765_s3] sm:$0x1f] }
   0xb   :  { %v1156_v28 = vld [vmem:[%s1763_s1 + $0x30] sm:$0xff]   ;;  %v1160_v36 = vld [vmem:[%s1763_s1 + $0x38] sm:$0xff]   ;;  %v1315_v41 = vrot.slane %v1312_v40, %v92_v29  ;;  %v1320_v42 = vld [vmem:[%s1766_s4] sm:$0x1f]  ;;  %v1329_v45 = vrot.slane %v1312_v40, %v100_v31  ;;  %v1332_v46 = vrot.slane %v1312_v40, %v88_v33  ;;  %v1335_v47 = vrot.slane %v1312_v40, %v96_v35 }
   0xc   :  { %993 = vmatpush3.bf16.msra.mxu0 %v1140_v10  ;;  %v1157_v30 = vld [vmem:[%s1763_s1 + $0xb0] sm:$0xff]   ;;  %v1161_v37 = vld [vmem:[%s1763_s1 + $0xb8] sm:$0xff]   ;;  %v32_v44 = vld [vmem:[%s1764_s0 + $0x40] sm:$0xff]  ;;  %v1338_v48 = vrot.slane %v1320_v42, %v92_v29  ;;  %v1341_v49 = vrot.slane %v1320_v42, %v100_v31  ;;  %v1350_v52 = vrot.slane %v1320_v42, %v88_v33  ;;  %v1356_v54 = vrot.slane %v1320_v42, %v96_v35 }
   0xd   :  { %1045 = vmatpush3.bf16.msra.mxu1 %v1141_v11  ;;  %994 = vmatprep.subr.bf16.mxu0 %v1142_v12  ;;  %v30_v39 = vld [vmem:[%s1764_s0 + $0x30] sm:$0xff]  ;;  %v27_v43 = vld [vmem:[%s1764_s0 + $0x18] sm:$0xff]  ;;  %v24_v50 = vld [vmem:[%s1764_s0] sm:$0xff]  ;;  %v112_v55 = vmul.f32 %v1315_v41, %v25_v38  ;;  %v119_v58 = vmul.f32 %v1329_v45, %v32_v44 }
   0xe   :  { %1046 = vmatprep.subr.bf16.mxu1 %v1143_v13  ;;  %v29_v51 = vld [vmem:[%s1764_s0 + $0x28] sm:$0xff]  ;;  %v26_v53 = vld [vmem:[%s1764_s0 + $0x10] sm:$0xff]  ;;  %v117_v56 = vmul.f32 %v1315_v41, %v30_v39  ;;  %v114_v57 = vmul.f32 %v1329_v45, %v27_v43  ;;  %v31_v59 = vld [vmem:[%s1764_s0 + $0x38] sm:$0xff]  ;;  %v111_v60 = vmul.f32 %v1332_v46, %v24_v50  ;;  %v104_v50 = vsub.s32 4, %v1270_v24 }
   0xf   :  { %v116_v61 = vmul.f32 %v1332_v46, %v29_v51  ;;  %v113_v62 = vmul.f32 %v1335_v47, %v26_v53  ;;  %v118_v63 = vmul.f32 %v1335_v47, %v31_v59  ;;  %v1162_v0 = vld [vmem:[%s1763_s1 + $0x100] sm:$0xff]   ;;  %v199_v1 = vadd.f32 %v1338_v48, %v112_v55  ;;  %v35_v5 = vld [vmem:[%s1764_s0 + $0x58] sm:$0xff]  ;;  %v37_v11 = vld [vmem:[%s1764_s0 + $0x68] sm:$0xff] }
  0x10   :  { %995 = vmatpush3.bf16.msra.mxu0 %v1144_v14  ;;  %v204_v2 = vadd.f32 %v1338_v48, %v117_v56  ;;  %v201_v3 = vadd.f32 %v1341_v49, %v114_v57  ;;  %v206_v4 = vadd.f32 %v1341_v49, %v119_v58  ;;  %v40_v6 = vld [vmem:[%s1764_s0 + $0x80] sm:$0xff]  ;;  %v198_v7 = vadd.f32 %v1350_v52, %v111_v60  ;;  %v42_v12 = vld [vmem:[%s1764_s0 + $0x90] sm:$0xff]  ;;  %v1163_v33 = vld [vmem:[%s1763_s1 + $0x108] sm:$0xff]  }
  0x11   :  { %1047 = vmatpush3.bf16.msra.mxu1 %v1145_v15  ;;  %996 = vmatprep.subr.bf16.mxu0 %v1146_v16  ;;  %v203_v8 = vadd.f32 %v1350_v52, %v116_v61  ;;  %v200_v9 = vadd.f32 %v1356_v54, %v113_v62  ;;  %v205_v10 = vadd.f32 %v1356_v54, %v118_v63  ;;  %v34_v13 = vld [vmem:[%s1764_s0 + $0x50] sm:$0xff]  ;;  %v259_v14 = vmax.f32 %v199_v1, 0.0  ;;  %v45_v44 = vld [vmem:[%s1764_s0 + $0xa8] sm:$0xff]  ;;  %v47_v62 = vld [vmem:[%s1764_s0 + $0xb8] sm:$0xff] }
  0x12   :  { %1048 = vmatprep.subr.bf16.mxu1 %v1147_v17  ;;  %v264_v15 = vmax.f32 %v204_v2, 0.0  ;;  %v261_v16 = vmax.f32 %v201_v3, 0.0  ;;  %v266_v17 = vmax.f32 %v206_v4, 0.0  ;;  %v129_v31 = vmul.f32 %v1329_v45, %v42_v12  ;;  %v50_v57 = vld [vmem:[%s1764_s0 + $0xd0] sm:$0xff]  ;;  %v52_v63 = vld [vmem:[%s1764_s0 + $0xe0] sm:$0xff] }
  0x13   :  { %v263_v19 = vmax.f32 %v203_v8, 0.0  ;;  %v132_v3 = vmul.f32 %v1315_v41, %v45_v44  ;;  %v44_v4 = vld [vmem:[%s1764_s0 + $0xa0] sm:$0xff] }
  0x14   :  { %997 = vmatpush3.bf16.msra.mxu0 %v1148_v18  ;;  %v258_v18 = vmax.f32 %v198_v7, 0.0  ;;  %v216_v39 = vadd.f32 %v1341_v49, %v129_v31 }
  0x15   :  { %1049 = vmatpush3.bf16.msra.mxu1 %v1149_v20  ;;  %998 = vmatprep.subr.bf16.mxu0 %v1150_v21  ;;  %v260_v20 = vmax.f32 %v200_v9, 0.0  ;;  %v265_v21 = vmax.f32 %v205_v10, 0.0  ;;  %v137_v9 = vmul.f32 %v1315_v41, %v50_v57  ;;  %v49_v10 = vld [vmem:[%s1764_s0 + $0xc8] sm:$0xff]  ;;  %v219_v12 = vadd.f32 %v1338_v48, %v132_v3 }
  0x16   :  { %1050 = vmatprep.subr.bf16.mxu1 %v1151_v22  ;;  %v319_v22 = vpack.c.bf16 %v264_v15, %v259_v14  ;;  %v276_v59 = vmax.f32 %v216_v39, 0.0  ;;  %v139_v14 = vmul.f32 %v1329_v45, %v52_v63  ;;  %v46_v15 = vld [vmem:[%s1764_s0 + $0xb0] sm:$0xff] }
  0x17   :  { %v320_v29 = vpack.c.bf16 %v265_v21, %v260_v20  ;;  %v51_v20 = vld [vmem:[%s1764_s0 + $0xd8] sm:$0xff]  ;;  %v279_v21 = vmax.f32 %v219_v12, 0.0  ;;  %v133_v31 = vmul.f32 %v1335_v47, %v46_v15  ;;  %v70_v15 = vld [vmem:[%s1764_s0 + $0x170] sm:$0xff] }
  0x18   :  { %999 = vmatpush3.bf16.msra.mxu0 %v1152_v23  ;;  %v321_v23 = vpack.c.bf16 %v266_v17, %v261_v16  ;;  %694 = vmatprep.mubr.bf16.mxu0 %v319_v22 }
  0x19   :  { %1051 = vmatpush3.bf16.msra.mxu1 %v1153_v25  ;;  %1000 = vmatprep.subr.bf16.mxu0 %v1154_v26  ;;  %v122_v25 = vmul.f32 %v1315_v41, %v35_v5  ;;  %v127_v26 = vmul.f32 %v1315_v41, %v40_v6  ;;  %v1164_v5 = vld [vmem:[%s1763_s1 + $0x110] sm:$0xff]   ;;  %v220_v44 = vadd.f32 %v1356_v54, %v133_v31 }
  0x1a   :  { %1052 = vmatprep.subr.bf16.mxu1 %v1155_v27  ;;  %v39_v27 = vld [vmem:[%s1764_s0 + $0x78] sm:$0xff]  ;;  %775 = vmatprep.mubr.bf16.mxu1 %v321_v23  ;;  %v226_v23 = vadd.f32 %v1341_v49, %v139_v14  ;;  %v157_v31 = vmul.f32 %v1315_v41, %v70_v15 }
  0x1b   :  { %v214_v35 = vadd.f32 %v1338_v48, %v127_v26  ;;  %v126_v43 = vmul.f32 %v1332_v46, %v39_v27  ;;  %v55_v26 = vld [vmem:[%s1764_s0 + $0xf8] sm:$0xff] }
  0x1c   :  { %1001 = vmatpush3.bf16.msra.mxu0 %v1156_v28  ;;  %v318_v28 = vpack.c.bf16 %v263_v19, %v258_v18  ;;  %v224_v18 = vadd.f32 %v1338_v48, %v137_v9  ;;  %v131_v19 = vmul.f32 %v1332_v46, %v44_v4  ;;  %v1165_v27 = vld [vmem:[%s1763_s1 + $0x118] sm:$0xff]  }
  0x1d   :  { %1053 = vmatpush3.bf16.msra.mxu1 %v1157_v30  ;;  %1002 = vmatprep.subr.bf16.mxu0 %v1158_v32  ;;  %v124_v30 = vmul.f32 %v1329_v45, %v37_v11  ;;  %v36_v32 = vld [vmem:[%s1764_s0 + $0x60] sm:$0xff]  ;;  %v274_v53 = vmax.f32 %v214_v35, 0.0  ;;  %v213_v60 = vadd.f32 %v1350_v52, %v126_v43  ;;  %v79_v15 = vld [vmem:[%s1764_s0 + $0x1b8] sm:$0xff] }
  0x1e   :  { %1054 = vmatprep.subr.bf16.mxu1 %v1159_v34  ;;  %v209_v34 = vadd.f32 %v1338_v48, %v122_v25  ;;  %v123_v56 = vmul.f32 %v1335_v47, %v36_v32  ;;  %v136_v25 = vmul.f32 %v1332_v46, %v49_v10  ;;  %v60_v32 = vld [vmem:[%s1764_s0 + $0x120] sm:$0xff]  ;;  %v65_v10 = vld [vmem:[%s1764_s0 + $0x148] sm:$0xff] }
  0x1f   :  { %v211_v38 = vadd.f32 %v1341_v49, %v124_v30  ;;  %v273_v7 = vmax.f32 %v213_v60, 0.0  ;;  %v218_v30 = vadd.f32 %v1350_v52, %v131_v19  ;;  %v280_v60 = vmax.f32 %v220_v44, 0.0 }
  0x20   :  { %1003 = vmatpush3.bf16.msra.mxu0 %v1160_v36  ;;  %v121_v36 = vmul.f32 %v1332_v46, %v34_v13  ;;  %v269_v51 = vmax.f32 %v209_v34, 0.0  ;;  %v210_v2 = vadd.f32 %v1356_v54, %v123_v56  ;;  %v134_v13 = vmul.f32 %v1329_v45, %v47_v62 }
  0x21   :  { %1055 = vmatpush3.bf16.msra.mxu1 %v1161_v37  ;;  %1102 = vmatprep.subr.bf16.mxu0 %v1162_v0  ;;  %v41_v37 = vld [vmem:[%s1764_s0 + $0x88] sm:$0xff]  ;;  %v271_v58 = vmax.f32 %v211_v38, 0.0  ;;  %v286_v34 = vmax.f32 %v226_v23, 0.0  ;;  %v223_v35 = vadd.f32 %v1350_v52, %v136_v25  ;;  %v62_v38 = vld [vmem:[%s1764_s0 + $0x130] sm:$0xff]  ;;  %v278_v43 = vmax.f32 %v218_v30, 0.0 }
  0x22   :  { %1122 = vmatprep.subr.bf16.mxu1 %v1162_v0  ;;  %v208_v55 = vadd.f32 %v1350_v52, %v121_v36  ;;  %v128_v61 = vmul.f32 %v1335_v47, %v41_v37  ;;  %v270_v11 = vmax.f32 %v210_v2, 0.0  ;;  %v221_v22 = vadd.f32 %v1341_v49, %v134_v13  ;;  %v57_v37 = vld [vmem:[%s1764_s0 + $0x108] sm:$0xff] }
  0x23   :  { %695 = vmatmul.mubr.bf16.vlgmr.msra.gmra.mrb[0].mxu0 %v318_v28  ;;  %v326_v6 = vpack.c.bf16 %v276_v59, %v271_v58  ;;  %v138_v36 = vmul.f32 %v1335_v47, %v51_v20  ;;  %v283_v56 = vmax.f32 %v223_v35, 0.0  ;;  %v147_v58 = vmul.f32 %v1315_v41, %v60_v32  ;;  %v59_v59 = vld [vmem:[%s1764_s0 + $0x118] sm:$0xff]  ;;  %v69_v32 = vld [vmem:[%s1764_s0 + $0x168] sm:$0xff] }
  0x24   :  { %776 = vmatmul.mubr.bf16.vlgmr.msra.gmra.mrb[0].mxu1 %v320_v29  ;;  %1103 = vmatpush3.bf16.msra.mxu0 %v1162_v0  ;;  %v268_v1 = vmax.f32 %v208_v55, 0.0  ;;  %v215_v8 = vadd.f32 %v1356_v54, %v128_v61  ;;  %v284_v29 = vmax.f32 %v224_v18, 0.0  ;;  %v144_v62 = vmul.f32 %v1329_v45, %v57_v37  ;;  %v67_v20 = vld [vmem:[%s1764_s0 + $0x158] sm:$0xff]  ;;  %v66_v37 = vld [vmem:[%s1764_s0 + $0x150] sm:$0xff] }
  0x25   :  { %1126 = vmatpush3.bf16.msra.mxu1 %v1162_v0  ;;  %1104 = vmatprep.subr.bf16.mxu0 %v1163_v33  ;;  %v324_v0 = vpack.c.bf16 %v274_v53, %v269_v51  ;;  %v142_v51 = vmul.f32 %v1315_v41, %v55_v26  ;;  %v54_v53 = vld [vmem:[%s1764_s0 + $0xf0] sm:$0xff]  ;;  %v225_v57 = vadd.f32 %v1356_v54, %v138_v36 }
  0x26   :  { %1123 = vmatprep.subr.bf16.mxu1 %v1163_v33  ;;  %783 = vmatprep.mubr.bf16.mxu1 %v326_v6  ;;  %v323_v16 = vpack.c.bf16 %v273_v7, %v268_v1  ;;  %v275_v17 = vmax.f32 %v215_v8, 0.0  ;;  %v329_v39 = vpack.c.bf16 %v284_v29, %v279_v21  ;;  %v149_v63 = vmul.f32 %v1329_v45, %v62_v38  ;;  %v72_v21 = vld [vmem:[%s1764_s0 + $0x180] sm:$0xff] }
  0x27   :  { %702 = vmatprep.mubr.bf16.mxu0 %v324_v0  ;;  %v229_v61 = vadd.f32 %v1338_v48, %v142_v51  ;;  %v56_v0 = vld [vmem:[%s1764_s0 + $0x100] sm:$0xff]  ;;  %v328_v1 = vpack.c.bf16 %v283_v56, %v278_v43  ;;  %v285_v2 = vmax.f32 %v225_v57, 0.0  ;;  %v234_v3 = vadd.f32 %v1338_v48, %v147_v58  ;;  %v71_v51 = vld [vmem:[%s1764_s0 + $0x178] sm:$0xff] }
  0x28   :  { %1105 = vmatpush3.bf16.msra.mxu0 %v1163_v33  ;;  %v325_v28 = vpack.c.bf16 %v275_v17, %v270_v11  ;;  %v141_v4 = vmul.f32 %v1332_v46, %v54_v53  ;;  %v231_v7 = vadd.f32 %v1341_v49, %v144_v62  ;;  %v236_v8 = vadd.f32 %v1341_v49, %v149_v63  ;;  %v75_v58 = vld [vmem:[%s1764_s0 + $0x198] sm:$0xff]  ;;  %v80_v63 = vld [vmem:[%s1764_s0 + $0x1c0] sm:$0xff] }
  0x29   :  { %1127 = vmatpush3.bf16.msra.mxu1 %v1163_v33  ;;  %1106 = vmatprep.subr.bf16.mxu0 %v1164_v5  ;;  %v281_v33 = vmax.f32 %v221_v22, 0.0  ;;  %v289_v6 = vmax.f32 %v229_v61, 0.0  ;;  %v146_v9 = vmul.f32 %v1332_v46, %v59_v59  ;;  %v330_v11 = vpack.c.bf16 %v285_v2, %v280_v60 }
  0x2a   :  { %1124 = vmatprep.subr.bf16.mxu1 %v1164_v5  ;;  %v294_v12 = vmax.f32 %v234_v3, 0.0  ;;  %v228_v13 = vadd.f32 %v1350_v52, %v141_v4  ;;  %v143_v14 = vmul.f32 %v1335_v47, %v56_v0  ;;  %v296_v17 = vmax.f32 %v236_v8, 0.0  ;;  %v77_v4 = vld [vmem:[%s1764_s0 + $0x1a8] sm:$0xff] }
  0x2b   :  { %703 = vmatmul.mubr.bf16.gmra.mrb[4].mxu0 %v323_v16  ;;  %v331_v55 = vpack.c.bf16 %v286_v34, %v281_v33  ;;  %v291_v16 = vmax.f32 %v231_v7, 0.0  ;;  %v233_v18 = vadd.f32 %v1350_v52, %v146_v9  ;;  %v152_v26 = vmul.f32 %v1315_v41, %v65_v10  ;;  %v74_v10 = vld [vmem:[%s1764_s0 + $0x190] sm:$0xff] }
  0x2c   :  { %784 = vmatmul.mubr.bf16.gmra.mrb[4].mxu1 %v325_v28  ;;  %1107 = vmatpush3.bf16.msra.mxu0 %v1164_v5  ;;  %v334_v22 = vpack.c.bf16 %v294_v12, %v289_v6  ;;  %v288_v23 = vmax.f32 %v228_v13, 0.0  ;;  %v230_v25 = vadd.f32 %v1356_v54, %v143_v14  ;;  %v154_v35 = vmul.f32 %v1329_v45, %v67_v20  ;;  %v76_v20 = vld [vmem:[%s1764_s0 + $0x1a0] sm:$0xff] }
  0x2d   :  { %1128 = vmatpush3.bf16.msra.mxu1 %v1164_v5  ;;  %1108 = vmatprep.subr.bf16.mxu0 %v1165_v27  ;;  %v61_v5 = vld [vmem:[%s1764_s0 + $0x128] sm:$0xff]  ;;  %v336_v28 = vpack.c.bf16 %v296_v17, %v291_v16  ;;  %v293_v29 = vmax.f32 %v233_v18, 0.0  ;;  %v239_v34 = vadd.f32 %v1338_v48, %v152_v26  ;;  %v159_v36 = vmul.f32 %v1329_v45, %v72_v21 }
  0x2e   :  { %1125 = vmatprep.subr.bf16.mxu1 %v1165_v27  ;;  %710 = vmatprep.mubr.bf16.mxu0 %v329_v39  ;;  %v148_v19 = vmul.f32 %v1335_v47, %v61_v5  ;;  %v290_v33 = vmax.f32 %v230_v25, 0.0  ;;  %v244_v43 = vadd.f32 %v1338_v48, %v157_v31  ;;  %v156_v57 = vmul.f32 %v1332_v46, %v69_v32  ;;  %v82_v5 = vld [vmem:[%s1764_s0 + $0x1d0] sm:$0xff]  ;;  %v81_v25 = vld [vmem:[%s1764_s0 + $0x1c8] sm:$0xff] }
  0x2f   :  { %791 = vmatprep.mubr.bf16.mxu1 %v331_v55  ;;  %v333_v38 = vpack.c.bf16 %v293_v29, %v288_v23  ;;  %v299_v53 = vmax.f32 %v239_v34, 0.0  ;;  %v241_v55 = vadd.f32 %v1341_v49, %v154_v35  ;;  %v246_v56 = vadd.f32 %v1341_v49, %v159_v36  ;;  %v28_v36 = vld [vmem:[%s1764_s0 + $0x20] sm:$0xff] }
  0x30   :  { %1109 = vmatpush3.bf16.msra.mxu0 %v1165_v27  ;;  %v235_v30 = vadd.f32 %v1356_v54, %v148_v19  ;;  %v304_v60 = vmax.f32 %v244_v43, 0.0  ;;  %v153_v62 = vmul.f32 %v1335_v47, %v66_v37  ;;  %v243_v2 = vadd.f32 %v1350_v52, %v156_v57  ;;  %v38_v43 = vld [vmem:[%s1764_s0 + $0x70] sm:$0xff] }
  0x31   :  { %1129 = vmatpush3.bf16.msra.mxu1 %v1165_v27  ;;  %v64_v27 = vld [vmem:[%s1764_s0 + $0x140] sm:$0xff]  ;;  %v301_v0 = vmax.f32 %v241_v55, 0.0  ;;  %v158_v3 = vmul.f32 %v1335_v47, %v71_v51  ;;  %v162_v9 = vmul.f32 %v1315_v41, %v75_v58  ;;  %v167_v14 = vmul.f32 %v1315_v41, %v80_v63 }
  0x32   :  { %v295_v39 = vmax.f32 %v235_v30, 0.0  ;;  %v151_v44 = vmul.f32 %v1332_v46, %v64_v27  ;;  %v339_v6 = vpack.c.bf16 %v304_v60, %v299_v53  ;;  %v240_v8 = vadd.f32 %v1356_v54, %v153_v62 }
  0x33   :  { %711 = vmatmul.mubr.bf16.gmra.mrb[8].mxu0 %v328_v1  ;;  %v306_v1 = vmax.f32 %v246_v56, 0.0  ;;  %v303_v12 = vmax.f32 %v243_v2, 0.0  ;;  %v245_v13 = vadd.f32 %v1356_v54, %v158_v3  ;;  %v249_v17 = vadd.f32 %v1338_v48, %v162_v9 }
  0x34   :  { %792 = vmatmul.mubr.bf16.gmra.mrb[8].mxu1 %v330_v11  ;;  %718 = vmatprep.mubr.bf16.mxu0 %v334_v22  ;;  %v335_v59 = vpack.c.bf16 %v295_v39, %v290_v33  ;;  %v238_v61 = vadd.f32 %v1350_v52, %v151_v44  ;;  %v300_v16 = vmax.f32 %v240_v8, 0.0  ;;  %v164_v18 = vmul.f32 %v1329_v45, %v77_v4 }
  0x35   :  { %799 = vmatprep.mubr.bf16.mxu1 %v336_v28  ;;  %v341_v11 = vpack.c.bf16 %v306_v1, %v301_v0  ;;  %v169_v19 = vmul.f32 %v1329_v45, %v82_v5  ;;  %v305_v41 = vmax.f32 %v245_v13, 0.0  ;;  %v254_v22 = vadd.f32 %v1338_v48, %v167_v14  ;;  %v63_v0 = vld [vmem:[%s1764_s0 + $0x138] sm:$0xff]  ;;  %v68_v5 = vld [vmem:[%s1764_s0 + $0x160] sm:$0xff] }
  0x36   :  { %v298_v7 = vmax.f32 %v238_v61, 0.0  ;;  %v161_v23 = vmul.f32 %v1332_v46, %v74_v10  ;;  %v309_v26 = vmax.f32 %v249_v17, 0.0  ;;  %v251_v27 = vadd.f32 %v1341_v49, %v164_v18  ;;  %v78_v18 = vld [vmem:[%s1764_s0 + $0x1b0] sm:$0xff] }
  0x37   :  { %v256_v45 = vadd.f32 %v1341_v49, %v169_v19  ;;  %v166_v28 = vmul.f32 %v1332_v46, %v79_v15  ;;  %v340_v29 = vpack.c.bf16 %v305_v41, %v300_v16  ;;  %v314_v30 = vmax.f32 %v254_v22, 0.0  ;;  %v33_v46 = vld [vmem:[%s1764_s0 + $0x48] sm:$0xff]  ;;  %v48_v49 = vld [vmem:[%s1764_s0 + $0xc0] sm:$0xff]  ;;  %v83_v19 = vld [vmem:[%s1764_s0 + $0x1d8] sm:$0xff] }
  0x38   :  { %v338_v21 = vpack.c.bf16 %v303_v12, %v298_v7  ;;  %v248_v31 = vadd.f32 %v1350_v52, %v161_v23  ;;  %v163_v32 = vmul.f32 %v1335_v47, %v76_v20  ;;  %v311_v48 = vmax.f32 %v251_v27, 0.0 }
  0x39   :  { %v316_v33 = vmax.f32 %v256_v45, 0.0  ;;  %v253_v34 = vadd.f32 %v1350_v52, %v166_v28  ;;  %v168_v35 = vmul.f32 %v1335_v47, %v81_v25  ;;  %v344_v37 = vpack.c.bf16 %v314_v30, %v309_v26  ;;  %v53_v52 = vld [vmem:[%s1764_s0 + $0xe8] sm:$0xff] }
  0x3a   :  { %v250_v39 = vadd.f32 %v1356_v54, %v163_v32  ;;  %v105_v47 = vrot.slane %v1312_v40, %v104_v50  ;;  %v192_v55 = vrot.slane %v1320_v42, %v104_v50  ;;  %v43_v40 = vld [vmem:[%s1764_s0 + $0x98] sm:$0xff] }
  0x3b   :  { %719 = vmatmul.mubr.bf16.gmra.mrb[12].mxu0 %v333_v38  ;;  %v308_v38 = vmax.f32 %v248_v31, 0.0  ;;  %v346_v44 = vpack.c.bf16 %v316_v33, %v311_v48  ;;  %v313_v51 = vmax.f32 %v253_v34, 0.0  ;;  %v255_v53 = vadd.f32 %v1356_v54, %v168_v35 }
  0x3c   :  { %800 = vmatmul.mubr.bf16.gmra.mrb[12].mxu1 %v335_v59  ;;  %726 = vmatprep.mubr.bf16.mxu0 %v339_v6  ;;  %v115_v56 = vmul.f32 %v105_v47, %v28_v36  ;;  %v120_v57 = vmul.f32 %v105_v47, %v33_v46  ;;  %v135_v58 = vmul.f32 %v105_v47, %v48_v49  ;;  %v58_v59 = vld [vmem:[%s1764_s0 + $0x110] sm:$0xff]  ;;  %v310_v60 = vmax.f32 %v250_v39, 0.0  ;;  %v73_v6 = vld [vmem:[%s1764_s0 + $0x188] sm:$0xff] }
  0x3d   :  { %807 = vmatprep.mubr.bf16.mxu1 %v341_v11  ;;  %v315_v54 = vmax.f32 %v255_v53, 0.0  ;;  %v140_v61 = vmul.f32 %v105_v47, %v53_v52  ;;  %v125_v24 = vmul.f32 %v105_v47, %v38_v43  ;;  %v130_v63 = vmul.f32 %v105_v47, %v43_v40 }
  0x3e   :  { %v202_v42 = vadd.f32 %v192_v55, %v115_v56  ;;  %v207_v50 = vadd.f32 %v192_v55, %v120_v57  ;;  %v222_v62 = vadd.f32 %v192_v55, %v135_v58  ;;  %v343_v1 = vpack.c.bf16 %v313_v51, %v308_v38  ;;  %v1641_v38 = vld [vmem:[%s1767_s2] ss:$0 sm:$0xff] }
  0x3f   :  { %v227_v2 = vadd.f32 %v192_v55, %v140_v61  ;;  %v212_v3 = vadd.f32 %v192_v55, %v125_v24  ;;  %v145_v4 = vmul.f32 %v105_v47, %v58_v59  ;;  %v217_v10 = vadd.f32 %v192_v55, %v130_v63 }
  0x40   :  { %v262_v7 = vmax.f32 %v202_v42, 0.0  ;;  %v267_v8 = vmax.f32 %v207_v50, 0.0  ;;  %v282_v9 = vmax.f32 %v222_v62, 0.0  ;;  %v345_v11 = vpack.c.bf16 %v315_v54, %v310_v60 }
  0x41   :  { %v287_v12 = vmax.f32 %v227_v2, 0.0  ;;  %v150_v13 = vmul.f32 %v105_v47, %v63_v0  ;;  %v232_v14 = vadd.f32 %v192_v55, %v145_v4  ;;  %v155_v16 = vmul.f32 %v105_v47, %v68_v5 }
  0x42   :  { %v322_v15 = vpack.c.bf16 %v267_v8, %v262_v7  ;;  %v160_v17 = vmul.f32 %v105_v47, %v73_v6  ;;  %v277_v41 = vmax.f32 %v217_v10, 0.0  ;;  %v165_v45 = vmul.f32 %v105_v47, %v78_v18 }
  0x43   :  { %727 = vmatmul.mubr.bf16.gmra.mrb[16].mxu0 %v338_v21  ;;  %v332_v20 = vpack.c.bf16 %v287_v12, %v282_v9  ;;  %v272_v21 = vmax.f32 %v212_v3, 0.0  ;;  %v237_v22 = vadd.f32 %v192_v55, %v150_v13  ;;  %v242_v23 = vadd.f32 %v192_v55, %v155_v16 }
  0x44   :  { %734 = vmatprep.mubr.bf16.mxu0 %v344_v37  ;;  %808 = vmatmul.mubr.bf16.gmra.mrb[16].mxu1 %v340_v29  ;;  %v247_v25 = vadd.f32 %v192_v55, %v160_v17  ;;  %v292_v26 = vmax.f32 %v232_v14, 0.0  ;;  %v170_v28 = vmul.f32 %v105_v47, %v83_v19  ;;  %v252_v48 = vadd.f32 %v192_v55, %v165_v45 }
  0x45   :  { %815 = vmatprep.mubr.bf16.mxu1 %v346_v44  ;;  %v297_v27 = vmax.f32 %v237_v22, 0.0  ;;  %v302_v29 = vmax.f32 %v242_v23, 0.0  ;;  %v327_v31 = vpack.c.bf16 %v277_v41, %v272_v21 }
  0x46   :  { %v307_v30 = vmax.f32 %v247_v25, 0.0  ;;  %v257_v33 = vadd.f32 %v192_v55, %v170_v28  ;;  %v312_v35 = vmax.f32 %v252_v48, 0.0 }
  0x47   :  { %v337_v32 = vpack.c.bf16 %v297_v27, %v292_v26 }
  0x48   :  { %v342_v34 = vpack.c.bf16 %v307_v30, %v302_v29  ;;  %v317_v36 = vmax.f32 %v257_v33, 0.0 }
  0x4a   :  { %v347_v46 = vpack.c.bf16 %v317_v36, %v312_v35 }
  0x4b   :  { %735 = vmatmul.mubr.bf16.gmra.mrb[20].mxu0 %v343_v1 }
  0x4c   :  { %1110 = vmatprep.mubr.msk.bf16.mxu0 %vm643_vm0, %v322_v15  ;;  %816 = vmatmul.mubr.bf16.gmra.mrb[20].mxu1 %v345_v11 }
  0x4d   :  { %1114 = vmatprep.mubr.msk.bf16.mxu1 %vm643_vm0, %v332_v20 }
  0x53   :  { %1111 = vmatmul.mubr.msk.bf16.vlgmr.msra.gmra.mrb[24].mxu0 %vm643_vm0, %v327_v31 }
  0x54   :  { %1115 = vmatmul.mubr.msk.bf16.vlgmr.msra.gmra.mrb[24].mxu1 %vm643_vm0, %v337_v32 }
  0x55   :  { %1118 = vmatprep.mubr.msk.bf16.mxu1 %vm643_vm0, %v342_v34 }
  0x5c   :  { %1119 = vmatmul.mubr.msk.bf16.gmra.mrb[28].mxu1 %vm643_vm0, %v347_v46 }
  0xf6   :  { %v1004_v49 = vpop.f32.mrb[0].mxu0 }
  0xf7   :  { %v1056_v37 = vpop.f32.mrb[0].mxu1  ;;  %v1005_v39 = vpop.f32.mrb[1].mxu0 }
  0xf8   :  { %v1057_v47 = vpop.f32.mrb[1].mxu1  ;;  %v1006_v52 = vadd.f32 %v1005_v39, %v1004_v49  ;;  %v1007_v44 = vpop.f32.mrb[2].mxu0 }
  0xf9   :  { %v1058_v43 = vadd.f32 %v1057_v47, %v1056_v37  ;;  %v1059_v51 = vpop.f32.mrb[2].mxu1  ;;  %v1008_v53 = vpop.f32.mrb[3].mxu0 }
  0xfa   :  { %v1060_v55 = vpop.f32.mrb[3].mxu1  ;;  %v697_v40 = vadd.f32 %v1006_v52, %v1641_v38  ;;  %v1009_v56 = vadd.f32 %v1008_v53, %v1007_v44 }
  0xfb   :  { %v1061_v57 = vadd.f32 %v1060_v55, %v1059_v51 }
  0xfc   :  { %v700_v58 = vadd.f32 %v1009_v56, %v1641_v38  ;;  %v1645_v59 = vadd.f32 %v1058_v43, %v697_v40 }
  0xfe   :  { %v1010_v60 = vpop.f32.mrb[4].mxu0  ;;  %v1647_v54 = vadd.f32 %v1061_v57, %v700_v58 }
  0xff   :  { %v1011_v61 = vpop.f32.mrb[5].mxu0  ;;  %v1062_v24 = vpop.f32.mrb[4].mxu1 }
 0x100   :  { %v1012_v42 = vadd.f32 %v1011_v61, %v1010_v60  ;;  %v1013_v50 = vpop.f32.mrb[6].mxu0  ;;  %v1063_v62 = vpop.f32.mrb[5].mxu1 }
 0x101   :  { %v1014_v63 = vpop.f32.mrb[7].mxu0  ;;  %v1064_v1 = vadd.f32 %v1063_v62, %v1062_v24  ;;  %v1065_v2 = vpop.f32.mrb[6].mxu1 }
 0x102   :  { %v705_v0 = vadd.f32 %v1012_v42, %v1641_v38  ;;  %v1015_v3 = vadd.f32 %v1014_v63, %v1013_v50  ;;  %v1066_v4 = vpop.f32.mrb[7].mxu1 }
 0x103   :  { %v1067_v6 = vadd.f32 %v1066_v4, %v1065_v2 }
 0x104   :  { %v708_v5 = vadd.f32 %v1015_v3, %v1641_v38  ;;  %v1651_v7 = vadd.f32 %v1064_v1, %v705_v0 }
 0x106   :  { %v1016_v8 = vpop.f32.mrb[8].mxu0  ;;  %v1653_v9 = vadd.f32 %v1067_v6, %v708_v5 }
 0x107   :  { %v1017_v10 = vpop.f32.mrb[9].mxu0  ;;  %v1068_v11 = vpop.f32.mrb[8].mxu1 }
 0x108   :  { %v1018_v12 = vadd.f32 %v1017_v10, %v1016_v8  ;;  %v1019_v13 = vpop.f32.mrb[10].mxu0  ;;  %v1069_v14 = vpop.f32.mrb[9].mxu1 }
 0x109   :  { %v1020_v15 = vpop.f32.mrb[11].mxu0  ;;  %v1070_v17 = vadd.f32 %v1069_v14, %v1068_v11  ;;  %v1071_v18 = vpop.f32.mrb[10].mxu1  ;;  %v907_v14 = vld [vmem:[%s1768_s5 + $0x10] sm:$0xff] }
 0x10a   :  { %v713_v16 = vadd.f32 %v1018_v12, %v1641_v38  ;;  %v1021_v19 = vadd.f32 %v1020_v15, %v1019_v13  ;;  %v1072_v20 = vpop.f32.mrb[11].mxu1 }
 0x10b   :  { %v1073_v41 = vadd.f32 %v1072_v20, %v1071_v18  ;;  %v905_v18 = vld [vmem:[%s1768_s5] sm:$0xff] }
 0x10c   :  { %v716_v21 = vadd.f32 %v1021_v19, %v1641_v38  ;;  %v1657_v22 = vadd.f32 %v1070_v17, %v713_v16 }
 0x10e   :  { %v1022_v23 = vpop.f32.mrb[12].mxu0  ;;  %v1659_v25 = vadd.f32 %v1073_v41, %v716_v21  ;;  %v908_v41 = vld [vmem:[%s1768_s5 + $0x18] sm:$0xff] }
 0x10f   :  { %v1023_v26 = vpop.f32.mrb[13].mxu0  ;;  %v1074_v27 = vpop.f32.mrb[12].mxu1 }
 0x110   :  { %v1024_v45 = vadd.f32 %v1023_v26, %v1022_v23  ;;  %v1025_v28 = vpop.f32.mrb[14].mxu0  ;;  %v1075_v29 = vpop.f32.mrb[13].mxu1 }
 0x111   :  { %v1026_v30 = vpop.f32.mrb[15].mxu0  ;;  %v1076_v32 = vadd.f32 %v1075_v29, %v1074_v27  ;;  %v1077_v48 = vpop.f32.mrb[14].mxu1  ;;  %v909_v27 = vld [vmem:[%s1768_s5 + $0x20] sm:$0xff]  ;;  %v906_v29 = vld [vmem:[%s1768_s5 + $0x8] sm:$0xff] }
 0x112   :  { %v721_v31 = vadd.f32 %v1024_v45, %v1641_v38  ;;  %v1027_v33 = vadd.f32 %v1026_v30, %v1025_v28  ;;  %v1078_v34 = vpop.f32.mrb[15].mxu1 }
 0x113   :  { %v1079_v36 = vadd.f32 %v1078_v34, %v1077_v48 }
 0x114   :  { %v724_v35 = vadd.f32 %v1027_v33, %v1641_v38  ;;  %v802_v46 = vadd.f32 %v1076_v32, %v721_v31  ;;  %v912_v32 = vld [vmem:[%s1768_s5 + $0x38] sm:$0xff] }
 0x116   :  { %v1028_v49 = vpop.f32.mrb[16].mxu0  ;;  %v805_v37 = vadd.f32 %v1079_v36, %v724_v35 }
 0x117   :  { %v1029_v39 = vpop.f32.mrb[17].mxu0  ;;  %v1080_v47 = vpop.f32.mrb[16].mxu1 }
 0x118   :  { %v1030_v52 = vadd.f32 %v1029_v39, %v1028_v49  ;;  %v1031_v43 = vpop.f32.mrb[18].mxu0  ;;  %v1081_v44 = vpop.f32.mrb[17].mxu1  ;;  %v915_v39 = vld [vmem:[%s1768_s5 + $0x50] sm:$0xff] }
 0x119   :  { %v1032_v51 = vpop.f32.mrb[19].mxu0  ;;  %v1082_v55 = vadd.f32 %v1081_v44, %v1080_v47  ;;  %v1083_v40 = vpop.f32.mrb[18].mxu1 }
 0x11a   :  { %v729_v53 = vadd.f32 %v1030_v52, %v1641_v38  ;;  %v1033_v56 = vadd.f32 %v1032_v51, %v1031_v43  ;;  %v1084_v57 = vpop.f32.mrb[19].mxu1  ;;  %v913_v43 = vld [vmem:[%s1768_s5 + $0x40] sm:$0xff] }
 0x11b   :  { %v1085_v60 = vadd.f32 %v1084_v57, %v1083_v40  ;;  %v914_v57 = vld [vmem:[%s1768_s5 + $0x48] sm:$0xff] }
 0x11c   :  { %v732_v58 = vadd.f32 %v1033_v56, %v1641_v38  ;;  %v1665_v61 = vadd.f32 %v1082_v55, %v729_v53  ;;  %v916_v53 = vld [vmem:[%s1768_s5 + $0x58] sm:$0xff] }
 0x11e   :  { %v1034_v24 = vpop.f32.mrb[20].mxu0  ;;  %v1667_v42 = vadd.f32 %v1085_v60, %v732_v58 }
 0x11f   :  { %v1035_v50 = vpop.f32.mrb[21].mxu0  ;;  %v1086_v62 = vpop.f32.mrb[20].mxu1 }
 0x120   :  { %v1036_v63 = vadd.f32 %v1035_v50, %v1034_v24  ;;  %v1037_v0 = vpop.f32.mrb[22].mxu0  ;;  %v1087_v1 = vpop.f32.mrb[21].mxu1 }
 0x121   :  { %v1038_v2 = vpop.f32.mrb[23].mxu0  ;;  %v1088_v4 = vadd.f32 %v1087_v1, %v1086_v62  ;;  %v1089_v5 = vpop.f32.mrb[22].mxu1 }
 0x122   :  { %v737_v3 = vadd.f32 %v1036_v63, %v1641_v38  ;;  %v1039_v6 = vadd.f32 %v1038_v2, %v1037_v0  ;;  %v1090_v8 = vpop.f32.mrb[23].mxu1 }
 0x123   :  { %v1091_v11 = vadd.f32 %v1090_v8, %v1089_v5 }
 0x124   :  { %v740_v10 = vadd.f32 %v1039_v6, %v1641_v38  ;;  %v818_v12 = vadd.f32 %v1088_v4, %v737_v3  ;;  %v911_v38 = vld [vmem:[%s1768_s5 + $0x30] sm:$0xff] }
 0x126   :  { %v1112_v13 = vpop.f32.mrb[24].mxu0  ;;  %v821_v15 = vadd.f32 %v1091_v11, %v740_v10 }
 0x127   :  { %v867_v16 = vadd.f32 %v1112_v13, %v1651_v7  ;;  %v858_v17 = vpop.f32.mrb[25].mxu0  ;;  %v1116_v19 = vpop.f32.mrb[24].mxu1 }
 0x128   :  { %v859_v20 = vadd.f32 %v858_v17, %v1645_v59  ;;  %v1113_v21 = vpop.f32.mrb[26].mxu0  ;;  %v883_v26 = vadd.f32 %v1116_v19, %v802_v46  ;;  %v874_v7 = vpop.f32.mrb[25].mxu1 }
 0x129   :  { %v919_v23 = vadd.f32 %v907_v14, %v867_v16  ;;  %v870_v45 = vadd.f32 %v1113_v21, %v1653_v9  ;;  %v861_v28 = vpop.f32.mrb[27].mxu0  ;;  %v875_v30 = vadd.f32 %v874_v7, %v1657_v22  ;;  %v1117_v31 = vpop.f32.mrb[26].mxu1  ;;  %v910_v22 = vld [vmem:[%s1768_s5 + $0x28] sm:$0xff] }
 0x12a   :  { %v917_v59 = vadd.f32 %v905_v18, %v859_v20  ;;  %v862_v48 = vadd.f32 %v861_v28, %v1647_v54  ;;  %v923_v9 = vadd.f32 %v911_v38, %v883_v26  ;;  %v886_v34 = vadd.f32 %v1117_v31, %v805_v37  ;;  %v877_v35 = vpop.f32.mrb[27].mxu1 }
 0x12b   :  { %931 = vst.msk [vmem:[%s1769_s6 + $0x10] sm:$0xff] %vm643_vm0, %v919_v23  ;;  %v920_v33 = vadd.f32 %v908_v41, %v870_v45  ;;  %v921_v36 = vadd.f32 %v909_v27, %v875_v30  ;;  %v878_v46 = vadd.f32 %v877_v35, %v1659_v25 }
 0x12c   :  { %929 = vst.msk [vmem:[%s1769_s6] sm:$0xff] %vm643_vm0, %v917_v59  ;;  %v918_v54 = vadd.f32 %v906_v29, %v862_v48  ;;  %935 = vst.msk [vmem:[%s1769_s6 + $0x30] sm:$0xff] %vm643_vm0, %v923_v9  ;;  %v924_v49 = vadd.f32 %v912_v32, %v886_v34 }
 0x12d   :  { %932 = vst.msk [vmem:[%s1769_s6 + $0x18] sm:$0xff] %vm643_vm0, %v920_v33  ;;  %933 = vst.msk [vmem:[%s1769_s6 + $0x20] sm:$0xff] %vm643_vm0, %v921_v36  ;;  %v922_v25 = vadd.f32 %v910_v22, %v878_v46 }
 0x12e   :  { %930 = vst.msk [vmem:[%s1769_s6 + $0x8] sm:$0xff] %vm643_vm0, %v918_v54  ;;  %936 = vst.msk [vmem:[%s1769_s6 + $0x38] sm:$0xff] %vm643_vm0, %v924_v49 }
 0x12f   :  { %934 = vst.msk [vmem:[%s1769_s6 + $0x28] sm:$0xff] %vm643_vm0, %v922_v25  ;;  %v1120_v37 = vpop.f32.mrb[28].mxu1 }
 0x130   :  { %v899_v47 = vadd.f32 %v1120_v37, %v818_v12  ;;  %v890_v52 = vpop.f32.mrb[29].mxu1 }
 0x131   :  { %v891_v44 = vadd.f32 %v890_v52, %v1665_v61  ;;  %v1121_v51 = vpop.f32.mrb[30].mxu1 }
 0x132   :  { %v927_v55 = vadd.f32 %v915_v39, %v899_v47  ;;  %v902_v40 = vadd.f32 %v1121_v51, %v821_v15  ;;  %v893_v56 = vpop.f32.mrb[31].mxu1 }
 0x133   :  { %v925_v58 = vadd.f32 %v913_v43, %v891_v44  ;;  %v894_v60 = vadd.f32 %v893_v56, %v1667_v42 }
 0x134   :  { %939 = vst.msk [vmem:[%s1769_s6 + $0x50] sm:$0xff] %vm643_vm0, %v927_v55  ;;  %v928_v61 = vadd.f32 %v916_v53, %v902_v40 }
 0x135   :  { %937 = vst.msk [vmem:[%s1769_s6 + $0x40] sm:$0xff] %vm643_vm0, %v925_v58  ;;  %v926_v24 = vadd.f32 %v914_v57, %v894_v60 }
 0x136   :  { %940 = vst.msk [vmem:[%s1769_s6 + $0x58] sm:$0xff] %vm643_vm0, %v928_v61 }
 0x137   :  { %938 = vst.msk [vmem:[%s1769_s6 + $0x48] sm:$0xff] %vm643_vm0, %v926_v24 }

// kernel: resnet8_forward.13
= control target key start
LH: loop header
LB: loop body
LE: loop exit
PB: predicated region body
PF: predicated region fallthrough
CT: control target
= control target key end

     0   :  { %vm73_vm0 = vcmask 523264   ;;  %v145_v24 = vlaneseq  ;;  %s1153_s3 = inlined_call_operand.vmem [shape: bf16[64,128], index: 3, kind: input, shape index: {}]   ;;  %s1154_s1 = inlined_call_operand.vmem [shape: bf16[576,128], index: 1, kind: input, shape index: {}]   ;;  %s1155_s0 = inlined_call_operand.vmem [shape: f32[24,576], index: 0, kind: input, shape index: {}]   ;;  %s1156_s5 = inlined_call_operand.vmem [shape: f32[1,576], index: 5, kind: input, shape index: {}]   ;;  %s1157_s6 = inlined_call_operand.vmem [shape: f32[1,576], index: 6, kind: input, shape index: {}]   ;;  %s1158_s4 = inlined_call_operand.vmem [shape: f32[1,128], index: 4, kind: input, shape index: {}]   ;;  %s1159_s8 = inlined_call_operand.vmem [shape: f32[24,128], index: 8, kind: output, shape index: {1}]   ;;  %s1160_s2 = inlined_call_operand.vmem [shape: f32[1,128], index: 2, kind: input, shape index: {}]   ;;  %s1161_s7 = inlined_call_operand.vmem [shape: f32[24,128], index: 7, kind: output, shape index: {0}]  }
   0x1   :  { %v849_v0 = vld [vmem:[%s1153_s3] sm:$0xff]   ;;  %v850_v1 = vld [vmem:[%s1153_s3 + $0x8] sm:$0xff]   ;;  %v853_v4 = vld [vmem:[%s1153_s3 + $0x10] sm:$0xff]  }
   0x2   :  { %825 = vmatprep.subr.bf16.mxu0 %v849_v0  ;;  %v851_v2 = vld [vmem:[%s1154_s1 + $0x40] sm:$0xff]   ;;  %v854_v5 = vld [vmem:[%s1154_s1 + $0x48] sm:$0xff]   ;;  %v856_v7 = vld [vmem:[%s1153_s3 + $0x18] sm:$0xff]   ;;  %v1024_v29 = vshrl.u32 %v145_v24, 7 }
   0x3   :  { %826 = vmatpush3.bf16.msra.mxu0 %v849_v0  ;;  %v852_v3 = vld [vmem:[%s1154_s1] sm:$0xff]   ;;  %763 = vmatprep.subr.bf16.mxu1 %v851_v2  ;;  %v855_v6 = vld [vmem:[%s1154_s1 + $0x8] sm:$0xff]   ;;  %v857_v8 = vld [vmem:[%s1154_s1 + $0x50] sm:$0xff]  }
   0x4   :  { %827 = vmatprep.subr.bf16.mxu0 %v850_v1  ;;  %764 = vmatpush3.bf16.msra.mxu1 %v852_v3  ;;  %v858_v9 = vld [vmem:[%s1154_s1 + $0x10] sm:$0xff]   ;;  %v972_v11 = vld [vmem:[%s1155_s0 + $0x38] sm:$0xff]  ;;  %v977_v12 = vld [vmem:[%s1155_s0 + $0x60] sm:$0xff]  ;;  %v151_v34 = vsub.s32 1, %v1024_v29  ;;  %v147_v36 = vsub.s32 0, %v1024_v29  ;;  %v155_v38 = vsub.s32 2, %v1024_v29 }
   0x5   :  { %765 = vmatprep.subr.bf16.mxu1 %v854_v5  ;;  %v967_v10 = vld [vmem:[%s1155_s0 + $0x10] sm:$0xff]  ;;  %v859_v14 = vld [vmem:[%s1154_s1 + $0x58] sm:$0xff]   ;;  %v860_v15 = vld [vmem:[%s1154_s1 + $0xc0] sm:$0xff]   ;;  %v33_v17 = vpack.c.bf16 %v977_v12, %v977_v12  ;;  %v159_v58 = vsub.s32 3, %v1024_v29  ;;  %v163_v3 = vsub.s32 4, %v1024_v29 }
   0x6   :  { %v32_v13 = vpack.c.bf16 %v972_v11, %v967_v10  ;;  %v861_v16 = vld [vmem:[%s1154_s1 + $0x18] sm:$0xff]   ;;  %v862_v18 = vld [vmem:[%s1154_s1 + $0x80] sm:$0xff]   ;;  %v864_v20 = vld [vmem:[%s1154_s1 + $0xc8] sm:$0xff]  }
   0x7   :  { %828 = vmatpush3.bf16.msra.mxu0 %v850_v1  ;;  %v863_v19 = vld [vmem:[%s1154_s1 + $0x60] sm:$0xff]   ;;  %v866_v22 = vld [vmem:[%s1154_s1 + $0x88] sm:$0xff]   ;;  %v868_v25 = vld [vmem:[%s1154_s1 + $0xd0] sm:$0xff]  }
   0x8   :  { %829 = vmatprep.subr.bf16.mxu0 %v853_v4  ;;  %766 = vmatpush3.bf16.msra.mxu1 %v855_v6  ;;  %v865_v21 = vld [vmem:[%s1154_s1 + $0x20] sm:$0xff]   ;;  %v867_v23 = vld [vmem:[%s1154_s1 + $0x68] sm:$0xff]   ;;  %v870_v27 = vld [vmem:[%s1154_s1 + $0x90] sm:$0xff]  }
   0x9   :  { %767 = vmatprep.subr.bf16.mxu1 %v857_v8  ;;  %833 = vmatprep.mubr.msk.bf16.mxu0 %vm73_vm0, %v32_v13  ;;  %v869_v26 = vld [vmem:[%s1154_s1 + $0x28] sm:$0xff]   ;;  %v871_v28 = vld [vmem:[%s1154_s1 + $0x70] sm:$0xff]   ;;  %v872_v30 = vld [vmem:[%s1154_s1 + $0xd8] sm:$0xff]  }
   0xa   :  { %v873_v31 = vld [vmem:[%s1154_s1 + $0x30] sm:$0xff]   ;;  %v874_v32 = vld [vmem:[%s1154_s1 + $0x98] sm:$0xff]   ;;  %v876_v35 = vld [vmem:[%s1154_s1 + $0xe0] sm:$0xff]  }
   0xb   :  { %830 = vmatpush3.bf16.msra.mxu0 %v853_v4  ;;  %v875_v33 = vld [vmem:[%s1154_s1 + $0x78] sm:$0xff]   ;;  %v878_v39 = vld [vmem:[%s1154_s1 + $0xa0] sm:$0xff]   ;;  %v129_v40 = vld [vmem:[%s1155_s0 + $0x8] sm:$0xff] }
   0xc   :  { %831 = vmatprep.subr.bf16.mxu0 %v856_v7  ;;  %768 = vmatpush3.bf16.msra.mxu1 %v858_v9  ;;  %v877_v37 = vld [vmem:[%s1154_s1 + $0x38] sm:$0xff]   ;;  %v134_v41 = vld [vmem:[%s1155_s0 + $0x30] sm:$0xff]  ;;  %v143_v42 = vld [vmem:[%s1156_s5] sm:$0x1f] }
   0xd   :  { %769 = vmatprep.subr.bf16.mxu1 %v859_v14  ;;  %v152_v43 = vrot.slane %v143_v42, %v151_v34  ;;  %v185_v44 = vld [vmem:[%s1157_s6] sm:$0x1f]  ;;  %v133_v46 = vld [vmem:[%s1155_s0 + $0x28] sm:$0xff]  ;;  %v148_v47 = vrot.slane %v143_v42, %v147_v36  ;;  %v156_v51 = vrot.slane %v143_v42, %v155_v38  ;;  %v882_v63 = vld [vmem:[%s1154_s1 + $0xf0] sm:$0xff]  }
   0xe   :  { %v128_v45 = vld [vmem:[%s1155_s0] sm:$0xff]  ;;  %v194_v48 = vrot.slane %v185_v44, %v151_v34  ;;  %v190_v49 = vrot.slane %v185_v44, %v147_v36  ;;  %v879_v50 = vld [vmem:[%s1154_s1 + $0xe8] sm:$0xff]   ;;  %v198_v2 = vrot.slane %v185_v44, %v155_v38  ;;  %v884_v9 = vld [vmem:[%s1154_s1 + $0xb0] sm:$0xff]  }
   0xf   :  { %832 = vmatpush3.bf16.msra.mxu0 %v856_v7  ;;  %v171_v52 = vmul.f32 %v152_v43, %v129_v40  ;;  %v176_v53 = vmul.f32 %v152_v43, %v134_v41  ;;  %v170_v54 = vmul.f32 %v148_v47, %v128_v45  ;;  %v175_v55 = vmul.f32 %v148_v47, %v133_v46  ;;  %v880_v56 = vld [vmem:[%s1154_s1 + $0x100] sm:$0xff]   ;;  %v881_v57 = vld [vmem:[%s1154_s1 + $0xa8] sm:$0xff]  }
  0x10   :  { %791 = vmatprep.subr.bf16.mxu0 %v860_v15  ;;  %770 = vmatpush3.bf16.msra.mxu1 %v861_v16  ;;  %v172_v0 = vmul.f32 %v156_v51, %v967_v10  ;;  %v177_v1 = vmul.f32 %v156_v51, %v972_v11  ;;  %v883_v8 = vld [vmem:[%s1154_s1 + $0x108] sm:$0xff]   ;;  %v139_v10 = vld [vmem:[%s1155_s0 + $0x58] sm:$0xff]  ;;  %v138_v15 = vld [vmem:[%s1155_s0 + $0x50] sm:$0xff]  ;;  %v160_v16 = vrot.slane %v143_v42, %v159_v58 }
  0x11   :  { %771 = vmatprep.subr.bf16.mxu1 %v863_v19  ;;  %v213_v59 = vadd.f32 %v194_v48, %v171_v52  ;;  %v218_v60 = vadd.f32 %v194_v48, %v176_v53  ;;  %v212_v61 = vadd.f32 %v190_v49, %v170_v54  ;;  %v217_v62 = vadd.f32 %v190_v49, %v175_v55  ;;  %v137_v38 = vld [vmem:[%s1155_s0 + $0x48] sm:$0xff]  ;;  %v888_v53 = vld [vmem:[%s1154_s1 + $0x118] sm:$0xff]  }
  0x12   :  { %834 = vmatmul.mubr.msk.bf16.vlgmr.msra.gmra.mrb[0].mxu0 %vm73_vm0, %v33_v17  ;;  %v181_v14 = vmul.f32 %v152_v43, %v139_v10  ;;  %v180_v17 = vmul.f32 %v148_v47, %v138_v15  ;;  %v214_v19 = vadd.f32 %v198_v2, %v172_v0  ;;  %v141_v43 = vld [vmem:[%s1155_s0 + $0x68] sm:$0xff] }
  0x13   :  { %792 = vmatpush3.bf16.msra.mxu0 %v862_v18  ;;  %v228_v4 = vmax.f32 %v213_v59, 0.0  ;;  %v233_v5 = vmax.f32 %v218_v60, 0.0  ;;  %v227_v6 = vmax.f32 %v212_v61, 0.0  ;;  %v232_v7 = vmax.f32 %v217_v62, 0.0  ;;  %v885_v18 = vld [vmem:[%s1154_s1 + $0xf8] sm:$0xff]  }
  0x14   :  { %793 = vmatprep.subr.bf16.mxu0 %v864_v20  ;;  %772 = vmatpush3.bf16.msra.mxu1 %v865_v21  ;;  %v219_v20 = vadd.f32 %v198_v2, %v177_v1  ;;  %v223_v21 = vadd.f32 %v194_v48, %v181_v14  ;;  %v222_v24 = vadd.f32 %v190_v49, %v180_v17 }
  0x15   :  { %773 = vmatprep.subr.bf16.mxu1 %v867_v23  ;;  %v243_v11 = vpack.c.bf16 %v233_v5, %v228_v4  ;;  %v242_v13 = vpack.c.bf16 %v232_v7, %v227_v6  ;;  %v164_v23 = vrot.slane %v143_v42, %v163_v3  ;;  %v183_v47 = vmul.f32 %v160_v16, %v141_v43 }
  0x16   :  { %v238_v29 = vmax.f32 %v223_v21, 0.0  ;;  %v237_v34 = vmax.f32 %v222_v24, 0.0  ;;  %v234_v36 = vmax.f32 %v219_v20, 0.0 }
  0x17   :  { %794 = vmatpush3.bf16.msra.mxu0 %v866_v22  ;;  %585 = vmatprep.mubr.bf16.mxu1 %v243_v11  ;;  %v202_v22 = vrot.slane %v185_v44, %v159_v58  ;;  %v179_v45 = vmul.f32 %v164_v23, %v137_v38 }
  0x18   :  { %795 = vmatprep.subr.bf16.mxu0 %v868_v25  ;;  %774 = vmatpush3.bf16.msra.mxu1 %v869_v26  ;;  %v887_v25 = vld [vmem:[%s1154_s1 + $0xb8] sm:$0xff]   ;;  %v248_v40 = vpack.c.bf16 %v238_v29, %v238_v29 }
  0x19   :  { %775 = vmatprep.subr.bf16.mxu1 %v871_v28  ;;  %v131_v26 = vld [vmem:[%s1155_s0 + $0x18] sm:$0xff]  ;;  %v206_v28 = vrot.slane %v185_v44, %v163_v3  ;;  %v247_v44 = vpack.c.bf16 %v237_v34, %v237_v34  ;;  %v711_v3 = vld [vmem:[%s1158_s4] ss:$0 sm:$0xff] }
  0x1b   :  { %796 = vmatpush3.bf16.msra.mxu0 %v870_v27  ;;  %v136_v27 = vld [vmem:[%s1155_s0 + $0x40] sm:$0xff]  ;;  %v221_v54 = vadd.f32 %v206_v28, %v179_v45 }
  0x1c   :  { %797 = vmatprep.subr.bf16.mxu0 %v872_v30  ;;  %776 = vmatpush3.bf16.msra.mxu1 %v873_v31  ;;  %v886_v30 = vld [vmem:[%s1154_s1 + $0x110] sm:$0xff]   ;;  %v173_v31 = vmul.f32 %v160_v16, %v131_v26 }
  0x1d   :  { %777 = vmatprep.subr.bf16.mxu1 %v875_v33  ;;  %v182_v33 = vmul.f32 %v156_v51, %v977_v12  ;;  %v236_v59 = vmax.f32 %v221_v54, 0.0 }
  0x1e   :  { %v215_v41 = vadd.f32 %v202_v22, %v173_v31 }
  0x1f   :  { %798 = vmatpush3.bf16.msra.mxu0 %v874_v32  ;;  %v178_v32 = vmul.f32 %v160_v16, %v136_v27  ;;  %v224_v51 = vadd.f32 %v198_v2, %v182_v33 }
  0x20   :  { %799 = vmatprep.subr.bf16.mxu0 %v876_v35  ;;  %778 = vmatpush3.bf16.msra.mxu1 %v877_v37  ;;  %v229_v35 = vmax.f32 %v214_v19, 0.0  ;;  %v132_v37 = vld [vmem:[%s1155_s0 + $0x20] sm:$0xff]  ;;  %v230_v48 = vmax.f32 %v215_v41, 0.0 }
  0x21   :  { %837 = vmatprep.subr.bf16.mxu1 %v880_v56  ;;  %v220_v42 = vadd.f32 %v202_v22, %v178_v32  ;;  %v174_v12 = vmul.f32 %v164_v23, %v132_v37  ;;  %v239_v0 = vmax.f32 %v224_v51, 0.0  ;;  %v718_v19 = vld [vmem:[%s1160_s2] ss:$0 sm:$0xff] }
  0x22   :  { %v244_v52 = vpack.c.bf16 %v234_v36, %v229_v35 }
  0x23   :  { %800 = vmatpush3.bf16.msra.mxu0 %v878_v39  ;;  %586 = vmatmul.mubr.bf16.vlgmr.msra.gmra.mrb[0].mxu1 %v242_v13  ;;  %v142_v39 = vld [vmem:[%s1155_s0 + $0x70] sm:$0xff]  ;;  %v235_v49 = vmax.f32 %v220_v42, 0.0  ;;  %v249_v2 = vpack.c.bf16 %v239_v0, %v239_v0 }
  0x24   :  { %801 = vmatprep.subr.bf16.mxu0 %v879_v50  ;;  %838 = vmatpush3.bf16.msra.mxu1 %v880_v56  ;;  %v184_v46 = vmul.f32 %v164_v23, %v142_v39  ;;  %v216_v50 = vadd.f32 %v206_v28, %v174_v12  ;;  %v225_v56 = vadd.f32 %v202_v22, %v183_v47 }
  0x25   :  { %839 = vmatprep.subr.bf16.mxu1 %v883_v8  ;;  %593 = vmatprep.mubr.bf16.mxu1 %v248_v40 }
  0x26   :  { %v226_v55 = vadd.f32 %v206_v28, %v184_v46  ;;  %v231_v58 = vmax.f32 %v216_v50, 0.0  ;;  %v240_v61 = vmax.f32 %v225_v56, 0.0 }
  0x27   :  { %802 = vmatpush3.bf16.msra.mxu0 %v881_v57  ;;  %v245_v57 = vpack.c.bf16 %v235_v49, %v230_v48 }
  0x28   :  { %803 = vmatprep.subr.bf16.mxu0 %v882_v63  ;;  %840 = vmatpush3.bf16.msra.mxu1 %v883_v8  ;;  %v241_v60 = vmax.f32 %v226_v55, 0.0  ;;  %v246_v62 = vpack.c.bf16 %v236_v59, %v231_v58  ;;  %v250_v63 = vpack.c.bf16 %v240_v61, %v240_v61 }
  0x29   :  { %841 = vmatprep.subr.bf16.mxu1 %v886_v30  ;;  %633 = vmatprep.mubr.bf16.mxu0 %v245_v57 }
  0x2a   :  { %v251_v1 = vpack.c.bf16 %v241_v60, %v241_v60 }
  0x2b   :  { %804 = vmatpush3.bf16.msra.mxu0 %v884_v9  ;;  %594 = vmatmul.mubr.bf16.gmra.mrb[4].mxu1 %v247_v44 }
  0x2c   :  { %805 = vmatprep.subr.bf16.mxu0 %v885_v18  ;;  %842 = vmatpush3.bf16.msra.mxu1 %v886_v30 }
  0x2d   :  { %843 = vmatprep.subr.bf16.mxu1 %v888_v53  ;;  %845 = vmatprep.mubr.msk.bf16.mxu1 %vm73_vm0, %v246_v62 }
  0x2f   :  { %806 = vmatpush3.bf16.msra.mxu0 %v887_v25 }
  0x30   :  { %844 = vmatpush3.bf16.msra.mxu1 %v888_v53 }
  0x32   :  { %634 = vmatmul.mubr.bf16.vlgmr.msra.gmra.mrb[4].mxu0 %v244_v52 }
  0x33   :  { %641 = vmatprep.mubr.bf16.mxu0 %v250_v63  ;;  %846 = vmatmul.mubr.msk.bf16.vlgmr.msra.gmra.mrb[8].mxu1 %vm73_vm0, %v251_v1 }
  0x3a   :  { %642 = vmatmul.mubr.bf16.gmra.mrb[8].mxu0 %v249_v2 }
  0xe5   :  { %v835_v4 = vpop.f32.mrb[0].mxu0 }
  0xe6   :  { %v123_v5 = vadd.f32 %v835_v4, %v711_v3  ;;  %v114_v6 = vpop.f32.mrb[1].mxu0 }
  0xe7   :  { %v115_v7 = vadd.f32 %v711_v3, %v114_v6  ;;  %v836_v8 = vpop.f32.mrb[2].mxu0 }
  0xe8   :  { %702 = vst [vmem:[%s1159_s8 + $0x10] sm:$0xff] %v123_v5  ;;  %v117_v9 = vpop.f32.mrb[3].mxu0 }
  0xe9   :  { %700 = vst [vmem:[%s1159_s8] sm:$0xff] %v115_v7  ;;  %v118_v10 = vadd.f32 %v711_v3, %v117_v9 }
  0xeb   :  { %701 = vst [vmem:[%s1159_s8 + $0x8] sm:$0xff] %v118_v10 }
  0xf6   :  { %v779_v11 = vpop.f32.mrb[0].mxu1 }
  0xf7   :  { %v780_v13 = vpop.f32.mrb[1].mxu1 }
  0xf8   :  { %v781_v14 = vadd.f32 %v780_v13, %v779_v11  ;;  %v782_v15 = vpop.f32.mrb[2].mxu1 }
  0xf9   :  { %v783_v16 = vpop.f32.mrb[3].mxu1 }
  0xfa   :  { %v784_v17 = vadd.f32 %v783_v16, %v782_v15  ;;  %v588_v26 = vadd.f32 %v781_v14, %v718_v19 }
  0xfc   :  { %v591_v30 = vadd.f32 %v784_v17, %v718_v19 }
  0xfe   :  { %v785_v18 = vpop.f32.mrb[4].mxu1 }
  0xff   :  { %v786_v20 = vpop.f32.mrb[5].mxu1 }
 0x100   :  { %v787_v21 = vadd.f32 %v786_v20, %v785_v18  ;;  %v788_v23 = vpop.f32.mrb[6].mxu1 }
 0x101   :  { %v789_v25 = vpop.f32.mrb[7].mxu1 }
 0x102   :  { %v596_v41 = vadd.f32 %v787_v21, %v718_v19 }
 0x105   :  { %v807_v22 = vpop.f32.mrb[4].mxu0 }
 0x106   :  { %v808_v24 = vpop.f32.mrb[5].mxu0  ;;  %v847_v33 = vpop.f32.mrb[8].mxu1 }
 0x107   :  { %v809_v27 = vadd.f32 %v808_v24, %v807_v22  ;;  %v810_v28 = vpop.f32.mrb[6].mxu0  ;;  %v683_v35 = vpop.f32.mrb[9].mxu1 }
 0x108   :  { %v811_v29 = vpop.f32.mrb[7].mxu0  ;;  %v848_v37 = vpop.f32.mrb[10].mxu1 }
 0x109   :  { %v812_v31 = vadd.f32 %v811_v29, %v810_v28  ;;  %v636_v32 = vadd.f32 %v809_v27, %v588_v26  ;;  %v686_v39 = vpop.f32.mrb[11].mxu1 }
 0x10b   :  { %v639_v34 = vadd.f32 %v812_v31, %v591_v30  ;;  %v684_v36 = vadd.f32 %v683_v35, %v636_v32 }
 0x10d   :  { %v813_v38 = vpop.f32.mrb[8].mxu0  ;;  %697 = vst [vmem:[%s1161_s7] sm:$0xff] %v684_v36  ;;  %v687_v42 = vadd.f32 %v686_v39, %v639_v34 }
 0x10e   :  { %v814_v40 = vpop.f32.mrb[9].mxu0 }
 0x10f   :  { %v815_v12 = vadd.f32 %v814_v40, %v813_v38  ;;  %v816_v43 = vpop.f32.mrb[10].mxu0  ;;  %698 = vst [vmem:[%s1161_s7 + $0x8] sm:$0xff] %v687_v42 }
 0x110   :  { %v817_v44 = vpop.f32.mrb[11].mxu0 }
 0x111   :  { %v644_v45 = vadd.f32 %v815_v12, %v596_v41 }
 0x113   :  { %v692_v46 = vadd.f32 %v847_v33, %v644_v45 }
 0x115   :  { %699 = vst [vmem:[%s1161_s7 + $0x10] sm:$0xff] %v692_v46 }

// kernel: resnet8_forward.14
= control target key start
LH: loop header
LB: loop body
LE: loop exit
PB: predicated region body
PF: predicated region fallthrough
CT: control target
= control target key end

     0   :  { %v55_v19 = vlaneseq  ;;  %s1818_s1 = inlined_call_operand.vmem [shape: bf16[1152,128], index: 1, kind: input, shape index: {}]   ;;  %s1819_s0 = inlined_call_operand.vmem [shape: f32[24,1152], index: 0, kind: input, shape index: {}]   ;;  %s1820_s3 = inlined_call_operand.vmem [shape: f32[1,1152], index: 3, kind: input, shape index: {}]   ;;  %s1821_s4 = inlined_call_operand.vmem [shape: f32[1,1152], index: 4, kind: input, shape index: {}]   ;;  %s1822_s2 = inlined_call_operand.vmem [shape: f32[1,128], index: 2, kind: input, shape index: {}]   ;;  %s1823_s5 = inlined_call_operand.vmem [shape: f32[24,128], index: 5, kind: input, shape index: {}]   ;;  %s1824_s6 = inlined_call_operand.vmem [shape: f32[24,128], index: 6, kind: output, shape index: {}]  }
   0x1   :  { %v1301_v0 = vld [vmem:[%s1818_s1 + $0x40] sm:$0xff]   ;;  %v1305_v4 = vld [vmem:[%s1818_s1 + $0x48] sm:$0xff]   ;;  %v1309_v8 = vld [vmem:[%s1818_s1 + $0x50] sm:$0xff]  }
   0x2   :  { %v1302_v1 = vld [vmem:[%s1818_s1] sm:$0xff]   ;;  %1159 = vmatprep.subr.bf16.mxu0 %v1301_v0  ;;  %v1306_v5 = vld [vmem:[%s1818_s1 + $0x8] sm:$0xff]   ;;  %v1310_v9 = vld [vmem:[%s1818_s1 + $0x10] sm:$0xff]   ;;  %v1477_v24 = vshrl.u32 %v55_v19, 7 }
   0x3   :  { %v1303_v2 = vld [vmem:[%s1818_s1 + $0xc0] sm:$0xff]   ;;  %1160 = vmatpush3.bf16.msra.mxu0 %v1302_v1  ;;  %v1307_v6 = vld [vmem:[%s1818_s1 + $0xc8] sm:$0xff]   ;;  %v1311_v10 = vld [vmem:[%s1818_s1 + $0xd0] sm:$0xff]  }
   0x4   :  { %v1304_v3 = vld [vmem:[%s1818_s1 + $0x80] sm:$0xff]   ;;  %1187 = vmatprep.subr.bf16.mxu1 %v1303_v2  ;;  %1161 = vmatprep.subr.bf16.mxu0 %v1305_v4  ;;  %v1308_v7 = vld [vmem:[%s1818_s1 + $0x88] sm:$0xff]   ;;  %v1312_v11 = vld [vmem:[%s1818_s1 + $0x90] sm:$0xff]   ;;  %v61_v29 = vsub.s32 1, %v1477_v24  ;;  %v57_v31 = vsub.s32 0, %v1477_v24  ;;  %v69_v33 = vsub.s32 3, %v1477_v24 }
   0x5   :  { %1188 = vmatpush3.bf16.msra.mxu1 %v1304_v3  ;;  %v1313_v12 = vld [vmem:[%s1818_s1 + $0x58] sm:$0xff]   ;;  %v1317_v16 = vld [vmem:[%s1818_s1 + $0x60] sm:$0xff]   ;;  %v1321_v21 = vld [vmem:[%s1818_s1 + $0x68] sm:$0xff]   ;;  %v65_v35 = vsub.s32 2, %v1477_v24 }
   0x6   :  { %1189 = vmatprep.subr.bf16.mxu1 %v1307_v6  ;;  %v1314_v13 = vld [vmem:[%s1818_s1 + $0x18] sm:$0xff]   ;;  %v1318_v17 = vld [vmem:[%s1818_s1 + $0x20] sm:$0xff]   ;;  %v1322_v22 = vld [vmem:[%s1818_s1 + $0x28] sm:$0xff]  }
   0x7   :  { %1162 = vmatpush3.bf16.msra.mxu0 %v1306_v5  ;;  %v1315_v14 = vld [vmem:[%s1818_s1 + $0xd8] sm:$0xff]   ;;  %v1319_v18 = vld [vmem:[%s1818_s1 + $0xe0] sm:$0xff]   ;;  %v1323_v23 = vld [vmem:[%s1818_s1 + $0xe8] sm:$0xff]  }
   0x8   :  { %1163 = vmatprep.subr.bf16.mxu0 %v1309_v8  ;;  %v1316_v15 = vld [vmem:[%s1818_s1 + $0x98] sm:$0xff]   ;;  %v1320_v20 = vld [vmem:[%s1818_s1 + $0xa0] sm:$0xff]   ;;  %v1324_v25 = vld [vmem:[%s1818_s1 + $0xa8] sm:$0xff]  }
   0x9   :  { %1190 = vmatpush3.bf16.msra.mxu1 %v1308_v7  ;;  %v1325_v26 = vld [vmem:[%s1818_s1 + $0x70] sm:$0xff]   ;;  %v1329_v32 = vld [vmem:[%s1818_s1 + $0x78] sm:$0xff]   ;;  %v25_v37 = vld [vmem:[%s1819_s0 + $0x8] sm:$0xff] }
   0xa   :  { %1191 = vmatprep.subr.bf16.mxu1 %v1311_v10  ;;  %v1326_v27 = vld [vmem:[%s1818_s1 + $0x30] sm:$0xff]   ;;  %v1330_v34 = vld [vmem:[%s1818_s1 + $0x38] sm:$0xff]   ;;  %v1516_v39 = vld [vmem:[%s1820_s3] sm:$0xff] }
   0xb   :  { %1164 = vmatpush3.bf16.msra.mxu0 %v1310_v9  ;;  %v1327_v28 = vld [vmem:[%s1818_s1 + $0xf0] sm:$0xff]   ;;  %v1331_v36 = vld [vmem:[%s1818_s1 + $0xf8] sm:$0xff]   ;;  %v1519_v40 = vrot.slane %v1516_v39, %v61_v29  ;;  %v1524_v41 = vld [vmem:[%s1821_s4] sm:$0xff]  ;;  %v1527_v42 = vrot.slane %v1516_v39, %v57_v31  ;;  %v1545_v48 = vrot.slane %v1516_v39, %v69_v33  ;;  %v1548_v49 = vrot.slane %v1516_v39, %v65_v35 }
   0xc   :  { %1165 = vmatprep.subr.bf16.mxu0 %v1313_v12  ;;  %v1328_v30 = vld [vmem:[%s1818_s1 + $0xb0] sm:$0xff]   ;;  %v1530_v43 = vrot.slane %v1524_v41, %v61_v29  ;;  %v1332_v44 = vld [vmem:[%s1818_s1 + $0xb8] sm:$0xff]   ;;  %v24_v45 = vld [vmem:[%s1819_s0] sm:$0xff]  ;;  %v1542_v47 = vrot.slane %v1524_v41, %v57_v31  ;;  %v1564_v57 = vrot.slane %v1524_v41, %v69_v33  ;;  %v1567_v58 = vrot.slane %v1524_v41, %v65_v35 }
   0xd   :  { %1192 = vmatpush3.bf16.msra.mxu1 %v1312_v11  ;;  %v34_v38 = vld [vmem:[%s1819_s0 + $0x50] sm:$0xff]  ;;  %v33_v46 = vld [vmem:[%s1819_s0 + $0x48] sm:$0xff]  ;;  %v101_v50 = vmul.f32 %v1519_v40, %v25_v37  ;;  %v100_v52 = vmul.f32 %v1527_v42, %v24_v45  ;;  %v1333_v54 = vld [vmem:[%s1818_s1 + $0x140] sm:$0xff]  }
   0xe   :  { %1193 = vmatprep.subr.bf16.mxu1 %v1315_v14  ;;  %v110_v51 = vmul.f32 %v1519_v40, %v34_v38  ;;  %v109_v53 = vmul.f32 %v1527_v42, %v33_v46  ;;  %v27_v55 = vld [vmem:[%s1819_s0 + $0x18] sm:$0xff]  ;;  %v36_v56 = vld [vmem:[%s1819_s0 + $0x60] sm:$0xff]  ;;  %v26_v63 = vld [vmem:[%s1819_s0 + $0x10] sm:$0xff] }
   0xf   :  { %1166 = vmatpush3.bf16.msra.mxu0 %v1314_v13  ;;  %v177_v59 = vadd.f32 %v1530_v43, %v101_v50  ;;  %v176_v61 = vadd.f32 %v1542_v47, %v100_v52  ;;  %v103_v0 = vmul.f32 %v1545_v48, %v27_v55  ;;  %v112_v1 = vmul.f32 %v1545_v48, %v36_v56  ;;  %v35_v2 = vld [vmem:[%s1819_s0 + $0x58] sm:$0xff]  ;;  %v1335_v8 = vld [vmem:[%s1818_s1 + $0x1c0] sm:$0xff]   ;;  %v1340_v29 = vld [vmem:[%s1818_s1 + $0x188] sm:$0xff]  }
  0x10   :  { %1167 = vmatprep.subr.bf16.mxu0 %v1317_v16  ;;  %v186_v60 = vadd.f32 %v1530_v43, %v110_v51  ;;  %v185_v62 = vadd.f32 %v1542_v47, %v109_v53  ;;  %v102_v3 = vmul.f32 %v1548_v49, %v26_v63  ;;  %v111_v11 = vmul.f32 %v1548_v49, %v35_v2  ;;  %v1343_v31 = vld [vmem:[%s1818_s1 + $0x1d0] sm:$0xff]   ;;  %v1347_v35 = vld [vmem:[%s1818_s1 + $0x1d8] sm:$0xff]   ;;  %v1350_v38 = vld [vmem:[%s1818_s1 + $0x120] sm:$0xff]  }
  0x11   :  { %1194 = vmatpush3.bf16.msra.mxu1 %v1316_v15  ;;  %v204_v4 = vmax.f32 %v177_v59, 0.0  ;;  %v203_v6 = vmax.f32 %v176_v61, 0.0  ;;  %v179_v9 = vadd.f32 %v1564_v57, %v103_v0  ;;  %v188_v10 = vadd.f32 %v1564_v57, %v112_v1  ;;  %v1334_v15 = vld [vmem:[%s1818_s1 + $0x100] sm:$0xff]   ;;  %v1344_v33 = vld [vmem:[%s1818_s1 + $0x190] sm:$0xff]   ;;  %v1348_v37 = vld [vmem:[%s1818_s1 + $0x198] sm:$0xff]  }
  0x12   :  { %1195 = vmatprep.subr.bf16.mxu1 %v1319_v18  ;;  %v213_v5 = vmax.f32 %v186_v60, 0.0  ;;  %v212_v7 = vmax.f32 %v185_v62, 0.0  ;;  %v178_v12 = vadd.f32 %v1567_v58, %v102_v3  ;;  %v187_v18 = vadd.f32 %v1567_v58, %v111_v11  ;;  %v1353_v45 = vld [vmem:[%s1818_s1 + $0x168] sm:$0xff]   ;;  %v43_v46 = vld [vmem:[%s1819_s0 + $0x98] sm:$0xff]  ;;  %v1352_v50 = vld [vmem:[%s1818_s1 + $0x1a0] sm:$0xff]  }
  0x13   :  { %1168 = vmatpush3.bf16.msra.mxu0 %v1318_v17  ;;  %v206_v16 = vmax.f32 %v179_v9, 0.0  ;;  %v215_v17 = vmax.f32 %v188_v10, 0.0  ;;  %v119_v51 = vmul.f32 %v1519_v40, %v43_v46  ;;  %v42_v52 = vld [vmem:[%s1819_s0 + $0x90] sm:$0xff]  ;;  %v1354_v53 = vld [vmem:[%s1818_s1 + $0x128] sm:$0xff]   ;;  %v77_v60 = vsub.s32 5, %v1477_v24  ;;  %v44_v0 = vld [vmem:[%s1819_s0 + $0xa0] sm:$0xff] }
  0x14   :  { %1169 = vmatprep.subr.bf16.mxu0 %v1321_v21  ;;  %v231_v13 = vpack.c.bf16 %v213_v5, %v204_v4  ;;  %v230_v14 = vpack.c.bf16 %v212_v7, %v203_v6  ;;  %v205_v19 = vmax.f32 %v178_v12, 0.0  ;;  %v1336_v21 = vld [vmem:[%s1818_s1 + $0x180] sm:$0xff]   ;;  %v1355_v56 = vld [vmem:[%s1818_s1 + $0x1e8] sm:$0xff]   ;;  %v1357_v59 = vld [vmem:[%s1818_s1 + $0x170] sm:$0xff]   ;;  %v120_v4 = vmul.f32 %v1548_v49, %v44_v0 }
  0x15   :  { %1196 = vmatpush3.bf16.msra.mxu1 %v1320_v20  ;;  %v1337_v20 = vld [vmem:[%s1818_s1 + $0x148] sm:$0xff]   ;;  %v195_v55 = vadd.f32 %v1530_v43, %v119_v51  ;;  %v73_v43 = vsub.s32 4, %v1477_v24  ;;  %v1358_v3 = vld [vmem:[%s1818_s1 + $0x130] sm:$0xff]   ;;  %v85_v5 = vsub.s32 7, %v1477_v24  ;;  %v78_v7 = vrot.slane %v1516_v39, %v77_v60  ;;  %v1361_v49 = vld [vmem:[%s1818_s1 + $0x178] sm:$0xff]  }
  0x16   :  { %1197 = vmatprep.subr.bf16.mxu1 %v1323_v23  ;;  %863 = vmatprep.mubr.bf16.mxu0 %v231_v13  ;;  %v214_v23 = vmax.f32 %v187_v18, 0.0  ;;  %v1356_v62 = vld [vmem:[%s1818_s1 + $0x1a8] sm:$0xff]   ;;  %v196_v9 = vadd.f32 %v1567_v58, %v120_v4  ;;  %v1360_v10 = vld [vmem:[%s1818_s1 + $0x1b0] sm:$0xff]   ;;  %v1697_v11 = vrot.slane %v1524_v41, %v77_v60  ;;  %v1362_v58 = vld [vmem:[%s1818_s1 + $0x138] sm:$0xff]  }
  0x17   :  { %1170 = vmatpush3.bf16.msra.mxu0 %v1322_v22  ;;  %v233_v22 = vpack.c.bf16 %v215_v17, %v206_v16  ;;  %v222_v61 = vmax.f32 %v195_v55, 0.0  ;;  %v1700_v12 = vrot.slane %v1516_v39, %v73_v43  ;;  %v86_v16 = vrot.slane %v1516_v39, %v85_v5  ;;  %v1363_v17 = vld [vmem:[%s1818_s1 + $0x1f8] sm:$0xff]   ;;  %v46_v55 = vld [vmem:[%s1819_s0 + $0xb0] sm:$0xff]  ;;  %v1366_v0 = vld [vmem:[%s1818_s1 + $0x208] sm:$0xff]  }
  0x18   :  { %1171 = vmatprep.subr.bf16.mxu0 %v1325_v26  ;;  %v1339_v26 = vld [vmem:[%s1818_s1 + $0x1c8] sm:$0xff]   ;;  %v223_v13 = vmax.f32 %v196_v9, 0.0 }
  0x19   :  { %1198 = vmatpush3.bf16.msra.mxu1 %v1324_v25  ;;  %v1338_v25 = vld [vmem:[%s1818_s1 + $0x108] sm:$0xff]   ;;  %911 = vmatprep.mubr.bf16.mxu1 %v233_v22  ;;  %v240_v1 = vpack.c.bf16 %v222_v61, %v222_v61  ;;  %v28_v22 = vld [vmem:[%s1819_s0 + $0x20] sm:$0xff] }
  0x1a   :  { %1199 = vmatprep.subr.bf16.mxu1 %v1327_v28  ;;  %v1341_v28 = vld [vmem:[%s1818_s1 + $0x150] sm:$0xff]  }
  0x1b   :  { %1172 = vmatpush3.bf16.msra.mxu0 %v1326_v27  ;;  %v232_v27 = vpack.c.bf16 %v214_v23, %v205_v19  ;;  %v37_v23 = vld [vmem:[%s1819_s0 + $0x68] sm:$0xff] }
  0x1c   :  { %1173 = vmatprep.subr.bf16.mxu0 %v1329_v32  ;;  %v1345_v32 = vld [vmem:[%s1818_s1 + $0x158] sm:$0xff]  }
  0x1d   :  { %1200 = vmatpush3.bf16.msra.mxu1 %v1328_v30  ;;  %v1342_v30 = vld [vmem:[%s1818_s1 + $0x110] sm:$0xff]  }
  0x1e   :  { %1201 = vmatprep.subr.bf16.mxu1 %v1331_v36  ;;  %v1349_v36 = vld [vmem:[%s1818_s1 + $0x160] sm:$0xff]  }
  0x1f   :  { %1174 = vmatpush3.bf16.msra.mxu0 %v1330_v34  ;;  %v1346_v34 = vld [vmem:[%s1818_s1 + $0x118] sm:$0xff]  }
  0x20   :  { %1215 = vmatprep.subr.bf16.mxu0 %v1333_v54  ;;  %v118_v54 = vmul.f32 %v1527_v42, %v42_v52  ;;  %v45_v42 = vld [vmem:[%s1819_s0 + $0xa8] sm:$0xff] }
  0x21   :  { %1202 = vmatpush3.bf16.msra.mxu1 %v1332_v44  ;;  %v1351_v44 = vld [vmem:[%s1818_s1 + $0x1e0] sm:$0xff]   ;;  %v121_v63 = vmul.f32 %v1545_v48, %v45_v42  ;;  %v1359_v48 = vld [vmem:[%s1818_s1 + $0x1f0] sm:$0xff]  }
  0x22   :  { %1243 = vmatprep.subr.bf16.mxu1 %v1335_v8  ;;  %864 = vmatmul.mubr.bf16.vlgmr.msra.gmra.mrb[0].mxu0 %v230_v14  ;;  %v194_v40 = vadd.f32 %v1542_v47, %v118_v54  ;;  %v81_v8 = vsub.s32 6, %v1477_v24  ;;  %v29_v14 = vld [vmem:[%s1819_s0 + $0x28] sm:$0xff]  ;;  %v47_v54 = vld [vmem:[%s1819_s0 + $0xb8] sm:$0xff] }
  0x23   :  { %1216 = vmatpush3.bf16.msra.mxu0 %v1334_v15  ;;  %v197_v2 = vadd.f32 %v1564_v57, %v121_v63  ;;  %871 = vmatprep.mubr.bf16.mxu0 %v240_v1  ;;  %v38_v15 = vld [vmem:[%s1819_s0 + $0x70] sm:$0xff]  ;;  %v105_v18 = vmul.f32 %v78_v7, %v29_v14  ;;  %v48_v63 = vld [vmem:[%s1819_s0 + $0xc0] sm:$0xff]  ;;  %v41_v14 = vld [vmem:[%s1819_s0 + $0x88] sm:$0xff] }
  0x24   :  { %1217 = vmatprep.subr.bf16.mxu0 %v1337_v20  ;;  %912 = vmatmul.mubr.bf16.vlgmr.msra.gmra.mrb[0].mxu1 %v232_v27  ;;  %v221_v47 = vmax.f32 %v194_v40, 0.0  ;;  %v114_v19 = vmul.f32 %v78_v7, %v38_v15  ;;  %v150_v20 = vrot.slane %v1524_v41, %v73_v43 }
  0x25   :  { %1244 = vmatpush3.bf16.msra.mxu1 %v1336_v21  ;;  %v224_v57 = vmax.f32 %v197_v2, 0.0  ;;  %v241_v21 = vpack.c.bf16 %v223_v13, %v223_v13  ;;  %v181_v27 = vadd.f32 %v1697_v11, %v105_v18  ;;  %v122_v2 = vmul.f32 %v1700_v12, %v46_v55  ;;  %v1085_v18 = vld [vmem:[%s1821_s4 + $0x8] ss:$0 sm:$0xff] }
  0x26   :  { %1245 = vmatprep.subr.bf16.mxu1 %v1339_v26  ;;  %v239_v6 = vpack.c.bf16 %v221_v47, %v221_v47  ;;  %v82_v26 = vrot.slane %v1516_v39, %v81_v8  ;;  %v31_v39 = vld [vmem:[%s1819_s0 + $0x38] sm:$0xff] }
  0x27   :  { %1218 = vmatpush3.bf16.msra.mxu0 %v1338_v25  ;;  %v242_v24 = vpack.c.bf16 %v224_v57, %v224_v57  ;;  %v162_v25 = vrot.slane %v1524_v41, %v85_v5 }
  0x28   :  { %1219 = vmatprep.subr.bf16.mxu0 %v1341_v28  ;;  %v190_v28 = vadd.f32 %v1697_v11, %v114_v19 }
  0x29   :  { %1246 = vmatpush3.bf16.msra.mxu1 %v1340_v29  ;;  %919 = vmatprep.mubr.bf16.mxu1 %v242_v24  ;;  %v1364_v29 = vld [vmem:[%s1818_s1 + $0x1b8] sm:$0xff]  }
  0x2a   :  { %1247 = vmatprep.subr.bf16.mxu1 %v1343_v31  ;;  %872 = vmatmul.mubr.bf16.gmra.mrb[4].mxu0 %v239_v6  ;;  %v113_v31 = vmul.f32 %v1700_v12, %v37_v23 }
  0x2b   :  { %1220 = vmatpush3.bf16.msra.mxu0 %v1342_v30  ;;  %v104_v30 = vmul.f32 %v1700_v12, %v28_v22  ;;  %v1368_v22 = vld [vmem:[%s1818_s1 + $0x218] sm:$0xff]  }
  0x2c   :  { %1221 = vmatprep.subr.bf16.mxu0 %v1345_v32  ;;  %v1365_v32 = vld [vmem:[%s1818_s1 + $0x200] sm:$0xff]   ;;  %920 = vmatmul.mubr.bf16.gmra.mrb[4].mxu1 %v241_v21  ;;  %v189_v46 = vadd.f32 %v150_v20, %v113_v31  ;;  %v50_v31 = vld [vmem:[%s1819_s0 + $0xd0] sm:$0xff] }
  0x2d   :  { %1248 = vmatpush3.bf16.msra.mxu1 %v1344_v33  ;;  %v40_v33 = vld [vmem:[%s1819_s0 + $0x80] sm:$0xff] }
  0x2e   :  { %1249 = vmatprep.subr.bf16.mxu1 %v1347_v35  ;;  %v30_v35 = vld [vmem:[%s1819_s0 + $0x30] sm:$0xff]  ;;  %v216_v40 = vmax.f32 %v189_v46, 0.0 }
  0x2f   :  { %1222 = vmatpush3.bf16.msra.mxu0 %v1346_v34  ;;  %v107_v34 = vmul.f32 %v86_v16, %v31_v39  ;;  %v106_v52 = vmul.f32 %v82_v26, %v30_v35  ;;  %v1372_v35 = vld [vmem:[%s1818_s1 + $0x238] sm:$0xff]  }
  0x30   :  { %1223 = vmatprep.subr.bf16.mxu0 %v1349_v36  ;;  %v39_v36 = vld [vmem:[%s1819_s0 + $0x78] sm:$0xff] }
  0x31   :  { %1250 = vmatpush3.bf16.msra.mxu1 %v1348_v37  ;;  %v158_v37 = vrot.slane %v1524_v41, %v81_v8  ;;  %v183_v51 = vadd.f32 %v162_v25, %v107_v34  ;;  %v124_v8 = vmul.f32 %v82_v26, %v48_v63 }
  0x32   :  { %1251 = vmatprep.subr.bf16.mxu1 %v1351_v44  ;;  %v217_v44 = vmax.f32 %v190_v28, 0.0 }
  0x33   :  { %1224 = vmatpush3.bf16.msra.mxu0 %v1350_v38  ;;  %v208_v38 = vmax.f32 %v181_v27, 0.0  ;;  %v210_v60 = vmax.f32 %v183_v51, 0.0  ;;  %v182_v43 = vadd.f32 %v158_v37, %v106_v52  ;;  %v200_v12 = vadd.f32 %v158_v37, %v124_v8 }
  0x34   :  { %1225 = vmatprep.subr.bf16.mxu0 %v1353_v45  ;;  %v180_v45 = vadd.f32 %v150_v20, %v104_v30 }
  0x35   :  { %1252 = vmatpush3.bf16.msra.mxu1 %v1352_v50  ;;  %v116_v50 = vmul.f32 %v86_v16, %v40_v33  ;;  %v235_v41 = vpack.c.bf16 %v217_v44, %v208_v38  ;;  %v209_v4 = vmax.f32 %v182_v43, 0.0  ;;  %v1371_v33 = vld [vmem:[%s1818_s1 + $0x230] sm:$0xff]   ;;  %v1086_v44 = vld [vmem:[%s1822_s2] ss:$0 sm:$0xff] }
  0x36   :  { %1253 = vmatprep.subr.bf16.mxu1 %v1355_v56  ;;  %v207_v56 = vmax.f32 %v180_v45, 0.0 }
  0x37   :  { %1226 = vmatpush3.bf16.msra.mxu0 %v1354_v53  ;;  %v115_v53 = vmul.f32 %v82_v26, %v39_v36  ;;  %v192_v42 = vadd.f32 %v162_v25, %v116_v50  ;;  %959 = vmatprep.mubr.bf16.mxu0 %v235_v41 }
  0x38   :  { %1227 = vmatprep.subr.bf16.mxu0 %v1357_v59  ;;  %v123_v59 = vmul.f32 %v78_v7, %v47_v54  ;;  %v234_v47 = vpack.c.bf16 %v216_v40, %v207_v56  ;;  %v198_v7 = vadd.f32 %v150_v20, %v122_v2 }
  0x39   :  { %1254 = vmatpush3.bf16.msra.mxu1 %v1356_v62  ;;  %v191_v61 = vadd.f32 %v158_v37, %v115_v53  ;;  %v49_v62 = vld [vmem:[%s1819_s0 + $0xc8] sm:$0xff] }
  0x3a   :  { %1255 = vmatprep.subr.bf16.mxu1 %v1359_v48  ;;  %v199_v1 = vadd.f32 %v1697_v11, %v123_v59  ;;  %v125_v6 = vmul.f32 %v86_v16, %v49_v62  ;;  %v225_v24 = vmax.f32 %v198_v7, 0.0  ;;  %v1367_v11 = vld [vmem:[%s1818_s1 + $0x210] sm:$0xff]   ;;  %v227_v16 = vmax.f32 %v200_v12, 0.0 }
  0x3b   :  { %1228 = vmatpush3.bf16.msra.mxu0 %v1358_v3  ;;  %v219_v3 = vmax.f32 %v192_v42, 0.0  ;;  %v218_v5 = vmax.f32 %v191_v61, 0.0 }
  0x3c   :  { %1229 = vmatprep.subr.bf16.mxu0 %v1361_v49  ;;  %v226_v48 = vmax.f32 %v199_v1, 0.0  ;;  %v201_v49 = vadd.f32 %v162_v25, %v125_v6  ;;  %v243_v15 = vpack.c.bf16 %v225_v24, %v225_v24  ;;  %v245_v26 = vpack.c.bf16 %v227_v16, %v227_v16 }
  0x3d   :  { %1256 = vmatpush3.bf16.msra.mxu1 %v1360_v10  ;;  %v237_v57 = vpack.c.bf16 %v219_v3, %v210_v60  ;;  %v236_v9 = vpack.c.bf16 %v218_v5, %v209_v4 }
  0x3e   :  { %1257 = vmatprep.subr.bf16.mxu1 %v1363_v17  ;;  %v244_v10 = vpack.c.bf16 %v226_v48, %v226_v48  ;;  %v228_v13 = vmax.f32 %v201_v49, 0.0  ;;  %v1084_v17 = vld [vmem:[%s1820_s3 + $0x8] ss:$0 sm:$0xff] }
  0x3f   :  { %1230 = vmatpush3.bf16.msra.mxu0 %v1362_v58  ;;  %1007 = vmatprep.mubr.bf16.mxu1 %v237_v57  ;;  %v32_v58 = vld [vmem:[%s1819_s0 + $0x40] sm:$0xff]  ;;  %v117_v21 = vmul.f32 %v1084_v17, %v41_v14  ;;  %v126_v39 = vmul.f32 %v1084_v17, %v50_v31 }
  0x40   :  { %1281 = vmatprep.subr.bf16.mxu0 %v1365_v32  ;;  %v246_v19 = vpack.c.bf16 %v228_v13, %v228_v13  ;;  %v108_v20 = vmul.f32 %v1084_v17, %v32_v58 }
  0x41   :  { %1258 = vmatpush3.bf16.msra.mxu1 %v1364_v29  ;;  %v193_v25 = vadd.f32 %v1085_v18, %v117_v21  ;;  %v1369_v29 = vld [vmem:[%s1818_s1 + $0x220] sm:$0xff]   ;;  %v202_v34 = vadd.f32 %v1085_v18, %v126_v39  ;;  %v1073_v39 = vld [vmem:[%s1823_s5 + $0x10] sm:$0xff] }
  0x42   :  { %960 = vmatmul.mubr.bf16.vlgmr.msra.gmra.mrb[8].mxu0 %v234_v47  ;;  %v184_v23 = vadd.f32 %v1085_v18, %v108_v20 }
  0x43   :  { %1282 = vmatpush3.bf16.msra.mxu0 %v1365_v32  ;;  %967 = vmatprep.mubr.bf16.mxu0 %v244_v10  ;;  %v220_v28 = vmax.f32 %v193_v25, 0.0  ;;  %v1370_v32 = vld [vmem:[%s1818_s1 + $0x228] sm:$0xff]   ;;  %v229_v36 = vmax.f32 %v202_v34, 0.0 }
  0x44   :  { %1283 = vmatprep.subr.bf16.mxu0 %v1366_v0  ;;  %1008 = vmatmul.mubr.bf16.vlgmr.msra.gmra.mrb[8].mxu1 %v236_v9  ;;  %v211_v27 = vmax.f32 %v184_v23, 0.0 }
  0x45   :  { %1015 = vmatprep.mubr.bf16.mxu1 %v246_v19  ;;  %v247_v37 = vpack.c.bf16 %v229_v36, %v229_v36 }
  0x46   :  { %v238_v30 = vpack.c.bf16 %v220_v28, %v211_v27 }
  0x47   :  { %1284 = vmatpush3.bf16.msra.mxu0 %v1366_v0 }
  0x48   :  { %1285 = vmatprep.subr.bf16.mxu0 %v1367_v11 }
  0x4a   :  { %968 = vmatmul.mubr.bf16.gmra.mrb[12].mxu0 %v243_v15 }
  0x4b   :  { %1286 = vmatpush3.bf16.msra.mxu0 %v1367_v11  ;;  %1297 = vmatprep.mubr.bf16.mxu0 %v238_v30 }
  0x4c   :  { %1287 = vmatprep.subr.bf16.mxu0 %v1368_v22  ;;  %1016 = vmatmul.mubr.bf16.gmra.mrb[12].mxu1 %v245_v26 }
  0x4f   :  { %1288 = vmatpush3.bf16.msra.mxu0 %v1368_v22 }
  0x50   :  { %1289 = vmatprep.subr.bf16.mxu0 %v1369_v29 }
  0x53   :  { %1290 = vmatpush3.bf16.msra.mxu0 %v1369_v29 }
  0x54   :  { %1291 = vmatprep.subr.bf16.mxu0 %v1370_v32 }
  0x57   :  { %1292 = vmatpush3.bf16.msra.mxu0 %v1370_v32 }
  0x58   :  { %1293 = vmatprep.subr.bf16.mxu0 %v1371_v33 }
  0x5b   :  { %1294 = vmatpush3.bf16.msra.mxu0 %v1371_v33 }
  0x5c   :  { %1295 = vmatprep.subr.bf16.mxu0 %v1372_v35 }
  0x5f   :  { %1296 = vmatpush3.bf16.msra.mxu0 %v1372_v35  ;;  %v1071_v35 = vld [vmem:[%s1823_s5] sm:$0xff] }
  0x62   :  { %1298 = vmatmul.mubr.bf16.vlgmr.msra.gmra.mrb[16].mxu0 %v247_v37 }
  0xf5   :  { %v1175_v38 = vpop.f32.mrb[0].mxu0 }
  0xf6   :  { %v1176_v45 = vpop.f32.mrb[1].mxu0 }
  0xf7   :  { %v1177_v46 = vadd.f32 %v1176_v45, %v1175_v38  ;;  %v1178_v50 = vpop.f32.mrb[2].mxu0  ;;  %v1203_v53 = vpop.f32.mrb[0].mxu1  ;;  %v1072_v45 = vld [vmem:[%s1823_s5 + $0x8] sm:$0xff] }
  0xf8   :  { %v1179_v51 = vpop.f32.mrb[3].mxu0  ;;  %v1204_v55 = vpop.f32.mrb[1].mxu1 }
  0xf9   :  { %v866_v52 = vadd.f32 %v1177_v46, %v1086_v44  ;;  %v1180_v54 = vadd.f32 %v1179_v51, %v1178_v50  ;;  %v1205_v56 = vadd.f32 %v1204_v55, %v1203_v53  ;;  %v1206_v40 = vpop.f32.mrb[2].mxu1 }
  0xfa   :  { %v1207_v59 = vpop.f32.mrb[3].mxu1 }
  0xfb   :  { %v869_v41 = vadd.f32 %v1180_v54, %v1086_v44  ;;  %v914_v42 = vadd.f32 %v1205_v56, %v866_v52  ;;  %v1208_v60 = vadd.f32 %v1207_v59, %v1206_v40 }
  0xfd   :  { %v917_v43 = vadd.f32 %v1208_v60, %v869_v41  ;;  %v1181_v61 = vpop.f32.mrb[4].mxu0 }
  0xfe   :  { %v1182_v62 = vpop.f32.mrb[5].mxu0 }
  0xff   :  { %v1183_v63 = vadd.f32 %v1182_v62, %v1181_v61  ;;  %v1184_v47 = vpop.f32.mrb[6].mxu0  ;;  %v1209_v2 = vpop.f32.mrb[4].mxu1 }
 0x100   :  { %v1185_v0 = vpop.f32.mrb[7].mxu0  ;;  %v1210_v3 = vpop.f32.mrb[5].mxu1 }
 0x101   :  { %v874_v1 = vadd.f32 %v1183_v63, %v1086_v44  ;;  %v1211_v4 = vadd.f32 %v1210_v3, %v1209_v2  ;;  %v1212_v5 = vpop.f32.mrb[6].mxu1 }
 0x102   :  { %v1213_v6 = vpop.f32.mrb[7].mxu1 }
 0x103   :  { %v922_v48 = vadd.f32 %v1211_v4, %v874_v1 }
 0x115   :  { %v1231_v7 = vpop.f32.mrb[8].mxu0 }
 0x116   :  { %v1232_v8 = vpop.f32.mrb[9].mxu0 }
 0x117   :  { %v1233_v57 = vadd.f32 %v1232_v8, %v1231_v7  ;;  %v1234_v9 = vpop.f32.mrb[10].mxu0  ;;  %v1259_v24 = vpop.f32.mrb[8].mxu1 }
 0x118   :  { %v1235_v49 = vpop.f32.mrb[11].mxu0  ;;  %v1260_v12 = vpop.f32.mrb[9].mxu1 }
 0x119   :  { %v962_v10 = vadd.f32 %v1233_v57, %v914_v42  ;;  %v1236_v11 = vadd.f32 %v1235_v49, %v1234_v9  ;;  %v1261_v58 = vadd.f32 %v1260_v12, %v1259_v24  ;;  %v1262_v14 = vpop.f32.mrb[10].mxu1 }
 0x11a   :  { %v1263_v15 = vpop.f32.mrb[11].mxu1 }
 0x11b   :  { %v965_v13 = vadd.f32 %v1236_v11, %v917_v43  ;;  %v1264_v16 = vadd.f32 %v1263_v15, %v1262_v14  ;;  %v1010_v18 = vadd.f32 %v1261_v58, %v962_v10 }
 0x11d   :  { %v1237_v17 = vpop.f32.mrb[12].mxu0  ;;  %v1013_v22 = vadd.f32 %v1264_v16, %v965_v13 }
 0x11e   :  { %v1238_v19 = vpop.f32.mrb[13].mxu0 }
 0x11f   :  { %v1239_v20 = vadd.f32 %v1238_v19, %v1237_v17  ;;  %v1240_v21 = vpop.f32.mrb[14].mxu0  ;;  %v1265_v26 = vpop.f32.mrb[12].mxu1 }
 0x120   :  { %v1241_v23 = vpop.f32.mrb[15].mxu0  ;;  %v1266_v27 = vpop.f32.mrb[13].mxu1 }
 0x121   :  { %v970_v25 = vadd.f32 %v1239_v20, %v922_v48  ;;  %v1267_v28 = vadd.f32 %v1266_v27, %v1265_v26  ;;  %v1268_v29 = vpop.f32.mrb[14].mxu1 }
 0x122   :  { %v1269_v30 = vpop.f32.mrb[15].mxu1 }
 0x123   :  { %v1018_v31 = vadd.f32 %v1267_v28, %v970_v25 }
 0x135   :  { %v1299_v32 = vpop.f32.mrb[16].mxu0 }
 0x136   :  { %v1066_v33 = vadd.f32 %v1299_v32, %v1018_v31  ;;  %v1057_v34 = vpop.f32.mrb[17].mxu0 }
 0x137   :  { %v1058_v36 = vadd.f32 %v1057_v34, %v1010_v18  ;;  %v1300_v37 = vpop.f32.mrb[18].mxu0 }
 0x138   :  { %v1076_v38 = vadd.f32 %v1073_v39, %v1066_v33  ;;  %v1060_v44 = vpop.f32.mrb[19].mxu0 }
 0x139   :  { %v1074_v46 = vadd.f32 %v1071_v35, %v1058_v36  ;;  %v1061_v50 = vadd.f32 %v1060_v44, %v1013_v22 }
 0x13a   :  { %1079 = vst [vmem:[%s1824_s6 + $0x10] sm:$0xff] %v1076_v38 }
 0x13b   :  { %1077 = vst [vmem:[%s1824_s6] sm:$0xff] %v1074_v46  ;;  %v1075_v51 = vadd.f32 %v1072_v45, %v1061_v50 }
 0x13d   :  { %1078 = vst [vmem:[%s1824_s6 + $0x8] sm:$0xff] %v1075_v51 }

// kernel: resnet8_forward.15
= control target key start
LH: loop header
LB: loop body
LE: loop exit
PB: predicated region body
PF: predicated region fallthrough
CT: control target
= control target key end

     0   :  { %vm3210_vm0 = vcmask 31744   ;;  %s5670_s1 = inlined_call_operand.vmem [shape: bf16[1536,512], index: 1, kind: input, shape index: {}]   ;;  %s5671_s0 = inlined_call_operand.vmem [shape: f32[8,1536], index: 0, kind: input, shape index: {}]   ;;  %s5672_s3 = inlined_call_operand.vmem [shape: bf16[512,4], index: 3, kind: input, shape index: {}]   ;;  %s5673_s2 = inlined_call_operand.vmem [shape: f32[1,512], index: 2, kind: input, shape index: {}]   ;;  %s5674_s4 = inlined_call_operand.vmem [shape: f32[1,4], index: 4, kind: input, shape index: {}]   ;;  %s5675_s5 = inlined_call_operand.vmem [shape: f32[8,4], index: 5, kind: output, shape index: {}]  }
   0x1   :  { %v3732_v0 = vld [vmem:[%s5670_s1 + $0x4] ss:$16 sps:$4 sm:$0xff]   ;;  %v3734_v1 = vld [vmem:[%s5670_s1 + $0xc] ss:$16 sps:$4 sm:$0xff]   ;;  %v3736_v2 = vld [vmem:[%s5670_s1] ss:$16 sps:$4 sm:$0xff]  }
   0x2   :  { %2371 = vmatprep.subr.bf16.mxu0 %v3732_v0  ;;  %v3737_v3 = vld [vmem:[%s5670_s1 + $0x8] ss:$16 sps:$4 sm:$0xff]   ;;  %2617 = vmatprep.subr.bf16.mxu1 %v3734_v1  ;;  %v3738_v4 = vld [vmem:[%s5670_s1 + $0x24] ss:$16 sps:$4 sm:$0xff]   ;;  %v3740_v5 = vld [vmem:[%s5670_s1 + $0x2c] ss:$16 sps:$4 sm:$0xff]  }
   0x3   :  { %2372 = vmatpush1.bf16.msra.mxu0 %v3736_v2  ;;  %2618 = vmatpush1.bf16.msra.mxu1 %v3737_v3  ;;  %v3742_v6 = vld [vmem:[%s5670_s1 + $0x20] ss:$16 sps:$4 sm:$0xff]   ;;  %v3743_v7 = vld [vmem:[%s5670_s1 + $0x28] ss:$16 sps:$4 sm:$0xff]   ;;  %v3744_v8 = vld [vmem:[%s5670_s1 + $0x44] ss:$16 sps:$4 sm:$0xff]  }
   0x4   :  { %2373 = vmatprep.subr.bf16.mxu0 %v3738_v4  ;;  %2619 = vmatprep.subr.bf16.mxu1 %v3740_v5  ;;  %v3746_v9 = vld [vmem:[%s5670_s1 + $0x4c] ss:$16 sps:$4 sm:$0xff]   ;;  %v3748_v10 = vld [vmem:[%s5670_s1 + $0x40] ss:$16 sps:$4 sm:$0xff]   ;;  %v3749_v11 = vld [vmem:[%s5670_s1 + $0x48] ss:$16 sps:$4 sm:$0xff]  }
   0x5   :  { %v3750_v12 = vld [vmem:[%s5670_s1 + $0x64] ss:$16 sps:$4 sm:$0xff]   ;;  %v3752_v13 = vld [vmem:[%s5670_s1 + $0x6c] ss:$16 sps:$4 sm:$0xff]   ;;  %v3754_v14 = vld [vmem:[%s5670_s1 + $0x60] ss:$16 sps:$4 sm:$0xff]  }
   0x6   :  { %v3755_v15 = vld [vmem:[%s5670_s1 + $0x68] ss:$16 sps:$4 sm:$0xff]   ;;  %v3756_v16 = vld [vmem:[%s5670_s1 + $0x84] ss:$16 sps:$4 sm:$0xff]   ;;  %v3758_v17 = vld [vmem:[%s5670_s1 + $0x8c] ss:$16 sps:$4 sm:$0xff]  }
   0x7   :  { %2374 = vmatpush1.bf16.msra.mxu0 %v3742_v6  ;;  %2620 = vmatpush1.bf16.msra.mxu1 %v3743_v7  ;;  %v3760_v18 = vld [vmem:[%s5670_s1 + $0x80] ss:$16 sps:$4 sm:$0xff]   ;;  %v3761_v19 = vld [vmem:[%s5670_s1 + $0x88] ss:$16 sps:$4 sm:$0xff]   ;;  %v3762_v20 = vld [vmem:[%s5670_s1 + $0xa4] ss:$16 sps:$4 sm:$0xff]  }
   0x8   :  { %2375 = vmatprep.subr.bf16.mxu0 %v3744_v8  ;;  %2621 = vmatprep.subr.bf16.mxu1 %v3746_v9  ;;  %v3764_v21 = vld [vmem:[%s5670_s1 + $0xac] ss:$16 sps:$4 sm:$0xff]   ;;  %v3766_v22 = vld [vmem:[%s5670_s1 + $0xa0] ss:$16 sps:$4 sm:$0xff]   ;;  %v3767_v23 = vld [vmem:[%s5670_s1 + $0xa8] ss:$16 sps:$4 sm:$0xff]  }
   0x9   :  { %v3768_v24 = vld [vmem:[%s5670_s1 + $0xc4] ss:$16 sps:$4 sm:$0xff]   ;;  %v3770_v25 = vld [vmem:[%s5670_s1 + $0xcc] ss:$16 sps:$4 sm:$0xff]   ;;  %v3772_v26 = vld [vmem:[%s5670_s1 + $0xc0] ss:$16 sps:$4 sm:$0xff]  }
   0xa   :  { %v3773_v27 = vld [vmem:[%s5670_s1 + $0xc8] ss:$16 sps:$4 sm:$0xff]   ;;  %v3774_v28 = vld [vmem:[%s5670_s1 + $0xe4] ss:$16 sps:$4 sm:$0xff]   ;;  %v3776_v29 = vld [vmem:[%s5670_s1 + $0xec] ss:$16 sps:$4 sm:$0xff]  }
   0xb   :  { %2376 = vmatpush1.bf16.msra.mxu0 %v3748_v10  ;;  %2622 = vmatpush1.bf16.msra.mxu1 %v3749_v11  ;;  %v3778_v30 = vld [vmem:[%s5670_s1 + $0xe0] ss:$16 sps:$4 sm:$0xff]   ;;  %v3779_v31 = vld [vmem:[%s5670_s1 + $0xe8] ss:$16 sps:$4 sm:$0xff]   ;;  %v3780_v32 = vld [vmem:[%s5670_s1 + $0x104] ss:$16 sps:$4 sm:$0xff]  }
   0xc   :  { %2377 = vmatprep.subr.bf16.mxu0 %v3750_v12  ;;  %2623 = vmatprep.subr.bf16.mxu1 %v3752_v13  ;;  %v3782_v33 = vld [vmem:[%s5670_s1 + $0x10c] ss:$16 sps:$4 sm:$0xff]   ;;  %v3784_v34 = vld [vmem:[%s5670_s1 + $0x100] ss:$16 sps:$4 sm:$0xff]   ;;  %v3785_v35 = vld [vmem:[%s5670_s1 + $0x108] ss:$16 sps:$4 sm:$0xff]  }
   0xd   :  { %v3786_v36 = vld [vmem:[%s5670_s1 + $0x124] ss:$16 sps:$4 sm:$0xff]   ;;  %v3788_v37 = vld [vmem:[%s5670_s1 + $0x12c] ss:$16 sps:$4 sm:$0xff]   ;;  %v3790_v38 = vld [vmem:[%s5670_s1 + $0x120] ss:$16 sps:$4 sm:$0xff]  }
   0xe   :  { %v3791_v39 = vld [vmem:[%s5670_s1 + $0x128] ss:$16 sps:$4 sm:$0xff]   ;;  %v3792_v40 = vld [vmem:[%s5670_s1 + $0x144] ss:$16 sps:$4 sm:$0xff]   ;;  %v3794_v41 = vld [vmem:[%s5670_s1 + $0x14c] ss:$16 sps:$4 sm:$0xff]  }
   0xf   :  { %2378 = vmatpush1.bf16.msra.mxu0 %v3754_v14  ;;  %2624 = vmatpush1.bf16.msra.mxu1 %v3755_v15  ;;  %v3796_v42 = vld [vmem:[%s5670_s1 + $0x140] ss:$16 sps:$4 sm:$0xff]   ;;  %v3797_v43 = vld [vmem:[%s5670_s1 + $0x148] ss:$16 sps:$4 sm:$0xff]   ;;  %v3798_v44 = vld [vmem:[%s5670_s1 + $0x164] ss:$16 sps:$4 sm:$0xff]  }
  0x10   :  { %2379 = vmatprep.subr.bf16.mxu0 %v3756_v16  ;;  %2625 = vmatprep.subr.bf16.mxu1 %v3758_v17  ;;  %v3800_v45 = vld [vmem:[%s5670_s1 + $0x16c] ss:$16 sps:$4 sm:$0xff]   ;;  %v3802_v47 = vld [vmem:[%s5670_s1 + $0x160] ss:$16 sps:$4 sm:$0xff]   ;;  %v3803_v49 = vld [vmem:[%s5670_s1 + $0x168] ss:$16 sps:$4 sm:$0xff]  }
  0x11   :  { %v22_v46 = vld [vmem:[%s5671_s0 + $0x8] sm:$0xff]  ;;  %v3804_v50 = vld [vmem:[%s5670_s1 + $0x184] ss:$16 sps:$4 sm:$0xff]   ;;  %v3808_v52 = vld [vmem:[%s5670_s1 + $0x180] ss:$16 sps:$4 sm:$0xff]  }
  0x12   :  { %v34_v48 = vpack.c.bf16 %v22_v46, %v22_v46  ;;  %v3806_v51 = vld [vmem:[%s5670_s1 + $0x18c] ss:$16 sps:$4 sm:$0xff]   ;;  %v3809_v53 = vld [vmem:[%s5670_s1 + $0x188] ss:$16 sps:$4 sm:$0xff]   ;;  %v3810_v54 = vld [vmem:[%s5670_s1 + $0x1a4] ss:$16 sps:$4 sm:$0xff]  }
  0x13   :  { %2380 = vmatpush1.bf16.msra.mxu0 %v3760_v18  ;;  %2626 = vmatpush1.bf16.msra.mxu1 %v3761_v19  ;;  %v3812_v55 = vld [vmem:[%s5670_s1 + $0x1ac] ss:$16 sps:$4 sm:$0xff]   ;;  %v3814_v56 = vld [vmem:[%s5670_s1 + $0x1a0] ss:$16 sps:$4 sm:$0xff]   ;;  %v3815_v57 = vld [vmem:[%s5670_s1 + $0x1a8] ss:$16 sps:$4 sm:$0xff]  }
  0x14   :  { %2381 = vmatprep.subr.bf16.mxu0 %v3762_v20  ;;  %2627 = vmatprep.subr.bf16.mxu1 %v3764_v21  ;;  %v3816_v58 = vld [vmem:[%s5670_s1 + $0x1c4] ss:$16 sps:$4 sm:$0xff]   ;;  %v3818_v59 = vld [vmem:[%s5670_s1 + $0x1cc] ss:$16 sps:$4 sm:$0xff]   ;;  %v3820_v60 = vld [vmem:[%s5670_s1 + $0x1c0] ss:$16 sps:$4 sm:$0xff]  }
  0x15   :  { %2403 = vmatprep.mubr.bf16.mxu0 %v34_v48  ;;  %2649 = vmatprep.mubr.bf16.mxu1 %v34_v48  ;;  %v3821_v61 = vld [vmem:[%s5670_s1 + $0x1c8] ss:$16 sps:$4 sm:$0xff]   ;;  %v3822_v62 = vld [vmem:[%s5670_s1 + $0x1e4] ss:$16 sps:$4 sm:$0xff]   ;;  %v3824_v63 = vld [vmem:[%s5670_s1 + $0x1ec] ss:$16 sps:$4 sm:$0xff]  }
  0x16   :  { %v3826_v0 = vld [vmem:[%s5670_s1 + $0x1e0] ss:$16 sps:$4 sm:$0xff]   ;;  %v3827_v1 = vld [vmem:[%s5670_s1 + $0x1e8] ss:$16 sps:$4 sm:$0xff]   ;;  %v3830_v3 = vld [vmem:[%s5670_s1 + $0x204] ss:$16 sps:$4 sm:$0xff]  }
  0x17   :  { %2382 = vmatpush1.bf16.msra.mxu0 %v3766_v22  ;;  %2628 = vmatpush1.bf16.msra.mxu1 %v3767_v23  ;;  %v21_v2 = vld [vmem:[%s5671_s0] sm:$0xff]  ;;  %v3833_v4 = vld [vmem:[%s5670_s1 + $0x20c] ss:$16 sps:$4 sm:$0xff]   ;;  %v3831_v7 = vld [vmem:[%s5670_s1 + $0x208] ss:$16 sps:$4 sm:$0xff]  }
  0x18   :  { %2383 = vmatprep.subr.bf16.mxu0 %v3768_v24  ;;  %2629 = vmatprep.subr.bf16.mxu1 %v3770_v25  ;;  %v33_v5 = vpack.c.bf16 %v21_v2, %v21_v2  ;;  %v3828_v6 = vld [vmem:[%s5670_s1 + $0x200] ss:$16 sps:$4 sm:$0xff]   ;;  %v3836_v8 = vld [vmem:[%s5670_s1 + $0x224] ss:$16 sps:$4 sm:$0xff]   ;;  %v3839_v9 = vld [vmem:[%s5670_s1 + $0x22c] ss:$16 sps:$4 sm:$0xff]  }
  0x19   :  { %v3834_v10 = vld [vmem:[%s5670_s1 + $0x220] ss:$16 sps:$4 sm:$0xff]   ;;  %v3837_v11 = vld [vmem:[%s5670_s1 + $0x228] ss:$16 sps:$4 sm:$0xff]   ;;  %v3842_v12 = vld [vmem:[%s5670_s1 + $0x244] ss:$16 sps:$4 sm:$0xff]  }
  0x1a   :  { %v3845_v13 = vld [vmem:[%s5670_s1 + $0x24c] ss:$16 sps:$4 sm:$0xff]   ;;  %v3840_v14 = vld [vmem:[%s5670_s1 + $0x240] ss:$16 sps:$4 sm:$0xff]   ;;  %v3843_v15 = vld [vmem:[%s5670_s1 + $0x248] ss:$16 sps:$4 sm:$0xff]  }
  0x1b   :  { %2384 = vmatpush1.bf16.msra.mxu0 %v3772_v26  ;;  %2630 = vmatpush1.bf16.msra.mxu1 %v3773_v27  ;;  %v3848_v16 = vld [vmem:[%s5670_s1 + $0x264] ss:$16 sps:$4 sm:$0xff]   ;;  %v3851_v17 = vld [vmem:[%s5670_s1 + $0x26c] ss:$16 sps:$4 sm:$0xff]   ;;  %v3846_v18 = vld [vmem:[%s5670_s1 + $0x260] ss:$16 sps:$4 sm:$0xff]  }
  0x1c   :  { %2385 = vmatprep.subr.bf16.mxu0 %v3774_v28  ;;  %2631 = vmatprep.subr.bf16.mxu1 %v3776_v29  ;;  %v3849_v19 = vld [vmem:[%s5670_s1 + $0x268] ss:$16 sps:$4 sm:$0xff]   ;;  %v3854_v20 = vld [vmem:[%s5670_s1 + $0x284] ss:$16 sps:$4 sm:$0xff]   ;;  %v3857_v21 = vld [vmem:[%s5670_s1 + $0x28c] ss:$16 sps:$4 sm:$0xff]  }
  0x1d   :  { %v3852_v22 = vld [vmem:[%s5670_s1 + $0x280] ss:$16 sps:$4 sm:$0xff]   ;;  %v3855_v23 = vld [vmem:[%s5670_s1 + $0x288] ss:$16 sps:$4 sm:$0xff]   ;;  %v3860_v24 = vld [vmem:[%s5670_s1 + $0x2a4] ss:$16 sps:$4 sm:$0xff]  }
  0x1e   :  { %v3863_v25 = vld [vmem:[%s5670_s1 + $0x2ac] ss:$16 sps:$4 sm:$0xff]   ;;  %v3858_v26 = vld [vmem:[%s5670_s1 + $0x2a0] ss:$16 sps:$4 sm:$0xff]   ;;  %v3861_v27 = vld [vmem:[%s5670_s1 + $0x2a8] ss:$16 sps:$4 sm:$0xff]  }
  0x1f   :  { %2386 = vmatpush1.bf16.msra.mxu0 %v3778_v30  ;;  %2632 = vmatpush1.bf16.msra.mxu1 %v3779_v31  ;;  %v3866_v28 = vld [vmem:[%s5670_s1 + $0x2c4] ss:$16 sps:$4 sm:$0xff]   ;;  %v3869_v29 = vld [vmem:[%s5670_s1 + $0x2cc] ss:$16 sps:$4 sm:$0xff]   ;;  %v3864_v31 = vld [vmem:[%s5670_s1 + $0x2c0] ss:$16 sps:$4 sm:$0xff]  }
  0x20   :  { %2387 = vmatprep.subr.bf16.mxu0 %v3780_v32  ;;  %2633 = vmatprep.subr.bf16.mxu1 %v3782_v33  ;;  %v24_v30 = vld [vmem:[%s5671_s0 + $0x18] sm:$0xff]  ;;  %v3890_v46 = vld [vmem:[%s5670_s1 + $0x344] ss:$16 sps:$4 sm:$0xff]   ;;  %v3888_v48 = vld [vmem:[%s5670_s1 + $0x340] ss:$16 sps:$4 sm:$0xff]  }
  0x21   :  { %v36_v32 = vpack.c.bf16 %v24_v30, %v24_v30  ;;  %v3867_v33 = vld [vmem:[%s5670_s1 + $0x2c8] ss:$16 sps:$4 sm:$0xff]   ;;  %v3920_v2 = vld [vmem:[%s5670_s1 + $0x3e4] ss:$16 sps:$4 sm:$0xff]  }
  0x22   :  { %v3956_v30 = vld [vmem:[%s5670_s1 + $0x4a4] ss:$16 sps:$4 sm:$0xff]  }
  0x23   :  { %2388 = vmatpush1.bf16.msra.mxu0 %v3784_v34  ;;  %2634 = vmatpush1.bf16.msra.mxu1 %v3785_v35  ;;  %v3872_v34 = vld [vmem:[%s5670_s1 + $0x2e4] ss:$16 sps:$4 sm:$0xff]   ;;  %v3875_v35 = vld [vmem:[%s5670_s1 + $0x2ec] ss:$16 sps:$4 sm:$0xff]  }
  0x24   :  { %2389 = vmatprep.subr.bf16.mxu0 %v3786_v36  ;;  %2635 = vmatprep.subr.bf16.mxu1 %v3788_v37  ;;  %v3870_v36 = vld [vmem:[%s5670_s1 + $0x2e0] ss:$16 sps:$4 sm:$0xff]   ;;  %v3873_v37 = vld [vmem:[%s5670_s1 + $0x2e8] ss:$16 sps:$4 sm:$0xff]  }
  0x27   :  { %2390 = vmatpush1.bf16.msra.mxu0 %v3790_v38  ;;  %2636 = vmatpush1.bf16.msra.mxu1 %v3791_v39  ;;  %v3878_v38 = vld [vmem:[%s5670_s1 + $0x304] ss:$16 sps:$4 sm:$0xff]   ;;  %v3881_v39 = vld [vmem:[%s5670_s1 + $0x30c] ss:$16 sps:$4 sm:$0xff]  }
  0x28   :  { %2391 = vmatprep.subr.bf16.mxu0 %v3792_v40  ;;  %2637 = vmatprep.subr.bf16.mxu1 %v3794_v41  ;;  %v3876_v40 = vld [vmem:[%s5670_s1 + $0x300] ss:$16 sps:$4 sm:$0xff]   ;;  %v3879_v41 = vld [vmem:[%s5670_s1 + $0x308] ss:$16 sps:$4 sm:$0xff]  }
  0x2b   :  { %2392 = vmatpush1.bf16.msra.mxu0 %v3796_v42  ;;  %2638 = vmatpush1.bf16.msra.mxu1 %v3797_v43  ;;  %v3884_v42 = vld [vmem:[%s5670_s1 + $0x324] ss:$16 sps:$4 sm:$0xff]   ;;  %v3887_v43 = vld [vmem:[%s5670_s1 + $0x32c] ss:$16 sps:$4 sm:$0xff]  }
  0x2c   :  { %2393 = vmatprep.subr.bf16.mxu0 %v3798_v44  ;;  %2639 = vmatprep.subr.bf16.mxu1 %v3800_v45  ;;  %v3882_v44 = vld [vmem:[%s5670_s1 + $0x320] ss:$16 sps:$4 sm:$0xff]   ;;  %v3885_v45 = vld [vmem:[%s5670_s1 + $0x328] ss:$16 sps:$4 sm:$0xff]  }
  0x2f   :  { %2394 = vmatpush1.bf16.msra.mxu0 %v3802_v47  ;;  %2640 = vmatpush1.bf16.msra.mxu1 %v3803_v49  ;;  %v3893_v47 = vld [vmem:[%s5670_s1 + $0x34c] ss:$16 sps:$4 sm:$0xff]   ;;  %v3891_v49 = vld [vmem:[%s5670_s1 + $0x348] ss:$16 sps:$4 sm:$0xff]  }
  0x30   :  { %2395 = vmatprep.subr.bf16.mxu0 %v3804_v50  ;;  %2641 = vmatprep.subr.bf16.mxu1 %v3806_v51  ;;  %v3896_v50 = vld [vmem:[%s5670_s1 + $0x364] ss:$16 sps:$4 sm:$0xff]   ;;  %v3899_v51 = vld [vmem:[%s5670_s1 + $0x36c] ss:$16 sps:$4 sm:$0xff]  }
  0x33   :  { %2396 = vmatpush1.bf16.msra.mxu0 %v3808_v52  ;;  %2642 = vmatpush1.bf16.msra.mxu1 %v3809_v53  ;;  %v3894_v52 = vld [vmem:[%s5670_s1 + $0x360] ss:$16 sps:$4 sm:$0xff]   ;;  %v3897_v53 = vld [vmem:[%s5670_s1 + $0x368] ss:$16 sps:$4 sm:$0xff]  }
  0x34   :  { %2397 = vmatprep.subr.bf16.mxu0 %v3810_v54  ;;  %2643 = vmatprep.subr.bf16.mxu1 %v3812_v55  ;;  %v3902_v54 = vld [vmem:[%s5670_s1 + $0x384] ss:$16 sps:$4 sm:$0xff]   ;;  %v3905_v55 = vld [vmem:[%s5670_s1 + $0x38c] ss:$16 sps:$4 sm:$0xff]  }
  0x37   :  { %2398 = vmatpush1.bf16.msra.mxu0 %v3814_v56  ;;  %2644 = vmatpush1.bf16.msra.mxu1 %v3815_v57  ;;  %v3900_v56 = vld [vmem:[%s5670_s1 + $0x380] ss:$16 sps:$4 sm:$0xff]   ;;  %v3903_v57 = vld [vmem:[%s5670_s1 + $0x388] ss:$16 sps:$4 sm:$0xff]  }
  0x38   :  { %2399 = vmatprep.subr.bf16.mxu0 %v3816_v58  ;;  %2645 = vmatprep.subr.bf16.mxu1 %v3818_v59  ;;  %v3908_v58 = vld [vmem:[%s5670_s1 + $0x3a4] ss:$16 sps:$4 sm:$0xff]   ;;  %v3911_v59 = vld [vmem:[%s5670_s1 + $0x3ac] ss:$16 sps:$4 sm:$0xff]  }
  0x3b   :  { %2400 = vmatpush1.bf16.msra.mxu0 %v3820_v60  ;;  %2646 = vmatpush1.bf16.msra.mxu1 %v3821_v61  ;;  %v3906_v60 = vld [vmem:[%s5670_s1 + $0x3a0] ss:$16 sps:$4 sm:$0xff]   ;;  %v3909_v61 = vld [vmem:[%s5670_s1 + $0x3a8] ss:$16 sps:$4 sm:$0xff]  }
  0x3c   :  { %2401 = vmatprep.subr.bf16.mxu0 %v3822_v62  ;;  %2647 = vmatprep.subr.bf16.mxu1 %v3824_v63  ;;  %v3914_v62 = vld [vmem:[%s5670_s1 + $0x3c4] ss:$16 sps:$4 sm:$0xff]   ;;  %v3917_v63 = vld [vmem:[%s5670_s1 + $0x3cc] ss:$16 sps:$4 sm:$0xff]  }
  0x3f   :  { %2402 = vmatpush1.bf16.msra.mxu0 %v3826_v0  ;;  %2648 = vmatpush1.bf16.msra.mxu1 %v3827_v1  ;;  %v3912_v0 = vld [vmem:[%s5670_s1 + $0x3c0] ss:$16 sps:$4 sm:$0xff]   ;;  %v3915_v1 = vld [vmem:[%s5670_s1 + $0x3c8] ss:$16 sps:$4 sm:$0xff]  }
  0x40   :  { %2412 = vmatprep.subr.bf16.mxu0 %v3830_v3  ;;  %2658 = vmatprep.subr.bf16.mxu1 %v3833_v4  ;;  %v3923_v3 = vld [vmem:[%s5670_s1 + $0x3ec] ss:$16 sps:$4 sm:$0xff]   ;;  %v3918_v4 = vld [vmem:[%s5670_s1 + $0x3e0] ss:$16 sps:$4 sm:$0xff]  }
  0x42   :  { %2404 = vmatmul.mubr.bf16.vlgmr.msra.gmra.mrb[0].mxu0 %v33_v5  ;;  %2650 = vmatmul.mubr.bf16.vlgmr.msra.gmra.mrb[0].mxu1 %v33_v5  ;;  %v3921_v5 = vld [vmem:[%s5670_s1 + $0x3e8] ss:$16 sps:$4 sm:$0xff]  }
  0x43   :  { %2413 = vmatpush1.bf16.msra.mxu0 %v3828_v6  ;;  %2659 = vmatpush1.bf16.msra.mxu1 %v3831_v7  ;;  %v3926_v6 = vld [vmem:[%s5670_s1 + $0x404] ss:$16 sps:$4 sm:$0xff]  }
  0x44   :  { %2414 = vmatprep.subr.bf16.mxu0 %v3836_v8  ;;  %2660 = vmatprep.subr.bf16.mxu1 %v3839_v9  ;;  %v23_v7 = vld [vmem:[%s5671_s0 + $0x10] sm:$0xff]  ;;  %v3929_v8 = vld [vmem:[%s5670_s1 + $0x40c] ss:$16 sps:$4 sm:$0xff]  }
  0x45   :  { %2444 = vmatprep.mubr.bf16.mxu0 %v36_v32  ;;  %2690 = vmatprep.mubr.bf16.mxu1 %v36_v32  ;;  %v3924_v9 = vld [vmem:[%s5670_s1 + $0x400] ss:$16 sps:$4 sm:$0xff]  }
  0x46   :  { %v3954_v32 = vld [vmem:[%s5670_s1 + $0x4a0] ss:$16 sps:$4 sm:$0xff]  }
  0x47   :  { %2415 = vmatpush1.bf16.msra.mxu0 %v3834_v10  ;;  %2661 = vmatpush1.bf16.msra.mxu1 %v3837_v11  ;;  %v3927_v10 = vld [vmem:[%s5670_s1 + $0x408] ss:$16 sps:$4 sm:$0xff]   ;;  %v35_v11 = vpack.c.bf16 %v23_v7, %v23_v7  ;;  %v4019_v7 = vld [vmem:[%s5670_s1 + $0x5ec] ss:$16 sps:$4 sm:$0xff]  }
  0x48   :  { %2416 = vmatprep.subr.bf16.mxu0 %v3842_v12  ;;  %2662 = vmatprep.subr.bf16.mxu1 %v3845_v13  ;;  %v3932_v12 = vld [vmem:[%s5670_s1 + $0x424] ss:$16 sps:$4 sm:$0xff]   ;;  %v3935_v13 = vld [vmem:[%s5670_s1 + $0x42c] ss:$16 sps:$4 sm:$0xff]  }
  0x4b   :  { %2417 = vmatpush1.bf16.msra.mxu0 %v3840_v14  ;;  %2663 = vmatpush1.bf16.msra.mxu1 %v3843_v15  ;;  %v26_v14 = vld [vmem:[%s5671_s0 + $0x28] sm:$0xff] }
  0x4c   :  { %2418 = vmatprep.subr.bf16.mxu0 %v3848_v16  ;;  %2664 = vmatprep.subr.bf16.mxu1 %v3851_v17  ;;  %v38_v15 = vpack.c.bf16 %v26_v14, %v26_v14  ;;  %v3930_v16 = vld [vmem:[%s5670_s1 + $0x420] ss:$16 sps:$4 sm:$0xff]   ;;  %v3933_v17 = vld [vmem:[%s5670_s1 + $0x428] ss:$16 sps:$4 sm:$0xff]  }
  0x4d   :  { %v4023_v14 = vld [vmem:[%s5670_s1 + $0x608] ss:$16 sps:$4 sm:$0xff]  }
  0x4f   :  { %2419 = vmatpush1.bf16.msra.mxu0 %v3846_v18  ;;  %2665 = vmatpush1.bf16.msra.mxu1 %v3849_v19  ;;  %v3938_v18 = vld [vmem:[%s5670_s1 + $0x444] ss:$16 sps:$4 sm:$0xff]   ;;  %v3941_v19 = vld [vmem:[%s5670_s1 + $0x44c] ss:$16 sps:$4 sm:$0xff]  }
  0x50   :  { %2420 = vmatprep.subr.bf16.mxu0 %v3854_v20  ;;  %2666 = vmatprep.subr.bf16.mxu1 %v3857_v21  ;;  %v3936_v20 = vld [vmem:[%s5670_s1 + $0x440] ss:$16 sps:$4 sm:$0xff]   ;;  %v3939_v21 = vld [vmem:[%s5670_s1 + $0x448] ss:$16 sps:$4 sm:$0xff]  }
  0x53   :  { %2421 = vmatpush1.bf16.msra.mxu0 %v3852_v22  ;;  %2667 = vmatpush1.bf16.msra.mxu1 %v3855_v23  ;;  %v3944_v22 = vld [vmem:[%s5670_s1 + $0x464] ss:$16 sps:$4 sm:$0xff]   ;;  %v3947_v23 = vld [vmem:[%s5670_s1 + $0x46c] ss:$16 sps:$4 sm:$0xff]  }
  0x54   :  { %2422 = vmatprep.subr.bf16.mxu0 %v3860_v24  ;;  %2668 = vmatprep.subr.bf16.mxu1 %v3863_v25  ;;  %v3942_v24 = vld [vmem:[%s5670_s1 + $0x460] ss:$16 sps:$4 sm:$0xff]   ;;  %v3945_v25 = vld [vmem:[%s5670_s1 + $0x468] ss:$16 sps:$4 sm:$0xff]  }
  0x57   :  { %2423 = vmatpush1.bf16.msra.mxu0 %v3858_v26  ;;  %2669 = vmatpush1.bf16.msra.mxu1 %v3861_v27  ;;  %v3950_v26 = vld [vmem:[%s5670_s1 + $0x484] ss:$16 sps:$4 sm:$0xff]   ;;  %v3953_v27 = vld [vmem:[%s5670_s1 + $0x48c] ss:$16 sps:$4 sm:$0xff]  }
  0x58   :  { %2424 = vmatprep.subr.bf16.mxu0 %v3866_v28  ;;  %2670 = vmatprep.subr.bf16.mxu1 %v3869_v29  ;;  %v3948_v28 = vld [vmem:[%s5670_s1 + $0x480] ss:$16 sps:$4 sm:$0xff]   ;;  %v3951_v29 = vld [vmem:[%s5670_s1 + $0x488] ss:$16 sps:$4 sm:$0xff]  }
  0x5b   :  { %2425 = vmatpush1.bf16.msra.mxu0 %v3864_v31  ;;  %2671 = vmatpush1.bf16.msra.mxu1 %v3867_v33  ;;  %v3959_v31 = vld [vmem:[%s5670_s1 + $0x4ac] ss:$16 sps:$4 sm:$0xff]   ;;  %v3957_v33 = vld [vmem:[%s5670_s1 + $0x4a8] ss:$16 sps:$4 sm:$0xff]  }
  0x5c   :  { %2426 = vmatprep.subr.bf16.mxu0 %v3872_v34  ;;  %2672 = vmatprep.subr.bf16.mxu1 %v3875_v35  ;;  %v3962_v34 = vld [vmem:[%s5670_s1 + $0x4c4] ss:$16 sps:$4 sm:$0xff]   ;;  %v3965_v35 = vld [vmem:[%s5670_s1 + $0x4cc] ss:$16 sps:$4 sm:$0xff]  }
  0x5f   :  { %2427 = vmatpush1.bf16.msra.mxu0 %v3870_v36  ;;  %2673 = vmatpush1.bf16.msra.mxu1 %v3873_v37  ;;  %v3960_v36 = vld [vmem:[%s5670_s1 + $0x4c0] ss:$16 sps:$4 sm:$0xff]   ;;  %v3963_v37 = vld [vmem:[%s5670_s1 + $0x4c8] ss:$16 sps:$4 sm:$0xff]  }
  0x60   :  { %2428 = vmatprep.subr.bf16.mxu0 %v3878_v38  ;;  %2674 = vmatprep.subr.bf16.mxu1 %v3881_v39  ;;  %v3968_v38 = vld [vmem:[%s5670_s1 + $0x4e4] ss:$16 sps:$4 sm:$0xff]   ;;  %v3971_v39 = vld [vmem:[%s5670_s1 + $0x4ec] ss:$16 sps:$4 sm:$0xff]  }
  0x63   :  { %2429 = vmatpush1.bf16.msra.mxu0 %v3876_v40  ;;  %2675 = vmatpush1.bf16.msra.mxu1 %v3879_v41  ;;  %v3966_v40 = vld [vmem:[%s5670_s1 + $0x4e0] ss:$16 sps:$4 sm:$0xff]   ;;  %v3969_v41 = vld [vmem:[%s5670_s1 + $0x4e8] ss:$16 sps:$4 sm:$0xff]  }
  0x64   :  { %2430 = vmatprep.subr.bf16.mxu0 %v3884_v42  ;;  %2676 = vmatprep.subr.bf16.mxu1 %v3887_v43  ;;  %v3974_v42 = vld [vmem:[%s5670_s1 + $0x504] ss:$16 sps:$4 sm:$0xff]   ;;  %v3977_v43 = vld [vmem:[%s5670_s1 + $0x50c] ss:$16 sps:$4 sm:$0xff]  }
  0x67   :  { %2431 = vmatpush1.bf16.msra.mxu0 %v3882_v44  ;;  %2677 = vmatpush1.bf16.msra.mxu1 %v3885_v45  ;;  %v3972_v44 = vld [vmem:[%s5670_s1 + $0x500] ss:$16 sps:$4 sm:$0xff]   ;;  %v3975_v45 = vld [vmem:[%s5670_s1 + $0x508] ss:$16 sps:$4 sm:$0xff]  }
  0x68   :  { %2432 = vmatprep.subr.bf16.mxu0 %v3890_v46  ;;  %2678 = vmatprep.subr.bf16.mxu1 %v3893_v47  ;;  %v3980_v46 = vld [vmem:[%s5670_s1 + $0x524] ss:$16 sps:$4 sm:$0xff]   ;;  %v3983_v47 = vld [vmem:[%s5670_s1 + $0x52c] ss:$16 sps:$4 sm:$0xff]  }
  0x6b   :  { %2433 = vmatpush1.bf16.msra.mxu0 %v3888_v48  ;;  %2679 = vmatpush1.bf16.msra.mxu1 %v3891_v49  ;;  %v3978_v48 = vld [vmem:[%s5670_s1 + $0x520] ss:$16 sps:$4 sm:$0xff]   ;;  %v3981_v49 = vld [vmem:[%s5670_s1 + $0x528] ss:$16 sps:$4 sm:$0xff]  }
  0x6c   :  { %2434 = vmatprep.subr.bf16.mxu0 %v3896_v50  ;;  %2680 = vmatprep.subr.bf16.mxu1 %v3899_v51  ;;  %v3986_v50 = vld [vmem:[%s5670_s1 + $0x544] ss:$16 sps:$4 sm:$0xff]   ;;  %v3989_v51 = vld [vmem:[%s5670_s1 + $0x54c] ss:$16 sps:$4 sm:$0xff]  }
  0x6f   :  { %2435 = vmatpush1.bf16.msra.mxu0 %v3894_v52  ;;  %2681 = vmatpush1.bf16.msra.mxu1 %v3897_v53  ;;  %v3984_v52 = vld [vmem:[%s5670_s1 + $0x540] ss:$16 sps:$4 sm:$0xff]   ;;  %v3987_v53 = vld [vmem:[%s5670_s1 + $0x548] ss:$16 sps:$4 sm:$0xff]  }
  0x70   :  { %2436 = vmatprep.subr.bf16.mxu0 %v3902_v54  ;;  %2682 = vmatprep.subr.bf16.mxu1 %v3905_v55  ;;  %v3992_v54 = vld [vmem:[%s5670_s1 + $0x564] ss:$16 sps:$4 sm:$0xff]   ;;  %v3995_v55 = vld [vmem:[%s5670_s1 + $0x56c] ss:$16 sps:$4 sm:$0xff]  }
  0x73   :  { %2437 = vmatpush1.bf16.msra.mxu0 %v3900_v56  ;;  %2683 = vmatpush1.bf16.msra.mxu1 %v3903_v57  ;;  %v3990_v56 = vld [vmem:[%s5670_s1 + $0x560] ss:$16 sps:$4 sm:$0xff]   ;;  %v3993_v57 = vld [vmem:[%s5670_s1 + $0x568] ss:$16 sps:$4 sm:$0xff]  }
  0x74   :  { %2438 = vmatprep.subr.bf16.mxu0 %v3908_v58  ;;  %2684 = vmatprep.subr.bf16.mxu1 %v3911_v59  ;;  %v3998_v58 = vld [vmem:[%s5670_s1 + $0x584] ss:$16 sps:$4 sm:$0xff]   ;;  %v4001_v59 = vld [vmem:[%s5670_s1 + $0x58c] ss:$16 sps:$4 sm:$0xff]  }
  0x77   :  { %2439 = vmatpush1.bf16.msra.mxu0 %v3906_v60  ;;  %2685 = vmatpush1.bf16.msra.mxu1 %v3909_v61  ;;  %v3996_v60 = vld [vmem:[%s5670_s1 + $0x580] ss:$16 sps:$4 sm:$0xff]   ;;  %v3999_v61 = vld [vmem:[%s5670_s1 + $0x588] ss:$16 sps:$4 sm:$0xff]  }
  0x78   :  { %2440 = vmatprep.subr.bf16.mxu0 %v3914_v62  ;;  %2686 = vmatprep.subr.bf16.mxu1 %v3917_v63  ;;  %v4004_v62 = vld [vmem:[%s5670_s1 + $0x5a4] ss:$16 sps:$4 sm:$0xff]   ;;  %v4007_v63 = vld [vmem:[%s5670_s1 + $0x5ac] ss:$16 sps:$4 sm:$0xff]  }
  0x7b   :  { %2441 = vmatpush1.bf16.msra.mxu0 %v3912_v0  ;;  %2687 = vmatpush1.bf16.msra.mxu1 %v3915_v1  ;;  %v4002_v0 = vld [vmem:[%s5670_s1 + $0x5a0] ss:$16 sps:$4 sm:$0xff]   ;;  %v4005_v1 = vld [vmem:[%s5670_s1 + $0x5a8] ss:$16 sps:$4 sm:$0xff]  }
  0x7c   :  { %2442 = vmatprep.subr.bf16.mxu0 %v3920_v2  ;;  %2688 = vmatprep.subr.bf16.mxu1 %v3923_v3  ;;  %v4010_v2 = vld [vmem:[%s5670_s1 + $0x5c4] ss:$16 sps:$4 sm:$0xff]   ;;  %v4013_v3 = vld [vmem:[%s5670_s1 + $0x5cc] ss:$16 sps:$4 sm:$0xff]  }
  0x7f   :  { %2443 = vmatpush1.bf16.msra.mxu0 %v3918_v4  ;;  %2689 = vmatpush1.bf16.msra.mxu1 %v3921_v5  ;;  %v4008_v4 = vld [vmem:[%s5670_s1 + $0x5c0] ss:$16 sps:$4 sm:$0xff]   ;;  %v4011_v5 = vld [vmem:[%s5670_s1 + $0x5c8] ss:$16 sps:$4 sm:$0xff]  }
  0x80   :  { %2453 = vmatprep.subr.bf16.mxu0 %v3926_v6  ;;  %2699 = vmatprep.subr.bf16.mxu1 %v3929_v8  ;;  %v4016_v6 = vld [vmem:[%s5670_s1 + $0x5e4] ss:$16 sps:$4 sm:$0xff]   ;;  %v4014_v8 = vld [vmem:[%s5670_s1 + $0x5e0] ss:$16 sps:$4 sm:$0xff]  }
  0x82   :  { %2445 = vmatmul.mubr.bf16.vlgmr.msra.gmra.mrb[0].mxu0 %v35_v11  ;;  %2691 = vmatmul.mubr.bf16.vlgmr.msra.gmra.mrb[0].mxu1 %v35_v11  ;;  %v25_v11 = vld [vmem:[%s5671_s0 + $0x20] sm:$0xff] }
  0x83   :  { %2454 = vmatpush1.bf16.msra.mxu0 %v3924_v9  ;;  %2700 = vmatpush1.bf16.msra.mxu1 %v3927_v10  ;;  %v4017_v9 = vld [vmem:[%s5670_s1 + $0x5e8] ss:$16 sps:$4 sm:$0xff]   ;;  %v4022_v10 = vld [vmem:[%s5670_s1 + $0x604] ss:$16 sps:$4 sm:$0xff]  }
  0x84   :  { %2455 = vmatprep.subr.bf16.mxu0 %v3932_v12  ;;  %2701 = vmatprep.subr.bf16.mxu1 %v3935_v13  ;;  %v4025_v12 = vld [vmem:[%s5670_s1 + $0x60c] ss:$16 sps:$4 sm:$0xff]   ;;  %v4020_v13 = vld [vmem:[%s5670_s1 + $0x600] ss:$16 sps:$4 sm:$0xff]  }
  0x85   :  { %2485 = vmatprep.mubr.bf16.mxu0 %v38_v15  ;;  %2731 = vmatprep.mubr.bf16.mxu1 %v38_v15  ;;  %v37_v15 = vpack.c.bf16 %v25_v11, %v25_v11  ;;  %v4115_v11 = vld [vmem:[%s5670_s1 + $0x7ec] ss:$16 sps:$4 sm:$0xff]  }
  0x87   :  { %2456 = vmatpush1.bf16.msra.mxu0 %v3930_v16  ;;  %2702 = vmatpush1.bf16.msra.mxu1 %v3933_v17  ;;  %v28_v16 = vld [vmem:[%s5671_s0 + $0x38] sm:$0xff]  ;;  %v4028_v17 = vld [vmem:[%s5670_s1 + $0x624] ss:$16 sps:$4 sm:$0xff]  }
  0x88   :  { %2457 = vmatprep.subr.bf16.mxu0 %v3938_v18  ;;  %2703 = vmatprep.subr.bf16.mxu1 %v3941_v19  ;;  %v4031_v18 = vld [vmem:[%s5670_s1 + $0x62c] ss:$16 sps:$4 sm:$0xff]   ;;  %v40_v19 = vpack.c.bf16 %v28_v16, %v28_v16 }
  0x89   :  { %v4121_v16 = vld [vmem:[%s5670_s1 + $0x80c] ss:$16 sps:$4 sm:$0xff]  }
  0x8b   :  { %2458 = vmatpush1.bf16.msra.mxu0 %v3936_v20  ;;  %2704 = vmatpush1.bf16.msra.mxu1 %v3939_v21  ;;  %v4026_v20 = vld [vmem:[%s5670_s1 + $0x620] ss:$16 sps:$4 sm:$0xff]   ;;  %v4029_v21 = vld [vmem:[%s5670_s1 + $0x628] ss:$16 sps:$4 sm:$0xff]  }
  0x8c   :  { %2459 = vmatprep.subr.bf16.mxu0 %v3944_v22  ;;  %2705 = vmatprep.subr.bf16.mxu1 %v3947_v23  ;;  %v4034_v22 = vld [vmem:[%s5670_s1 + $0x644] ss:$16 sps:$4 sm:$0xff]   ;;  %v4037_v23 = vld [vmem:[%s5670_s1 + $0x64c] ss:$16 sps:$4 sm:$0xff]  }
  0x8f   :  { %2460 = vmatpush1.bf16.msra.mxu0 %v3942_v24  ;;  %2706 = vmatpush1.bf16.msra.mxu1 %v3945_v25  ;;  %v4032_v24 = vld [vmem:[%s5670_s1 + $0x640] ss:$16 sps:$4 sm:$0xff]   ;;  %v4035_v25 = vld [vmem:[%s5670_s1 + $0x648] ss:$16 sps:$4 sm:$0xff]  }
  0x90   :  { %2461 = vmatprep.subr.bf16.mxu0 %v3950_v26  ;;  %2707 = vmatprep.subr.bf16.mxu1 %v3953_v27  ;;  %v4040_v26 = vld [vmem:[%s5670_s1 + $0x664] ss:$16 sps:$4 sm:$0xff]   ;;  %v4043_v27 = vld [vmem:[%s5670_s1 + $0x66c] ss:$16 sps:$4 sm:$0xff]  }
  0x93   :  { %2462 = vmatpush1.bf16.msra.mxu0 %v3948_v28  ;;  %2708 = vmatpush1.bf16.msra.mxu1 %v3951_v29  ;;  %v4038_v28 = vld [vmem:[%s5670_s1 + $0x660] ss:$16 sps:$4 sm:$0xff]   ;;  %v4041_v29 = vld [vmem:[%s5670_s1 + $0x668] ss:$16 sps:$4 sm:$0xff]  }
  0x94   :  { %2463 = vmatprep.subr.bf16.mxu0 %v3956_v30  ;;  %2709 = vmatprep.subr.bf16.mxu1 %v3959_v31  ;;  %v4046_v30 = vld [vmem:[%s5670_s1 + $0x684] ss:$16 sps:$4 sm:$0xff]   ;;  %v4049_v31 = vld [vmem:[%s5670_s1 + $0x68c] ss:$16 sps:$4 sm:$0xff]  }
  0x97   :  { %2464 = vmatpush1.bf16.msra.mxu0 %v3954_v32  ;;  %2710 = vmatpush1.bf16.msra.mxu1 %v3957_v33  ;;  %v4044_v32 = vld [vmem:[%s5670_s1 + $0x680] ss:$16 sps:$4 sm:$0xff]   ;;  %v4047_v33 = vld [vmem:[%s5670_s1 + $0x688] ss:$16 sps:$4 sm:$0xff]  }
  0x98   :  { %2465 = vmatprep.subr.bf16.mxu0 %v3962_v34  ;;  %2711 = vmatprep.subr.bf16.mxu1 %v3965_v35  ;;  %v4052_v34 = vld [vmem:[%s5670_s1 + $0x6a4] ss:$16 sps:$4 sm:$0xff]   ;;  %v4055_v35 = vld [vmem:[%s5670_s1 + $0x6ac] ss:$16 sps:$4 sm:$0xff]  }
  0x9b   :  { %2466 = vmatpush1.bf16.msra.mxu0 %v3960_v36  ;;  %2712 = vmatpush1.bf16.msra.mxu1 %v3963_v37  ;;  %v4050_v36 = vld [vmem:[%s5670_s1 + $0x6a0] ss:$16 sps:$4 sm:$0xff]   ;;  %v4053_v37 = vld [vmem:[%s5670_s1 + $0x6a8] ss:$16 sps:$4 sm:$0xff]  }
  0x9c   :  { %2467 = vmatprep.subr.bf16.mxu0 %v3968_v38  ;;  %2713 = vmatprep.subr.bf16.mxu1 %v3971_v39  ;;  %v4058_v38 = vld [vmem:[%s5670_s1 + $0x6c4] ss:$16 sps:$4 sm:$0xff]   ;;  %v4061_v39 = vld [vmem:[%s5670_s1 + $0x6cc] ss:$16 sps:$4 sm:$0xff]  }
  0x9f   :  { %2468 = vmatpush1.bf16.msra.mxu0 %v3966_v40  ;;  %2714 = vmatpush1.bf16.msra.mxu1 %v3969_v41  ;;  %v4056_v40 = vld [vmem:[%s5670_s1 + $0x6c0] ss:$16 sps:$4 sm:$0xff]   ;;  %v4059_v41 = vld [vmem:[%s5670_s1 + $0x6c8] ss:$16 sps:$4 sm:$0xff]  }
  0xa0   :  { %2469 = vmatprep.subr.bf16.mxu0 %v3974_v42  ;;  %2715 = vmatprep.subr.bf16.mxu1 %v3977_v43  ;;  %v4064_v42 = vld [vmem:[%s5670_s1 + $0x6e4] ss:$16 sps:$4 sm:$0xff]   ;;  %v4067_v43 = vld [vmem:[%s5670_s1 + $0x6ec] ss:$16 sps:$4 sm:$0xff]  }
  0xa3   :  { %2470 = vmatpush1.bf16.msra.mxu0 %v3972_v44  ;;  %2716 = vmatpush1.bf16.msra.mxu1 %v3975_v45  ;;  %v4062_v44 = vld [vmem:[%s5670_s1 + $0x6e0] ss:$16 sps:$4 sm:$0xff]   ;;  %v4065_v45 = vld [vmem:[%s5670_s1 + $0x6e8] ss:$16 sps:$4 sm:$0xff]  }
  0xa4   :  { %2471 = vmatprep.subr.bf16.mxu0 %v3980_v46  ;;  %2717 = vmatprep.subr.bf16.mxu1 %v3983_v47  ;;  %v4070_v46 = vld [vmem:[%s5670_s1 + $0x704] ss:$16 sps:$4 sm:$0xff]   ;;  %v4073_v47 = vld [vmem:[%s5670_s1 + $0x70c] ss:$16 sps:$4 sm:$0xff]  }
  0xa7   :  { %2472 = vmatpush1.bf16.msra.mxu0 %v3978_v48  ;;  %2718 = vmatpush1.bf16.msra.mxu1 %v3981_v49  ;;  %v4068_v48 = vld [vmem:[%s5670_s1 + $0x700] ss:$16 sps:$4 sm:$0xff]   ;;  %v4071_v49 = vld [vmem:[%s5670_s1 + $0x708] ss:$16 sps:$4 sm:$0xff]  }
  0xa8   :  { %2473 = vmatprep.subr.bf16.mxu0 %v3986_v50  ;;  %2719 = vmatprep.subr.bf16.mxu1 %v3989_v51  ;;  %v4076_v50 = vld [vmem:[%s5670_s1 + $0x724] ss:$16 sps:$4 sm:$0xff]   ;;  %v4079_v51 = vld [vmem:[%s5670_s1 + $0x72c] ss:$16 sps:$4 sm:$0xff]  }
  0xab   :  { %2474 = vmatpush1.bf16.msra.mxu0 %v3984_v52  ;;  %2720 = vmatpush1.bf16.msra.mxu1 %v3987_v53  ;;  %v4074_v52 = vld [vmem:[%s5670_s1 + $0x720] ss:$16 sps:$4 sm:$0xff]   ;;  %v4077_v53 = vld [vmem:[%s5670_s1 + $0x728] ss:$16 sps:$4 sm:$0xff]  }
  0xac   :  { %2475 = vmatprep.subr.bf16.mxu0 %v3992_v54  ;;  %2721 = vmatprep.subr.bf16.mxu1 %v3995_v55  ;;  %v4082_v54 = vld [vmem:[%s5670_s1 + $0x744] ss:$16 sps:$4 sm:$0xff]   ;;  %v4085_v55 = vld [vmem:[%s5670_s1 + $0x74c] ss:$16 sps:$4 sm:$0xff]  }
  0xaf   :  { %2476 = vmatpush1.bf16.msra.mxu0 %v3990_v56  ;;  %2722 = vmatpush1.bf16.msra.mxu1 %v3993_v57  ;;  %v4080_v56 = vld [vmem:[%s5670_s1 + $0x740] ss:$16 sps:$4 sm:$0xff]   ;;  %v4083_v57 = vld [vmem:[%s5670_s1 + $0x748] ss:$16 sps:$4 sm:$0xff]  }
  0xb0   :  { %2477 = vmatprep.subr.bf16.mxu0 %v3998_v58  ;;  %2723 = vmatprep.subr.bf16.mxu1 %v4001_v59  ;;  %v4088_v58 = vld [vmem:[%s5670_s1 + $0x764] ss:$16 sps:$4 sm:$0xff]   ;;  %v4091_v59 = vld [vmem:[%s5670_s1 + $0x76c] ss:$16 sps:$4 sm:$0xff]  }
  0xb3   :  { %2478 = vmatpush1.bf16.msra.mxu0 %v3996_v60  ;;  %2724 = vmatpush1.bf16.msra.mxu1 %v3999_v61  ;;  %v4086_v60 = vld [vmem:[%s5670_s1 + $0x760] ss:$16 sps:$4 sm:$0xff]   ;;  %v4089_v61 = vld [vmem:[%s5670_s1 + $0x768] ss:$16 sps:$4 sm:$0xff]  }
  0xb4   :  { %2479 = vmatprep.subr.bf16.mxu0 %v4004_v62  ;;  %2725 = vmatprep.subr.bf16.mxu1 %v4007_v63  ;;  %v4094_v62 = vld [vmem:[%s5670_s1 + $0x784] ss:$16 sps:$4 sm:$0xff]   ;;  %v4097_v63 = vld [vmem:[%s5670_s1 + $0x78c] ss:$16 sps:$4 sm:$0xff]  }
  0xb7   :  { %2480 = vmatpush1.bf16.msra.mxu0 %v4002_v0  ;;  %2726 = vmatpush1.bf16.msra.mxu1 %v4005_v1  ;;  %v4092_v0 = vld [vmem:[%s5670_s1 + $0x780] ss:$16 sps:$4 sm:$0xff]   ;;  %v4095_v1 = vld [vmem:[%s5670_s1 + $0x788] ss:$16 sps:$4 sm:$0xff]  }
  0xb8   :  { %2481 = vmatprep.subr.bf16.mxu0 %v4010_v2  ;;  %2727 = vmatprep.subr.bf16.mxu1 %v4013_v3  ;;  %v4100_v2 = vld [vmem:[%s5670_s1 + $0x7a4] ss:$16 sps:$4 sm:$0xff]   ;;  %v4103_v3 = vld [vmem:[%s5670_s1 + $0x7ac] ss:$16 sps:$4 sm:$0xff]  }
  0xbb   :  { %2482 = vmatpush1.bf16.msra.mxu0 %v4008_v4  ;;  %2728 = vmatpush1.bf16.msra.mxu1 %v4011_v5  ;;  %v4098_v4 = vld [vmem:[%s5670_s1 + $0x7a0] ss:$16 sps:$4 sm:$0xff]   ;;  %v4101_v5 = vld [vmem:[%s5670_s1 + $0x7a8] ss:$16 sps:$4 sm:$0xff]  }
  0xbc   :  { %2483 = vmatprep.subr.bf16.mxu0 %v4016_v6  ;;  %2729 = vmatprep.subr.bf16.mxu1 %v4019_v7  ;;  %v4106_v6 = vld [vmem:[%s5670_s1 + $0x7c4] ss:$16 sps:$4 sm:$0xff]   ;;  %v4109_v7 = vld [vmem:[%s5670_s1 + $0x7cc] ss:$16 sps:$4 sm:$0xff]  }
  0xbf   :  { %2484 = vmatpush1.bf16.msra.mxu0 %v4014_v8  ;;  %2730 = vmatpush1.bf16.msra.mxu1 %v4017_v9  ;;  %v4104_v8 = vld [vmem:[%s5670_s1 + $0x7c0] ss:$16 sps:$4 sm:$0xff]   ;;  %v4107_v9 = vld [vmem:[%s5670_s1 + $0x7c8] ss:$16 sps:$4 sm:$0xff]  }
  0xc0   :  { %2494 = vmatprep.subr.bf16.mxu0 %v4022_v10  ;;  %2740 = vmatprep.subr.bf16.mxu1 %v4025_v12  ;;  %v4112_v10 = vld [vmem:[%s5670_s1 + $0x7e4] ss:$16 sps:$4 sm:$0xff]   ;;  %v4110_v12 = vld [vmem:[%s5670_s1 + $0x7e0] ss:$16 sps:$4 sm:$0xff]  }
  0xc2   :  { %2486 = vmatmul.mubr.bf16.vlgmr.msra.gmra.mrb[0].mxu0 %v37_v15  ;;  %2732 = vmatmul.mubr.bf16.vlgmr.msra.gmra.mrb[0].mxu1 %v37_v15  ;;  %v4118_v15 = vld [vmem:[%s5670_s1 + $0x804] ss:$16 sps:$4 sm:$0xff]  }
  0xc3   :  { %2495 = vmatpush1.bf16.msra.mxu0 %v4020_v13  ;;  %2741 = vmatpush1.bf16.msra.mxu1 %v4023_v14  ;;  %v4113_v13 = vld [vmem:[%s5670_s1 + $0x7e8] ss:$16 sps:$4 sm:$0xff]   ;;  %v27_v14 = vld [vmem:[%s5671_s0 + $0x30] sm:$0xff] }
  0xc4   :  { %2496 = vmatprep.subr.bf16.mxu0 %v4028_v17  ;;  %2742 = vmatprep.subr.bf16.mxu1 %v4031_v18  ;;  %v39_v17 = vpack.c.bf16 %v27_v14, %v27_v14  ;;  %v30_v18 = vld [vmem:[%s5671_s0 + $0x48] sm:$0xff]  ;;  %v4208_v14 = vld [vmem:[%s5670_s1 + $0x9e4] ss:$16 sps:$4 sm:$0xff]  }
  0xc5   :  { %2526 = vmatprep.mubr.bf16.mxu0 %v40_v19  ;;  %2772 = vmatprep.mubr.bf16.mxu1 %v40_v19  ;;  %v4116_v19 = vld [vmem:[%s5670_s1 + $0x800] ss:$16 sps:$4 sm:$0xff]  }
  0xc7   :  { %2497 = vmatpush1.bf16.msra.mxu0 %v4026_v20  ;;  %2743 = vmatpush1.bf16.msra.mxu1 %v4029_v21  ;;  %v4119_v20 = vld [vmem:[%s5670_s1 + $0x808] ss:$16 sps:$4 sm:$0xff]   ;;  %v4124_v21 = vld [vmem:[%s5670_s1 + $0x824] ss:$16 sps:$4 sm:$0xff]  }
  0xc8   :  { %2498 = vmatprep.subr.bf16.mxu0 %v4034_v22  ;;  %2744 = vmatprep.subr.bf16.mxu1 %v4037_v23  ;;  %v4127_v22 = vld [vmem:[%s5670_s1 + $0x82c] ss:$16 sps:$4 sm:$0xff]   ;;  %v42_v23 = vpack.c.bf16 %v30_v18, %v30_v18  ;;  %v29_v18 = vld [vmem:[%s5671_s0 + $0x40] sm:$0xff] }
  0xcb   :  { %2499 = vmatpush1.bf16.msra.mxu0 %v4032_v24  ;;  %2745 = vmatpush1.bf16.msra.mxu1 %v4035_v25  ;;  %v4122_v24 = vld [vmem:[%s5670_s1 + $0x820] ss:$16 sps:$4 sm:$0xff]   ;;  %v4125_v25 = vld [vmem:[%s5670_s1 + $0x828] ss:$16 sps:$4 sm:$0xff]  }
  0xcc   :  { %2500 = vmatprep.subr.bf16.mxu0 %v4040_v26  ;;  %2746 = vmatprep.subr.bf16.mxu1 %v4043_v27  ;;  %v4130_v26 = vld [vmem:[%s5670_s1 + $0x844] ss:$16 sps:$4 sm:$0xff]   ;;  %v4133_v27 = vld [vmem:[%s5670_s1 + $0x84c] ss:$16 sps:$4 sm:$0xff]  }
  0xcf   :  { %2501 = vmatpush1.bf16.msra.mxu0 %v4038_v28  ;;  %2747 = vmatpush1.bf16.msra.mxu1 %v4041_v29  ;;  %v4128_v28 = vld [vmem:[%s5670_s1 + $0x840] ss:$16 sps:$4 sm:$0xff]   ;;  %v4131_v29 = vld [vmem:[%s5670_s1 + $0x848] ss:$16 sps:$4 sm:$0xff]  }
  0xd0   :  { %2502 = vmatprep.subr.bf16.mxu0 %v4046_v30  ;;  %2748 = vmatprep.subr.bf16.mxu1 %v4049_v31  ;;  %v4136_v30 = vld [vmem:[%s5670_s1 + $0x864] ss:$16 sps:$4 sm:$0xff]   ;;  %v4139_v31 = vld [vmem:[%s5670_s1 + $0x86c] ss:$16 sps:$4 sm:$0xff]  }
  0xd3   :  { %2503 = vmatpush1.bf16.msra.mxu0 %v4044_v32  ;;  %2749 = vmatpush1.bf16.msra.mxu1 %v4047_v33  ;;  %v4134_v32 = vld [vmem:[%s5670_s1 + $0x860] ss:$16 sps:$4 sm:$0xff]   ;;  %v4137_v33 = vld [vmem:[%s5670_s1 + $0x868] ss:$16 sps:$4 sm:$0xff]  }
  0xd4   :  { %2504 = vmatprep.subr.bf16.mxu0 %v4052_v34  ;;  %2750 = vmatprep.subr.bf16.mxu1 %v4055_v35  ;;  %v4142_v34 = vld [vmem:[%s5670_s1 + $0x884] ss:$16 sps:$4 sm:$0xff]   ;;  %v4145_v35 = vld [vmem:[%s5670_s1 + $0x88c] ss:$16 sps:$4 sm:$0xff]  }
  0xd7   :  { %2505 = vmatpush1.bf16.msra.mxu0 %v4050_v36  ;;  %2751 = vmatpush1.bf16.msra.mxu1 %v4053_v37  ;;  %v4140_v36 = vld [vmem:[%s5670_s1 + $0x880] ss:$16 sps:$4 sm:$0xff]   ;;  %v4143_v37 = vld [vmem:[%s5670_s1 + $0x888] ss:$16 sps:$4 sm:$0xff]  }
  0xd8   :  { %2506 = vmatprep.subr.bf16.mxu0 %v4058_v38  ;;  %2752 = vmatprep.subr.bf16.mxu1 %v4061_v39  ;;  %v4148_v38 = vld [vmem:[%s5670_s1 + $0x8a4] ss:$16 sps:$4 sm:$0xff]   ;;  %v4151_v39 = vld [vmem:[%s5670_s1 + $0x8ac] ss:$16 sps:$4 sm:$0xff]  }
  0xdb   :  { %2507 = vmatpush1.bf16.msra.mxu0 %v4056_v40  ;;  %2753 = vmatpush1.bf16.msra.mxu1 %v4059_v41  ;;  %v4146_v40 = vld [vmem:[%s5670_s1 + $0x8a0] ss:$16 sps:$4 sm:$0xff]   ;;  %v4149_v41 = vld [vmem:[%s5670_s1 + $0x8a8] ss:$16 sps:$4 sm:$0xff]  }
  0xdc   :  { %2508 = vmatprep.subr.bf16.mxu0 %v4064_v42  ;;  %2754 = vmatprep.subr.bf16.mxu1 %v4067_v43  ;;  %v4154_v42 = vld [vmem:[%s5670_s1 + $0x8c4] ss:$16 sps:$4 sm:$0xff]   ;;  %v4157_v43 = vld [vmem:[%s5670_s1 + $0x8cc] ss:$16 sps:$4 sm:$0xff]  }
  0xdf   :  { %2509 = vmatpush1.bf16.msra.mxu0 %v4062_v44  ;;  %2755 = vmatpush1.bf16.msra.mxu1 %v4065_v45  ;;  %v4152_v44 = vld [vmem:[%s5670_s1 + $0x8c0] ss:$16 sps:$4 sm:$0xff]   ;;  %v4155_v45 = vld [vmem:[%s5670_s1 + $0x8c8] ss:$16 sps:$4 sm:$0xff]  }
  0xe0   :  { %2510 = vmatprep.subr.bf16.mxu0 %v4070_v46  ;;  %2756 = vmatprep.subr.bf16.mxu1 %v4073_v47  ;;  %v4160_v46 = vld [vmem:[%s5670_s1 + $0x8e4] ss:$16 sps:$4 sm:$0xff]   ;;  %v4163_v47 = vld [vmem:[%s5670_s1 + $0x8ec] ss:$16 sps:$4 sm:$0xff]  }
  0xe3   :  { %2511 = vmatpush1.bf16.msra.mxu0 %v4068_v48  ;;  %2757 = vmatpush1.bf16.msra.mxu1 %v4071_v49  ;;  %v4158_v48 = vld [vmem:[%s5670_s1 + $0x8e0] ss:$16 sps:$4 sm:$0xff]   ;;  %v4161_v49 = vld [vmem:[%s5670_s1 + $0x8e8] ss:$16 sps:$4 sm:$0xff]  }
  0xe4   :  { %2512 = vmatprep.subr.bf16.mxu0 %v4076_v50  ;;  %2758 = vmatprep.subr.bf16.mxu1 %v4079_v51  ;;  %v4166_v50 = vld [vmem:[%s5670_s1 + $0x904] ss:$16 sps:$4 sm:$0xff]   ;;  %v4169_v51 = vld [vmem:[%s5670_s1 + $0x90c] ss:$16 sps:$4 sm:$0xff]  }
  0xe7   :  { %2513 = vmatpush1.bf16.msra.mxu0 %v4074_v52  ;;  %2759 = vmatpush1.bf16.msra.mxu1 %v4077_v53  ;;  %v4164_v52 = vld [vmem:[%s5670_s1 + $0x900] ss:$16 sps:$4 sm:$0xff]   ;;  %v4167_v53 = vld [vmem:[%s5670_s1 + $0x908] ss:$16 sps:$4 sm:$0xff]  }
  0xe8   :  { %2514 = vmatprep.subr.bf16.mxu0 %v4082_v54  ;;  %2760 = vmatprep.subr.bf16.mxu1 %v4085_v55  ;;  %v4172_v54 = vld [vmem:[%s5670_s1 + $0x924] ss:$16 sps:$4 sm:$0xff]   ;;  %v4175_v55 = vld [vmem:[%s5670_s1 + $0x92c] ss:$16 sps:$4 sm:$0xff]  }
  0xeb   :  { %2515 = vmatpush1.bf16.msra.mxu0 %v4080_v56  ;;  %2761 = vmatpush1.bf16.msra.mxu1 %v4083_v57  ;;  %v4170_v56 = vld [vmem:[%s5670_s1 + $0x920] ss:$16 sps:$4 sm:$0xff]   ;;  %v4173_v57 = vld [vmem:[%s5670_s1 + $0x928] ss:$16 sps:$4 sm:$0xff]  }
  0xec   :  { %2516 = vmatprep.subr.bf16.mxu0 %v4088_v58  ;;  %2762 = vmatprep.subr.bf16.mxu1 %v4091_v59  ;;  %v4178_v58 = vld [vmem:[%s5670_s1 + $0x944] ss:$16 sps:$4 sm:$0xff]   ;;  %v4181_v59 = vld [vmem:[%s5670_s1 + $0x94c] ss:$16 sps:$4 sm:$0xff]  }
  0xef   :  { %2517 = vmatpush1.bf16.msra.mxu0 %v4086_v60  ;;  %2763 = vmatpush1.bf16.msra.mxu1 %v4089_v61  ;;  %v4176_v60 = vld [vmem:[%s5670_s1 + $0x940] ss:$16 sps:$4 sm:$0xff]   ;;  %v4179_v61 = vld [vmem:[%s5670_s1 + $0x948] ss:$16 sps:$4 sm:$0xff]  }
  0xf0   :  { %2518 = vmatprep.subr.bf16.mxu0 %v4094_v62  ;;  %2764 = vmatprep.subr.bf16.mxu1 %v4097_v63  ;;  %v4184_v62 = vld [vmem:[%s5670_s1 + $0x964] ss:$16 sps:$4 sm:$0xff]   ;;  %v4187_v63 = vld [vmem:[%s5670_s1 + $0x96c] ss:$16 sps:$4 sm:$0xff]  }
  0xf3   :  { %2519 = vmatpush1.bf16.msra.mxu0 %v4092_v0  ;;  %2765 = vmatpush1.bf16.msra.mxu1 %v4095_v1  ;;  %v4182_v0 = vld [vmem:[%s5670_s1 + $0x960] ss:$16 sps:$4 sm:$0xff]   ;;  %v4185_v1 = vld [vmem:[%s5670_s1 + $0x968] ss:$16 sps:$4 sm:$0xff]  }
  0xf4   :  { %2520 = vmatprep.subr.bf16.mxu0 %v4100_v2  ;;  %2766 = vmatprep.subr.bf16.mxu1 %v4103_v3  ;;  %v4190_v2 = vld [vmem:[%s5670_s1 + $0x984] ss:$16 sps:$4 sm:$0xff]   ;;  %v4193_v3 = vld [vmem:[%s5670_s1 + $0x98c] ss:$16 sps:$4 sm:$0xff]  }
  0xf7   :  { %2521 = vmatpush1.bf16.msra.mxu0 %v4098_v4  ;;  %2767 = vmatpush1.bf16.msra.mxu1 %v4101_v5  ;;  %v4188_v4 = vld [vmem:[%s5670_s1 + $0x980] ss:$16 sps:$4 sm:$0xff]   ;;  %v4191_v5 = vld [vmem:[%s5670_s1 + $0x988] ss:$16 sps:$4 sm:$0xff]  }
  0xf8   :  { %2522 = vmatprep.subr.bf16.mxu0 %v4106_v6  ;;  %2768 = vmatprep.subr.bf16.mxu1 %v4109_v7  ;;  %v4196_v6 = vld [vmem:[%s5670_s1 + $0x9a4] ss:$16 sps:$4 sm:$0xff]   ;;  %v4199_v7 = vld [vmem:[%s5670_s1 + $0x9ac] ss:$16 sps:$4 sm:$0xff]  }
  0xfb   :  { %2523 = vmatpush1.bf16.msra.mxu0 %v4104_v8  ;;  %2769 = vmatpush1.bf16.msra.mxu1 %v4107_v9  ;;  %v4194_v8 = vld [vmem:[%s5670_s1 + $0x9a0] ss:$16 sps:$4 sm:$0xff]   ;;  %v4197_v9 = vld [vmem:[%s5670_s1 + $0x9a8] ss:$16 sps:$4 sm:$0xff]  }
  0xfc   :  { %2524 = vmatprep.subr.bf16.mxu0 %v4112_v10  ;;  %2770 = vmatprep.subr.bf16.mxu1 %v4115_v11  ;;  %v4202_v10 = vld [vmem:[%s5670_s1 + $0x9c4] ss:$16 sps:$4 sm:$0xff]   ;;  %v4205_v11 = vld [vmem:[%s5670_s1 + $0x9cc] ss:$16 sps:$4 sm:$0xff]  }
  0xff   :  { %2525 = vmatpush1.bf16.msra.mxu0 %v4110_v12  ;;  %2771 = vmatpush1.bf16.msra.mxu1 %v4113_v13  ;;  %v4200_v12 = vld [vmem:[%s5670_s1 + $0x9c0] ss:$16 sps:$4 sm:$0xff]   ;;  %v4203_v13 = vld [vmem:[%s5670_s1 + $0x9c8] ss:$16 sps:$4 sm:$0xff]  }
 0x100   :  { %2535 = vmatprep.subr.bf16.mxu0 %v4118_v15  ;;  %2781 = vmatprep.subr.bf16.mxu1 %v4121_v16  ;;  %v4211_v15 = vld [vmem:[%s5670_s1 + $0x9ec] ss:$16 sps:$4 sm:$0xff]   ;;  %v4206_v16 = vld [vmem:[%s5670_s1 + $0x9e0] ss:$16 sps:$4 sm:$0xff]  }
 0x102   :  { %2527 = vmatmul.mubr.bf16.vlgmr.msra.gmra.mrb[0].mxu0 %v39_v17  ;;  %2773 = vmatmul.mubr.bf16.vlgmr.msra.gmra.mrb[0].mxu1 %v39_v17  ;;  %v4209_v17 = vld [vmem:[%s5670_s1 + $0x9e8] ss:$16 sps:$4 sm:$0xff]  }
 0x103   :  { %2536 = vmatpush1.bf16.msra.mxu0 %v4116_v19  ;;  %2782 = vmatpush1.bf16.msra.mxu1 %v4119_v20  ;;  %v4214_v19 = vld [vmem:[%s5670_s1 + $0xa04] ss:$16 sps:$4 sm:$0xff]   ;;  %v4217_v20 = vld [vmem:[%s5670_s1 + $0xa0c] ss:$16 sps:$4 sm:$0xff]  }
 0x104   :  { %2537 = vmatprep.subr.bf16.mxu0 %v4124_v21  ;;  %2783 = vmatprep.subr.bf16.mxu1 %v4127_v22  ;;  %v41_v21 = vpack.c.bf16 %v29_v18, %v29_v18  ;;  %v32_v22 = vld [vmem:[%s5671_s0 + $0x58] sm:$0xff]  ;;  %v4304_v18 = vld [vmem:[%s5670_s1 + $0xbe4] ss:$16 sps:$4 sm:$0xff]  }
 0x105   :  { %2567 = vmatprep.mubr.bf16.mxu0 %v42_v23  ;;  %2813 = vmatprep.mubr.bf16.mxu1 %v42_v23  ;;  %v4212_v23 = vld [vmem:[%s5670_s1 + $0xa00] ss:$16 sps:$4 sm:$0xff]  }
 0x107   :  { %2538 = vmatpush1.bf16.msra.mxu0 %v4122_v24  ;;  %2784 = vmatpush1.bf16.msra.mxu1 %v4125_v25  ;;  %v4215_v24 = vld [vmem:[%s5670_s1 + $0xa08] ss:$16 sps:$4 sm:$0xff]   ;;  %v4220_v25 = vld [vmem:[%s5670_s1 + $0xa24] ss:$16 sps:$4 sm:$0xff]  }
 0x108   :  { %2539 = vmatprep.subr.bf16.mxu0 %v4130_v26  ;;  %2785 = vmatprep.subr.bf16.mxu1 %v4133_v27  ;;  %v4223_v26 = vld [vmem:[%s5670_s1 + $0xa2c] ss:$16 sps:$4 sm:$0xff]   ;;  %v44_v27 = vpack.c.bf16 %v32_v22, %v32_v22  ;;  %v31_v22 = vld [vmem:[%s5671_s0 + $0x50] sm:$0xff] }
 0x10b   :  { %2540 = vmatpush1.bf16.msra.mxu0 %v4128_v28  ;;  %2786 = vmatpush1.bf16.msra.mxu1 %v4131_v29  ;;  %v4218_v28 = vld [vmem:[%s5670_s1 + $0xa20] ss:$16 sps:$4 sm:$0xff]   ;;  %v4221_v29 = vld [vmem:[%s5670_s1 + $0xa28] ss:$16 sps:$4 sm:$0xff]  }
 0x10c   :  { %2541 = vmatprep.subr.bf16.mxu0 %v4136_v30  ;;  %2787 = vmatprep.subr.bf16.mxu1 %v4139_v31  ;;  %v4226_v30 = vld [vmem:[%s5670_s1 + $0xa44] ss:$16 sps:$4 sm:$0xff]   ;;  %v4229_v31 = vld [vmem:[%s5670_s1 + $0xa4c] ss:$16 sps:$4 sm:$0xff]  }
 0x10f   :  { %2542 = vmatpush1.bf16.msra.mxu0 %v4134_v32  ;;  %2788 = vmatpush1.bf16.msra.mxu1 %v4137_v33  ;;  %v4224_v32 = vld [vmem:[%s5670_s1 + $0xa40] ss:$16 sps:$4 sm:$0xff]   ;;  %v4227_v33 = vld [vmem:[%s5670_s1 + $0xa48] ss:$16 sps:$4 sm:$0xff]  }
 0x110   :  { %2543 = vmatprep.subr.bf16.mxu0 %v4142_v34  ;;  %2789 = vmatprep.subr.bf16.mxu1 %v4145_v35  ;;  %v4232_v34 = vld [vmem:[%s5670_s1 + $0xa64] ss:$16 sps:$4 sm:$0xff]   ;;  %v4235_v35 = vld [vmem:[%s5670_s1 + $0xa6c] ss:$16 sps:$4 sm:$0xff]  }
 0x113   :  { %2544 = vmatpush1.bf16.msra.mxu0 %v4140_v36  ;;  %2790 = vmatpush1.bf16.msra.mxu1 %v4143_v37  ;;  %v4230_v36 = vld [vmem:[%s5670_s1 + $0xa60] ss:$16 sps:$4 sm:$0xff]   ;;  %v4233_v37 = vld [vmem:[%s5670_s1 + $0xa68] ss:$16 sps:$4 sm:$0xff]  }
 0x114   :  { %2545 = vmatprep.subr.bf16.mxu0 %v4148_v38  ;;  %2791 = vmatprep.subr.bf16.mxu1 %v4151_v39  ;;  %v4238_v38 = vld [vmem:[%s5670_s1 + $0xa84] ss:$16 sps:$4 sm:$0xff]   ;;  %v4241_v39 = vld [vmem:[%s5670_s1 + $0xa8c] ss:$16 sps:$4 sm:$0xff]  }
 0x117   :  { %2546 = vmatpush1.bf16.msra.mxu0 %v4146_v40  ;;  %2792 = vmatpush1.bf16.msra.mxu1 %v4149_v41  ;;  %v4236_v40 = vld [vmem:[%s5670_s1 + $0xa80] ss:$16 sps:$4 sm:$0xff]   ;;  %v4239_v41 = vld [vmem:[%s5670_s1 + $0xa88] ss:$16 sps:$4 sm:$0xff]  }
 0x118   :  { %2547 = vmatprep.subr.bf16.mxu0 %v4154_v42  ;;  %2793 = vmatprep.subr.bf16.mxu1 %v4157_v43  ;;  %v4244_v42 = vld [vmem:[%s5670_s1 + $0xaa4] ss:$16 sps:$4 sm:$0xff]   ;;  %v4247_v43 = vld [vmem:[%s5670_s1 + $0xaac] ss:$16 sps:$4 sm:$0xff]  }
 0x11b   :  { %2548 = vmatpush1.bf16.msra.mxu0 %v4152_v44  ;;  %2794 = vmatpush1.bf16.msra.mxu1 %v4155_v45  ;;  %v4242_v44 = vld [vmem:[%s5670_s1 + $0xaa0] ss:$16 sps:$4 sm:$0xff]   ;;  %v4245_v45 = vld [vmem:[%s5670_s1 + $0xaa8] ss:$16 sps:$4 sm:$0xff]  }
 0x11c   :  { %2549 = vmatprep.subr.bf16.mxu0 %v4160_v46  ;;  %2795 = vmatprep.subr.bf16.mxu1 %v4163_v47  ;;  %v4250_v46 = vld [vmem:[%s5670_s1 + $0xac4] ss:$16 sps:$4 sm:$0xff]   ;;  %v4253_v47 = vld [vmem:[%s5670_s1 + $0xacc] ss:$16 sps:$4 sm:$0xff]  }
 0x11f   :  { %2550 = vmatpush1.bf16.msra.mxu0 %v4158_v48  ;;  %2796 = vmatpush1.bf16.msra.mxu1 %v4161_v49  ;;  %v4248_v48 = vld [vmem:[%s5670_s1 + $0xac0] ss:$16 sps:$4 sm:$0xff]   ;;  %v4251_v49 = vld [vmem:[%s5670_s1 + $0xac8] ss:$16 sps:$4 sm:$0xff]  }
 0x120   :  { %2551 = vmatprep.subr.bf16.mxu0 %v4166_v50  ;;  %2797 = vmatprep.subr.bf16.mxu1 %v4169_v51  ;;  %v4256_v50 = vld [vmem:[%s5670_s1 + $0xae4] ss:$16 sps:$4 sm:$0xff]   ;;  %v4259_v51 = vld [vmem:[%s5670_s1 + $0xaec] ss:$16 sps:$4 sm:$0xff]  }
 0x123   :  { %2552 = vmatpush1.bf16.msra.mxu0 %v4164_v52  ;;  %2798 = vmatpush1.bf16.msra.mxu1 %v4167_v53  ;;  %v4254_v52 = vld [vmem:[%s5670_s1 + $0xae0] ss:$16 sps:$4 sm:$0xff]   ;;  %v4257_v53 = vld [vmem:[%s5670_s1 + $0xae8] ss:$16 sps:$4 sm:$0xff]  }
 0x124   :  { %2553 = vmatprep.subr.bf16.mxu0 %v4172_v54  ;;  %2799 = vmatprep.subr.bf16.mxu1 %v4175_v55  ;;  %v4262_v54 = vld [vmem:[%s5670_s1 + $0xb04] ss:$16 sps:$4 sm:$0xff]   ;;  %v4265_v55 = vld [vmem:[%s5670_s1 + $0xb0c] ss:$16 sps:$4 sm:$0xff]  }
 0x127   :  { %2554 = vmatpush1.bf16.msra.mxu0 %v4170_v56  ;;  %2800 = vmatpush1.bf16.msra.mxu1 %v4173_v57  ;;  %v4260_v56 = vld [vmem:[%s5670_s1 + $0xb00] ss:$16 sps:$4 sm:$0xff]   ;;  %v4263_v57 = vld [vmem:[%s5670_s1 + $0xb08] ss:$16 sps:$4 sm:$0xff]  }
 0x128   :  { %2555 = vmatprep.subr.bf16.mxu0 %v4178_v58  ;;  %2801 = vmatprep.subr.bf16.mxu1 %v4181_v59  ;;  %v4268_v58 = vld [vmem:[%s5670_s1 + $0xb24] ss:$16 sps:$4 sm:$0xff]   ;;  %v4271_v59 = vld [vmem:[%s5670_s1 + $0xb2c] ss:$16 sps:$4 sm:$0xff]  }
 0x12b   :  { %2556 = vmatpush1.bf16.msra.mxu0 %v4176_v60  ;;  %2802 = vmatpush1.bf16.msra.mxu1 %v4179_v61  ;;  %v4266_v60 = vld [vmem:[%s5670_s1 + $0xb20] ss:$16 sps:$4 sm:$0xff]   ;;  %v4269_v61 = vld [vmem:[%s5670_s1 + $0xb28] ss:$16 sps:$4 sm:$0xff]  }
 0x12c   :  { %2557 = vmatprep.subr.bf16.mxu0 %v4184_v62  ;;  %2803 = vmatprep.subr.bf16.mxu1 %v4187_v63  ;;  %v4274_v62 = vld [vmem:[%s5670_s1 + $0xb44] ss:$16 sps:$4 sm:$0xff]   ;;  %v4277_v63 = vld [vmem:[%s5670_s1 + $0xb4c] ss:$16 sps:$4 sm:$0xff]  }
 0x12f   :  { %2558 = vmatpush1.bf16.msra.mxu0 %v4182_v0  ;;  %2804 = vmatpush1.bf16.msra.mxu1 %v4185_v1  ;;  %v4272_v0 = vld [vmem:[%s5670_s1 + $0xb40] ss:$16 sps:$4 sm:$0xff]   ;;  %v4275_v1 = vld [vmem:[%s5670_s1 + $0xb48] ss:$16 sps:$4 sm:$0xff]  }
 0x130   :  { %2559 = vmatprep.subr.bf16.mxu0 %v4190_v2  ;;  %2805 = vmatprep.subr.bf16.mxu1 %v4193_v3  ;;  %v4280_v2 = vld [vmem:[%s5670_s1 + $0xb64] ss:$16 sps:$4 sm:$0xff]   ;;  %v4283_v3 = vld [vmem:[%s5670_s1 + $0xb6c] ss:$16 sps:$4 sm:$0xff]  }
 0x133   :  { %2560 = vmatpush1.bf16.msra.mxu0 %v4188_v4  ;;  %2806 = vmatpush1.bf16.msra.mxu1 %v4191_v5  ;;  %v4278_v4 = vld [vmem:[%s5670_s1 + $0xb60] ss:$16 sps:$4 sm:$0xff]   ;;  %v4281_v5 = vld [vmem:[%s5670_s1 + $0xb68] ss:$16 sps:$4 sm:$0xff]  }
 0x134   :  { %2561 = vmatprep.subr.bf16.mxu0 %v4196_v6  ;;  %2807 = vmatprep.subr.bf16.mxu1 %v4199_v7  ;;  %v4286_v6 = vld [vmem:[%s5670_s1 + $0xb84] ss:$16 sps:$4 sm:$0xff]   ;;  %v4289_v7 = vld [vmem:[%s5670_s1 + $0xb8c] ss:$16 sps:$4 sm:$0xff]  }
 0x137   :  { %2562 = vmatpush1.bf16.msra.mxu0 %v4194_v8  ;;  %2808 = vmatpush1.bf16.msra.mxu1 %v4197_v9  ;;  %v4284_v8 = vld [vmem:[%s5670_s1 + $0xb80] ss:$16 sps:$4 sm:$0xff]   ;;  %v4287_v9 = vld [vmem:[%s5670_s1 + $0xb88] ss:$16 sps:$4 sm:$0xff]  }
 0x138   :  { %2563 = vmatprep.subr.bf16.mxu0 %v4202_v10  ;;  %2809 = vmatprep.subr.bf16.mxu1 %v4205_v11  ;;  %v4292_v10 = vld [vmem:[%s5670_s1 + $0xba4] ss:$16 sps:$4 sm:$0xff]   ;;  %v4295_v11 = vld [vmem:[%s5670_s1 + $0xbac] ss:$16 sps:$4 sm:$0xff]  }
 0x13b   :  { %2564 = vmatpush1.bf16.msra.mxu0 %v4200_v12  ;;  %2810 = vmatpush1.bf16.msra.mxu1 %v4203_v13  ;;  %v4290_v12 = vld [vmem:[%s5670_s1 + $0xba0] ss:$16 sps:$4 sm:$0xff]   ;;  %v4293_v13 = vld [vmem:[%s5670_s1 + $0xba8] ss:$16 sps:$4 sm:$0xff]  }
 0x13c   :  { %2565 = vmatprep.subr.bf16.mxu0 %v4208_v14  ;;  %2811 = vmatprep.subr.bf16.mxu1 %v4211_v15  ;;  %v4298_v14 = vld [vmem:[%s5670_s1 + $0xbc4] ss:$16 sps:$4 sm:$0xff]   ;;  %v4301_v15 = vld [vmem:[%s5670_s1 + $0xbcc] ss:$16 sps:$4 sm:$0xff]  }
 0x13f   :  { %2566 = vmatpush1.bf16.msra.mxu0 %v4206_v16  ;;  %2812 = vmatpush1.bf16.msra.mxu1 %v4209_v17  ;;  %v4296_v16 = vld [vmem:[%s5670_s1 + $0xbc0] ss:$16 sps:$4 sm:$0xff]   ;;  %v4299_v17 = vld [vmem:[%s5670_s1 + $0xbc8] ss:$16 sps:$4 sm:$0xff]  }
 0x140   :  { %2576 = vmatprep.subr.bf16.mxu0 %v4214_v19  ;;  %2822 = vmatprep.subr.bf16.mxu1 %v4217_v20  ;;  %v4307_v19 = vld [vmem:[%s5670_s1 + $0xbec] ss:$16 sps:$4 sm:$0xff]   ;;  %v4302_v20 = vld [vmem:[%s5670_s1 + $0xbe0] ss:$16 sps:$4 sm:$0xff]  }
 0x142   :  { %2568 = vmatmul.mubr.bf16.vlgmr.msra.gmra.mrb[0].mxu0 %v41_v21  ;;  %2814 = vmatmul.mubr.bf16.vlgmr.msra.gmra.mrb[0].mxu1 %v41_v21  ;;  %v4305_v21 = vld [vmem:[%s5670_s1 + $0xbe8] ss:$16 sps:$4 sm:$0xff]  }
 0x143   :  { %2577 = vmatpush1.bf16.msra.mxu0 %v4212_v23  ;;  %2823 = vmatpush1.bf16.msra.mxu1 %v4215_v24  ;;  %v4308_v23 = vld [vmem:[%s5672_s3 + $0x40] sm:$0xff]  }
 0x144   :  { %2578 = vmatprep.subr.bf16.mxu0 %v4220_v25  ;;  %2824 = vmatprep.subr.bf16.mxu1 %v4223_v26  ;;  %v4309_v24 = vld [vmem:[%s5672_s3 + $0xc0] sm:$0xff]   ;;  %v43_v25 = vpack.c.bf16 %v31_v22, %v31_v22 }
 0x145   :  { %2608 = vmatprep.mubr.bf16.mxu0 %v44_v27  ;;  %2854 = vmatprep.mubr.bf16.mxu1 %v44_v27  ;;  %v4310_v26 = vld [vmem:[%s5672_s3] sm:$0xff]  }
 0x146   :  { %v4311_v27 = vld [vmem:[%s5672_s3 + $0x80] sm:$0xff]  }
 0x147   :  { %2579 = vmatpush1.bf16.msra.mxu0 %v4218_v28  ;;  %2825 = vmatpush1.bf16.msra.mxu1 %v4221_v29  ;;  %v4312_v28 = vld [vmem:[%s5672_s3 + $0x48] sm:$0xff]  }
 0x148   :  { %2580 = vmatprep.subr.bf16.mxu0 %v4226_v30  ;;  %2826 = vmatprep.subr.bf16.mxu1 %v4229_v31  ;;  %v4313_v29 = vld [vmem:[%s5672_s3 + $0xc8] sm:$0xff]  }
 0x149   :  { %v4314_v30 = vld [vmem:[%s5672_s3 + $0x8] sm:$0xff]  }
 0x14a   :  { %v4315_v31 = vld [vmem:[%s5672_s3 + $0x88] sm:$0xff]  }
 0x14b   :  { %2581 = vmatpush1.bf16.msra.mxu0 %v4224_v32  ;;  %2827 = vmatpush1.bf16.msra.mxu1 %v4227_v33  ;;  %v4316_v32 = vld [vmem:[%s5672_s3 + $0x50] sm:$0xff]  }
 0x14c   :  { %2582 = vmatprep.subr.bf16.mxu0 %v4232_v34  ;;  %2828 = vmatprep.subr.bf16.mxu1 %v4235_v35  ;;  %v4317_v33 = vld [vmem:[%s5672_s3 + $0xd0] sm:$0xff]  }
 0x14d   :  { %v4318_v34 = vld [vmem:[%s5672_s3 + $0x10] sm:$0xff]  }
 0x14e   :  { %v4319_v35 = vld [vmem:[%s5672_s3 + $0x90] sm:$0xff]  }
 0x14f   :  { %2583 = vmatpush1.bf16.msra.mxu0 %v4230_v36  ;;  %2829 = vmatpush1.bf16.msra.mxu1 %v4233_v37  ;;  %v4320_v36 = vld [vmem:[%s5672_s3 + $0x58] sm:$0xff]  }
 0x150   :  { %2584 = vmatprep.subr.bf16.mxu0 %v4238_v38  ;;  %2830 = vmatprep.subr.bf16.mxu1 %v4241_v39  ;;  %v4321_v37 = vld [vmem:[%s5672_s3 + $0xd8] sm:$0xff]  }
 0x151   :  { %v4322_v38 = vld [vmem:[%s5672_s3 + $0x18] sm:$0xff]  }
 0x152   :  { %v4323_v39 = vld [vmem:[%s5672_s3 + $0x98] sm:$0xff]  }
 0x153   :  { %2585 = vmatpush1.bf16.msra.mxu0 %v4236_v40  ;;  %2831 = vmatpush1.bf16.msra.mxu1 %v4239_v41  ;;  %v4324_v40 = vld [vmem:[%s5672_s3 + $0x60] sm:$0xff]  }
 0x154   :  { %2586 = vmatprep.subr.bf16.mxu0 %v4244_v42  ;;  %2832 = vmatprep.subr.bf16.mxu1 %v4247_v43  ;;  %v4325_v41 = vld [vmem:[%s5672_s3 + $0xe0] sm:$0xff]  }
 0x155   :  { %v4326_v42 = vld [vmem:[%s5672_s3 + $0x20] sm:$0xff]  }
 0x156   :  { %v4327_v43 = vld [vmem:[%s5672_s3 + $0xa0] sm:$0xff]  }
 0x157   :  { %2587 = vmatpush1.bf16.msra.mxu0 %v4242_v44  ;;  %2833 = vmatpush1.bf16.msra.mxu1 %v4245_v45  ;;  %v4328_v44 = vld [vmem:[%s5672_s3 + $0x68] sm:$0xff]  }
 0x158   :  { %2588 = vmatprep.subr.bf16.mxu0 %v4250_v46  ;;  %2834 = vmatprep.subr.bf16.mxu1 %v4253_v47  ;;  %v4329_v45 = vld [vmem:[%s5672_s3 + $0xe8] sm:$0xff]  }
 0x159   :  { %v4330_v46 = vld [vmem:[%s5672_s3 + $0x28] sm:$0xff]  }
 0x15a   :  { %v4331_v47 = vld [vmem:[%s5672_s3 + $0xa8] sm:$0xff]  }
 0x15b   :  { %2589 = vmatpush1.bf16.msra.mxu0 %v4248_v48  ;;  %2835 = vmatpush1.bf16.msra.mxu1 %v4251_v49  ;;  %v4332_v48 = vld [vmem:[%s5672_s3 + $0x70] sm:$0xff]  }
 0x15c   :  { %2590 = vmatprep.subr.bf16.mxu0 %v4256_v50  ;;  %2836 = vmatprep.subr.bf16.mxu1 %v4259_v51  ;;  %v4333_v49 = vld [vmem:[%s5672_s3 + $0xf0] sm:$0xff]  }
 0x15d   :  { %v4334_v50 = vld [vmem:[%s5672_s3 + $0x30] sm:$0xff]  }
 0x15e   :  { %v4335_v51 = vld [vmem:[%s5672_s3 + $0xb0] sm:$0xff]  }
 0x15f   :  { %2591 = vmatpush1.bf16.msra.mxu0 %v4254_v52  ;;  %2837 = vmatpush1.bf16.msra.mxu1 %v4257_v53  ;;  %v4336_v52 = vld [vmem:[%s5672_s3 + $0x78] sm:$0xff]  }
 0x160   :  { %2592 = vmatprep.subr.bf16.mxu0 %v4262_v54  ;;  %2838 = vmatprep.subr.bf16.mxu1 %v4265_v55  ;;  %v4337_v53 = vld [vmem:[%s5672_s3 + $0xf8] sm:$0xff]  }
 0x161   :  { %v4338_v54 = vld [vmem:[%s5672_s3 + $0x38] sm:$0xff]  }
 0x162   :  { %v4339_v55 = vld [vmem:[%s5672_s3 + $0xb8] sm:$0xff]  }
 0x163   :  { %2593 = vmatpush1.bf16.msra.mxu0 %v4260_v56  ;;  %2839 = vmatpush1.bf16.msra.mxu1 %v4263_v57  ;;  %v431_v56 = vlaneseq }
 0x164   :  { %2594 = vmatprep.subr.bf16.mxu0 %v4268_v58  ;;  %2840 = vmatprep.subr.bf16.mxu1 %v4271_v59 }
 0x165   :  { %v432_v57 = vshrl.u32 %v431_v56, 7 }
 0x167   :  { %2595 = vmatpush1.bf16.msra.mxu0 %v4266_v60  ;;  %2841 = vmatpush1.bf16.msra.mxu1 %v4269_v61  ;;  %v433_v58 = vsub.s32 0, %v432_v57  ;;  %v441_v59 = vsub.s32 2, %v432_v57  ;;  %v429_v60 = vld [vmem:[%s5673_s2] sm:$0xf]  ;;  %v437_v61 = vsub.s32 1, %v432_v57 }
 0x168   :  { %2596 = vmatprep.subr.bf16.mxu0 %v4274_v62  ;;  %2842 = vmatprep.subr.bf16.mxu1 %v4277_v63  ;;  %v445_v62 = vsub.s32 3, %v432_v57 }
 0x169   :  { %v434_v63 = vrot.slane %v429_v60, %v433_v58 }
 0x16b   :  { %2597 = vmatpush1.bf16.msra.mxu0 %v4272_v0  ;;  %2843 = vmatpush1.bf16.msra.mxu1 %v4275_v1  ;;  %v442_v0 = vrot.slane %v429_v60, %v441_v59  ;;  %v438_v1 = vrot.slane %v429_v60, %v437_v61 }
 0x16c   :  { %2598 = vmatprep.subr.bf16.mxu0 %v4280_v2  ;;  %2844 = vmatprep.subr.bf16.mxu1 %v4283_v3  ;;  %v446_v2 = vrot.slane %v429_v60, %v445_v62 }
 0x16f   :  { %2599 = vmatpush1.bf16.msra.mxu0 %v4278_v4  ;;  %2845 = vmatpush1.bf16.msra.mxu1 %v4281_v5 }
 0x170   :  { %2600 = vmatprep.subr.bf16.mxu0 %v4286_v6  ;;  %2846 = vmatprep.subr.bf16.mxu1 %v4289_v7 }
 0x173   :  { %2601 = vmatpush1.bf16.msra.mxu0 %v4284_v8  ;;  %2847 = vmatpush1.bf16.msra.mxu1 %v4287_v9 }
 0x174   :  { %2602 = vmatprep.subr.bf16.mxu0 %v4292_v10  ;;  %2848 = vmatprep.subr.bf16.mxu1 %v4295_v11 }
 0x177   :  { %2603 = vmatpush1.bf16.msra.mxu0 %v4290_v12  ;;  %2849 = vmatpush1.bf16.msra.mxu1 %v4293_v13 }
 0x178   :  { %2604 = vmatprep.subr.bf16.mxu0 %v4298_v14  ;;  %2850 = vmatprep.subr.bf16.mxu1 %v4301_v15 }
 0x17b   :  { %2605 = vmatpush1.bf16.msra.mxu0 %v4296_v16  ;;  %2851 = vmatpush1.bf16.msra.mxu1 %v4299_v17 }
 0x17c   :  { %2606 = vmatprep.subr.bf16.mxu0 %v4304_v18  ;;  %2852 = vmatprep.subr.bf16.mxu1 %v4307_v19 }
 0x17f   :  { %2607 = vmatpush1.bf16.msra.mxu0 %v4302_v20  ;;  %2853 = vmatpush1.bf16.msra.mxu1 %v4305_v21  ;;  %v3611_v21 = vld [vmem:[%s5674_s4] ss:$0 sm:$0xff] }
 0x180   :  { %3644 = vmatprep.subr.bf16.mxu0 %v4308_v23  ;;  %3666 = vmatprep.subr.bf16.mxu1 %v4309_v24 }
 0x182   :  { %2609 = vmatmul.mubr.bf16.vlgmr.msra.gmra.mrb[0].mxu0 %v43_v25  ;;  %2855 = vmatmul.mubr.bf16.vlgmr.msra.gmra.mrb[0].mxu1 %v43_v25 }
 0x183   :  { %3645 = vmatpush3.bf16.msra.mxu0 %v4310_v26  ;;  %3667 = vmatpush3.bf16.msra.mxu1 %v4311_v27 }
 0x184   :  { %3646 = vmatprep.subr.bf16.mxu0 %v4312_v28  ;;  %3668 = vmatprep.subr.bf16.mxu1 %v4313_v29 }
 0x187   :  { %3647 = vmatpush3.bf16.msra.mxu0 %v4314_v30  ;;  %3669 = vmatpush3.bf16.msra.mxu1 %v4315_v31 }
 0x188   :  { %3648 = vmatprep.subr.bf16.mxu0 %v4316_v32  ;;  %3670 = vmatprep.subr.bf16.mxu1 %v4317_v33 }
 0x18b   :  { %3649 = vmatpush3.bf16.msra.mxu0 %v4318_v34  ;;  %3671 = vmatpush3.bf16.msra.mxu1 %v4319_v35 }
 0x18c   :  { %3650 = vmatprep.subr.bf16.mxu0 %v4320_v36  ;;  %3672 = vmatprep.subr.bf16.mxu1 %v4321_v37 }
 0x18f   :  { %3651 = vmatpush3.bf16.msra.mxu0 %v4322_v38  ;;  %3673 = vmatpush3.bf16.msra.mxu1 %v4323_v39 }
 0x190   :  { %3652 = vmatprep.subr.bf16.mxu0 %v4324_v40  ;;  %3674 = vmatprep.subr.bf16.mxu1 %v4325_v41 }
 0x193   :  { %3653 = vmatpush3.bf16.msra.mxu0 %v4326_v42  ;;  %3675 = vmatpush3.bf16.msra.mxu1 %v4327_v43 }
 0x194   :  { %3654 = vmatprep.subr.bf16.mxu0 %v4328_v44  ;;  %3676 = vmatprep.subr.bf16.mxu1 %v4329_v45 }
 0x197   :  { %3655 = vmatpush3.bf16.msra.mxu0 %v4330_v46  ;;  %3677 = vmatpush3.bf16.msra.mxu1 %v4331_v47 }
 0x198   :  { %3656 = vmatprep.subr.bf16.mxu0 %v4332_v48  ;;  %3678 = vmatprep.subr.bf16.mxu1 %v4333_v49 }
 0x19b   :  { %3657 = vmatpush3.bf16.msra.mxu0 %v4334_v50  ;;  %3679 = vmatpush3.bf16.msra.mxu1 %v4335_v51 }
 0x19c   :  { %3658 = vmatprep.subr.bf16.mxu0 %v4336_v52  ;;  %3680 = vmatprep.subr.bf16.mxu1 %v4337_v53 }
 0x19f   :  { %3659 = vmatpush3.bf16.msra.mxu0 %v4338_v54  ;;  %3681 = vmatpush3.bf16.msra.mxu1 %v4339_v55 }
 0x255   :  { %v2610_v3 = vpop.f32.mrb[0].mxu0  ;;  %v2856_v4 = vpop.f32.mrb[0].mxu1 }
 0x256   :  { %v3688_v5 = vadd.f32 %v2610_v3, %v434_v63  ;;  %v3690_v6 = vadd.f32 %v2856_v4, %v442_v0  ;;  %v2612_v7 = vpop.f32.mrb[1].mxu0  ;;  %v2858_v8 = vpop.f32.mrb[1].mxu1 }
 0x257   :  { %v3689_v9 = vadd.f32 %v2612_v7, %v438_v1  ;;  %v3691_v10 = vadd.f32 %v2858_v8, %v446_v2  ;;  %v2614_v11 = vpop.f32.mrb[2].mxu0  ;;  %v2860_v12 = vpop.f32.mrb[2].mxu1 }
 0x258   :  { %v2615_v13 = vpop.f32.mrb[3].mxu0  ;;  %v2861_v14 = vpop.f32.mrb[3].mxu1  ;;  %v2863_v17 = vpack.c.bf16 %v3688_v5, %v3688_v5  ;;  %v2865_v18 = vpack.c.bf16 %v3690_v6, %v3690_v6 }
 0x259   :  { %v2864_v15 = vpack.c.bf16 %v3689_v9, %v3689_v9  ;;  %v2866_v16 = vpack.c.bf16 %v3691_v10, %v3691_v10 }
 0x25b   :  { %3162 = vmatprep.mubr.bf16.mxu0 %v2864_v15  ;;  %3202 = vmatprep.mubr.bf16.mxu1 %v2866_v16 }
 0x25c   :  { %3163 = vmatmul.mubr.bf16.vlgmr.msra.gmra.mrb[4].mxu0 %v2863_v17  ;;  %3203 = vmatmul.mubr.bf16.vlgmr.msra.gmra.mrb[4].mxu1 %v2865_v18 }
 0x32f   :  { %v3660_v19 = vpop.f32.mrb[4].mxu0  ;;  %v3682_v20 = vpop.f32.mrb[4].mxu1 }
 0x330   :  { %v3661_v22 = vpop.f32.mrb[5].mxu0  ;;  %v3683_v23 = vpop.f32.mrb[5].mxu1 }
 0x331   :  { %v3662_v24 = vadd.f32 %v3661_v22, %v3660_v19  ;;  %v3684_v25 = vadd.f32 %v3683_v23, %v3682_v20  ;;  %v3663_v26 = vpop.f32.mrb[6].mxu0  ;;  %v3685_v27 = vpop.f32.mrb[6].mxu1 }
 0x332   :  { %v3664_v28 = vpop.f32.mrb[7].mxu0  ;;  %v3686_v29 = vpop.f32.mrb[7].mxu1 }
 0x333   :  { %v3165_v30 = vadd.f32 %v3662_v24, %v3611_v21 }
 0x335   :  { %v3205_v31 = vadd.f32 %v3684_v25, %v3165_v30 }
 0x337   :  { %v3211_v32 = vsel %vm3210_vm0, %v3205_v31, -inf }
 0x338   :  { %3212 = vmax.xlane.f32.xlu0 %v3211_v32 }
 0x3c5   :  { %v3213_v33 = vpop.xlane.xlu0 %3212 }
 0x3c6   :  { %v3214_v34 = vsub.f32 %v3205_v31, %v3213_v33 }
 0x3c8   :  { %v3215_v35 = vmul.f32 1.442695, %v3214_v34 }
 0x3ca   :  { %4340 = vpow2.f32 %v3215_v35 }
 0x3d4   :  { %v4341_v36 = vpop.eup %4340 }
 0x3d5   :  { %v3217_v37 = vsel %vm3210_vm0, %v4341_v36, 0.0 }
 0x3d6   :  { %3218 = vadd.xlane.f32.xlu0 %v3217_v37 }
 0x463   :  { %v3219_v38 = vpop.xlane.xlu0 %3218 }
 0x464   :  { %4342 = vrcp.f32 %v3219_v38 }
 0x46e   :  { %v4343_v39 = vpop.eup %4342 }
 0x46f   :  { %v3221_v40 = vmul.f32 %v4343_v39, %v4341_v36 }
 0x471   :  { %3222 = vst.msk [vmem:[%s5675_s5] sm:$0xff] %vm3210_vm0, %v3221_v40 }

</bundles_post_ra>
